<compile_context>
chip_gen: v7x
topology: tpu7x:2x2x1
jax: 0.10.0
libtpu: 0.0.40
codegen_flags: <defaults>
</compile_context>

<pallas_src>
import math
from functools import partial

import jax
import jax.numpy as jnp
from jax.experimental import pallas as pl
from jax.experimental.pallas import tpu as pltpu

HIDDEN = 256    # hidden_list = [256, 256, 256, 256]
D_PAD = 128     # MLP input dim (9C+2 = 38) padded lane-dense


# ----------------------------------------------------------------------------
# Pallas kernel: fused 5-layer MLP. bf16 MXU inputs, f32 accumulation.
# Hidden-layer bias+ReLU run in `act_dtype` (bf16 on v6e/v7x, f32 on v5*).
# ----------------------------------------------------------------------------
def _mlp_kernel(x_ref, w1, b1, w2, b2, w3, b3, w4, b4, w5, b5, o_ref, *,
                act_dtype):
    def hidden(h, w_ref, b_ref):
        # MXU matmul with f32 accumulation; cast immediately, then bias + ReLU
        # in act_dtype; back to bf16 for the next MXU pass.
        y = jnp.dot(h, w_ref[...], preferred_element_type=jnp.float32)
        y = jnp.maximum(y.astype(act_dtype) + b_ref[...], 0)
        return y.astype(jnp.bfloat16)

    h = hidden(x_ref[...], w1, b1)
    h = hidden(h, w2, b2)
    h = hidden(h, w3, b3)
    h = hidden(h, w4, b4)
    # Final layer: f32 accumulate + f32 bias; narrow (TM, C) lane-masked store.
    o_ref[...] = jnp.dot(h, w5[...], preferred_element_type=jnp.float32) + b5[...]


def _epilogue_dtype():
    """bf16 epilogue on chips with a bf16 VALU (v6e/v7x); f32 on v5*."""
    try:
        kind = jax.devices()[0].device_kind.lower()
    except Exception:
        kind = ""
    return jnp.float32 if "v5" in kind else jnp.bfloat16


def _prep_params(params, act_dtype):
    """Cast weights to bf16; pad w1 rows to D_PAD; hidden biases -> act_dtype."""
    (w1, b1), (w2, b2), (w3, b3), (w4, b4), (w5, b5) = params
    D = w1.shape[0]
    w1p = jnp.zeros((D_PAD, w1.shape[1]), jnp.bfloat16).at[:D, :].set(
        w1.astype(jnp.bfloat16))
    return (
        (w1p, b1.astype(act_dtype)),
        (w2.astype(jnp.bfloat16), b2.astype(act_dtype)),
        (w3.astype(jnp.bfloat16), b3.astype(act_dtype)),
        (w4.astype(jnp.bfloat16), b4.astype(act_dtype)),
        (w5.astype(jnp.bfloat16), b5.astype(jnp.float32)),
    )


def _choose_tm(n_rows):
    # Largest tile amortizes the per-step pipeline overhead; keep >= 2 grid
    # steps when possible so v7x's two TensorCores both get work.
    for tm in (1024, 512, 256):
        if n_rows >= 2 * tm:
            return tm
    return 256


def mlp_pallas(x, prepped):
    """x: (N, D_PAD) bf16, already lane-padded; returns (N, C) f32."""
    N, d_pad = x.shape
    assert d_pad == D_PAD
    C = prepped[-1][0].shape[1]
    act_dtype = prepped[0][1].dtype

    tm = _choose_tm(N)
    n_pad = (-N) % tm
    Np = N + n_pad
    xp = jnp.pad(x, ((0, n_pad), (0, 0))) if n_pad else x

    flat_args = []
    in_specs = [pl.BlockSpec((tm, D_PAD), lambda i: (i, 0))]
    for wgt, bias in prepped:
        flat_args += [wgt, bias]
        # Constant index_map -> weights/biases stay resident across the grid.
        in_specs.append(pl.BlockSpec(wgt.shape, lambda i: (0, 0)))
        in_specs.append(pl.BlockSpec(bias.shape, lambda i: (0, 0)))

    flops = 2 * Np * (D_PAD * HIDDEN + 3 * HIDDEN * HIDDEN + HIDDEN * C)
    param_bytes = sum(int(a.size) * a.dtype.itemsize for a in flat_args)
    cost = pl.CostEstimate(
        flops=flops,
        transcendentals=0,
        bytes_accessed=Np * D_PAD * 2 + Np * C * 4 + param_bytes,
    )

    out = pl.pallas_call(
        partial(_mlp_kernel, act_dtype=act_dtype),
        out_shape=jax.ShapeDtypeStruct((Np, C), jnp.float32),
        grid=(Np // tm,),
        in_specs=in_specs,
        out_specs=pl.BlockSpec((tm, C), lambda i: (i, 0)),
        compiler_params=pltpu.CompilerParams(
            dimension_semantics=("parallel",),
            vmem_limit_bytes=32 * 1024 * 1024,
        ),
        cost_estimate=cost,
    )(xp, *flat_args)
    return out[:N] if n_pad else out


# ----------------------------------------------------------------------------
# Glue (pure JAX): make_coord, 3x3 unfold, nearest grid_sample, rearranges.
# ----------------------------------------------------------------------------
def make_coord(shape):
    seqs = []
    for n in shape:
        r = 1.0 / n
        seqs.append(-1.0 + r + 2.0 * r * jnp.arange(n, dtype=jnp.float32))
    grid = jnp.stack(jnp.meshgrid(*seqs, indexing="ij"), axis=-1)
    return grid.reshape(-1, len(shape))


def unfold3x3(feat):
    """F.unfold(feat, 3, padding=1).view(B, C*9, H, W) — (c, kh, kw) order."""
    B, C, H, W = feat.shape
    p = jnp.pad(feat, ((0, 0), (0, 0), (1, 1), (1, 1)))
    patches = [p[:, :, ki:ki + H, kj:kj + W] for ki in range(3) for kj in range(3)]
    return jnp.stack(patches, axis=2).reshape(B, C * 9, H, W)


def _nearest_idx(g, size):
    # grid_sample nearest, align_corners=False.  Coords are pre-clamped to
    # (-1+1e-6, 1-1e-6) so the index is always in range (zeros-padding branch
    # never triggers); clip kept only as a numerical guard.
    ix = ((g + 1.0) * size - 1.0) / 2.0
    idx = jnp.rint(ix).astype(jnp.int32)          # half-to-even, like nearbyint
    return jnp.clip(idx, 0, size - 1)


def query_epi(epi, patchsize, ang_factor, prepped):
    """epi: (B, C, V, W) -> (B, C, ang_factor, patchsize)."""
    B, C, V, W = epi.shape
    feat = unfold3x3(epi)                                    # (B, 9C, V, W)

    coord = make_coord((ang_factor, patchsize))              # (Q, 2)
    coord_c = jnp.clip(coord, -1.0 + 1e-6, 1.0 - 1e-6)
    iy = _nearest_idx(coord_c[:, 0], V)                      # coord[:,0] -> dim -2 (V)
    ix = _nearest_idx(coord_c[:, 1], W)                      # coord[:,1] -> dim -1 (W)

    q_feat = jnp.transpose(feat[:, :, iy, ix], (0, 2, 1))    # (B, Q, 9C)

    fy = -1.0 + (2.0 * iy.astype(jnp.float32) + 1.0) / V
    fx = -1.0 + (2.0 * ix.astype(jnp.float32) + 1.0) / W
    q_coord = jnp.stack([fy, fx], axis=-1)                   # (Q, 2)
    rel = (coord - q_coord) * jnp.array([V, W], jnp.float32)  # (Q, 2)

    Q = ang_factor * patchsize
    D = 9 * C + 2
    # Fused pad+cast: build the lane-dense (B, Q, 128) bf16 MLP input slab in
    # one concatenate (no separate f32 slab + zero-pad round trip in HBM).
    inp = jnp.concatenate(
        [q_feat.astype(jnp.bfloat16),
         jnp.broadcast_to(rel.astype(jnp.bfloat16), (B, Q, 2)),
         jnp.zeros((B, Q, D_PAD - D), jnp.bfloat16)],
        axis=-1)

    pred = mlp_pallas(inp.reshape(B * Q, D_PAD), prepped)    # (B*Q, C) f32
    pred = pred.reshape(B, Q, C)
    # local_ensemble=False => single term, area/tot_area == 1
    return jnp.transpose(pred, (0, 2, 1)).reshape(B, C, ang_factor, patchsize)


def epi_feature_rebuild_forward(x, patchsize, ang_factor, params):
    """x: (b, c, u, v, h, w) f32 -> (b, c, AF, AF, patchsize, patchsize)."""
    b, c, u, v, h, w = x.shape
    prepped = _prep_params(params, _epilogue_dtype())        # prep once, use twice
    # 'b c u v h w -> (b u h) c v w'
    epi_h = jnp.transpose(x, (0, 2, 4, 1, 3, 5)).reshape(b * u * h, c, v, w)
    hor = query_epi(epi_h, patchsize, ang_factor, prepped)    # (b*u*h, c, AF, PS)
    # '(b u h) c v w -> b c u v h w'
    x2 = hor.reshape(b, u, h, c, ang_factor, patchsize).transpose(0, 3, 1, 4, 2, 5)
    b2, c2, u2, v2, h2, w2 = x2.shape
    # 'b c u v h w -> (b v w) c u h'
    epi_v = jnp.transpose(x2, (0, 3, 5, 1, 2, 4)).reshape(b * v2 * w2, c, u2, h2)
    ver = query_epi(epi_v, patchsize, ang_factor, prepped)    # (b*v*w, c, AF, PS)
    # '(b v w) c u h -> b c u v h w'
    out = ver.reshape(b, v2, w2, c, ang_factor, patchsize).transpose(0, 3, 4, 1, 5, 2)
    return out


def init_mlp_params(key, in_dim, hidden_list, out_dim):
    """Deterministic init matching nn.Linear default (U(-1/sqrt(fan_in), ..))."""
    dims = [in_dim] + list(hidden_list) + [out_dim]
    params = []
    for i in range(len(dims) - 1):
        key, kw, kb = jax.random.split(key, 3)
        bound = 1.0 / math.sqrt(dims[i])
        wgt = jax.random.uniform(kw, (dims[i], dims[i + 1]), jnp.float32, -bound, bound)
        bvec = jax.random.uniform(kb, (1, dims[i + 1]), jnp.float32, -bound, bound)
        params.append((wgt, bvec))
    return tuple(params)


def _mlp_reference(x, params):
    """Pure-JAX f32 reference MLP for tolerance checks."""
    h = x
    for wgt, bias in params[:-1]:
        h = jnp.maximum(h @ wgt + bias, 0.0)
    wgt, bias = params[-1]
    return h @ wgt + bias


if __name__ == "__main__":
    key = jax.random.PRNGKey(0)
    k_x, k_p, k_t = jax.random.split(key, 3)

    batch, channels = 2, 4
    angRes_in = 2
    ang_factor = 4
    patchsize = 8
    h = w = 8

    x = jax.random.normal(
        k_x, (batch, channels, angRes_in, angRes_in, h, w), jnp.float32)

    imnet_in_dim = channels * 9 + 2   # feat_unfold=True, cell_decode=False
    params = init_mlp_params(k_p, imnet_in_dim, [HIDDEN] * 4, channels)

    fwd = jax.jit(epi_feature_rebuild_forward, static_argnums=(1, 2))
    out = jax.block_until_ready(fwd(x, patchsize, ang_factor, params))

    assert out.shape == (batch, channels, ang_factor, ang_factor, patchsize, patchsize)
    assert jnp.all(jnp.isfinite(out))

    # Tolerance check of the bf16 MXU kernel vs an f32 reference MLP
    # (documents the expected ~1e-2 relative deviation from the bf16 cast).
    n_test = 1024
    xt = jax.random.normal(k_t, (n_test, imnet_in_dim), jnp.float32)
    xt_pad = jnp.concatenate(
        [xt.astype(jnp.bfloat16),
         jnp.zeros((n_test, D_PAD - imnet_in_dim), jnp.bfloat16)], axis=-1)
    prepped = _prep_params(params, _epilogue_dtype())
    got = jax.block_until_ready(mlp_pallas(xt_pad, prepped))
    want = _mlp_reference(xt, params)
    rel = float(jnp.max(jnp.abs(got - want)) / (jnp.max(jnp.abs(want)) + 1e-6))
    assert rel < 5e-2, f"bf16 kernel deviates too much from f32 reference: {rel}"

    print("KERNEL_OK")
</pallas_src>

<mosaic_0001>
module attributes {stable_mosaic.version = 11 : i64} {
  func.func @_mlp_kernel(%arg0: i32, %arg1: memref<512x128xbf16, #tpu.memory_space<vmem>>, %arg2: memref<128x256xbf16, #tpu.memory_space<vmem>>, %arg3: memref<1x256xbf16, #tpu.memory_space<vmem>>, %arg4: memref<256x256xbf16, #tpu.memory_space<vmem>>, %arg5: memref<1x256xbf16, #tpu.memory_space<vmem>>, %arg6: memref<256x256xbf16, #tpu.memory_space<vmem>>, %arg7: memref<1x256xbf16, #tpu.memory_space<vmem>>, %arg8: memref<256x256xbf16, #tpu.memory_space<vmem>>, %arg9: memref<1x256xbf16, #tpu.memory_space<vmem>>, %arg10: memref<256x4xbf16, #tpu.memory_space<vmem>>, %arg11: memref<1x4xf32, #tpu.memory_space<vmem>>, %arg12: memref<512x4xf32, #tpu.memory_space<vmem>>) attributes {dimension_semantics = [#tpu.dimension_semantics<parallel>], iteration_bounds = array<i64: 2>, scalar_prefetch = 0 : i64, scratch_operands = 0 : i64, tpu.core_type = #tpu.core_type<tc>, window_params = [{transform_indices = @transform_0, window_bounds = array<i64: 512, 128>}, {pipeline_mode = #tpu.pipeline_mode<synchronous>, transform_indices = @transform_1, window_bounds = array<i64: 128, 256>}, {pipeline_mode = #tpu.pipeline_mode<synchronous>, transform_indices = @transform_2, window_bounds = array<i64: 1, 256>}, {pipeline_mode = #tpu.pipeline_mode<synchronous>, transform_indices = @transform_3, window_bounds = array<i64: 256, 256>}, {pipeline_mode = #tpu.pipeline_mode<synchronous>, transform_indices = @transform_4, window_bounds = array<i64: 1, 256>}, {pipeline_mode = #tpu.pipeline_mode<synchronous>, transform_indices = @transform_5, window_bounds = array<i64: 256, 256>}, {pipeline_mode = #tpu.pipeline_mode<synchronous>, transform_indices = @transform_6, window_bounds = array<i64: 1, 256>}, {pipeline_mode = #tpu.pipeline_mode<synchronous>, transform_indices = @transform_7, window_bounds = array<i64: 256, 256>}, {pipeline_mode = #tpu.pipeline_mode<synchronous>, transform_indices = @transform_8, window_bounds = array<i64: 1, 256>}, {pipeline_mode = #tpu.pipeline_mode<synchronous>, transform_indices = @transform_9, window_bounds = array<i64: 256, 4>}, {pipeline_mode = #tpu.pipeline_mode<synchronous>, transform_indices = @transform_10, window_bounds = array<i64: 1, 4>}, {transform_indices = @transform_11, window_bounds = array<i64: 512, 4>}]} {
    %c0 = arith.constant 0 : index
    %c0_0 = arith.constant 0 : index
    %0 = vector.load %arg1[%c0, %c0_0] : memref<512x128xbf16, #tpu.memory_space<vmem>>, vector<512x128xbf16>
    %c0_1 = arith.constant 0 : index
    %c0_2 = arith.constant 0 : index
    %1 = vector.load %arg2[%c0_1, %c0_2] : memref<128x256xbf16, #tpu.memory_space<vmem>>, vector<128x256xbf16>
    %cst = arith.constant dense<0.000000e+00> : vector<512x256xf32>
    %2 = tpu.matmul %0, %1, %cst {dimension_numbers = #tpu.dot_dimension_numbers<[1], [0], [0], [1], [0, 0, 1, 1], [], []>} : vector<512x128xbf16>, vector<128x256xbf16>, vector<512x256xf32> -> vector<512x256xf32>
    %3 = arith.truncf %2 : vector<512x256xf32> to vector<512x256xbf16>
    %c0_3 = arith.constant 0 : index
    %c0_4 = arith.constant 0 : index
    %4 = vector.load %arg3[%c0_3, %c0_4] : memref<1x256xbf16, #tpu.memory_space<vmem>>, vector<1x256xbf16>
    %5 = vector.broadcast %4 : vector<1x256xbf16> to vector<512x256xbf16>
    %6 = arith.addf %3, %5 : vector<512x256xbf16>
    %cst_5 = arith.constant 0.000000e+00 : bf16
    %7 = vector.broadcast %cst_5 : bf16 to vector<512x256xbf16>
    %8 = arith.maximumf %6, %7 : vector<512x256xbf16>
    %c0_6 = arith.constant 0 : index
    %c0_7 = arith.constant 0 : index
    %9 = vector.load %arg4[%c0_6, %c0_7] : memref<256x256xbf16, #tpu.memory_space<vmem>>, vector<256x256xbf16>
    %cst_8 = arith.constant dense<0.000000e+00> : vector<512x256xf32>
    %10 = tpu.matmul %8, %9, %cst_8 {dimension_numbers = #tpu.dot_dimension_numbers<[1], [0], [0], [1], [0, 0, 1, 1], [], []>} : vector<512x256xbf16>, vector<256x256xbf16>, vector<512x256xf32> -> vector<512x256xf32>
    %11 = arith.truncf %10 : vector<512x256xf32> to vector<512x256xbf16>
    %c0_9 = arith.constant 0 : index
    %c0_10 = arith.constant 0 : index
    %12 = vector.load %arg5[%c0_9, %c0_10] : memref<1x256xbf16, #tpu.memory_space<vmem>>, vector<1x256xbf16>
    %13 = vector.broadcast %12 : vector<1x256xbf16> to vector<512x256xbf16>
    %14 = arith.addf %11, %13 : vector<512x256xbf16>
    %cst_11 = arith.constant 0.000000e+00 : bf16
    %15 = vector.broadcast %cst_11 : bf16 to vector<512x256xbf16>
    %16 = arith.maximumf %14, %15 : vector<512x256xbf16>
    %c0_12 = arith.constant 0 : index
    %c0_13 = arith.constant 0 : index
    %17 = vector.load %arg6[%c0_12, %c0_13] : memref<256x256xbf16, #tpu.memory_space<vmem>>, vector<256x256xbf16>
    %cst_14 = arith.constant dense<0.000000e+00> : vector<512x256xf32>
    %18 = tpu.matmul %16, %17, %cst_14 {dimension_numbers = #tpu.dot_dimension_numbers<[1], [0], [0], [1], [0, 0, 1, 1], [], []>} : vector<512x256xbf16>, vector<256x256xbf16>, vector<512x256xf32> -> vector<512x256xf32>
    %19 = arith.truncf %18 : vector<512x256xf32> to vector<512x256xbf16>
    %c0_15 = arith.constant 0 : index
    %c0_16 = arith.constant 0 : index
    %20 = vector.load %arg7[%c0_15, %c0_16] : memref<1x256xbf16, #tpu.memory_space<vmem>>, vector<1x256xbf16>
    %21 = vector.broadcast %20 : vector<1x256xbf16> to vector<512x256xbf16>
    %22 = arith.addf %19, %21 : vector<512x256xbf16>
    %cst_17 = arith.constant 0.000000e+00 : bf16
    %23 = vector.broadcast %cst_17 : bf16 to vector<512x256xbf16>
    %24 = arith.maximumf %22, %23 : vector<512x256xbf16>
    %c0_18 = arith.constant 0 : index
    %c0_19 = arith.constant 0 : index
    %25 = vector.load %arg8[%c0_18, %c0_19] : memref<256x256xbf16, #tpu.memory_space<vmem>>, vector<256x256xbf16>
    %cst_20 = arith.constant dense<0.000000e+00> : vector<512x256xf32>
    %26 = tpu.matmul %24, %25, %cst_20 {dimension_numbers = #tpu.dot_dimension_numbers<[1], [0], [0], [1], [0, 0, 1, 1], [], []>} : vector<512x256xbf16>, vector<256x256xbf16>, vector<512x256xf32> -> vector<512x256xf32>
    %27 = arith.truncf %26 : vector<512x256xf32> to vector<512x256xbf16>
    %c0_21 = arith.constant 0 : index
    %c0_22 = arith.constant 0 : index
    %28 = vector.load %arg9[%c0_21, %c0_22] : memref<1x256xbf16, #tpu.memory_space<vmem>>, vector<1x256xbf16>
    %29 = vector.broadcast %28 : vector<1x256xbf16> to vector<512x256xbf16>
    %30 = arith.addf %27, %29 : vector<512x256xbf16>
    %cst_23 = arith.constant 0.000000e+00 : bf16
    %31 = vector.broadcast %cst_23 : bf16 to vector<512x256xbf16>
    %32 = arith.maximumf %30, %31 : vector<512x256xbf16>
    %c0_24 = arith.constant 0 : index
    %c0_25 = arith.constant 0 : index
    %33 = vector.load %arg10[%c0_24, %c0_25] : memref<256x4xbf16, #tpu.memory_space<vmem>>, vector<256x4xbf16>
    %cst_26 = arith.constant dense<0.000000e+00> : vector<512x4xf32>
    %34 = tpu.matmul %32, %33, %cst_26 {dimension_numbers = #tpu.dot_dimension_numbers<[1], [0], [0], [1], [0, 0, 1, 1], [], []>} : vector<512x256xbf16>, vector<256x4xbf16>, vector<512x4xf32> -> vector<512x4xf32>
    %c0_27 = arith.constant 0 : index
    %c0_28 = arith.constant 0 : index
    %35 = vector.load %arg11[%c0_27, %c0_28] : memref<1x4xf32, #tpu.memory_space<vmem>>, vector<1x4xf32>
    %36 = vector.broadcast %35 : vector<1x4xf32> to vector<512x4xf32>
    %37 = arith.addf %34, %36 : vector<512x4xf32>
    %c0_29 = arith.constant 0 : index
    %c0_30 = arith.constant 0 : index
    %38 = vector.load %arg12[%c0_29, %c0_30] : memref<512x4xf32, #tpu.memory_space<vmem>>, vector<512x4xf32>
    tpu.vector_store %arg12[%c0_29, %c0_30], %37 {strides = array<i32>} : memref<512x4xf32, #tpu.memory_space<vmem>>, vector<512x4xf32>,
    return
  }
  func.func @transform_0(%arg0: i32) -> (i32, i32) {
    %c0_i32 = arith.constant 0 : i32
    %c0_i32_0 = arith.constant 0 : i32
    return %arg0, %c0_i32 : i32, i32
  }
  func.func @transform_1(%arg0: i32) -> (i32, i32) {
    %c0_i32 = arith.constant 0 : i32
    %c0_i32_0 = arith.constant 0 : i32
    %c0_i32_1 = arith.constant 0 : i32
    return %c0_i32, %c0_i32_0 : i32, i32
  }
  func.func @transform_2(%arg0: i32) -> (i32, i32) {
    %c0_i32 = arith.constant 0 : i32
    %c0_i32_0 = arith.constant 0 : i32
    %c0_i32_1 = arith.constant 0 : i32
    return %c0_i32, %c0_i32_0 : i32, i32
  }
  func.func @transform_3(%arg0: i32) -> (i32, i32) {
    %c0_i32 = arith.constant 0 : i32
    %c0_i32_0 = arith.constant 0 : i32
    %c0_i32_1 = arith.constant 0 : i32
    return %c0_i32, %c0_i32_0 : i32, i32
  }
  func.func @transform_4(%arg0: i32) -> (i32, i32) {
    %c0_i32 = arith.constant 0 : i32
    %c0_i32_0 = arith.constant 0 : i32
    %c0_i32_1 = arith.constant 0 : i32
    return %c0_i32, %c0_i32_0 : i32, i32
  }
  func.func @transform_5(%arg0: i32) -> (i32, i32) {
    %c0_i32 = arith.constant 0 : i32
    %c0_i32_0 = arith.constant 0 : i32
    %c0_i32_1 = arith.constant 0 : i32
    return %c0_i32, %c0_i32_0 : i32, i32
  }
  func.func @transform_6(%arg0: i32) -> (i32, i32) {
    %c0_i32 = arith.constant 0 : i32
    %c0_i32_0 = arith.constant 0 : i32
    %c0_i32_1 = arith.constant 0 : i32
    return %c0_i32, %c0_i32_0 : i32, i32
  }
  func.func @transform_7(%arg0: i32) -> (i32, i32) {
    %c0_i32 = arith.constant 0 : i32
    %c0_i32_0 = arith.constant 0 : i32
    %c0_i32_1 = arith.constant 0 : i32
    return %c0_i32, %c0_i32_0 : i32, i32
  }
  func.func @transform_8(%arg0: i32) -> (i32, i32) {
    %c0_i32 = arith.constant 0 : i32
    %c0_i32_0 = arith.constant 0 : i32
    %c0_i32_1 = arith.constant 0 : i32
    return %c0_i32, %c0_i32_0 : i32, i32
  }
  func.func @transform_9(%arg0: i32) -> (i32, i32) {
    %c0_i32 = arith.constant 0 : i32
    %c0_i32_0 = arith.constant 0 : i32
    %c0_i32_1 = arith.constant 0 : i32
    return %c0_i32, %c0_i32_0 : i32, i32
  }
  func.func @transform_10(%arg0: i32) -> (i32, i32) {
    %c0_i32 = arith.constant 0 : i32
    %c0_i32_0 = arith.constant 0 : i32
    %c0_i32_1 = arith.constant 0 : i32
    return %c0_i32, %c0_i32_0 : i32, i32
  }
  func.func @transform_11(%arg0: i32) -> (i32, i32) {
    %c0_i32 = arith.constant 0 : i32
    %c0_i32_0 = arith.constant 0 : i32
    return %arg0, %c0_i32 : i32, i32
  }
}

module attributes {stable_mosaic.version = 11 : i64} {
  func.func @_mlp_kernel(%arg0: i32, %arg1: memref<1024x128xbf16, #tpu.memory_space<vmem>>, %arg2: memref<128x256xbf16, #tpu.memory_space<vmem>>, %arg3: memref<1x256xbf16, #tpu.memory_space<vmem>>, %arg4: memref<256x256xbf16, #tpu.memory_space<vmem>>, %arg5: memref<1x256xbf16, #tpu.memory_space<vmem>>, %arg6: memref<256x256xbf16, #tpu.memory_space<vmem>>, %arg7: memref<1x256xbf16, #tpu.memory_space<vmem>>, %arg8: memref<256x256xbf16, #tpu.memory_space<vmem>>, %arg9: memref<1x256xbf16, #tpu.memory_space<vmem>>, %arg10: memref<256x4xbf16, #tpu.memory_space<vmem>>, %arg11: memref<1x4xf32, #tpu.memory_space<vmem>>, %arg12: memref<1024x4xf32, #tpu.memory_space<vmem>>) attributes {dimension_semantics = [#tpu.dimension_semantics<parallel>], iteration_bounds = array<i64: 2>, scalar_prefetch = 0 : i64, scratch_operands = 0 : i64, tpu.core_type = #tpu.core_type<tc>, window_params = [{transform_indices = @transform_0, window_bounds = array<i64: 1024, 128>}, {pipeline_mode = #tpu.pipeline_mode<synchronous>, transform_indices = @transform_1, window_bounds = array<i64: 128, 256>}, {pipeline_mode = #tpu.pipeline_mode<synchronous>, transform_indices = @transform_2, window_bounds = array<i64: 1, 256>}, {pipeline_mode = #tpu.pipeline_mode<synchronous>, transform_indices = @transform_3, window_bounds = array<i64: 256, 256>}, {pipeline_mode = #tpu.pipeline_mode<synchronous>, transform_indices = @transform_4, window_bounds = array<i64: 1, 256>}, {pipeline_mode = #tpu.pipeline_mode<synchronous>, transform_indices = @transform_5, window_bounds = array<i64: 256, 256>}, {pipeline_mode = #tpu.pipeline_mode<synchronous>, transform_indices = @transform_6, window_bounds = array<i64: 1, 256>}, {pipeline_mode = #tpu.pipeline_mode<synchronous>, transform_indices = @transform_7, window_bounds = array<i64: 256, 256>}, {pipeline_mode = #tpu.pipeline_mode<synchronous>, transform_indices = @transform_8, window_bounds = array<i64: 1, 256>}, {pipeline_mode = #tpu.pipeline_mode<synchronous>, transform_indices = @transform_9, window_bounds = array<i64: 256, 4>}, {pipeline_mode = #tpu.pipeline_mode<synchronous>, transform_indices = @transform_10, window_bounds = array<i64: 1, 4>}, {transform_indices = @transform_11, window_bounds = array<i64: 1024, 4>}]} {
    %c0 = arith.constant 0 : index
    %c0_0 = arith.constant 0 : index
    %0 = vector.load %arg1[%c0, %c0_0] : memref<1024x128xbf16, #tpu.memory_space<vmem>>, vector<1024x128xbf16>
    %c0_1 = arith.constant 0 : index
    %c0_2 = arith.constant 0 : index
    %1 = vector.load %arg2[%c0_1, %c0_2] : memref<128x256xbf16, #tpu.memory_space<vmem>>, vector<128x256xbf16>
    %cst = arith.constant dense<0.000000e+00> : vector<1024x256xf32>
    %2 = tpu.matmul %0, %1, %cst {dimension_numbers = #tpu.dot_dimension_numbers<[1], [0], [0], [1], [0, 0, 1, 1], [], []>} : vector<1024x128xbf16>, vector<128x256xbf16>, vector<1024x256xf32> -> vector<1024x256xf32>
    %3 = arith.truncf %2 : vector<1024x256xf32> to vector<1024x256xbf16>
    %c0_3 = arith.constant 0 : index
    %c0_4 = arith.constant 0 : index
    %4 = vector.load %arg3[%c0_3, %c0_4] : memref<1x256xbf16, #tpu.memory_space<vmem>>, vector<1x256xbf16>
    %5 = vector.broadcast %4 : vector<1x256xbf16> to vector<1024x256xbf16>
    %6 = arith.addf %3, %5 : vector<1024x256xbf16>
    %cst_5 = arith.constant 0.000000e+00 : bf16
    %7 = vector.broadcast %cst_5 : bf16 to vector<1024x256xbf16>
    %8 = arith.maximumf %6, %7 : vector<1024x256xbf16>
    %c0_6 = arith.constant 0 : index
    %c0_7 = arith.constant 0 : index
    %9 = vector.load %arg4[%c0_6, %c0_7] : memref<256x256xbf16, #tpu.memory_space<vmem>>, vector<256x256xbf16>
    %cst_8 = arith.constant dense<0.000000e+00> : vector<1024x256xf32>
    %10 = tpu.matmul %8, %9, %cst_8 {dimension_numbers = #tpu.dot_dimension_numbers<[1], [0], [0], [1], [0, 0, 1, 1], [], []>} : vector<1024x256xbf16>, vector<256x256xbf16>, vector<1024x256xf32> -> vector<1024x256xf32>
    %11 = arith.truncf %10 : vector<1024x256xf32> to vector<1024x256xbf16>
    %c0_9 = arith.constant 0 : index
    %c0_10 = arith.constant 0 : index
    %12 = vector.load %arg5[%c0_9, %c0_10] : memref<1x256xbf16, #tpu.memory_space<vmem>>, vector<1x256xbf16>
    %13 = vector.broadcast %12 : vector<1x256xbf16> to vector<1024x256xbf16>
    %14 = arith.addf %11, %13 : vector<1024x256xbf16>
    %cst_11 = arith.constant 0.000000e+00 : bf16
    %15 = vector.broadcast %cst_11 : bf16 to vector<1024x256xbf16>
    %16 = arith.maximumf %14, %15 : vector<1024x256xbf16>
    %c0_12 = arith.constant 0 : index
    %c0_13 = arith.constant 0 : index
    %17 = vector.load %arg6[%c0_12, %c0_13] : memref<256x256xbf16, #tpu.memory_space<vmem>>, vector<256x256xbf16>
    %cst_14 = arith.constant dense<0.000000e+00> : vector<1024x256xf32>
    %18 = tpu.matmul %16, %17, %cst_14 {dimension_numbers = #tpu.dot_dimension_numbers<[1], [0], [0], [1], [0, 0, 1, 1], [], []>} : vector<1024x256xbf16>, vector<256x256xbf16>, vector<1024x256xf32> -> vector<1024x256xf32>
    %19 = arith.truncf %18 : vector<1024x256xf32> to vector<1024x256xbf16>
    %c0_15 = arith.constant 0 : index
    %c0_16 = arith.constant 0 : index
    %20 = vector.load %arg7[%c0_15, %c0_16] : memref<1x256xbf16, #tpu.memory_space<vmem>>, vector<1x256xbf16>
    %21 = vector.broadcast %20 : vector<1x256xbf16> to vector<1024x256xbf16>
    %22 = arith.addf %19, %21 : vector<1024x256xbf16>
    %cst_17 = arith.constant 0.000000e+00 : bf16
    %23 = vector.broadcast %cst_17 : bf16 to vector<1024x256xbf16>
    %24 = arith.maximumf %22, %23 : vector<1024x256xbf16>
    %c0_18 = arith.constant 0 : index
    %c0_19 = arith.constant 0 : index
    %25 = vector.load %arg8[%c0_18, %c0_19] : memref<256x256xbf16, #tpu.memory_space<vmem>>, vector<256x256xbf16>
    %cst_20 = arith.constant dense<0.000000e+00> : vector<1024x256xf32>
    %26 = tpu.matmul %24, %25, %cst_20 {dimension_numbers = #tpu.dot_dimension_numbers<[1], [0], [0], [1], [0, 0, 1, 1], [], []>} : vector<1024x256xbf16>, vector<256x256xbf16>, vector<1024x256xf32> -> vector<1024x256xf32>
    %27 = arith.truncf %26 : vector<1024x256xf32> to vector<1024x256xbf16>
    %c0_21 = arith.constant 0 : index
    %c0_22 = arith.constant 0 : index
    %28 = vector.load %arg9[%c0_21, %c0_22] : memref<1x256xbf16, #tpu.memory_space<vmem>>, vector<1x256xbf16>
    %29 = vector.broadcast %28 : vector<1x256xbf16> to vector<1024x256xbf16>
    %30 = arith.addf %27, %29 : vector<1024x256xbf16>
    %cst_23 = arith.constant 0.000000e+00 : bf16
    %31 = vector.broadcast %cst_23 : bf16 to vector<1024x256xbf16>
    %32 = arith.maximumf %30, %31 : vector<1024x256xbf16>
    %c0_24 = arith.constant 0 : index
    %c0_25 = arith.constant 0 : index
    %33 = vector.load %arg10[%c0_24, %c0_25] : memref<256x4xbf16, #tpu.memory_space<vmem>>, vector<256x4xbf16>
    %cst_26 = arith.constant dense<0.000000e+00> : vector<1024x4xf32>
    %34 = tpu.matmul %32, %33, %cst_26 {dimension_numbers = #tpu.dot_dimension_numbers<[1], [0], [0], [1], [0, 0, 1, 1], [], []>} : vector<1024x256xbf16>, vector<256x4xbf16>, vector<1024x4xf32> -> vector<1024x4xf32>
    %c0_27 = arith.constant 0 : index
    %c0_28 = arith.constant 0 : index
    %35 = vector.load %arg11[%c0_27, %c0_28] : memref<1x4xf32, #tpu.memory_space<vmem>>, vector<1x4xf32>
    %36 = vector.broadcast %35 : vector<1x4xf32> to vector<1024x4xf32>
    %37 = arith.addf %34, %36 : vector<1024x4xf32>
    %c0_29 = arith.constant 0 : index
    %c0_30 = arith.constant 0 : index
    %38 = vector.load %arg12[%c0_29, %c0_30] : memref<1024x4xf32, #tpu.memory_space<vmem>>, vector<1024x4xf32>
    tpu.vector_store %arg12[%c0_29, %c0_30], %37 {strides = array<i32>} : memref<1024x4xf32, #tpu.memory_space<vmem>>, vector<1024x4xf32>,
    return
  }
  func.func @transform_0(%arg0: i32) -> (i32, i32) {
    %c0_i32 = arith.constant 0 : i32
    %c0_i32_0 = arith.constant 0 : i32
    return %arg0, %c0_i32 : i32, i32
  }
  func.func @transform_1(%arg0: i32) -> (i32, i32) {
    %c0_i32 = arith.constant 0 : i32
    %c0_i32_0 = arith.constant 0 : i32
    %c0_i32_1 = arith.constant 0 : i32
    return %c0_i32, %c0_i32_0 : i32, i32
  }
  func.func @transform_2(%arg0: i32) -> (i32, i32) {
    %c0_i32 = arith.constant 0 : i32
    %c0_i32_0 = arith.constant 0 : i32
    %c0_i32_1 = arith.constant 0 : i32
    return %c0_i32, %c0_i32_0 : i32, i32
  }
  func.func @transform_3(%arg0: i32) -> (i32, i32) {
    %c0_i32 = arith.constant 0 : i32
    %c0_i32_0 = arith.constant 0 : i32
    %c0_i32_1 = arith.constant 0 : i32
    return %c0_i32, %c0_i32_0 : i32, i32
  }
  func.func @transform_4(%arg0: i32) -> (i32, i32) {
    %c0_i32 = arith.constant 0 : i32
    %c0_i32_0 = arith.constant 0 : i32
    %c0_i32_1 = arith.constant 0 : i32
    return %c0_i32, %c0_i32_0 : i32, i32
  }
  func.func @transform_5(%arg0: i32) -> (i32, i32) {
    %c0_i32 = arith.constant 0 : i32
    %c0_i32_0 = arith.constant 0 : i32
    %c0_i32_1 = arith.constant 0 : i32
    return %c0_i32, %c0_i32_0 : i32, i32
  }
  func.func @transform_6(%arg0: i32) -> (i32, i32) {
    %c0_i32 = arith.constant 0 : i32
    %c0_i32_0 = arith.constant 0 : i32
    %c0_i32_1 = arith.constant 0 : i32
    return %c0_i32, %c0_i32_0 : i32, i32
  }
  func.func @transform_7(%arg0: i32) -> (i32, i32) {
    %c0_i32 = arith.constant 0 : i32
    %c0_i32_0 = arith.constant 0 : i32
    %c0_i32_1 = arith.constant 0 : i32
    return %c0_i32, %c0_i32_0 : i32, i32
  }
  func.func @transform_8(%arg0: i32) -> (i32, i32) {
    %c0_i32 = arith.constant 0 : i32
    %c0_i32_0 = arith.constant 0 : i32
    %c0_i32_1 = arith.constant 0 : i32
    return %c0_i32, %c0_i32_0 : i32, i32
  }
  func.func @transform_9(%arg0: i32) -> (i32, i32) {
    %c0_i32 = arith.constant 0 : i32
    %c0_i32_0 = arith.constant 0 : i32
    %c0_i32_1 = arith.constant 0 : i32
    return %c0_i32, %c0_i32_0 : i32, i32
  }
  func.func @transform_10(%arg0: i32) -> (i32, i32) {
    %c0_i32 = arith.constant 0 : i32
    %c0_i32_0 = arith.constant 0 : i32
    %c0_i32_1 = arith.constant 0 : i32
    return %c0_i32, %c0_i32_0 : i32, i32
  }
  func.func @transform_11(%arg0: i32) -> (i32, i32) {
    %c0_i32 = arith.constant 0 : i32
    %c0_i32_0 = arith.constant 0 : i32
    return %arg0, %c0_i32 : i32, i32
  }
}

</mosaic_0001>

<bundles_post_ra>
// kernel: epi_feature_rebuild_forward.2
= control target key start
LH: loop header
LB: loop body
LE: loop exit
PB: predicated region body
PF: predicated region fallthrough
CT: control target
= control target key end

     0   :  { %s4684_s17 = smov 0   ;;  %s6218_s0 = inlined_call_operand.vmem [shape: bf16[1024,128], index: 0, kind: input, shape index: {}]   ;;  %s6219_s1 = inlined_call_operand.vmem [shape: bf16[128,256], index: 1, kind: input, shape index: {}]   ;;  %s6220_s2 = inlined_call_operand.vmem [shape: bf16[1,256], index: 2, kind: input, shape index: {}]   ;;  %s6221_s3 = inlined_call_operand.vmem [shape: bf16[256,256], index: 3, kind: input, shape index: {}]   ;;  %s6222_s4 = inlined_call_operand.vmem [shape: bf16[1,256], index: 4, kind: input, shape index: {}]   ;;  %s6223_s5 = inlined_call_operand.vmem [shape: bf16[256,256], index: 5, kind: input, shape index: {}]   ;;  %s6224_s6 = inlined_call_operand.vmem [shape: bf16[1,256], index: 6, kind: input, shape index: {}]   ;;  %s6225_s7 = inlined_call_operand.vmem [shape: bf16[256,256], index: 7, kind: input, shape index: {}]   ;;  %s6226_s8 = inlined_call_operand.vmem [shape: bf16[1,256], index: 8, kind: input, shape index: {}]   ;;  %s6227_s9 = inlined_call_operand.vmem [shape: bf16[256,4], index: 9, kind: input, shape index: {}]   ;;  %s6228_s10 = inlined_call_operand.vmem [shape: f32[1,4], index: 10, kind: input, shape index: {}]   ;;  %s6229_s11 = inlined_call_operand.vmem [shape: f32[1024,4], index: 11, kind: output, shape index: {}]  }
   0x1 LB: > { %s4196_s18 = sadd.s32 4294967295, %s4620_s17   ;;  %p4200_p0 = scmp.ge.s32.totalorder %s4620_s17, 1  ;;  %s4620_s17 = sphi %s4684_s17, %s21_s17  }
   0x2   : > { %p338_p1 = scmp.lt.s32.totalorder %s4620_s17, 3 }
   0x4   : > { %p339_p2 = pnand %p4200_p0, %p338_p1 }
   0x6   : > { %342 = sbr.rel (%p339_p2) target bundleno = 1400 (0x578), region = 64 }
   0xd   : > { %v4398_v0 = vld [vmem:[%s6219_s1 + $0x4] ss:$8 sps:$4 sm:$0xff]   ;;  %s4201_s21 = sshll.u32 %s4196_s18, 6  ;;  %v4400_v1 = vld [vmem:[%s6219_s1] ss:$8 sps:$4 sm:$0xff]   ;;  %v6232_v2 = vmov 0  }
   0xe   : > { %775 = vmatprep.mubr.bf16.mxu0 %v6232_v2  ;;  %p379_p3 = scmp.lt.s32.totalorder %s4201_s21, 127  ;;  %935 = vmatprep.mubr.bf16.mxu1 %v6232_v2  ;;  %v4401_v3 = vld [vmem:[%s6219_s1 + $0x14] ss:$8 sps:$4 sm:$0xff]   ;;  %v4403_v4 = vld [vmem:[%s6219_s1 + $0x10] ss:$8 sps:$4 sm:$0xff]   ;;  %vm4075_vm0 = vcmask 31744  }
   0xf   : > { %743 = vmatprep.subr.bf16.mxu0 %v4398_v0  ;;  %4372 = vmatprep.subr.bf16.mxu1 %v4398_v0  ;;  %v4404_v5 = vld [vmem:[%s6219_s1 + $0x24] ss:$8 sps:$4 sm:$0xff]   ;;  %v4406_v6 = vld [vmem:[%s6219_s1 + $0x20] ss:$8 sps:$4 sm:$0xff]   ;;  %v4407_v7 = vld [vmem:[%s6219_s1 + $0x34] ss:$8 sps:$4 sm:$0xff]  }
  0x10   : > { %744 = vmatpush1.bf16.msra.mxu0 %v4400_v1  ;;  %s6318_s21 = smov (!%p379_p3, %s4201_s21), 127  ;;  %4380 = vmatpush1.bf16.msra.mxu1 %v4400_v1  ;;  %v4409_v8 = vld [vmem:[%s6219_s1 + $0x30] ss:$8 sps:$4 sm:$0xff]   ;;  %v4410_v9 = vld [vmem:[%s6219_s1 + $0x44] ss:$8 sps:$4 sm:$0xff]  }
  0x11   : > { %745 = vmatprep.subr.bf16.mxu0 %v4401_v3  ;;  %4373 = vmatprep.subr.bf16.mxu1 %v4401_v3  ;;  %s4202_s30 = sshll.u32 %s6318_s21, 2  ;;  %v4412_v10 = vld [vmem:[%s6219_s1 + $0x40] ss:$8 sps:$4 sm:$0xff]   ;;  %v4413_v11 = vld [vmem:[%s6219_s1 + $0x54] ss:$8 sps:$4 sm:$0xff]   ;;  %s4204_s20 = sshll.u32 %s6318_s21, 3 }
  0x12   : > { %s4721_s19 = scalar_lea.vmem %s6218_s0, %s4202_s30  ;;  %v4415_v12 = vld [vmem:[%s6219_s1 + $0x50] ss:$8 sps:$4 sm:$0xff]   ;;  %v4416_v13 = vld [vmem:[%s6219_s1 + $0x64] ss:$8 sps:$4 sm:$0xff]   ;;  %v4418_v14 = vld [vmem:[%s6219_s1 + $0x60] ss:$8 sps:$4 sm:$0xff]   ;;  %s6003_s26 = scalar_lea.vmem %s6229_s11, %s4204_s20 }
  0x13   : > { %v4419_v15 = vld [vmem:[%s6219_s1 + $0x74] ss:$8 sps:$4 sm:$0xff]   ;;  %v4421_v16 = vld [vmem:[%s6219_s1 + $0x70] ss:$8 sps:$4 sm:$0xff]   ;;  %v4437_v17 = vld [vmem:[%s6221_s3 + $0x4] ss:$8 sps:$4 sm:$0xff]  }
  0x14   : > { %746 = vmatpush1.bf16.msra.mxu0 %v4403_v4  ;;  %4381 = vmatpush1.bf16.msra.mxu1 %v4403_v4  ;;  %v4422_v18 = vld [vmem:[%s4721_s19] sm:$0xff]   ;;  %v4442_v21 = vld [vmem:[%s6221_s3 + $0x14] ss:$8 sps:$4 sm:$0xff]   ;;  %v4440_v22 = vld [vmem:[%s6221_s3 + $0x10] ss:$8 sps:$4 sm:$0xff]  }
  0x15   : > { %747 = vmatprep.subr.bf16.mxu0 %v4404_v5  ;;  %4374 = vmatprep.subr.bf16.mxu1 %v4404_v5  ;;  %v4434_v19 = vld [vmem:[%s4721_s19 + $0x80] sm:$0xff]   ;;  %v4423_v24 = vld [vmem:[%s4721_s19 + $0x8] sm:$0xff]   ;;  %v4452_v27 = vld [vmem:[%s6221_s3 + $0x34] ss:$8 sps:$4 sm:$0xff]  }
  0x16   : > { %v4435_v20 = vld [vmem:[%s6221_s3] ss:$8 sps:$4 sm:$0xff]   ;;  %v4447_v23 = vld [vmem:[%s6221_s3 + $0x24] ss:$8 sps:$4 sm:$0xff]   ;;  %v4424_v28 = vld [vmem:[%s4721_s19 + $0x10] sm:$0xff]  }
  0x17   : > { %v4439_v25 = vld [vmem:[%s4721_s19 + $0x88] sm:$0xff]   ;;  %v4450_v29 = vld [vmem:[%s6221_s3 + $0x30] ss:$8 sps:$4 sm:$0xff]   ;;  %v4461_v33 = vld [vmem:[%s6221_s3 + $0x54] ss:$8 sps:$4 sm:$0xff]  }
  0x18   : > { %748 = vmatpush1.bf16.msra.mxu0 %v4406_v6  ;;  %4382 = vmatpush1.bf16.msra.mxu1 %v4406_v6  ;;  %v4445_v26 = vld [vmem:[%s6221_s3 + $0x20] ss:$8 sps:$4 sm:$0xff]   ;;  %v4457_v30 = vld [vmem:[%s6221_s3 + $0x44] ss:$8 sps:$4 sm:$0xff]   ;;  %v4444_v31 = vld [vmem:[%s4721_s19 + $0x90] sm:$0xff]  }
  0x19   : > { %749 = vmatprep.subr.bf16.mxu0 %v4407_v7  ;;  %4375 = vmatprep.subr.bf16.mxu1 %v4407_v7  ;;  %v4455_v32 = vld [vmem:[%s6221_s3 + $0x40] ss:$8 sps:$4 sm:$0xff]   ;;  %v4459_v34 = vld [vmem:[%s6221_s3 + $0x50] ss:$8 sps:$4 sm:$0xff]   ;;  %v4465_v35 = vld [vmem:[%s6221_s3 + $0x64] ss:$8 sps:$4 sm:$0xff]  }
  0x1a   : > { %v4425_v36 = vld [vmem:[%s4721_s19 + $0x18] sm:$0xff]   ;;  %v4463_v38 = vld [vmem:[%s6221_s3 + $0x60] ss:$8 sps:$4 sm:$0xff]   ;;  %v4473_v43 = vld [vmem:[%s6221_s3 + $0x84] ss:$8 sps:$4 sm:$0xff]  }
  0x1b   : > { %v4449_v37 = vld [vmem:[%s4721_s19 + $0x98] sm:$0xff]   ;;  %v4426_v40 = vld [vmem:[%s4721_s19 + $0x20] sm:$0xff]   ;;  %v4427_v48 = vld [vmem:[%s4721_s19 + $0x28] sm:$0xff]  }
  0x1c   : > { %750 = vmatpush1.bf16.msra.mxu0 %v4409_v8  ;;  %4383 = vmatpush1.bf16.msra.mxu1 %v4409_v8  ;;  %v4469_v39 = vld [vmem:[%s6221_s3 + $0x74] ss:$8 sps:$4 sm:$0xff]   ;;  %v4467_v41 = vld [vmem:[%s6221_s3 + $0x70] ss:$8 sps:$4 sm:$0xff]   ;;  %v4454_v42 = vld [vmem:[%s4721_s19 + $0xa0] sm:$0xff]  }
  0x1d   : > { %751 = vmatprep.subr.bf16.mxu0 %v4410_v9  ;;  %4376 = vmatprep.subr.bf16.mxu1 %v4410_v9  ;;  %v4471_v44 = vld [vmem:[%s6221_s3 + $0x80] ss:$8 sps:$4 sm:$0xff]   ;;  %v4477_v45 = vld [vmem:[%s6221_s3 + $0x94] ss:$8 sps:$4 sm:$0xff]   ;;  %v4475_v46 = vld [vmem:[%s6221_s3 + $0x90] ss:$8 sps:$4 sm:$0xff]  }
  0x1e   : > { %v4481_v47 = vld [vmem:[%s6221_s3 + $0xa4] ss:$8 sps:$4 sm:$0xff]   ;;  %v4479_v50 = vld [vmem:[%s6221_s3 + $0xa0] ss:$8 sps:$4 sm:$0xff]   ;;  %v4485_v51 = vld [vmem:[%s6221_s3 + $0xb4] ss:$8 sps:$4 sm:$0xff]  }
  0x1f   : > { %v4458_v49 = vld [vmem:[%s4721_s19 + $0xa8] sm:$0xff]   ;;  %v4483_v52 = vld [vmem:[%s6221_s3 + $0xb0] ss:$8 sps:$4 sm:$0xff]   ;;  %v4493_v57 = vld [vmem:[%s6221_s3 + $0xd4] ss:$8 sps:$4 sm:$0xff]  }
  0x20   : > { %752 = vmatpush1.bf16.msra.mxu0 %v4412_v10  ;;  %4384 = vmatpush1.bf16.msra.mxu1 %v4412_v10  ;;  %v4489_v53 = vld [vmem:[%s6221_s3 + $0xc4] ss:$8 sps:$4 sm:$0xff]   ;;  %v4428_v54 = vld [vmem:[%s4721_s19 + $0x30] sm:$0xff]   ;;  %v4487_v56 = vld [vmem:[%s6221_s3 + $0xc0] ss:$8 sps:$4 sm:$0xff]  }
  0x21   : > { %753 = vmatprep.subr.bf16.mxu0 %v4413_v11  ;;  %4377 = vmatprep.subr.bf16.mxu1 %v4413_v11  ;;  %v4462_v55 = vld [vmem:[%s4721_s19 + $0xb0] sm:$0xff]   ;;  %v4497_v59 = vld [vmem:[%s6221_s3 + $0xe4] ss:$8 sps:$4 sm:$0xff]   ;;  %v4429_v60 = vld [vmem:[%s4721_s19 + $0x38] sm:$0xff]  }
  0x22   : > { %v4491_v58 = vld [vmem:[%s6221_s3 + $0xd0] ss:$8 sps:$4 sm:$0xff]   ;;  %v4495_v62 = vld [vmem:[%s6221_s3 + $0xe0] ss:$8 sps:$4 sm:$0xff]   ;;  %v4501_v8 = vld [vmem:[%s6221_s3 + $0xf4] ss:$8 sps:$4 sm:$0xff]  }
  0x23   : > { %v4466_v61 = vld [vmem:[%s4721_s19 + $0xb8] sm:$0xff]   ;;  %v4430_v63 = vld [vmem:[%s4721_s19 + $0x40] sm:$0xff]   ;;  %v4431_v1 = vld [vmem:[%s4721_s19 + $0x48] sm:$0xff]  }
  0x24   : > { %754 = vmatpush1.bf16.msra.mxu0 %v4415_v12  ;;  %4385 = vmatpush1.bf16.msra.mxu1 %v4415_v12  ;;  %v4470_v0 = vld [vmem:[%s4721_s19 + $0xc0] sm:$0xff]   ;;  %v4474_v3 = vld [vmem:[%s4721_s19 + $0xc8] sm:$0xff]   ;;  %v4432_v4 = vld [vmem:[%s4721_s19 + $0x50] sm:$0xff]  }
  0x25   : > { %755 = vmatprep.subr.bf16.mxu0 %v4416_v13  ;;  %4378 = vmatprep.subr.bf16.mxu1 %v4416_v13  ;;  %v4478_v5 = vld [vmem:[%s4721_s19 + $0xd0] sm:$0xff]   ;;  %v4433_v6 = vld [vmem:[%s4721_s19 + $0x58] sm:$0xff]   ;;  %v4438_v10 = vld [vmem:[%s4721_s19 + $0x60] sm:$0xff]  }
  0x26   : > { %v4482_v7 = vld [vmem:[%s4721_s19 + $0xd8] sm:$0xff]   ;;  %v4486_v11 = vld [vmem:[%s4721_s19 + $0xe0] sm:$0xff]   ;;  %v4443_v12 = vld [vmem:[%s4721_s19 + $0x68] sm:$0xff]  }
  0x27   : > { %v4499_v9 = vld [vmem:[%s6221_s3 + $0xf0] ss:$8 sps:$4 sm:$0xff]   ;;  %v4490_v13 = vld [vmem:[%s4721_s19 + $0xe8] sm:$0xff]  }
  0x28   : > { %756 = vmatpush1.bf16.msra.mxu0 %v4418_v14  ;;  %4386 = vmatpush1.bf16.msra.mxu1 %v4418_v14  ;;  %v4448_v14 = vld [vmem:[%s4721_s19 + $0x70] sm:$0xff]  }
  0x29   : > { %757 = vmatprep.subr.bf16.mxu0 %v4419_v15  ;;  %4379 = vmatprep.subr.bf16.mxu1 %v4419_v15  ;;  %v4494_v15 = vld [vmem:[%s4721_s19 + $0xf0] sm:$0xff]  }
  0x2c   : > { %758 = vmatpush1.bf16.msra.mxu0 %v4421_v16  ;;  %4387 = vmatpush1.bf16.msra.mxu1 %v4421_v16  ;;  %v4453_v16 = vld [vmem:[%s4721_s19 + $0x78] sm:$0xff]  }
  0x2d   : > { %1518 = vmatprep.subr.bf16.mxu1 %v4437_v17  ;;  %v4498_v17 = vld [vmem:[%s4721_s19 + $0xf8] sm:$0xff]  }
  0x2f   : > { %776 = vmatmul.mubr.bf16.vlgmr.msra.gmra.mrb[0].mxu0 %v4422_v18  ;;  %936 = vmatmul.mubr.bf16.vlgmr.msra.gmra.mrb[0].mxu1 %v4434_v19  ;;  %v4502_v18 = vld [vmem:[%s6223_s5] ss:$8 sps:$4 sm:$0xff]   ;;  %v4504_v19 = vld [vmem:[%s6223_s5 + $0x4] ss:$8 sps:$4 sm:$0xff]  }
  0x30   : > { %785 = vmatprep.mubr.bf16.mxu0 %v6232_v2  ;;  %1519 = vmatpush1.bf16.msra.mxu1 %v4435_v20  ;;  %v4623_v20 = vmov 1966171168  }
  0x31   : > { %945 = vmatprep.mubr.bf16.mxu1 %v6232_v2  ;;  %1520 = vmatprep.subr.bf16.mxu1 %v4442_v21  ;;  %v1171_v21 = vunpack.c.l.s4 %v4623_v20 }
  0x32   : > { %2293 = vmatprep.subr.bf16.mxu0 %v4504_v19 }
  0x33   : > { %2294 = vmatpush1.bf16.msra.mxu0 %v4502_v18 }
  0x34   : > { %1521 = vmatpush1.bf16.msra.mxu1 %v4440_v22  ;;  %v1173_v22 = vlaneseq }
  0x35   : > { %1522 = vmatprep.subr.bf16.mxu1 %v4447_v23  ;;  %v4505_v23 = vld [vmem:[%s6223_s5 + $0x10] ss:$8 sps:$4 sm:$0xff]  }
  0x37   : > { %786 = vmatmul.mubr.bf16.gmra.mrb[4].mxu0 %v4423_v24  ;;  %946 = vmatmul.mubr.bf16.gmra.mrb[4].mxu1 %v4439_v25  ;;  %v4507_v24 = vld [vmem:[%s6223_s5 + $0x14] ss:$8 sps:$4 sm:$0xff]   ;;  %v1172_v25 = vunpack.c.0.s8 %v1171_v21 }
  0x38   : > { %795 = vmatprep.mubr.bf16.mxu0 %v6232_v2  ;;  %955 = vmatprep.mubr.bf16.mxu1 %v6232_v2 }
  0x39   : > { %1523 = vmatpush1.bf16.msra.mxu1 %v4445_v26  ;;  %v1174_v26 = vshrl.u32 %v1173_v22, 7  ;;  %2295 = vmatprep.subr.bf16.mxu0 %v4507_v24 }
  0x3a   : > { %1524 = vmatprep.subr.bf16.mxu1 %v4452_v27  ;;  %v4253_v27 = vld.sshfl [vmem:[%s6220_s2] sm:$0x11 pattern:$0x75316420]  ;;  %2296 = vmatpush1.bf16.msra.mxu0 %v4505_v23 }
  0x3d   : > { %1525 = vmatpush1.bf16.msra.mxu1 %v4450_v29  ;;  %v1169_v29 = vcombine.high %v4253_v27, %v4253_v27 }
  0x3e   : > { %1526 = vmatprep.subr.bf16.mxu1 %v4457_v30  ;;  %v4508_v30 = vld [vmem:[%s6223_s5 + $0x20] ss:$8 sps:$4 sm:$0xff]  }
  0x3f   : > { %796 = vmatmul.mubr.bf16.gmra.mrb[8].mxu0 %v4424_v28  ;;  %956 = vmatmul.mubr.bf16.gmra.mrb[8].mxu1 %v4444_v31  ;;  %v4923_v28 = vsub.s32 %v1172_v25, %v1174_v26  ;;  %v4510_v31 = vld [vmem:[%s6223_s5 + $0x24] ss:$8 sps:$4 sm:$0xff]  }
  0x40   : > { %805 = vmatprep.mubr.bf16.mxu0 %v6232_v2  ;;  %965 = vmatprep.mubr.bf16.mxu1 %v6232_v2 }
  0x41   : > { %1527 = vmatpush1.bf16.msra.mxu1 %v4455_v32  ;;  %6251 = vst [vmem:[#allocation2_spill] sm:$0xff] %v4923_v28  ;;  %v1176_v32 = vrot.slane %v4253_v27, %v4923_v28  ;;  %2297 = vmatprep.subr.bf16.mxu0 %v4510_v31  ;;  %v4522_v27 = vld [vmem:[%s6223_s5 + $0x64] ss:$8 sps:$4 sm:$0xff]  }
  0x42   : > { %1528 = vmatprep.subr.bf16.mxu1 %v4461_v33  ;;  %v1183_v33 = vrot.slane %v1169_v29, %v4923_v28  ;;  %2298 = vmatpush1.bf16.msra.mxu0 %v4508_v30 }
  0x45   : > { %1529 = vmatpush1.bf16.msra.mxu1 %v4459_v34  ;;  %v1185_v34 = vpack.i.b16 %v1176_v32, %v1176_v32 }
  0x46   : > { %1530 = vmatprep.subr.bf16.mxu1 %v4465_v35  ;;  %v4933_v35 = vsub.s32 0, %v1174_v26  ;;  %v4520_v26 = vld [vmem:[%s6223_s5 + $0x60] ss:$8 sps:$4 sm:$0xff]  }
  0x47   : > { %806 = vmatmul.mubr.bf16.gmra.mrb[12].mxu0 %v4425_v36  ;;  %966 = vmatmul.mubr.bf16.gmra.mrb[12].mxu1 %v4449_v37  ;;  %v1192_v36 = vpack.i.b16 %v1183_v33, %v1183_v33  ;;  %v4511_v37 = vld [vmem:[%s6223_s5 + $0x30] ss:$8 sps:$4 sm:$0xff]  }
  0x48   : > { %815 = vmatprep.mubr.bf16.mxu0 %v6232_v2  ;;  %975 = vmatprep.mubr.bf16.mxu1 %v6232_v2  ;;  %6252 = vst [vmem:[#allocation3_spill] sm:$0xff] %v4933_v35 }
  0x49   : > { %1531 = vmatpush1.bf16.msra.mxu1 %v4463_v38  ;;  %v4513_v38 = vld [vmem:[%s6223_s5 + $0x34] ss:$8 sps:$4 sm:$0xff]  }
  0x4a   : > { %1532 = vmatprep.subr.bf16.mxu1 %v4469_v39  ;;  %2299 = vmatprep.subr.bf16.mxu0 %v4513_v38 }
  0x4b   : > { %2300 = vmatpush1.bf16.msra.mxu0 %v4511_v37 }
  0x4d   : > { %1533 = vmatpush1.bf16.msra.mxu1 %v4467_v41 }
  0x4e   : > { %1534 = vmatprep.subr.bf16.mxu1 %v4473_v43 }
  0x4f   : > { %816 = vmatmul.mubr.bf16.gmra.mrb[16].mxu0 %v4426_v40  ;;  %976 = vmatmul.mubr.bf16.gmra.mrb[16].mxu1 %v4454_v42  ;;  %v4944_v42 = vrot.slane %v1185_v34, %v4933_v35 }
  0x50   : > { %825 = vmatprep.mubr.bf16.mxu0 %v6232_v2  ;;  %985 = vmatprep.mubr.bf16.mxu1 %v6232_v2 }
  0x51   : > { %1535 = vmatpush1.bf16.msra.mxu1 %v4471_v44 }
  0x52   : > { %1536 = vmatprep.subr.bf16.mxu1 %v4477_v45  ;;  %v4949_v45 = vrot.slane %v1192_v36, %v4933_v35 }
  0x55   : > { %1537 = vmatpush1.bf16.msra.mxu1 %v4475_v46 }
  0x56   : > { %1538 = vmatprep.subr.bf16.mxu1 %v4481_v47 }
  0x57   : > { %826 = vmatmul.mubr.bf16.gmra.mrb[20].mxu0 %v4427_v48  ;;  %986 = vmatmul.mubr.bf16.gmra.mrb[20].mxu1 %v4458_v49 }
  0x58   : > { %835 = vmatprep.mubr.bf16.mxu0 %v6232_v2  ;;  %995 = vmatprep.mubr.bf16.mxu1 %v6232_v2 }
  0x59   : > { %1539 = vmatpush1.bf16.msra.mxu1 %v4479_v50 }
  0x5a   : > { %1540 = vmatprep.subr.bf16.mxu1 %v4485_v51 }
  0x5d   : > { %1541 = vmatpush1.bf16.msra.mxu1 %v4483_v52 }
  0x5e   : > { %1542 = vmatprep.subr.bf16.mxu1 %v4489_v53  ;;  %v4514_v53 = vld [vmem:[%s6223_s5 + $0x40] ss:$8 sps:$4 sm:$0xff]  }
  0x5f   : > { %836 = vmatmul.mubr.bf16.gmra.mrb[24].mxu0 %v4428_v54  ;;  %996 = vmatmul.mubr.bf16.gmra.mrb[24].mxu1 %v4462_v55  ;;  %v4516_v54 = vld [vmem:[%s6223_s5 + $0x44] ss:$8 sps:$4 sm:$0xff]  }
  0x60   : > { %845 = vmatprep.mubr.bf16.mxu0 %v6232_v2  ;;  %1005 = vmatprep.mubr.bf16.mxu1 %v6232_v2 }
  0x61   : > { %1543 = vmatpush1.bf16.msra.mxu1 %v4487_v56  ;;  %2301 = vmatprep.subr.bf16.mxu0 %v4516_v54  ;;  %v4523_v54 = vld [vmem:[%s6223_s5 + $0x70] ss:$8 sps:$4 sm:$0xff]  }
  0x62   : > { %1544 = vmatprep.subr.bf16.mxu1 %v4493_v57  ;;  %2302 = vmatpush1.bf16.msra.mxu0 %v4514_v53 }
  0x65   : > { %1545 = vmatpush1.bf16.msra.mxu1 %v4491_v58 }
  0x66   : > { %1546 = vmatprep.subr.bf16.mxu1 %v4497_v59 }
  0x67   : > { %846 = vmatmul.mubr.bf16.gmra.mrb[28].mxu0 %v4429_v60  ;;  %1006 = vmatmul.mubr.bf16.gmra.mrb[28].mxu1 %v4466_v61 }
  0x68   : > { %855 = vmatprep.mubr.bf16.mxu0 %v6232_v2  ;;  %1015 = vmatprep.mubr.bf16.mxu1 %v6232_v2 }
  0x69   : > { %1547 = vmatpush1.bf16.msra.mxu1 %v4495_v62 }
  0x6a   : > { %1548 = vmatprep.subr.bf16.mxu1 %v4501_v8  ;;  %v4517_v8 = vld [vmem:[%s6223_s5 + $0x50] ss:$8 sps:$4 sm:$0xff]  }
  0x6d   : > { %1549 = vmatpush1.bf16.msra.mxu1 %v4499_v9  ;;  %v4519_v9 = vld [vmem:[%s6223_s5 + $0x54] ss:$8 sps:$4 sm:$0xff]  }
  0x6e   : > { %2303 = vmatprep.subr.bf16.mxu0 %v4519_v9 }
  0x6f   : > { %856 = vmatmul.mubr.bf16.gmra.mrb[32].mxu0 %v4430_v63  ;;  %1016 = vmatmul.mubr.bf16.gmra.mrb[32].mxu1 %v4470_v0 }
  0x70   : > { %865 = vmatprep.mubr.bf16.mxu0 %v6232_v2  ;;  %1025 = vmatprep.mubr.bf16.mxu1 %v6232_v2 }
  0x71   : > { %2304 = vmatpush1.bf16.msra.mxu0 %v4517_v8 }
  0x72   : > { %2305 = vmatprep.subr.bf16.mxu0 %v4522_v27 }
  0x75   : > { %2306 = vmatpush1.bf16.msra.mxu0 %v4520_v26 }
  0x77   : > { %866 = vmatmul.mubr.bf16.gmra.mrb[36].mxu0 %v4431_v1  ;;  %1026 = vmatmul.mubr.bf16.gmra.mrb[36].mxu1 %v4474_v3 }
  0x78   : > { %875 = vmatprep.mubr.bf16.mxu0 %v6232_v2  ;;  %1035 = vmatprep.mubr.bf16.mxu1 %v6232_v2 }
  0x7f   : > { %876 = vmatmul.mubr.bf16.gmra.mrb[40].mxu0 %v4432_v4  ;;  %1036 = vmatmul.mubr.bf16.gmra.mrb[40].mxu1 %v4478_v5 }
  0x80   : > { %885 = vmatprep.mubr.bf16.mxu0 %v6232_v2  ;;  %1045 = vmatprep.mubr.bf16.mxu1 %v6232_v2 }
  0x87   : > { %886 = vmatmul.mubr.bf16.gmra.mrb[44].mxu0 %v4433_v6  ;;  %1046 = vmatmul.mubr.bf16.gmra.mrb[44].mxu1 %v4482_v7 }
  0x88   : > { %895 = vmatprep.mubr.bf16.mxu0 %v6232_v2  ;;  %1055 = vmatprep.mubr.bf16.mxu1 %v6232_v2 }
  0x8f   : > { %896 = vmatmul.mubr.bf16.gmra.mrb[48].mxu0 %v4438_v10  ;;  %1056 = vmatmul.mubr.bf16.gmra.mrb[48].mxu1 %v4486_v11 }
  0x90   : > { %905 = vmatprep.mubr.bf16.mxu0 %v6232_v2  ;;  %1065 = vmatprep.mubr.bf16.mxu1 %v6232_v2 }
  0x97   : > { %906 = vmatmul.mubr.bf16.gmra.mrb[52].mxu0 %v4443_v12  ;;  %1066 = vmatmul.mubr.bf16.gmra.mrb[52].mxu1 %v4490_v13 }
  0x98   : > { %915 = vmatprep.mubr.bf16.mxu0 %v6232_v2  ;;  %1075 = vmatprep.mubr.bf16.mxu1 %v6232_v2 }
  0x9f   : > { %916 = vmatmul.mubr.bf16.gmra.mrb[56].mxu0 %v4448_v14  ;;  %1076 = vmatmul.mubr.bf16.gmra.mrb[56].mxu1 %v4494_v15 }
  0xa0   : > { %925 = vmatprep.mubr.bf16.mxu0 %v6232_v2  ;;  %1085 = vmatprep.mubr.bf16.mxu1 %v6232_v2 }
  0xa7   : > { %926 = vmatmul.mubr.bf16.gmra.mrb[60].mxu0 %v4453_v16  ;;  %1086 = vmatmul.mubr.bf16.gmra.mrb[60].mxu1 %v4498_v17 }
 0x102   : > { %v777_v39 = vpop.f32.mrb[0].mxu0  ;;  %v4941_v40 = vpop.f32.mrb[0].mxu1 }
 0x103   : > { %v779_v41 = vpop.f32.mrb[1].mxu0  ;;  %v4946_v43 = vpop.f32.mrb[1].mxu1 }
 0x104   : > { %v781_v44 = vpop.f32.mrb[2].mxu0  ;;  %v4951_v46 = vpop.f32.mrb[2].mxu1 }
 0x105   : > { %v1096_v47 = vpack.c.bf16 %v781_v44, %v777_v39  ;;  %v783_v48 = vpop.f32.mrb[3].mxu0  ;;  %v4955_v50 = vpop.f32.mrb[3].mxu1 }
 0x106   : > { %v1097_v51 = vpack.c.bf16 %v783_v48, %v779_v41 }
 0x107   : > { %v1198_v55 = vadd.bf16 %v4944_v42, %v1096_v47 }
 0x108   : > { %v1199_v56 = vadd.bf16 %v4949_v45, %v1097_v51 }
 0x109   : > { %v1262_v60 = vmax.bf16 %v6232_v2, %v1198_v55  ;;  %v4525_v55 = vld [vmem:[%s6223_s5 + $0x74] ss:$8 sps:$4 sm:$0xff]  }
 0x10a   : > { %v787_v57 = vpop.f32.mrb[4].mxu0  ;;  %v1263_v58 = vmax.bf16 %v6232_v2, %v1199_v56  ;;  %v4968_v59 = vpop.f32.mrb[4].mxu1  ;;  %2307 = vmatprep.subr.bf16.mxu0 %v4525_v55  ;;  %v4529_v55 = vld [vmem:[%s6223_s5 + $0x90] ss:$8 sps:$4 sm:$0xff]  }
 0x10b   : > { %v789_v61 = vpop.f32.mrb[5].mxu0  ;;  %v4971_v62 = vpop.f32.mrb[5].mxu1  ;;  %2308 = vmatpush1.bf16.msra.mxu0 %v4523_v54 }
 0x10c   : > { %v791_v63 = vpop.f32.mrb[6].mxu0  ;;  %1550 = vmatprep.mubr.bf16.mxu1 %v1263_v58  ;;  %v4973_v0 = vpop.f32.mrb[6].mxu1 }
 0x10d   : > { %v1098_v1 = vpack.c.bf16 %v791_v63, %v787_v57  ;;  %v793_v3 = vpop.f32.mrb[7].mxu0  ;;  %1551 = vmatmul.mubr.bf16.vlgmr.msra.gmra.mrb[64].mxu1 %v1262_v60  ;;  %v4977_v5 = vpop.f32.mrb[7].mxu1 }
 0x10e   : > { %v1099_v6 = vpack.c.bf16 %v793_v3, %v789_v61 }
 0x10f   : > { %v1200_v10 = vadd.bf16 %v4944_v42, %v1098_v1 }
 0x110   : > { %v1201_v11 = vadd.bf16 %v4949_v45, %v1099_v6 }
 0x111   : > { %v1264_v16 = vmax.bf16 %v6232_v2, %v1200_v10 }
 0x112   : > { %v797_v12 = vpop.f32.mrb[8].mxu0  ;;  %v1265_v13 = vmax.bf16 %v6232_v2, %v1201_v11  ;;  %v4990_v14 = vpop.f32.mrb[8].mxu1 }
 0x113   : > { %v799_v15 = vpop.f32.mrb[9].mxu0  ;;  %v4993_v17 = vpop.f32.mrb[9].mxu1 }
 0x114   : > { %v801_v18 = vpop.f32.mrb[10].mxu0  ;;  %1560 = vmatprep.mubr.bf16.mxu1 %v1265_v13  ;;  %v4995_v19 = vpop.f32.mrb[10].mxu1 }
 0x115   : > { %v1100_v20 = vpack.c.bf16 %v801_v18, %v797_v12  ;;  %v803_v21 = vpop.f32.mrb[11].mxu0  ;;  %1561 = vmatmul.mubr.bf16.gmra.mrb[68].mxu1 %v1264_v16  ;;  %v4999_v23 = vpop.f32.mrb[11].mxu1  ;;  %v4526_v16 = vld [vmem:[%s6223_s5 + $0x80] ss:$8 sps:$4 sm:$0xff]   ;;  %v4528_v18 = vld [vmem:[%s6223_s5 + $0x84] ss:$8 sps:$4 sm:$0xff]  }
 0x116   : > { %v1101_v24 = vpack.c.bf16 %v803_v21, %v799_v15  ;;  %2309 = vmatprep.subr.bf16.mxu0 %v4528_v18 }
 0x117   : > { %v1202_v29 = vadd.bf16 %v4944_v42, %v1100_v20  ;;  %2310 = vmatpush1.bf16.msra.mxu0 %v4526_v16 }
 0x118   : > { %v1203_v30 = vadd.bf16 %v4949_v45, %v1101_v24 }
 0x119   : > { %v1266_v36 = vmax.bf16 %v6232_v2, %v1202_v29 }
 0x11a   : > { %v807_v31 = vpop.f32.mrb[12].mxu0  ;;  %v1267_v32 = vmax.bf16 %v6232_v2, %v1203_v30  ;;  %v5012_v33 = vpop.f32.mrb[12].mxu1 }
 0x11b   : > { %v809_v34 = vpop.f32.mrb[13].mxu0  ;;  %v5015_v37 = vpop.f32.mrb[13].mxu1 }
 0x11c   : > { %v811_v38 = vpop.f32.mrb[14].mxu0  ;;  %1570 = vmatprep.mubr.bf16.mxu1 %v1267_v32  ;;  %v5017_v39 = vpop.f32.mrb[14].mxu1 }
 0x11d   : > { %v1102_v41 = vpack.c.bf16 %v811_v38, %v807_v31  ;;  %v813_v44 = vpop.f32.mrb[15].mxu0  ;;  %1571 = vmatmul.mubr.bf16.gmra.mrb[72].mxu1 %v1266_v36  ;;  %v5021_v48 = vpop.f32.mrb[15].mxu1 }
 0x11e   : > { %v1103_v51 = vpack.c.bf16 %v813_v44, %v809_v34 }
 0x11f   : > { %v1204_v56 = vadd.bf16 %v4944_v42, %v1102_v41 }
 0x120   : > { %v1205_v57 = vadd.bf16 %v4949_v45, %v1103_v51 }
 0x121   : > { %v1268_v1 = vmax.bf16 %v6232_v2, %v1204_v56  ;;  %v4531_v56 = vld [vmem:[%s6223_s5 + $0x94] ss:$8 sps:$4 sm:$0xff]  }
 0x122   : > { %v817_v58 = vpop.f32.mrb[16].mxu0  ;;  %v1269_v60 = vmax.bf16 %v6232_v2, %v1205_v57  ;;  %v5034_v61 = vpop.f32.mrb[16].mxu1  ;;  %2311 = vmatprep.subr.bf16.mxu0 %v4531_v56 }
 0x123   : > { %v819_v63 = vpop.f32.mrb[17].mxu0  ;;  %v5037_v3 = vpop.f32.mrb[17].mxu1  ;;  %2312 = vmatpush1.bf16.msra.mxu0 %v4529_v55 }
 0x124   : > { %v821_v6 = vpop.f32.mrb[18].mxu0  ;;  %1580 = vmatprep.mubr.bf16.mxu1 %v1269_v60  ;;  %v5039_v8 = vpop.f32.mrb[18].mxu1 }
 0x125   : > { %v1104_v9 = vpack.c.bf16 %v821_v6, %v817_v58  ;;  %v823_v10 = vpop.f32.mrb[19].mxu0  ;;  %1581 = vmatmul.mubr.bf16.gmra.mrb[76].mxu1 %v1268_v1  ;;  %v5043_v12 = vpop.f32.mrb[19].mxu1 }
 0x126   : > { %v1105_v13 = vpack.c.bf16 %v823_v10, %v819_v63 }
 0x127   : > { %v1206_v20 = vadd.bf16 %v4944_v42, %v1104_v9 }
 0x128   : > { %v1207_v21 = vadd.bf16 %v4949_v45, %v1105_v13 }
 0x129   : > { %v1270_v30 = vmax.bf16 %v6232_v2, %v1206_v20 }
 0x12a   : > { %v827_v24 = vpop.f32.mrb[20].mxu0  ;;  %v1271_v26 = vmax.bf16 %v6232_v2, %v1207_v21  ;;  %v5056_v27 = vpop.f32.mrb[20].mxu1 }
 0x12b   : > { %v829_v29 = vpop.f32.mrb[21].mxu0  ;;  %v5059_v31 = vpop.f32.mrb[21].mxu1 }
 0x12c   : > { %v831_v32 = vpop.f32.mrb[22].mxu0  ;;  %1590 = vmatprep.mubr.bf16.mxu1 %v1271_v26  ;;  %v5061_v34 = vpop.f32.mrb[22].mxu1 }
 0x12d   : > { %v1106_v36 = vpack.c.bf16 %v831_v32, %v827_v24  ;;  %v833_v38 = vpop.f32.mrb[23].mxu0  ;;  %1591 = vmatmul.mubr.bf16.gmra.mrb[80].mxu1 %v1270_v30  ;;  %v5065_v44 = vpop.f32.mrb[23].mxu1  ;;  %v4532_v30 = vld [vmem:[%s6223_s5 + $0xa0] ss:$8 sps:$4 sm:$0xff]   ;;  %v4534_v32 = vld [vmem:[%s6223_s5 + $0xa4] ss:$8 sps:$4 sm:$0xff]  }
 0x12e   : > { %v1107_v51 = vpack.c.bf16 %v833_v38, %v829_v29  ;;  %2313 = vmatprep.subr.bf16.mxu0 %v4534_v32  ;;  %v4535_v32 = vld [vmem:[%s6223_s5 + $0xb0] ss:$8 sps:$4 sm:$0xff]  }
 0x12f   : > { %v1208_v57 = vadd.bf16 %v4944_v42, %v1106_v36  ;;  %2314 = vmatpush1.bf16.msra.mxu0 %v4532_v30 }
 0x130   : > { %v1209_v58 = vadd.bf16 %v4949_v45, %v1107_v51 }
 0x131   : > { %v1272_v9 = vmax.bf16 %v6232_v2, %v1208_v57 }
 0x132   : > { %v837_v60 = vpop.f32.mrb[24].mxu0  ;;  %v1273_v63 = vmax.bf16 %v6232_v2, %v1209_v58  ;;  %v5078_v1 = vpop.f32.mrb[24].mxu1 }
 0x133   : > { %v839_v6 = vpop.f32.mrb[25].mxu0  ;;  %v5081_v10 = vpop.f32.mrb[25].mxu1 }
 0x134   : > { %v841_v13 = vpop.f32.mrb[26].mxu0  ;;  %1600 = vmatprep.mubr.bf16.mxu1 %v1273_v63  ;;  %v5083_v16 = vpop.f32.mrb[26].mxu1 }
 0x135   : > { %v1108_v18 = vpack.c.bf16 %v841_v13, %v837_v60  ;;  %v843_v20 = vpop.f32.mrb[27].mxu0  ;;  %1601 = vmatmul.mubr.bf16.gmra.mrb[84].mxu1 %v1272_v9  ;;  %v5087_v24 = vpop.f32.mrb[27].mxu1 }
 0x136   : > { %v1109_v26 = vpack.c.bf16 %v843_v20, %v839_v6 }
 0x137   : > { %v1210_v36 = vadd.bf16 %v4944_v42, %v1108_v18 }
 0x138   : > { %v1211_v38 = vadd.bf16 %v4949_v45, %v1109_v26 }
 0x139   : > { %v1274_v58 = vmax.bf16 %v6232_v2, %v1210_v36  ;;  %v4537_v36 = vld [vmem:[%s6223_s5 + $0xb4] ss:$8 sps:$4 sm:$0xff]  }
 0x13a   : > { %v847_v51 = vpop.f32.mrb[28].mxu0  ;;  %v1275_v55 = vmax.bf16 %v6232_v2, %v1211_v38  ;;  %v5100_v56 = vpop.f32.mrb[28].mxu1  ;;  %2315 = vmatprep.subr.bf16.mxu0 %v4537_v36 }
 0x13b   : > { %v849_v57 = vpop.f32.mrb[29].mxu0  ;;  %v5103_v60 = vpop.f32.mrb[29].mxu1  ;;  %2316 = vmatpush1.bf16.msra.mxu0 %v4535_v32 }
 0x13c   : > { %v851_v63 = vpop.f32.mrb[30].mxu0  ;;  %1610 = vmatprep.mubr.bf16.mxu1 %v1275_v55  ;;  %v5105_v6 = vpop.f32.mrb[30].mxu1 }
 0x13d   : > { %v1110_v9 = vpack.c.bf16 %v851_v63, %v847_v51  ;;  %v853_v13 = vpop.f32.mrb[31].mxu0  ;;  %1611 = vmatmul.mubr.bf16.gmra.mrb[88].mxu1 %v1274_v58  ;;  %v5109_v20 = vpop.f32.mrb[31].mxu1 }
 0x13e   : > { %v1111_v26 = vpack.c.bf16 %v853_v13, %v849_v57 }
 0x13f   : > { %v1212_v38 = vadd.bf16 %v4944_v42, %v1110_v9 }
 0x140   : > { %v1213_v51 = vadd.bf16 %v4949_v45, %v1111_v26 }
 0x141   : > { %v1276_v13 = vmax.bf16 %v6232_v2, %v1212_v38  ;;  %v4538_v38 = vld [vmem:[%s6225_s7] ss:$8 sps:$4 sm:$0xff]  }
 0x142   : > { %v857_v55 = vpop.f32.mrb[32].mxu0  ;;  %v1277_v57 = vmax.bf16 %v6232_v2, %v1213_v51  ;;  %v5122_v58 = vpop.f32.mrb[32].mxu1 }
 0x143   : > { %v859_v63 = vpop.f32.mrb[33].mxu0  ;;  %v5125_v18 = vpop.f32.mrb[33].mxu1 }
 0x144   : > { %v861_v30 = vpop.f32.mrb[34].mxu0  ;;  %1620 = vmatprep.mubr.bf16.mxu1 %v1277_v57  ;;  %v5127_v21 = vpop.f32.mrb[34].mxu1  ;;  %v4540_v57 = vld [vmem:[%s6225_s7 + $0x4] ss:$8 sps:$4 sm:$0xff]  }
 0x145   : > { %v1112_v29 = vpack.c.bf16 %v861_v30, %v857_v55  ;;  %v863_v9 = vpop.f32.mrb[35].mxu0  ;;  %1621 = vmatmul.mubr.bf16.gmra.mrb[92].mxu1 %v1276_v13  ;;  %v5131_v32 = vpop.f32.mrb[35].mxu1  ;;  %v4541_v30 = vld [vmem:[%s6223_s5 + $0xc0] ss:$8 sps:$4 sm:$0xff]   ;;  %3068 = vmatprep.subr.bf16.mxu1 %v4540_v57 }
 0x146   : > { %v1113_v36 = vpack.c.bf16 %v863_v9, %v859_v63  ;;  %v4543_v63 = vld [vmem:[%s6223_s5 + $0xc4] ss:$8 sps:$4 sm:$0xff]   ;;  %3069 = vmatpush1.bf16.msra.mxu1 %v4538_v38 }
 0x147   : > { %v1214_v55 = vadd.bf16 %v4944_v42, %v1112_v29  ;;  %2317 = vmatprep.subr.bf16.mxu0 %v4543_v63 }
 0x148   : > { %v1215_v13 = vadd.bf16 %v4949_v45, %v1113_v36  ;;  %2318 = vmatpush1.bf16.msra.mxu0 %v4541_v30 }
 0x149   : > { %v1278_v54 = vmax.bf16 %v6232_v2, %v1214_v55  ;;  %v4544_v55 = vld [vmem:[%s6223_s5 + $0xd0] ss:$8 sps:$4 sm:$0xff]  }
 0x14a   : > { %v867_v9 = vpop.f32.mrb[36].mxu0  ;;  %v1279_v26 = vmax.bf16 %v6232_v2, %v1215_v13  ;;  %v5150_v51 = vpop.f32.mrb[36].mxu1 }
 0x14b   : > { %v869_v41 = vpop.f32.mrb[37].mxu0  ;;  %v5153_v11 = vpop.f32.mrb[37].mxu1 }
 0x14c   : > { %v871_v29 = vpop.f32.mrb[38].mxu0  ;;  %1630 = vmatprep.mubr.bf16.mxu1 %v1279_v26  ;;  %v5155_v15 = vpop.f32.mrb[38].mxu1  ;;  %v4546_v26 = vld [vmem:[%s6223_s5 + $0xd4] ss:$8 sps:$4 sm:$0xff]  }
 0x14d   : > { %v1114_v47 = vpack.c.bf16 %v871_v29, %v867_v9  ;;  %v873_v36 = vpop.f32.mrb[39].mxu0  ;;  %1631 = vmatmul.mubr.bf16.gmra.mrb[96].mxu1 %v1278_v54  ;;  %v5159_v57 = vpop.f32.mrb[39].mxu1  ;;  %2319 = vmatprep.subr.bf16.mxu0 %v4546_v26 }
 0x14e   : > { %v1115_v63 = vpack.c.bf16 %v873_v36, %v869_v41  ;;  %2320 = vmatpush1.bf16.msra.mxu0 %v4544_v55 }
 0x14f   : > { %v1216_v13 = vadd.bf16 %v4944_v42, %v1114_v47 }
 0x150   : > { %v1217_v54 = vadd.bf16 %v4949_v45, %v1115_v63 }
 0x151   : > { %v1280_v38 = vmax.bf16 %v6232_v2, %v1216_v13  ;;  %v4547_v13 = vld [vmem:[%s6225_s7 + $0x10] ss:$8 sps:$4 sm:$0xff]  }
 0x152   : > { %v877_v9 = vpop.f32.mrb[40].mxu0  ;;  %v1281_v41 = vmax.bf16 %v6232_v2, %v1217_v54  ;;  %v5172_v29 = vpop.f32.mrb[40].mxu1 }
 0x153   : > { %6253 = vst [vmem:[#allocation4_spill] sm:$0xff] %v5172_v29  ;;  %v879_v36 = vpop.f32.mrb[41].mxu0  ;;  %v5175_v30 = vpop.f32.mrb[41].mxu1 }
 0x154   : > { %v881_v53 = vpop.f32.mrb[42].mxu0  ;;  %1640 = vmatprep.mubr.bf16.mxu1 %v1281_v41  ;;  %v5177_v22 = vpop.f32.mrb[42].mxu1  ;;  %v4549_v41 = vld [vmem:[%s6225_s7 + $0x14] ss:$8 sps:$4 sm:$0xff]  }
 0x155   : > { %v1116_v25 = vpack.c.bf16 %v881_v53, %v877_v9  ;;  %v883_v47 = vpop.f32.mrb[43].mxu0  ;;  %1641 = vmatmul.mubr.bf16.gmra.mrb[100].mxu1 %v1280_v38  ;;  %v5181_v55 = vpop.f32.mrb[43].mxu1  ;;  %v4550_v53 = vld [vmem:[%s6223_s5 + $0xe0] ss:$8 sps:$4 sm:$0xff]   ;;  %v4552_v9 = vld [vmem:[%s6223_s5 + $0xe4] ss:$8 sps:$4 sm:$0xff]   ;;  %3070 = vmatprep.subr.bf16.mxu1 %v4549_v41 }
 0x156   : > { %v1117_v26 = vpack.c.bf16 %v883_v47, %v879_v36  ;;  %3071 = vmatpush1.bf16.msra.mxu1 %v4547_v13  ;;  %2321 = vmatprep.subr.bf16.mxu0 %v4552_v9 }
 0x157   : > { %v1218_v38 = vadd.bf16 %v4944_v42, %v1116_v25  ;;  %2322 = vmatpush1.bf16.msra.mxu0 %v4550_v53 }
 0x158   : > { %v1219_v36 = vadd.bf16 %v4949_v45, %v1117_v26 }
 0x159   : > { %v1282_v7 = vmax.bf16 %v6232_v2, %v1218_v38 }
 0x15a   : > { %v887_v47 = vpop.f32.mrb[44].mxu0  ;;  %v1283_v63 = vmax.bf16 %v6232_v2, %v1219_v36  ;;  %v5200_v54 = vpop.f32.mrb[44].mxu1 }
 0x15b   : > { %6254 = vst [vmem:[#allocation5_spill] sm:$0xff] %v5200_v54  ;;  %v889_v4 = vpop.f32.mrb[45].mxu0  ;;  %v5203_v49 = vpop.f32.mrb[45].mxu1 }
 0x15c   : > { %6255 = vst [vmem:[#allocation6_spill] sm:$0xff] %v5203_v49  ;;  %v891_v25 = vpop.f32.mrb[46].mxu0  ;;  %1650 = vmatprep.mubr.bf16.mxu1 %v1283_v63  ;;  %v5205_v52 = vpop.f32.mrb[46].mxu1  ;;  %v6258_v63 = vmov 0  }
 0x15d   : > { %6256 = vst [vmem:[#allocation7_spill] sm:$0xff] %v5205_v52  ;;  %v1118_v35 = vpack.c.bf16 %v891_v25, %v887_v47  ;;  %v893_v26 = vpop.f32.mrb[47].mxu0  ;;  %1651 = vmatmul.mubr.bf16.gmra.mrb[104].mxu1 %v1282_v7  ;;  %v5209_v41 = vpop.f32.mrb[47].mxu1 }
 0x15e   : > { %6257 = vst [vmem:[#allocation8_spill] sm:$0xff] %v5209_v41  ;;  %v1119_v9 = vpack.c.bf16 %v893_v26, %v889_v4 }
 0x15f   : > { %v1220_v38 = vadd.bf16 %v4944_v42, %v1118_v35 }
 0x160   : > { %v1221_v36 = vadd.bf16 %v4949_v45, %v1119_v9 }
 0x161   : > { %v1284_v7 = vmax.bf16 %v6258_v63, %v1220_v38 }
 0x162   : > { %v897_v2 = vpop.f32.mrb[48].mxu0  ;;  %v1285_v28 = vmax.bf16 %v6258_v63, %v1221_v36  ;;  %v5216_v29 = vpop.f32.mrb[48].mxu1  ;;  %v4555_v36 = vld [vmem:[%s6223_s5 + $0xf4] ss:$8 sps:$4 sm:$0xff]  }
 0x163   : > { %6259 = vst [vmem:[#allocation9_spill] sm:$0xff] %v5216_v29  ;;  %v899_v47 = vpop.f32.mrb[49].mxu0  ;;  %v5219_v25 = vpop.f32.mrb[49].mxu1  ;;  %2323 = vmatprep.subr.bf16.mxu0 %v4555_v36 }
 0x164   : > { %6260 = vst [vmem:[#allocation10_spill] sm:$0xff] %v5219_v25  ;;  %v901_v13 = vpop.f32.mrb[50].mxu0  ;;  %1660 = vmatprep.mubr.bf16.mxu1 %v1285_v28  ;;  %v5221_v4 = vpop.f32.mrb[50].mxu1  ;;  %v4553_v28 = vld [vmem:[%s6223_s5 + $0xf0] ss:$8 sps:$4 sm:$0xff]  }
 0x165   : > { %6261 = vst [vmem:[#allocation11_spill] sm:$0xff] %v5221_v4  ;;  %v1120_v26 = vpack.c.bf16 %v901_v13, %v897_v2  ;;  %v903_v53 = vpop.f32.mrb[51].mxu0  ;;  %1661 = vmatmul.mubr.bf16.gmra.mrb[108].mxu1 %v1284_v7  ;;  %v5225_v9 = vpop.f32.mrb[51].mxu1  ;;  %2324 = vmatpush1.bf16.msra.mxu0 %v4553_v28  ;;  %v4556_v7 = vld [vmem:[%s6225_s7 + $0x20] ss:$8 sps:$4 sm:$0xff]  }
 0x166   : > { %6262 = vst [vmem:[#allocation12_spill] sm:$0xff] %v5225_v9  ;;  %v1121_v54 = vpack.c.bf16 %v903_v53, %v899_v47  ;;  %v4558_v53 = vld [vmem:[%s6225_s7 + $0x24] ss:$8 sps:$4 sm:$0xff]   ;;  %3786 = vmatprep.subr.bf16.mxu0 %v6258_v63 }
 0x167   : > { %v1222_v2 = vadd.bf16 %v4944_v42, %v1120_v26  ;;  %3072 = vmatprep.subr.bf16.mxu1 %v4558_v53 }
 0x168   : > { %v1223_v13 = vadd.bf16 %v4949_v45, %v1121_v54  ;;  %3073 = vmatpush1.bf16.msra.mxu1 %v4556_v7 }
 0x169   : > { %v1286_v54 = vmax.bf16 %v6258_v63, %v1222_v2 }
 0x16a   : > { %v907_v47 = vpop.f32.mrb[52].mxu0  ;;  %v1287_v35 = vmax.bf16 %v6258_v63, %v1223_v13  ;;  %v5245_v38 = vpop.f32.mrb[52].mxu1 }
 0x16b   : > { %6263 = vst [vmem:[#allocation13_spill] sm:$0xff] %v5245_v38  ;;  %v909_v26 = vpop.f32.mrb[53].mxu0  ;;  %v5248_v36 = vpop.f32.mrb[53].mxu1 }
 0x16c   : > { %v911_v28 = vpop.f32.mrb[54].mxu0  ;;  %1670 = vmatprep.mubr.bf16.mxu1 %v1287_v35  ;;  %v5250_v29 = vpop.f32.mrb[54].mxu1 }
 0x16d   : > { %6264 = vst [vmem:[#allocation14_spill] sm:$0xff] %v5250_v29  ;;  %v1122_v4 = vpack.c.bf16 %v911_v28, %v907_v47  ;;  %v913_v25 = vpop.f32.mrb[55].mxu0  ;;  %1671 = vmatmul.mubr.bf16.gmra.mrb[112].mxu1 %v1286_v54  ;;  %v5254_v13 = vpop.f32.mrb[55].mxu1 }
 0x16e   : > { %v1123_v52 = vpack.c.bf16 %v913_v25, %v909_v26 }
 0x16f   : > { %v1224_v2 = vadd.bf16 %v4944_v42, %v1122_v4 }
 0x170   : > { %v1225_v7 = vadd.bf16 %v4949_v45, %v1123_v52 }
 0x171   : > { %v1288_v54 = vmax.bf16 %v6258_v63, %v1224_v2 }
 0x172   : > { %v917_v49 = vpop.f32.mrb[56].mxu0  ;;  %v1289_v35 = vmax.bf16 %v6258_v63, %v1225_v7  ;;  %v5261_v41 = vpop.f32.mrb[56].mxu1 }
 0x173   : > { %6265 = vst [vmem:[#allocation15_spill] sm:$0xff] %v5261_v41  ;;  %v919_v47 = vpop.f32.mrb[57].mxu0  ;;  %v5264_v28 = vpop.f32.mrb[57].mxu1 }
 0x174   : > { %6266 = vst [vmem:[#allocation16_spill] sm:$0xff] %v5264_v28  ;;  %v921_v9 = vpop.f32.mrb[58].mxu0  ;;  %1680 = vmatprep.mubr.bf16.mxu1 %v1289_v35  ;;  %v5266_v25 = vpop.f32.mrb[58].mxu1  ;;  %v4559_v35 = vld [vmem:[%s6225_s7 + $0x30] ss:$8 sps:$4 sm:$0xff]  }
 0x175   : > { %6267 = vst [vmem:[#allocation17_spill] sm:$0xff] %v5266_v25  ;;  %v1124_v26 = vpack.c.bf16 %v921_v9, %v917_v49  ;;  %v923_v53 = vpop.f32.mrb[59].mxu0  ;;  %1681 = vmatmul.mubr.bf16.gmra.mrb[116].mxu1 %v1288_v54  ;;  %v5270_v4 = vpop.f32.mrb[59].mxu1  ;;  %v4561_v49 = vld [vmem:[%s6225_s7 + $0x34] ss:$8 sps:$4 sm:$0xff]  }
 0x176   : > { %6268 = vst [vmem:[#allocation18_spill] sm:$0xff] %v5270_v4  ;;  %v1125_v7 = vpack.c.bf16 %v923_v53, %v919_v47  ;;  %3074 = vmatprep.subr.bf16.mxu1 %v4561_v49 }
 0x177   : > { %v1226_v2 = vadd.bf16 %v4944_v42, %v1124_v26  ;;  %3075 = vmatpush1.bf16.msra.mxu1 %v4559_v35  ;;  %v6269_v35 = vpack.c.bf16 %v4955_v50, %v4946_v43  ;;  %v6271_v43 = vpack.c.bf16 %v4977_v5, %v4971_v62  ;;  %v6273_v5 = vpack.c.bf16 %v4999_v23, %v4993_v17  ;;  %v4565_v17 = vld [vmem:[%s6225_s7 + $0x50] ss:$8 sps:$4 sm:$0xff]   ;;  %v4567_v23 = vld [vmem:[%s6225_s7 + $0x54] ss:$8 sps:$4 sm:$0xff]  }
 0x178   : > { %v1227_v29 = vadd.bf16 %v4949_v45, %v1125_v7 }
 0x179   : > { %v1290_v47 = vmax.bf16 %v6258_v63, %v1226_v2  ;;  %v1233_v50 = vadd.bf16 %v4949_v45, %v6271_v43 }
 0x17a   : > { %v927_v9 = vpop.f32.mrb[60].mxu0  ;;  %v1291_v54 = vmax.bf16 %v6258_v63, %v1227_v29  ;;  %v5283_v52 = vpop.f32.mrb[60].mxu1 }
 0x17b   : > { %v929_v53 = vpop.f32.mrb[61].mxu0  ;;  %v5286_v26 = vpop.f32.mrb[61].mxu1 }
 0x17c   : > { %v931_v7 = vpop.f32.mrb[62].mxu0  ;;  %1690 = vmatprep.mubr.bf16.mxu1 %v1291_v54  ;;  %v5288_v38 = vpop.f32.mrb[62].mxu1  ;;  %v1231_v54 = vadd.bf16 %v4949_v45, %v6269_v35 }
 0x17d   : > { %v1126_v41 = vpack.c.bf16 %v931_v7, %v927_v9  ;;  %v933_v25 = vpop.f32.mrb[63].mxu0  ;;  %1691 = vmatmul.mubr.bf16.gmra.mrb[120].mxu1 %v1290_v47  ;;  %v5292_v29 = vpop.f32.mrb[63].mxu1 }
 0x17e   : > { %v1127_v4 = vpack.c.bf16 %v933_v25, %v929_v53  ;;  %v1159_v49 = vpack.c.bf16 %v5292_v29, %v5286_v26  ;;  %v1295_v28 = vmax.bf16 %v6258_v63, %v1231_v54  ;;  %v6270_v25 = vpack.c.bf16 %v4951_v46, %v4941_v40  ;;  %v4564_v53 = vld [vmem:[%s6225_s7 + $0x44] ss:$8 sps:$4 sm:$0xff]  }
 0x17f   : > { %v1228_v2 = vadd.bf16 %v4944_v42, %v1126_v41  ;;  %3076 = vmatprep.subr.bf16.mxu1 %v4564_v53  ;;  %v1297_v40 = vmax.bf16 %v6258_v63, %v1233_v50  ;;  %v6272_v46 = vpack.c.bf16 %v4973_v0, %v4968_v59  ;;  %v6275_v59 = vpack.c.bf16 %v5021_v48, %v5015_v37 }
 0x180   : > { %v1229_v9 = vadd.bf16 %v4949_v45, %v1127_v4  ;;  %v1230_v41 = vadd.bf16 %v4944_v42, %v6270_v25  ;;  %v4562_v4 = vld [vmem:[%s6225_s7 + $0x40] ss:$8 sps:$4 sm:$0xff]   ;;  %v6277_v48 = vpack.c.bf16 %v5043_v12, %v5037_v3  ;;  %v6278_v50 = vpack.c.bf16 %v5039_v8, %v5034_v61  ;;  %v4570_v12 = vld [vmem:[%s6225_s7 + $0x64] ss:$8 sps:$4 sm:$0xff]  }
 0x181   : > { %v1292_v7 = vmax.bf16 %v6258_v63, %v1228_v2  ;;  %3077 = vmatpush1.bf16.msra.mxu1 %v4562_v4  ;;  %v1232_v62 = vadd.bf16 %v4944_v42, %v6272_v46  ;;  %v1235_v2 = vadd.bf16 %v4949_v45, %v6273_v5  ;;  %v1237_v0 = vadd.bf16 %v4949_v45, %v6275_v59  ;;  %v4568_v3 = vld [vmem:[%s6225_s7 + $0x60] ss:$8 sps:$4 sm:$0xff]  }
 0x182   : > { %v1293_v47 = vmax.bf16 %v6258_v63, %v1229_v9  ;;  %v6274_v9 = vpack.c.bf16 %v4995_v19, %v4990_v14  ;;  %3078 = vmatprep.subr.bf16.mxu1 %v4567_v23  ;;  %v6276_v19 = vpack.c.bf16 %v5017_v39, %v5012_v33  ;;  %v1239_v25 = vadd.bf16 %v4949_v45, %v6277_v48  ;;  %v6292_v48 = vld [vmem:[#allocation8_spill] sm:$0xff] }
 0x183   : > { %v1296_v35 = vmax.bf16 %v6258_v63, %v1232_v62  ;;  %v1299_v54 = vmax.bf16 %v6258_v63, %v1235_v2  ;;  %v1301_v14 = vmax.bf16 %v6258_v63, %v1237_v0  ;;  %v1238_v4 = vadd.bf16 %v4944_v42, %v6278_v50  ;;  %v6295_v50 = vld [vmem:[#allocation2_spill] sm:$0xff] }
 0x184   : > { %1700 = vmatprep.mubr.bf16.mxu1 %v1293_v47  ;;  %v1234_v47 = vadd.bf16 %v4944_v42, %v6274_v9  ;;  %v1236_v37 = vadd.bf16 %v4944_v42, %v6276_v19  ;;  %v1303_v43 = vmax.bf16 %v6258_v63, %v1239_v25  ;;  %v6279_v33 = vpack.c.bf16 %v5065_v44, %v5059_v31 }
 0x185   : > { %1701 = vmatmul.mubr.bf16.gmra.mrb[124].mxu1 %v1292_v7  ;;  %v1302_v53 = vmax.bf16 %v6258_v63, %v1238_v4  ;;  %v6280_v8 = vpack.c.bf16 %v5061_v34, %v5056_v27  ;;  %v6281_v44 = vpack.c.bf16 %v5087_v24, %v5081_v10  ;;  %v6282_v62 = vpack.c.bf16 %v5083_v16, %v5078_v1  ;;  %v4571_v10 = vld [vmem:[%s6225_s7 + $0x70] ss:$8 sps:$4 sm:$0xff]   ;;  %v4573_v24 = vld [vmem:[%s6225_s7 + $0x74] ss:$8 sps:$4 sm:$0xff]  }
 0x186   : > { %1710 = vmatprep.mubr.bf16.mxu1 %v1295_v28  ;;  %v1294_v28 = vmax.bf16 %v6258_v63, %v1230_v41  ;;  %v1298_v7 = vmax.bf16 %v6258_v63, %v1234_v47  ;;  %3079 = vmatpush1.bf16.msra.mxu1 %v4565_v17  ;;  %v1300_v41 = vmax.bf16 %v6258_v63, %v1236_v37 }
 0x187   : > { %v1241_v39 = vadd.bf16 %v4949_v45, %v6279_v33  ;;  %3080 = vmatprep.subr.bf16.mxu1 %v4570_v12  ;;  %v1240_v31 = vadd.bf16 %v4944_v42, %v6280_v8  ;;  %v1242_v5 = vadd.bf16 %v4944_v42, %v6282_v62  ;;  %v6283_v27 = vpack.c.bf16 %v5109_v20, %v5103_v60 }
 0x188   : > { %v6284_v16 = vpack.c.bf16 %v5105_v6, %v5100_v56  ;;  %v6285_v20 = vpack.c.bf16 %v5131_v32, %v5125_v18  ;;  %v6286_v47 = vpack.c.bf16 %v5127_v21, %v5122_v58  ;;  %v6287_v56 = vpack.c.bf16 %v5159_v57, %v5153_v11  ;;  %v4574_v18 = vld [vmem:[%s6225_s7 + $0x80] ss:$8 sps:$4 sm:$0xff]   ;;  %v4576_v32 = vld [vmem:[%s6225_s7 + $0x84] ss:$8 sps:$4 sm:$0xff]  }
 0x189   : > { %v1305_v61 = vmax.bf16 %v6258_v63, %v1241_v39  ;;  %v1245_v34 = vadd.bf16 %v4949_v45, %v6283_v27  ;;  %v1306_v2 = vmax.bf16 %v6258_v63, %v1242_v5  ;;  %v6288_v11 = vpack.c.bf16 %v5155_v15, %v5150_v51  ;;  %v6290_v15 = vld [vmem:[#allocation4_spill] sm:$0xff]  ;;  %v6302_v27 = vld [vmem:[#allocation3_spill] sm:$0xff] }
 0x18a   : > { %3081 = vmatpush1.bf16.msra.mxu1 %v4568_v3  ;;  %v1244_v60 = vadd.bf16 %v4944_v42, %v6284_v16  ;;  %v1246_v59 = vadd.bf16 %v4944_v42, %v6286_v47  ;;  %v1249_v6 = vadd.bf16 %v4949_v45, %v6287_v56  ;;  %v6289_v57 = vpack.c.bf16 %v5181_v55, %v5175_v30  ;;  %v6293_v30 = vld [vmem:[#allocation6_spill] sm:$0xff]  ;;  %v6304_v47 = vld [vmem:[#allocation9_spill] sm:$0xff] }
 0x18b   : > { %3082 = vmatprep.subr.bf16.mxu1 %v4573_v24  ;;  %v1309_v1 = vmax.bf16 %v6258_v63, %v1245_v34  ;;  %v1248_v58 = vadd.bf16 %v4944_v42, %v6288_v11  ;;  %v6291_v51 = vpack.c.bf16 %v5177_v22, %v6290_v15  ;;  %v6294_v55 = vpack.c.bf16 %v6292_v48, %v6293_v30  ;;  %v4582_v11 = vld [vmem:[%s6225_s7 + $0xa4] ss:$8 sps:$4 sm:$0xff]  }
 0x18c   : > { %v1310_v0 = vmax.bf16 %v6258_v63, %v1246_v59  ;;  %v1313_v21 = vmax.bf16 %v6258_v63, %v1249_v6  ;;  %v1251_v17 = vadd.bf16 %v4949_v45, %v6289_v57  ;;  %v6306_v6 = vpack.c.bf16 %v5254_v13, %v5248_v36 }
 0x18d   : > { %1711 = vmatmul.mubr.bf16.gmra.mrb[128].mxu1 %v1294_v28  ;;  %v1243_v28 = vadd.bf16 %v4949_v45, %v6281_v44  ;;  %v1312_v23 = vmax.bf16 %v6258_v63, %v1248_v58  ;;  %v1250_v37 = vadd.bf16 %v4944_v42, %v6291_v51  ;;  %v1253_v25 = vadd.bf16 %v4949_v45, %v6294_v55  ;;  %v6299_v44 = vld [vmem:[#allocation12_spill] sm:$0xff]  ;;  %v6307_v51 = vld [vmem:[#allocation14_spill] sm:$0xff] }
 0x18e   : > { %1720 = vmatprep.mubr.bf16.mxu1 %v1297_v40  ;;  %v1304_v40 = vmax.bf16 %v6258_v63, %v1240_v31  ;;  %3083 = vmatpush1.bf16.msra.mxu1 %v4571_v10  ;;  %v6310_v55 = vld [vmem:[#allocation18_spill] sm:$0xff] }
 0x18f   : > { %v1307_v46 = vmax.bf16 %v6258_v63, %v1243_v28  ;;  %3084 = vmatprep.subr.bf16.mxu1 %v4576_v32  ;;  %v1314_v22 = vmax.bf16 %v6258_v63, %v1250_v37  ;;  %v1317_v39 = vmax.bf16 %v6258_v63, %v1253_v25  ;;  %v6300_v28 = vld [vmem:[#allocation10_spill] sm:$0xff]  ;;  %v6308_v37 = vld [vmem:[#allocation13_spill] sm:$0xff]  ;;  %v6311_v25 = vld [vmem:[#allocation16_spill] sm:$0xff] }
 0x190   : > { %v6309_v48 = vpack.c.bf16 %v6307_v51, %v6308_v37 }
 0x192   : > { %3085 = vmatpush1.bf16.msra.mxu1 %v4574_v18  ;;  %v1257_v18 = vadd.bf16 %v4949_v45, %v6306_v6  ;;  %v1256_v30 = vadd.bf16 %v4944_v42, %v6309_v48 }
 0x195   : > { %1721 = vmatmul.mubr.bf16.gmra.mrb[132].mxu1 %v1296_v35  ;;  %v1247_v35 = vadd.bf16 %v4949_v45, %v6285_v20 }
 0x196   : > { %1730 = vmatprep.mubr.bf16.mxu1 %v1299_v54  ;;  %v1308_v54 = vmax.bf16 %v6258_v63, %v1244_v60 }
 0x197   : > { %v1311_v9 = vmax.bf16 %v6258_v63, %v1247_v35 }
 0x19d   : > { %1731 = vmatmul.mubr.bf16.gmra.mrb[136].mxu1 %v1298_v7  ;;  %v4286_v7 = vld.sshfl [vmem:[%s6222_s4] sm:$0x11 pattern:$0x75316420] }
 0x19e   : > { %1740 = vmatprep.mubr.bf16.mxu1 %v1301_v14  ;;  %v1315_v14 = vmax.bf16 %v6258_v63, %v1251_v17  ;;  %v1944_v19 = vcombine.high %v4286_v7, %v4286_v7  ;;  %v1951_v4 = vrot.slane %v4286_v7, %v6295_v50 }
 0x1a0   : > { %v1958_v33 = vrot.slane %v1944_v19, %v6295_v50  ;;  %v1960_v3 = vpack.i.b16 %v1951_v4, %v1951_v4 }
 0x1a2   : > { %v1967_v12 = vpack.i.b16 %v1958_v33, %v1958_v33  ;;  %v5465_v34 = vrot.slane %v1960_v3, %v6302_v27 }
 0x1a4   : > { %v5468_v24 = vrot.slane %v1967_v12, %v6302_v27 }
 0x1a5   : > { %1741 = vmatmul.mubr.bf16.gmra.mrb[140].mxu1 %v1300_v41  ;;  %v4577_v41 = vld [vmem:[%s6225_s7 + $0x90] ss:$8 sps:$4 sm:$0xff]  }
 0x1a6   : > { %1750 = vmatprep.mubr.bf16.mxu1 %v1303_v43  ;;  %v4579_v43 = vld [vmem:[%s6225_s7 + $0x94] ss:$8 sps:$4 sm:$0xff]  }
 0x1a7   : > { %3086 = vmatprep.subr.bf16.mxu1 %v4579_v43 }
 0x1a8   : > { %3087 = vmatpush1.bf16.msra.mxu1 %v4577_v41  ;;  %v6312_v41 = vpack.c.bf16 %v6310_v55, %v6311_v25 }
 0x1a9   : > { %3088 = vmatprep.subr.bf16.mxu1 %v4582_v11 }
 0x1aa   : > { %v1259_v43 = vadd.bf16 %v4949_v45, %v6312_v41 }
 0x1ad   : > { %1751 = vmatmul.mubr.bf16.gmra.mrb[144].mxu1 %v1302_v53  ;;  %v6296_v53 = vld [vmem:[#allocation7_spill] sm:$0xff] }
 0x1ae   : > { %1760 = vmatprep.mubr.bf16.mxu1 %v1305_v61  ;;  %v6297_v61 = vld [vmem:[#allocation5_spill] sm:$0xff] }
 0x1af   : > { %v6298_v8 = vpack.c.bf16 %v6296_v53, %v6297_v61  ;;  %v1320_v61 = vmax.bf16 %v6258_v63, %v1256_v30 }
 0x1b1   : > { %v1252_v31 = vadd.bf16 %v4944_v42, %v6298_v8 }
 0x1b3   : > { %v1316_v16 = vmax.bf16 %v6258_v63, %v1252_v31  ;;  %v1323_v31 = vmax.bf16 %v6258_v63, %v1259_v43 }
 0x1b5   : > { %1761 = vmatmul.mubr.bf16.gmra.mrb[148].mxu1 %v1304_v40  ;;  %v6301_v40 = vpack.c.bf16 %v6299_v44, %v6300_v28 }
 0x1b6   : > { %1770 = vmatprep.mubr.bf16.mxu1 %v1307_v46 }
 0x1b7   : > { %v1255_v46 = vadd.bf16 %v4949_v45, %v6301_v40  ;;  %v6313_v40 = vld [vmem:[#allocation17_spill] sm:$0xff] }
 0x1b9   : > { %v1319_v20 = vmax.bf16 %v6258_v63, %v1255_v46  ;;  %v6314_v46 = vld [vmem:[#allocation15_spill] sm:$0xff] }
 0x1bd   : > { %1771 = vmatmul.mubr.bf16.gmra.mrb[152].mxu1 %v1306_v2 }
 0x1be   : > { %1780 = vmatprep.mubr.bf16.mxu1 %v1309_v1 }
 0x1c5   : > { %1781 = vmatmul.mubr.bf16.gmra.mrb[156].mxu1 %v1308_v54 }
 0x1c6   : > { %1790 = vmatprep.mubr.bf16.mxu1 %v1311_v9  ;;  %v6303_v9 = vld [vmem:[#allocation11_spill] sm:$0xff] }
 0x1c7   : > { %v6305_v59 = vpack.c.bf16 %v6303_v9, %v6304_v47 }
 0x1c9   : > { %v1254_v56 = vadd.bf16 %v4944_v42, %v6305_v59 }
 0x1cd   : > { %1791 = vmatmul.mubr.bf16.gmra.mrb[160].mxu1 %v1310_v0 }
 0x1ce   : > { %1800 = vmatprep.mubr.bf16.mxu1 %v1313_v21  ;;  %v4580_v21 = vld [vmem:[%s6225_s7 + $0xa0] ss:$8 sps:$4 sm:$0xff]  }
 0x1cf   : > { %3089 = vmatpush1.bf16.msra.mxu1 %v4580_v21 }
 0x1d5   : > { %1801 = vmatmul.mubr.bf16.gmra.mrb[164].mxu1 %v1312_v23  ;;  %v1318_v23 = vmax.bf16 %v6258_v63, %v1254_v56  ;;  %v6316_v56 = vpack.c.bf16 %v5288_v38, %v5283_v52 }
 0x1d6   : > { %1810 = vmatprep.mubr.bf16.mxu1 %v1315_v14  ;;  %v1321_v14 = vmax.bf16 %v6258_v63, %v1257_v18 }
 0x1d7   : > { %v1260_v6 = vadd.bf16 %v4944_v42, %v6316_v56 }
 0x1dd   : > { %1811 = vmatmul.mubr.bf16.gmra.mrb[168].mxu1 %v1314_v22 }
 0x1de   : > { %1820 = vmatprep.mubr.bf16.mxu1 %v1317_v39 }
 0x1e0   : > { %v1552_v62 = vpop.f32.mrb[64].mxu1 }
 0x1e1   : > { %v1554_v5 = vpop.f32.mrb[65].mxu1 }
 0x1e2   : > { %v1556_v10 = vpop.f32.mrb[66].mxu1 }
 0x1e3   : > { %v1871_v2 = vpack.c.bf16 %v1556_v10, %v1552_v62  ;;  %v1558_v1 = vpop.f32.mrb[67].mxu1  ;;  %v6315_v62 = vpack.c.bf16 %v6313_v40, %v6314_v46  ;;  %v1261_v10 = vadd.bf16 %v4949_v45, %v1159_v49 }
 0x1e4   : > { %v1872_v60 = vpack.c.bf16 %v1558_v1, %v1554_v5 }
 0x1e5   : > { %v1973_v35 = vadd.bf16 %v5465_v34, %v1871_v2  ;;  %1821 = vmatmul.mubr.bf16.gmra.mrb[172].mxu1 %v1316_v16  ;;  %v1258_v5 = vadd.bf16 %v4944_v42, %v6315_v62  ;;  %v4583_v16 = vld [vmem:[%s6225_s7 + $0xb0] ss:$8 sps:$4 sm:$0xff]   ;;  %v1325_v9 = vmax.bf16 %v6258_v63, %v1261_v10 }
 0x1e6   : > { %v1974_v54 = vadd.bf16 %v5468_v24, %v1872_v60  ;;  %1830 = vmatprep.mubr.bf16.mxu1 %v1319_v20  ;;  %v4585_v60 = vld [vmem:[%s6225_s7 + $0xb4] ss:$8 sps:$4 sm:$0xff]  }
 0x1e7   : > { %v2037_v58 = vmax.bf16 %v6258_v63, %v1973_v35  ;;  %3090 = vmatprep.subr.bf16.mxu1 %v4585_v60  ;;  %v1322_v45 = vmax.bf16 %v6258_v63, %v1258_v5 }
 0x1e8   : > { %v1562_v32 = vpop.f32.mrb[68].mxu1  ;;  %v2038_v0 = vmax.bf16 %v6258_v63, %v1974_v54  ;;  %3091 = vmatpush1.bf16.msra.mxu1 %v4583_v16 }
 0x1e9   : > { %v1564_v57 = vpop.f32.mrb[69].mxu1 }
 0x1ea   : > { %v1566_v17 = vpop.f32.mrb[70].mxu1  ;;  %2325 = vmatprep.mubr.bf16.mxu0 %v2038_v0 }
 0x1eb   : > { %v1873_v36 = vpack.c.bf16 %v1566_v17, %v1562_v32  ;;  %v1568_v13 = vpop.f32.mrb[71].mxu1  ;;  %2326 = vmatmul.mubr.bf16.vlgmr.msra.gmra.mrb[64].mxu0 %v2037_v58  ;;  %v1324_v17 = vmax.bf16 %v6258_v63, %v1260_v6  ;;  %v4593_v6 = vld [vmem:[%s6225_s7 + $0xe0] ss:$8 sps:$4 sm:$0xff]  }
 0x1ec   : > { %v1874_v7 = vpack.c.bf16 %v1568_v13, %v1564_v57 }
 0x1ed   : > { %v1975_v19 = vadd.bf16 %v5465_v34, %v1873_v36  ;;  %1831 = vmatmul.mubr.bf16.gmra.mrb[176].mxu1 %v1318_v23  ;;  %v4586_v23 = vld [vmem:[%s6225_s7 + $0xc0] ss:$8 sps:$4 sm:$0xff]  }
 0x1ee   : > { %v1976_v15 = vadd.bf16 %v5468_v24, %v1874_v7  ;;  %1840 = vmatprep.mubr.bf16.mxu1 %v1321_v14  ;;  %v4588_v7 = vld [vmem:[%s6225_s7 + $0xc4] ss:$8 sps:$4 sm:$0xff]  }
 0x1ef   : > { %v2039_v39 = vmax.bf16 %v6258_v63, %v1975_v19  ;;  %3092 = vmatprep.subr.bf16.mxu1 %v4588_v7 }
 0x1f0   : > { %v1572_v4 = vpop.f32.mrb[72].mxu1  ;;  %v2040_v33 = vmax.bf16 %v6258_v63, %v1976_v15  ;;  %3093 = vmatpush1.bf16.msra.mxu1 %v4586_v23 }
 0x1f1   : > { %v1574_v22 = vpop.f32.mrb[73].mxu1 }
 0x1f2   : > { %v1576_v3 = vpop.f32.mrb[74].mxu1  ;;  %2335 = vmatprep.mubr.bf16.mxu0 %v2040_v33 }
 0x1f3   : > { %v1875_v12 = vpack.c.bf16 %v1576_v3, %v1572_v4  ;;  %v1578_v53 = vpop.f32.mrb[75].mxu1  ;;  %2336 = vmatmul.mubr.bf16.gmra.mrb[68].mxu0 %v2039_v39 }
 0x1f4   : > { %v1876_v8 = vpack.c.bf16 %v1578_v53, %v1574_v22 }
 0x1f5   : > { %v1977_v44 = vadd.bf16 %v5465_v34, %v1875_v12  ;;  %1841 = vmatmul.mubr.bf16.gmra.mrb[180].mxu1 %v1320_v61 }
 0x1f6   : > { %v1978_v28 = vadd.bf16 %v5468_v24, %v1876_v8  ;;  %1850 = vmatprep.mubr.bf16.mxu1 %v1323_v31  ;;  %v4589_v31 = vld [vmem:[%s6225_s7 + $0xd0] ss:$8 sps:$4 sm:$0xff]  }
 0x1f7   : > { %v2041_v35 = vmax.bf16 %v6258_v63, %v1977_v44  ;;  %v4591_v44 = vld [vmem:[%s6225_s7 + $0xd4] ss:$8 sps:$4 sm:$0xff]  }
 0x1f8   : > { %v1582_v2 = vpop.f32.mrb[76].mxu1  ;;  %v2042_v1 = vmax.bf16 %v6258_v63, %v1978_v28  ;;  %3094 = vmatprep.subr.bf16.mxu1 %v4591_v44 }
 0x1f9   : > { %v1584_v20 = vpop.f32.mrb[77].mxu1  ;;  %3095 = vmatpush1.bf16.msra.mxu1 %v4589_v31 }
 0x1fa   : > { %v1586_v54 = vpop.f32.mrb[78].mxu1  ;;  %2345 = vmatprep.mubr.bf16.mxu0 %v2042_v1 }
 0x1fb   : > { %v1877_v26 = vpack.c.bf16 %v1586_v54, %v1582_v2  ;;  %v1588_v29 = vpop.f32.mrb[79].mxu1  ;;  %2346 = vmatmul.mubr.bf16.gmra.mrb[72].mxu0 %v2041_v35 }
 0x1fc   : > { %v1878_v49 = vpack.c.bf16 %v1588_v29, %v1584_v20 }
 0x1fd   : > { %v1979_v47 = vadd.bf16 %v5465_v34, %v1877_v26  ;;  %1851 = vmatmul.mubr.bf16.gmra.mrb[184].mxu1 %v1322_v45 }
 0x1fe   : > { %v1980_v59 = vadd.bf16 %v5468_v24, %v1878_v49  ;;  %1860 = vmatprep.mubr.bf16.mxu1 %v1325_v9 }
 0x1ff   : > { %v2043_v21 = vmax.bf16 %v6258_v63, %v1979_v47  ;;  %v4592_v47 = vld [vmem:[%s6227_s9] sm:$0xff]  }
 0x200   : > { %v1592_v18 = vpop.f32.mrb[80].mxu1  ;;  %v2044_v32 = vmax.bf16 %v6258_v63, %v1980_v59  ;;  %3787 = vmatpush1.bf16.msra.mxu0 %v4592_v47 }
 0x201   : > { %v1594_v0 = vpop.f32.mrb[81].mxu1  ;;  %3788 = vmatprep.subr.bf16.mxu0 %v6258_v63 }
 0x202   : > { %v1596_v11 = vpop.f32.mrb[82].mxu1  ;;  %2355 = vmatprep.mubr.bf16.mxu0 %v2044_v32 }
 0x203   : > { %v1879_v58 = vpack.c.bf16 %v1596_v11, %v1592_v18  ;;  %v1598_v57 = vpop.f32.mrb[83].mxu1  ;;  %2356 = vmatmul.mubr.bf16.gmra.mrb[76].mxu0 %v2043_v21  ;;  %v4595_v18 = vld [vmem:[%s6225_s7 + $0xe4] ss:$8 sps:$4 sm:$0xff]  }
 0x204   : > { %v1880_v36 = vpack.c.bf16 %v1598_v57, %v1594_v0  ;;  %3096 = vmatprep.subr.bf16.mxu1 %v4595_v18 }
 0x205   : > { %v1981_v13 = vadd.bf16 %v5465_v34, %v1879_v58  ;;  %1861 = vmatmul.mubr.bf16.gmra.mrb[188].mxu1 %v1324_v17 }
 0x206   : > { %v1982_v38 = vadd.bf16 %v5468_v24, %v1880_v36  ;;  %3097 = vmatpush1.bf16.msra.mxu1 %v4593_v6 }
 0x207   : > { %v2045_v19 = vmax.bf16 %v6258_v63, %v1981_v13 }
 0x208   : > { %v1602_v42 = vpop.f32.mrb[84].mxu1  ;;  %v2046_v52 = vmax.bf16 %v6258_v63, %v1982_v38 }
 0x209   : > { %v1604_v14 = vpop.f32.mrb[85].mxu1 }
 0x20a   : > { %v1606_v15 = vpop.f32.mrb[86].mxu1  ;;  %2365 = vmatprep.mubr.bf16.mxu0 %v2046_v52 }
 0x20b   : > { %v1881_v51 = vpack.c.bf16 %v1606_v15, %v1602_v42  ;;  %v1608_v37 = vpop.f32.mrb[87].mxu1  ;;  %2366 = vmatmul.mubr.bf16.gmra.mrb[80].mxu0 %v2045_v19 }
 0x20c   : > { %v1882_v48 = vpack.c.bf16 %v1608_v37, %v1604_v14  ;;  %v4596_v37 = vld [vmem:[%s6227_s9 + $0x8] sm:$0xff]  }
 0x20d   : > { %v1983_v30 = vadd.bf16 %v5465_v34, %v1881_v51  ;;  %3789 = vmatpush1.bf16.msra.mxu0 %v4596_v37 }
 0x20e   : > { %v1984_v55 = vadd.bf16 %v5468_v24, %v1882_v48  ;;  %3790 = vmatprep.subr.bf16.mxu0 %v6258_v63 }
 0x20f   : > { %v2047_v4 = vmax.bf16 %v6258_v63, %v1983_v30 }
 0x210   : > { %v1612_v25 = vpop.f32.mrb[88].mxu1  ;;  %v2048_v41 = vmax.bf16 %v6258_v63, %v1984_v55  ;;  %v4597_v55 = vld [vmem:[%s6225_s7 + $0xf0] ss:$8 sps:$4 sm:$0xff]  }
 0x211   : > { %v1614_v43 = vpop.f32.mrb[89].mxu1 }
 0x212   : > { %v1616_v33 = vpop.f32.mrb[90].mxu1  ;;  %2375 = vmatprep.mubr.bf16.mxu0 %v2048_v41 }
 0x213   : > { %v1883_v22 = vpack.c.bf16 %v1616_v33, %v1612_v25  ;;  %v1618_v39 = vpop.f32.mrb[91].mxu1  ;;  %2376 = vmatmul.mubr.bf16.gmra.mrb[84].mxu0 %v2047_v4  ;;  %v4599_v25 = vld [vmem:[%s6225_s7 + $0xf4] ss:$8 sps:$4 sm:$0xff]  }
 0x214   : > { %v1884_v3 = vpack.c.bf16 %v1618_v39, %v1614_v43  ;;  %3098 = vmatprep.subr.bf16.mxu1 %v4599_v25 }
 0x215   : > { %v1985_v12 = vadd.bf16 %v5465_v34, %v1883_v22  ;;  %3099 = vmatpush1.bf16.msra.mxu1 %v4597_v55 }
 0x216   : > { %v1986_v53 = vadd.bf16 %v5468_v24, %v1884_v3 }
 0x217   : > { %v2049_v40 = vmax.bf16 %v6258_v63, %v1985_v12 }
 0x218   : > { %v1622_v61 = vpop.f32.mrb[92].mxu1  ;;  %v2050_v8 = vmax.bf16 %v6258_v63, %v1986_v53 }
 0x219   : > { %v1624_v28 = vpop.f32.mrb[93].mxu1 }
 0x21a   : > { %v1626_v46 = vpop.f32.mrb[94].mxu1  ;;  %2385 = vmatprep.mubr.bf16.mxu0 %v2050_v8 }
 0x21b   : > { %v1885_v62 = vpack.c.bf16 %v1626_v46, %v1622_v61  ;;  %v1628_v5 = vpop.f32.mrb[95].mxu1  ;;  %2386 = vmatmul.mubr.bf16.gmra.mrb[88].mxu0 %v2049_v40 }
 0x21c   : > { %v1886_v10 = vpack.c.bf16 %v1628_v5, %v1624_v28 }
 0x21d   : > { %v1987_v2 = vadd.bf16 %v5465_v34, %v1885_v62 }
 0x21e   : > { %v1988_v1 = vadd.bf16 %v5468_v24, %v1886_v10  ;;  %v4600_v10 = vld [vmem:[%s6227_s9 + $0x10] sm:$0xff]  }
 0x21f   : > { %v2051_v35 = vmax.bf16 %v6258_v63, %v1987_v2  ;;  %3791 = vmatpush1.bf16.msra.mxu0 %v4600_v10 }
 0x220   : > { %v1632_v16 = vpop.f32.mrb[96].mxu1  ;;  %v2052_v60 = vmax.bf16 %v6258_v63, %v1988_v1  ;;  %3792 = vmatprep.subr.bf16.mxu0 %v6258_v63 }
 0x221   : > { %v1634_v20 = vpop.f32.mrb[97].mxu1 }
 0x222   : > { %v1636_v54 = vpop.f32.mrb[98].mxu1  ;;  %2395 = vmatprep.mubr.bf16.mxu0 %v2052_v60 }
 0x223   : > { %v1887_v26 = vpack.c.bf16 %v1636_v54, %v1632_v16  ;;  %v1638_v29 = vpop.f32.mrb[99].mxu1  ;;  %2396 = vmatmul.mubr.bf16.gmra.mrb[92].mxu0 %v2051_v35 }
 0x224   : > { %v1888_v45 = vpack.c.bf16 %v1638_v29, %v1634_v20 }
 0x225   : > { %v1989_v49 = vadd.bf16 %v5465_v34, %v1887_v26 }
 0x226   : > { %v1990_v9 = vadd.bf16 %v5468_v24, %v1888_v45 }
 0x227   : > { %v2053_v0 = vmax.bf16 %v6258_v63, %v1989_v49 }
 0x228   : > { %v1642_v59 = vpop.f32.mrb[100].mxu1  ;;  %v2054_v56 = vmax.bf16 %v6258_v63, %v1990_v9 }
 0x229   : > { %v1644_v32 = vpop.f32.mrb[101].mxu1 }
 0x22a   : > { %v1646_v21 = vpop.f32.mrb[102].mxu1  ;;  %2405 = vmatprep.mubr.bf16.mxu0 %v2054_v56 }
 0x22b   : > { %v1889_v11 = vpack.c.bf16 %v1646_v21, %v1642_v59  ;;  %v1648_v58 = vpop.f32.mrb[103].mxu1  ;;  %2406 = vmatmul.mubr.bf16.gmra.mrb[96].mxu0 %v2053_v0 }
 0x22c   : > { %v1890_v57 = vpack.c.bf16 %v1648_v58, %v1644_v32 }
 0x22d   : > { %v1991_v17 = vadd.bf16 %v5465_v34, %v1889_v11  ;;  %v4601_v11 = vld [vmem:[%s6227_s9 + $0x18] sm:$0xff]  }
 0x22e   : > { %v1992_v36 = vadd.bf16 %v5468_v24, %v1890_v57  ;;  %3793 = vmatpush1.bf16.msra.mxu0 %v4601_v11 }
 0x22f   : > { %v2055_v52 = vmax.bf16 %v6258_v63, %v1991_v17  ;;  %3794 = vmatprep.subr.bf16.mxu0 %v6258_v63 }
 0x230   : > { %v1652_v13 = vpop.f32.mrb[104].mxu1  ;;  %v2056_v38 = vmax.bf16 %v6258_v63, %v1992_v36 }
 0x231   : > { %v1654_v42 = vpop.f32.mrb[105].mxu1 }
 0x232   : > { %v1656_v23 = vpop.f32.mrb[106].mxu1  ;;  %2415 = vmatprep.mubr.bf16.mxu0 %v2056_v38 }
 0x233   : > { %v1891_v7 = vpack.c.bf16 %v1656_v23, %v1652_v13  ;;  %v1658_v14 = vpop.f32.mrb[107].mxu1  ;;  %2416 = vmatmul.mubr.bf16.gmra.mrb[100].mxu0 %v2055_v52 }
 0x234   : > { %v1892_v19 = vpack.c.bf16 %v1658_v14, %v1654_v42 }
 0x235   : > { %v1993_v15 = vadd.bf16 %v5465_v34, %v1891_v7 }
 0x236   : > { %v1994_v51 = vadd.bf16 %v5468_v24, %v1892_v19 }
 0x237   : > { %v2057_v43 = vmax.bf16 %v6258_v63, %v1993_v15 }
 0x238   : > { %v1662_v48 = vpop.f32.mrb[108].mxu1  ;;  %v2058_v30 = vmax.bf16 %v6258_v63, %v1994_v51 }
 0x239   : > { %v1664_v41 = vpop.f32.mrb[109].mxu1 }
 0x23a   : > { %v1666_v4 = vpop.f32.mrb[110].mxu1  ;;  %2425 = vmatprep.mubr.bf16.mxu0 %v2058_v30 }
 0x23b   : > { %v1893_v33 = vpack.c.bf16 %v1666_v4, %v1662_v48  ;;  %v1668_v22 = vpop.f32.mrb[111].mxu1  ;;  %2426 = vmatmul.mubr.bf16.gmra.mrb[104].mxu0 %v2057_v43  ;;  %v4602_v43 = vld [vmem:[%s6227_s9 + $0x20] sm:$0xff]  }
 0x23c   : > { %v1894_v39 = vpack.c.bf16 %v1668_v22, %v1664_v41  ;;  %3795 = vmatpush1.bf16.msra.mxu0 %v4602_v43 }
 0x23d   : > { %v1995_v3 = vadd.bf16 %v5465_v34, %v1893_v33  ;;  %3796 = vmatprep.subr.bf16.mxu0 %v6258_v63 }
 0x23e   : > { %v1996_v12 = vadd.bf16 %v5468_v24, %v1894_v39 }
 0x23f   : > { %v2059_v31 = vmax.bf16 %v6258_v63, %v1995_v3 }
 0x240   : > { %v1672_v53 = vpop.f32.mrb[112].mxu1  ;;  %v2060_v61 = vmax.bf16 %v6258_v63, %v1996_v12 }
 0x241   : > { %v1674_v8 = vpop.f32.mrb[113].mxu1 }
 0x242   : > { %v1676_v44 = vpop.f32.mrb[114].mxu1  ;;  %2435 = vmatprep.mubr.bf16.mxu0 %v2060_v61 }
 0x243   : > { %v1895_v28 = vpack.c.bf16 %v1676_v44, %v1672_v53  ;;  %v1678_v40 = vpop.f32.mrb[115].mxu1  ;;  %2436 = vmatmul.mubr.bf16.gmra.mrb[108].mxu0 %v2059_v31 }
 0x244   : > { %v1896_v46 = vpack.c.bf16 %v1678_v40, %v1674_v8 }
 0x245   : > { %v1997_v62 = vadd.bf16 %v5465_v34, %v1895_v28 }
 0x246   : > { %v1998_v5 = vadd.bf16 %v5468_v24, %v1896_v46 }
 0x247   : > { %v2061_v60 = vmax.bf16 %v6258_v63, %v1997_v62 }
 0x248   : > { %v1682_v2 = vpop.f32.mrb[116].mxu1  ;;  %v2062_v1 = vmax.bf16 %v6258_v63, %v1998_v5 }
 0x249   : > { %v1684_v16 = vpop.f32.mrb[117].mxu1 }
 0x24a   : > { %v1686_v20 = vpop.f32.mrb[118].mxu1  ;;  %2445 = vmatprep.mubr.bf16.mxu0 %v2062_v1 }
 0x24b   : > { %v1897_v35 = vpack.c.bf16 %v1686_v20, %v1682_v2  ;;  %v1688_v54 = vpop.f32.mrb[119].mxu1  ;;  %2446 = vmatmul.mubr.bf16.gmra.mrb[112].mxu0 %v2061_v60  ;;  %v4603_v60 = vld [vmem:[%s6227_s9 + $0x28] sm:$0xff]  }
 0x24c   : > { %v1898_v26 = vpack.c.bf16 %v1688_v54, %v1684_v16  ;;  %3797 = vmatpush1.bf16.msra.mxu0 %v4603_v60 }
 0x24d   : > { %v1999_v29 = vadd.bf16 %v5465_v34, %v1897_v35  ;;  %3798 = vmatprep.subr.bf16.mxu0 %v6258_v63 }
 0x24e   : > { %v2000_v45 = vadd.bf16 %v5468_v24, %v1898_v26 }
 0x24f   : > { %v2063_v59 = vmax.bf16 %v6258_v63, %v1999_v29 }
 0x250   : > { %v1692_v49 = vpop.f32.mrb[120].mxu1  ;;  %v2064_v9 = vmax.bf16 %v6258_v63, %v2000_v45 }
 0x251   : > { %v1694_v47 = vpop.f32.mrb[121].mxu1 }
 0x252   : > { %v1696_v56 = vpop.f32.mrb[122].mxu1  ;;  %2455 = vmatprep.mubr.bf16.mxu0 %v2064_v9 }
 0x253   : > { %v1899_v6 = vpack.c.bf16 %v1696_v56, %v1692_v49  ;;  %v1698_v18 = vpop.f32.mrb[123].mxu1  ;;  %2456 = vmatmul.mubr.bf16.gmra.mrb[116].mxu0 %v2063_v59 }
 0x254   : > { %v1900_v32 = vpack.c.bf16 %v1698_v18, %v1694_v47 }
 0x255   : > { %v2001_v0 = vadd.bf16 %v5465_v34, %v1899_v6 }
 0x256   : > { %v2002_v21 = vadd.bf16 %v5468_v24, %v1900_v32 }
 0x257   : > { %v2065_v36 = vmax.bf16 %v6258_v63, %v2001_v0 }
 0x258   : > { %v1702_v58 = vpop.f32.mrb[124].mxu1  ;;  %v2066_v57 = vmax.bf16 %v6258_v63, %v2002_v21 }
 0x259   : > { %v1704_v17 = vpop.f32.mrb[125].mxu1 }
 0x25a   : > { %v1706_v13 = vpop.f32.mrb[126].mxu1  ;;  %2465 = vmatprep.mubr.bf16.mxu0 %v2066_v57 }
 0x25b   : > { %v1901_v38 = vpack.c.bf16 %v1706_v13, %v1702_v58  ;;  %v1708_v42 = vpop.f32.mrb[127].mxu1  ;;  %2466 = vmatmul.mubr.bf16.gmra.mrb[120].mxu0 %v2065_v36  ;;  %v4604_v36 = vld [vmem:[%s6227_s9 + $0x30] sm:$0xff]  }
 0x25c   : > { %v1902_v52 = vpack.c.bf16 %v1708_v42, %v1704_v17  ;;  %3799 = vmatpush1.bf16.msra.mxu0 %v4604_v36 }
 0x25d   : > { %v2003_v23 = vadd.bf16 %v5465_v34, %v1901_v38  ;;  %3800 = vmatprep.subr.bf16.mxu0 %v6258_v63 }
 0x25e   : > { %v2004_v7 = vadd.bf16 %v5468_v24, %v1902_v52 }
 0x25f   : > { %v2067_v51 = vmax.bf16 %v6258_v63, %v2003_v23 }
 0x260   : > { %v1712_v14 = vpop.f32.mrb[128].mxu1  ;;  %v2068_v19 = vmax.bf16 %v6258_v63, %v2004_v7 }
 0x261   : > { %v1714_v15 = vpop.f32.mrb[129].mxu1 }
 0x262   : > { %v1716_v37 = vpop.f32.mrb[130].mxu1  ;;  %2475 = vmatprep.mubr.bf16.mxu0 %v2068_v19 }
 0x263   : > { %v1903_v48 = vpack.c.bf16 %v1716_v37, %v1712_v14  ;;  %v1718_v30 = vpop.f32.mrb[131].mxu1  ;;  %2476 = vmatmul.mubr.bf16.gmra.mrb[124].mxu0 %v2067_v51 }
 0x264   : > { %v1904_v55 = vpack.c.bf16 %v1718_v30, %v1714_v15 }
 0x265   : > { %v2005_v25 = vadd.bf16 %v5465_v34, %v1903_v48 }
 0x266   : > { %v2006_v41 = vadd.bf16 %v5468_v24, %v1904_v55 }
 0x267   : > { %v2069_v39 = vmax.bf16 %v6258_v63, %v2005_v25 }
 0x268   : > { %v1722_v4 = vpop.f32.mrb[132].mxu1  ;;  %v2070_v33 = vmax.bf16 %v6258_v63, %v2006_v41 }
 0x269   : > { %v1724_v22 = vpop.f32.mrb[133].mxu1 }
 0x26a   : > { %v1726_v3 = vpop.f32.mrb[134].mxu1  ;;  %2485 = vmatprep.mubr.bf16.mxu0 %v2070_v33 }
 0x26b   : > { %v1905_v12 = vpack.c.bf16 %v1726_v3, %v1722_v4  ;;  %v1728_v53 = vpop.f32.mrb[135].mxu1  ;;  %2486 = vmatmul.mubr.bf16.gmra.mrb[128].mxu0 %v2069_v39  ;;  %v4605_v39 = vld [vmem:[%s6227_s9 + $0x38] sm:$0xff]  }
 0x26c   : > { %v1906_v61 = vpack.c.bf16 %v1728_v53, %v1724_v22  ;;  %3801 = vmatpush1.bf16.msra.mxu0 %v4605_v39 }
 0x26d   : > { %v2007_v8 = vadd.bf16 %v5465_v34, %v1905_v12  ;;  %3802 = vmatprep.subr.bf16.mxu0 %v6258_v63 }
 0x26e   : > { %v2008_v31 = vadd.bf16 %v5468_v24, %v1906_v61 }
 0x26f   : > { %v2071_v46 = vmax.bf16 %v6258_v63, %v2007_v8 }
 0x270   : > { %v1732_v44 = vpop.f32.mrb[136].mxu1  ;;  %v2072_v28 = vmax.bf16 %v6258_v63, %v2008_v31 }
 0x271   : > { %v1734_v40 = vpop.f32.mrb[137].mxu1 }
 0x272   : > { %v1736_v62 = vpop.f32.mrb[138].mxu1  ;;  %2495 = vmatprep.mubr.bf16.mxu0 %v2072_v28 }
 0x273   : > { %v1907_v5 = vpack.c.bf16 %v1736_v62, %v1732_v44  ;;  %v1738_v10 = vpop.f32.mrb[139].mxu1  ;;  %2496 = vmatmul.mubr.bf16.gmra.mrb[132].mxu0 %v2071_v46 }
 0x274   : > { %v1908_v2 = vpack.c.bf16 %v1738_v10, %v1734_v40 }
 0x275   : > { %v2009_v1 = vadd.bf16 %v5465_v34, %v1907_v5 }
 0x276   : > { %v2010_v16 = vadd.bf16 %v5468_v24, %v1908_v2 }
 0x277   : > { %v2073_v26 = vmax.bf16 %v6258_v63, %v2009_v1 }
 0x278   : > { %v1742_v20 = vpop.f32.mrb[140].mxu1  ;;  %v2074_v35 = vmax.bf16 %v6258_v63, %v2010_v16 }
 0x279   : > { %v1744_v54 = vpop.f32.mrb[141].mxu1 }
 0x27a   : > { %v1746_v29 = vpop.f32.mrb[142].mxu1  ;;  %2505 = vmatprep.mubr.bf16.mxu0 %v2074_v35 }
 0x27b   : > { %v1909_v45 = vpack.c.bf16 %v1746_v29, %v1742_v20  ;;  %v1748_v49 = vpop.f32.mrb[143].mxu1  ;;  %2506 = vmatmul.mubr.bf16.gmra.mrb[136].mxu0 %v2073_v26  ;;  %v4606_v26 = vld [vmem:[%s6227_s9 + $0x40] sm:$0xff]  }
 0x27c   : > { %v1910_v9 = vpack.c.bf16 %v1748_v49, %v1744_v54  ;;  %3803 = vmatpush1.bf16.msra.mxu0 %v4606_v26 }
 0x27d   : > { %v2011_v47 = vadd.bf16 %v5465_v34, %v1909_v45  ;;  %3804 = vmatprep.subr.bf16.mxu0 %v6258_v63 }
 0x27e   : > { %v2012_v59 = vadd.bf16 %v5468_v24, %v1910_v9 }
 0x27f   : > { %v2075_v32 = vmax.bf16 %v6258_v63, %v2011_v47 }
 0x280   : > { %v1752_v56 = vpop.f32.mrb[144].mxu1  ;;  %v2076_v6 = vmax.bf16 %v6258_v63, %v2012_v59 }
 0x281   : > { %v1754_v18 = vpop.f32.mrb[145].mxu1 }
 0x282   : > { %v1756_v0 = vpop.f32.mrb[146].mxu1  ;;  %2515 = vmatprep.mubr.bf16.mxu0 %v2076_v6 }
 0x283   : > { %v1911_v21 = vpack.c.bf16 %v1756_v0, %v1752_v56  ;;  %v1758_v11 = vpop.f32.mrb[147].mxu1  ;;  %2516 = vmatmul.mubr.bf16.gmra.mrb[140].mxu0 %v2075_v32 }
 0x284   : > { %v1912_v58 = vpack.c.bf16 %v1758_v11, %v1754_v18 }
 0x285   : > { %v2013_v57 = vadd.bf16 %v5465_v34, %v1911_v21 }
 0x286   : > { %v2014_v17 = vadd.bf16 %v5468_v24, %v1912_v58 }
 0x287   : > { %v2077_v52 = vmax.bf16 %v6258_v63, %v2013_v57  ;;  %v4319_v57 = vld.sshfl [vmem:[%s6224_s6] sm:$0x11 pattern:$0x75316420] }
 0x288   : > { %v1762_v13 = vpop.f32.mrb[148].mxu1  ;;  %v2078_v38 = vmax.bf16 %v6258_v63, %v2014_v17 }
 0x289   : > { %v1764_v42 = vpop.f32.mrb[149].mxu1 }
 0x28a   : > { %v1766_v23 = vpop.f32.mrb[150].mxu1  ;;  %2525 = vmatprep.mubr.bf16.mxu0 %v2078_v38 }
 0x28b   : > { %v1913_v7 = vpack.c.bf16 %v1766_v23, %v1762_v13  ;;  %v1768_v14 = vpop.f32.mrb[151].mxu1  ;;  %2526 = vmatmul.mubr.bf16.gmra.mrb[144].mxu0 %v2077_v52 }
 0x28c   : > { %v1914_v19 = vpack.c.bf16 %v1768_v14, %v1764_v42  ;;  %v2719_v42 = vcombine.high %v4319_v57, %v4319_v57  ;;  %v4607_v14 = vld [vmem:[%s6227_s9 + $0x48] sm:$0xff]  }
 0x28d   : > { %v2015_v15 = vadd.bf16 %v5465_v34, %v1913_v7  ;;  %v2726_v7 = vrot.slane %v4319_v57, %v6295_v50  ;;  %3805 = vmatpush1.bf16.msra.mxu0 %v4607_v14 }
 0x28e   : > { %v2016_v51 = vadd.bf16 %v5468_v24, %v1914_v19  ;;  %3806 = vmatprep.subr.bf16.mxu0 %v6258_v63 }
 0x28f   : > { %v2079_v55 = vmax.bf16 %v6258_v63, %v2015_v15 }
 0x290   : > { %v1772_v37 = vpop.f32.mrb[152].mxu1  ;;  %v2080_v48 = vmax.bf16 %v6258_v63, %v2016_v51  ;;  %v2733_v51 = vrot.slane %v2719_v42, %v6295_v50 }
 0x291   : > { %v1774_v30 = vpop.f32.mrb[153].mxu1 }
 0x292   : > { %v1776_v25 = vpop.f32.mrb[154].mxu1  ;;  %2535 = vmatprep.mubr.bf16.mxu0 %v2080_v48 }
 0x293   : > { %v1915_v41 = vpack.c.bf16 %v1776_v25, %v1772_v37  ;;  %v1778_v43 = vpop.f32.mrb[155].mxu1  ;;  %2536 = vmatmul.mubr.bf16.gmra.mrb[148].mxu0 %v2079_v55 }
 0x294   : > { %v1916_v4 = vpack.c.bf16 %v1778_v43, %v1774_v30 }
 0x295   : > { %v2017_v33 = vadd.bf16 %v5465_v34, %v1915_v41  ;;  %v2735_v41 = vpack.i.b16 %v2726_v7, %v2726_v7 }
 0x296   : > { %v2018_v22 = vadd.bf16 %v5468_v24, %v1916_v4  ;;  %v2742_v4 = vpack.i.b16 %v2733_v51, %v2733_v51 }
 0x297   : > { %v2081_v61 = vmax.bf16 %v6258_v63, %v2017_v33 }
 0x298   : > { %v1782_v3 = vpop.f32.mrb[156].mxu1  ;;  %v2082_v12 = vmax.bf16 %v6258_v63, %v2018_v22 }
 0x299   : > { %v1784_v53 = vpop.f32.mrb[157].mxu1 }
 0x29a   : > { %v1786_v8 = vpop.f32.mrb[158].mxu1  ;;  %2545 = vmatprep.mubr.bf16.mxu0 %v2082_v12  ;;  %v5699_v12 = vrot.slane %v2735_v41, %v6302_v27 }
 0x29b   : > { %v1917_v31 = vpack.c.bf16 %v1786_v8, %v1782_v3  ;;  %v1788_v44 = vpop.f32.mrb[159].mxu1  ;;  %2546 = vmatmul.mubr.bf16.gmra.mrb[152].mxu0 %v2081_v61  ;;  %v5702_v8 = vrot.slane %v2742_v4, %v6302_v27 }
 0x29c   : > { %v1918_v28 = vpack.c.bf16 %v1788_v44, %v1784_v53 }
 0x29d   : > { %v2019_v40 = vadd.bf16 %v5465_v34, %v1917_v31 }
 0x29e   : > { %v2020_v46 = vadd.bf16 %v5468_v24, %v1918_v28 }
 0x29f   : > { %v2083_v2 = vmax.bf16 %v6258_v63, %v2019_v40 }
 0x2a0   : > { %v1792_v62 = vpop.f32.mrb[160].mxu1  ;;  %v2084_v5 = vmax.bf16 %v6258_v63, %v2020_v46 }
 0x2a1   : > { %v1794_v10 = vpop.f32.mrb[161].mxu1 }
 0x2a2   : > { %v1796_v1 = vpop.f32.mrb[162].mxu1  ;;  %2555 = vmatprep.mubr.bf16.mxu0 %v2084_v5 }
 0x2a3   : > { %v1919_v16 = vpack.c.bf16 %v1796_v1, %v1792_v62  ;;  %v1798_v60 = vpop.f32.mrb[163].mxu1  ;;  %2556 = vmatmul.mubr.bf16.gmra.mrb[156].mxu0 %v2083_v2 }
 0x2a4   : > { %v1920_v20 = vpack.c.bf16 %v1798_v60, %v1794_v10 }
 0x2a5   : > { %v2021_v35 = vadd.bf16 %v5465_v34, %v1919_v16 }
 0x2a6   : > { %v2022_v54 = vadd.bf16 %v5468_v24, %v1920_v20 }
 0x2a7   : > { %v2085_v9 = vmax.bf16 %v6258_v63, %v2021_v35 }
 0x2a8   : > { %v1802_v29 = vpop.f32.mrb[164].mxu1  ;;  %v2086_v45 = vmax.bf16 %v6258_v63, %v2022_v54 }
 0x2a9   : > { %v1804_v49 = vpop.f32.mrb[165].mxu1 }
 0x2aa   : > { %v1806_v47 = vpop.f32.mrb[166].mxu1  ;;  %2565 = vmatprep.mubr.bf16.mxu0 %v2086_v45 }
 0x2ab   : > { %v1921_v59 = vpack.c.bf16 %v1806_v47, %v1802_v29  ;;  %v1808_v56 = vpop.f32.mrb[167].mxu1  ;;  %2566 = vmatmul.mubr.bf16.gmra.mrb[160].mxu0 %v2085_v9 }
 0x2ac   : > { %v1922_v6 = vpack.c.bf16 %v1808_v56, %v1804_v49  ;;  %v4608_v49 = vld [vmem:[%s6227_s9 + $0x50] sm:$0xff]  }
 0x2ad   : > { %v2023_v18 = vadd.bf16 %v5465_v34, %v1921_v59  ;;  %3807 = vmatpush1.bf16.msra.mxu0 %v4608_v49 }
 0x2ae   : > { %v2024_v32 = vadd.bf16 %v5468_v24, %v1922_v6  ;;  %3808 = vmatprep.subr.bf16.mxu0 %v6258_v63 }
 0x2af   : > { %v2087_v58 = vmax.bf16 %v6258_v63, %v2023_v18 }
 0x2b0   : > { %v1812_v0 = vpop.f32.mrb[168].mxu1  ;;  %v2088_v21 = vmax.bf16 %v6258_v63, %v2024_v32 }
 0x2b1   : > { %v1814_v11 = vpop.f32.mrb[169].mxu1 }
 0x2b2   : > { %v1816_v17 = vpop.f32.mrb[170].mxu1  ;;  %2575 = vmatprep.mubr.bf16.mxu0 %v2088_v21 }
 0x2b3   : > { %v1923_v36 = vpack.c.bf16 %v1816_v17, %v1812_v0  ;;  %v1818_v13 = vpop.f32.mrb[171].mxu1  ;;  %2576 = vmatmul.mubr.bf16.gmra.mrb[164].mxu0 %v2087_v58 }
 0x2b4   : > { %v1924_v38 = vpack.c.bf16 %v1818_v13, %v1814_v11 }
 0x2b5   : > { %v2025_v52 = vadd.bf16 %v5465_v34, %v1923_v36 }
 0x2b6   : > { %v2026_v23 = vadd.bf16 %v5468_v24, %v1924_v38 }
 0x2b7   : > { %v2089_v48 = vmax.bf16 %v6258_v63, %v2025_v52 }
 0x2b8   : > { %v1822_v19 = vpop.f32.mrb[172].mxu1  ;;  %v2090_v15 = vmax.bf16 %v6258_v63, %v2026_v23 }
 0x2b9   : > { %v1824_v37 = vpop.f32.mrb[173].mxu1 }
 0x2ba   : > { %v1826_v30 = vpop.f32.mrb[174].mxu1  ;;  %2585 = vmatprep.mubr.bf16.mxu0 %v2090_v15 }
 0x2bb   : > { %v1925_v55 = vpack.c.bf16 %v1826_v30, %v1822_v19  ;;  %v1828_v25 = vpop.f32.mrb[175].mxu1  ;;  %2586 = vmatmul.mubr.bf16.gmra.mrb[168].mxu0 %v2089_v48 }
 0x2bc   : > { %v1926_v43 = vpack.c.bf16 %v1828_v25, %v1824_v37 }
 0x2bd   : > { %v2027_v33 = vadd.bf16 %v5465_v34, %v1925_v55 }
 0x2be   : > { %v2028_v22 = vadd.bf16 %v5468_v24, %v1926_v43  ;;  %v2327_v39 = vpop.f32.mrb[64].mxu0 }
 0x2bf   : > { %v2329_v3 = vpop.f32.mrb[65].mxu0  ;;  %v2091_v46 = vmax.bf16 %v6258_v63, %v2027_v33 }
 0x2c0   : > { %v1832_v53 = vpop.f32.mrb[176].mxu1  ;;  %v2331_v61 = vpop.f32.mrb[66].mxu0  ;;  %v2092_v31 = vmax.bf16 %v6258_v63, %v2028_v22 }
 0x2c1   : > { %v2646_v44 = vpack.c.bf16 %v2331_v61, %v2327_v39  ;;  %v1834_v28 = vpop.f32.mrb[177].mxu1  ;;  %v2333_v40 = vpop.f32.mrb[67].mxu0 }
 0x2c2   : > { %v2647_v62 = vpack.c.bf16 %v2333_v40, %v2329_v3  ;;  %v1836_v5 = vpop.f32.mrb[178].mxu1  ;;  %2595 = vmatprep.mubr.bf16.mxu0 %v2092_v31 }
 0x2c3   : > { %v2748_v10 = vadd.bf16 %v5699_v12, %v2646_v44  ;;  %v1927_v2 = vpack.c.bf16 %v1836_v5, %v1832_v53  ;;  %v1838_v1 = vpop.f32.mrb[179].mxu1  ;;  %2596 = vmatmul.mubr.bf16.gmra.mrb[172].mxu0 %v2091_v46 }
 0x2c4   : > { %v2749_v16 = vadd.bf16 %v5702_v8, %v2647_v62  ;;  %v1928_v60 = vpack.c.bf16 %v1838_v1, %v1834_v28  ;;  %v4609_v28 = vld [vmem:[%s6227_s9 + $0x58] sm:$0xff]  }
 0x2c5   : > { %v2029_v20 = vadd.bf16 %v5465_v34, %v1927_v2  ;;  %v2812_v29 = vmax.bf16 %v6258_v63, %v2748_v10  ;;  %3809 = vmatpush1.bf16.msra.mxu0 %v4609_v28 }
 0x2c6   : > { %v2030_v35 = vadd.bf16 %v5468_v24, %v1928_v60  ;;  %v2337_v54 = vpop.f32.mrb[68].mxu0  ;;  %v2813_v26 = vmax.bf16 %v6258_v63, %v2749_v16  ;;  %3810 = vmatprep.subr.bf16.mxu0 %v6258_v63 }
 0x2c7   : > { %v2339_v45 = vpop.f32.mrb[69].mxu0  ;;  %v2093_v32 = vmax.bf16 %v6258_v63, %v2029_v20 }
 0x2c8   : > { %v1842_v9 = vpop.f32.mrb[180].mxu1  ;;  %v2341_v47 = vpop.f32.mrb[70].mxu0  ;;  %3100 = vmatprep.mubr.bf16.mxu1 %v2813_v26  ;;  %v2094_v59 = vmax.bf16 %v6258_v63, %v2030_v35 }
 0x2c9   : > { %v2648_v56 = vpack.c.bf16 %v2341_v47, %v2337_v54  ;;  %v1844_v6 = vpop.f32.mrb[181].mxu1  ;;  %v2343_v18 = vpop.f32.mrb[71].mxu0  ;;  %3101 = vmatmul.mubr.bf16.vlgmr.msra.gmra.mrb[192].mxu1 %v2812_v29 }
 0x2ca   : > { %v2649_v0 = vpack.c.bf16 %v2343_v18, %v2339_v45  ;;  %v1846_v21 = vpop.f32.mrb[182].mxu1  ;;  %2605 = vmatprep.mubr.bf16.mxu0 %v2094_v59 }
 0x2cb   : > { %v2750_v11 = vadd.bf16 %v5699_v12, %v2648_v56  ;;  %v1929_v58 = vpack.c.bf16 %v1846_v21, %v1842_v9  ;;  %v1848_v57 = vpop.f32.mrb[183].mxu1  ;;  %2606 = vmatmul.mubr.bf16.gmra.mrb[176].mxu0 %v2093_v32 }
 0x2cc   : > { %v2751_v17 = vadd.bf16 %v5702_v8, %v2649_v0  ;;  %v1930_v36 = vpack.c.bf16 %v1848_v57, %v1844_v6 }
 0x2cd   : > { %v2031_v13 = vadd.bf16 %v5465_v34, %v1929_v58  ;;  %v2814_v7 = vmax.bf16 %v6258_v63, %v2750_v11 }
 0x2ce   : > { %v2032_v38 = vadd.bf16 %v5468_v24, %v1930_v36  ;;  %v2347_v42 = vpop.f32.mrb[72].mxu0  ;;  %v2815_v52 = vmax.bf16 %v6258_v63, %v2751_v17 }
 0x2cf   : > { %v2349_v23 = vpop.f32.mrb[73].mxu0  ;;  %v2095_v30 = vmax.bf16 %v6258_v63, %v2031_v13  ;;  %v4610_v13 = vld [vmem:[%s6227_s9 + $0x60] sm:$0xff]  }
 0x2d0   : > { %v1852_v14 = vpop.f32.mrb[184].mxu1  ;;  %v2351_v19 = vpop.f32.mrb[74].mxu0  ;;  %3110 = vmatprep.mubr.bf16.mxu1 %v2815_v52  ;;  %v2096_v15 = vmax.bf16 %v6258_v63, %v2032_v38  ;;  %3811 = vmatpush1.bf16.msra.mxu0 %v4610_v13 }
 0x2d1   : > { %v2650_v51 = vpack.c.bf16 %v2351_v19, %v2347_v42  ;;  %v1854_v37 = vpop.f32.mrb[185].mxu1  ;;  %v2353_v48 = vpop.f32.mrb[75].mxu0  ;;  %3111 = vmatmul.mubr.bf16.gmra.mrb[196].mxu1 %v2814_v7  ;;  %3812 = vmatprep.subr.bf16.mxu0 %v6258_v63 }
 0x2d2   : > { %v2651_v55 = vpack.c.bf16 %v2353_v48, %v2349_v23  ;;  %v1856_v25 = vpop.f32.mrb[186].mxu1  ;;  %2615 = vmatprep.mubr.bf16.mxu0 %v2096_v15 }
 0x2d3   : > { %v2752_v41 = vadd.bf16 %v5699_v12, %v2650_v51  ;;  %v1931_v43 = vpack.c.bf16 %v1856_v25, %v1852_v14  ;;  %v1858_v4 = vpop.f32.mrb[187].mxu1  ;;  %2616 = vmatmul.mubr.bf16.gmra.mrb[180].mxu0 %v2095_v30 }
 0x2d4   : > { %v2753_v33 = vadd.bf16 %v5702_v8, %v2651_v55  ;;  %v1932_v22 = vpack.c.bf16 %v1858_v4, %v1854_v37 }
 0x2d5   : > { %v2033_v39 = vadd.bf16 %v5465_v34, %v1931_v43  ;;  %v2816_v44 = vmax.bf16 %v6258_v63, %v2752_v41 }
 0x2d6   : > { %v2034_v3 = vadd.bf16 %v5468_v24, %v1932_v22  ;;  %v2357_v53 = vpop.f32.mrb[76].mxu0  ;;  %v2817_v61 = vmax.bf16 %v6258_v63, %v2753_v33 }
 0x2d7   : > { %v2359_v31 = vpop.f32.mrb[77].mxu0  ;;  %v2097_v1 = vmax.bf16 %v6258_v63, %v2033_v39 }
 0x2d8   : > { %v1862_v40 = vpop.f32.mrb[188].mxu1  ;;  %v2361_v46 = vpop.f32.mrb[78].mxu0  ;;  %3120 = vmatprep.mubr.bf16.mxu1 %v2817_v61  ;;  %v2098_v62 = vmax.bf16 %v6258_v63, %v2034_v3  ;;  %v4611_v3 = vld [vmem:[%s6227_s9 + $0x68] sm:$0xff]  }
 0x2d9   : > { %v2652_v5 = vpack.c.bf16 %v2361_v46, %v2357_v53  ;;  %v1864_v10 = vpop.f32.mrb[189].mxu1  ;;  %v2363_v2 = vpop.f32.mrb[79].mxu0  ;;  %3121 = vmatmul.mubr.bf16.gmra.mrb[200].mxu1 %v2816_v44  ;;  %3813 = vmatpush1.bf16.msra.mxu0 %v4611_v3 }
 0x2da   : > { %v2653_v16 = vpack.c.bf16 %v2363_v2, %v2359_v31  ;;  %v1866_v60 = vpop.f32.mrb[190].mxu1  ;;  %2625 = vmatprep.mubr.bf16.mxu0 %v2098_v62  ;;  %3814 = vmatprep.subr.bf16.mxu0 %v6258_v63 }
 0x2db   : > { %v2754_v20 = vadd.bf16 %v5699_v12, %v2652_v5  ;;  %v1933_v35 = vpack.c.bf16 %v1866_v60, %v1862_v40  ;;  %v1868_v54 = vpop.f32.mrb[191].mxu1  ;;  %2626 = vmatmul.mubr.bf16.gmra.mrb[184].mxu0 %v2097_v1 }
 0x2dc   : > { %v2755_v26 = vadd.bf16 %v5702_v8, %v2653_v16  ;;  %v1934_v29 = vpack.c.bf16 %v1868_v54, %v1864_v10 }
 0x2dd   : > { %v2035_v45 = vadd.bf16 %v5465_v34, %v1933_v35  ;;  %v2818_v56 = vmax.bf16 %v6258_v63, %v2754_v20 }
 0x2de   : > { %v2036_v49 = vadd.bf16 %v5468_v24, %v1934_v29  ;;  %v2367_v9 = vpop.f32.mrb[80].mxu0  ;;  %v2819_v47 = vmax.bf16 %v6258_v63, %v2755_v26 }
 0x2df   : > { %v2369_v59 = vpop.f32.mrb[81].mxu0  ;;  %v2099_v21 = vmax.bf16 %v6258_v63, %v2035_v45 }
 0x2e0   : > { %v2371_v6 = vpop.f32.mrb[82].mxu0  ;;  %3130 = vmatprep.mubr.bf16.mxu1 %v2819_v47  ;;  %v2100_v18 = vmax.bf16 %v6258_v63, %v2036_v49  ;;  %v4612_v49 = vld [vmem:[%s6227_s9 + $0x70] sm:$0xff]  }
 0x2e1   : > { %v2654_v32 = vpack.c.bf16 %v2371_v6, %v2367_v9  ;;  %v2373_v0 = vpop.f32.mrb[83].mxu0  ;;  %3131 = vmatmul.mubr.bf16.gmra.mrb[204].mxu1 %v2818_v56  ;;  %3815 = vmatpush1.bf16.msra.mxu0 %v4612_v49 }
 0x2e2   : > { %v2655_v11 = vpack.c.bf16 %v2373_v0, %v2369_v59  ;;  %2635 = vmatprep.mubr.bf16.mxu0 %v2100_v18  ;;  %3816 = vmatprep.subr.bf16.mxu0 %v6258_v63 }
 0x2e3   : > { %v2756_v34 = vadd.bf16 %v5699_v12, %v2654_v32  ;;  %2636 = vmatmul.mubr.bf16.gmra.mrb[188].mxu0 %v2099_v21 }
 0x2e4   : > { %v2757_v24 = vadd.bf16 %v5702_v8, %v2655_v11 }
 0x2e5   : > { %v2820_v36 = vmax.bf16 %v6258_v63, %v2756_v34 }
 0x2e6   : > { %v2377_v58 = vpop.f32.mrb[84].mxu0  ;;  %v2821_v57 = vmax.bf16 %v6258_v63, %v2757_v24 }
 0x2e7   : > { %v2379_v17 = vpop.f32.mrb[85].mxu0 }
 0x2e8   : > { %v2381_v38 = vpop.f32.mrb[86].mxu0  ;;  %3140 = vmatprep.mubr.bf16.mxu1 %v2821_v57 }
 0x2e9   : > { %v2656_v42 = vpack.c.bf16 %v2381_v38, %v2377_v58  ;;  %v2383_v52 = vpop.f32.mrb[87].mxu0  ;;  %3141 = vmatmul.mubr.bf16.gmra.mrb[208].mxu1 %v2820_v36 }
 0x2ea   : > { %v2657_v23 = vpack.c.bf16 %v2383_v52, %v2379_v17 }
 0x2eb   : > { %v2758_v7 = vadd.bf16 %v5699_v12, %v2656_v42 }
 0x2ec   : > { %v2759_v14 = vadd.bf16 %v5702_v8, %v2657_v23  ;;  %v4613_v23 = vld [vmem:[%s6227_s9 + $0x78] sm:$0xff]  }
 0x2ed   : > { %v2822_v37 = vmax.bf16 %v6258_v63, %v2758_v7  ;;  %3817 = vmatpush1.bf16.msra.mxu0 %v4613_v23 }
 0x2ee   : > { %v2387_v19 = vpop.f32.mrb[88].mxu0  ;;  %v2823_v15 = vmax.bf16 %v6258_v63, %v2759_v14 }
 0x2ef   : > { %v2389_v51 = vpop.f32.mrb[89].mxu0 }
 0x2f0   : > { %v2391_v48 = vpop.f32.mrb[90].mxu0  ;;  %3150 = vmatprep.mubr.bf16.mxu1 %v2823_v15 }
 0x2f1   : > { %v2658_v30 = vpack.c.bf16 %v2391_v48, %v2387_v19  ;;  %v2393_v55 = vpop.f32.mrb[91].mxu0  ;;  %3151 = vmatmul.mubr.bf16.gmra.mrb[212].mxu1 %v2822_v37 }
 0x2f2   : > { %v2659_v25 = vpack.c.bf16 %v2393_v55, %v2389_v51 }
 0x2f3   : > { %v2760_v41 = vadd.bf16 %v5699_v12, %v2658_v30 }
 0x2f4   : > { %v2761_v43 = vadd.bf16 %v5702_v8, %v2659_v25 }
 0x2f5   : > { %v2824_v39 = vmax.bf16 %v6258_v63, %v2760_v41 }
 0x2f6   : > { %v2397_v4 = vpop.f32.mrb[92].mxu0  ;;  %v2825_v33 = vmax.bf16 %v6258_v63, %v2761_v43 }
 0x2f7   : > { %v2399_v22 = vpop.f32.mrb[93].mxu0 }
 0x2f8   : > { %v2401_v53 = vpop.f32.mrb[94].mxu0  ;;  %3160 = vmatprep.mubr.bf16.mxu1 %v2825_v33 }
 0x2f9   : > { %v2660_v61 = vpack.c.bf16 %v2401_v53, %v2397_v4  ;;  %v2403_v31 = vpop.f32.mrb[95].mxu0  ;;  %3161 = vmatmul.mubr.bf16.gmra.mrb[216].mxu1 %v2824_v39 }
 0x2fa   : > { %v2661_v44 = vpack.c.bf16 %v2403_v31, %v2399_v22 }
 0x2fb   : > { %v2762_v28 = vadd.bf16 %v5699_v12, %v2660_v61 }
 0x2fc   : > { %v2763_v40 = vadd.bf16 %v5702_v8, %v2661_v44 }
 0x2fd   : > { %v2826_v10 = vmax.bf16 %v6258_v63, %v2762_v28 }
 0x2fe   : > { %v2407_v46 = vpop.f32.mrb[96].mxu0  ;;  %v2827_v62 = vmax.bf16 %v6258_v63, %v2763_v40 }
 0x2ff   : > { %v2409_v5 = vpop.f32.mrb[97].mxu0 }
 0x300   : > { %v2411_v2 = vpop.f32.mrb[98].mxu0  ;;  %3170 = vmatprep.mubr.bf16.mxu1 %v2827_v62 }
 0x301   : > { %v2662_v1 = vpack.c.bf16 %v2411_v2, %v2407_v46  ;;  %v2413_v16 = vpop.f32.mrb[99].mxu0  ;;  %3171 = vmatmul.mubr.bf16.gmra.mrb[220].mxu1 %v2826_v10 }
 0x302   : > { %v2663_v60 = vpack.c.bf16 %v2413_v16, %v2409_v5 }
 0x303   : > { %v2764_v20 = vadd.bf16 %v5699_v12, %v2662_v1 }
 0x304   : > { %v2765_v35 = vadd.bf16 %v5702_v8, %v2663_v60 }
 0x305   : > { %v2828_v45 = vmax.bf16 %v6258_v63, %v2764_v20 }
 0x306   : > { %v2417_v54 = vpop.f32.mrb[100].mxu0  ;;  %v2829_v26 = vmax.bf16 %v6258_v63, %v2765_v35 }
 0x307   : > { %v2419_v29 = vpop.f32.mrb[101].mxu0 }
 0x308   : > { %v2421_v9 = vpop.f32.mrb[102].mxu0  ;;  %3180 = vmatprep.mubr.bf16.mxu1 %v2829_v26 }
 0x309   : > { %v2664_v47 = vpack.c.bf16 %v2421_v9, %v2417_v54  ;;  %v2423_v59 = vpop.f32.mrb[103].mxu0  ;;  %3181 = vmatmul.mubr.bf16.gmra.mrb[224].mxu1 %v2828_v45 }
 0x30a   : > { %v2665_v56 = vpack.c.bf16 %v2423_v59, %v2419_v29 }
 0x30b   : > { %v2766_v6 = vadd.bf16 %v5699_v12, %v2664_v47 }
 0x30c   : > { %v2767_v18 = vadd.bf16 %v5702_v8, %v2665_v56 }
 0x30d   : > { %v2830_v11 = vmax.bf16 %v6258_v63, %v2766_v6 }
 0x30e   : > { %v2427_v32 = vpop.f32.mrb[104].mxu0  ;;  %v2831_v0 = vmax.bf16 %v6258_v63, %v2767_v18 }
 0x30f   : > { %v2429_v21 = vpop.f32.mrb[105].mxu0 }
 0x310   : > { %v2431_v34 = vpop.f32.mrb[106].mxu0  ;;  %3190 = vmatprep.mubr.bf16.mxu1 %v2831_v0 }
 0x311   : > { %v2666_v24 = vpack.c.bf16 %v2431_v34, %v2427_v32  ;;  %v2433_v58 = vpop.f32.mrb[107].mxu0  ;;  %3191 = vmatmul.mubr.bf16.gmra.mrb[228].mxu1 %v2830_v11 }
 0x312   : > { %v2667_v57 = vpack.c.bf16 %v2433_v58, %v2429_v21 }
 0x313   : > { %v2768_v17 = vadd.bf16 %v5699_v12, %v2666_v24 }
 0x314   : > { %v2769_v36 = vadd.bf16 %v5702_v8, %v2667_v57 }
 0x315   : > { %v2832_v52 = vmax.bf16 %v6258_v63, %v2768_v17 }
 0x316   : > { %v2437_v13 = vpop.f32.mrb[108].mxu0  ;;  %v2833_v38 = vmax.bf16 %v6258_v63, %v2769_v36 }
 0x317   : > { %v2439_v42 = vpop.f32.mrb[109].mxu0 }
 0x318   : > { %v2441_v7 = vpop.f32.mrb[110].mxu0  ;;  %3200 = vmatprep.mubr.bf16.mxu1 %v2833_v38 }
 0x319   : > { %v2668_v14 = vpack.c.bf16 %v2441_v7, %v2437_v13  ;;  %v2443_v19 = vpop.f32.mrb[111].mxu0  ;;  %3201 = vmatmul.mubr.bf16.gmra.mrb[232].mxu1 %v2832_v52 }
 0x31a   : > { %v2669_v15 = vpack.c.bf16 %v2443_v19, %v2439_v42 }
 0x31b   : > { %v2770_v51 = vadd.bf16 %v5699_v12, %v2668_v14 }
 0x31c   : > { %v2771_v37 = vadd.bf16 %v5702_v8, %v2669_v15 }
 0x31d   : > { %v2834_v25 = vmax.bf16 %v6258_v63, %v2770_v51 }
 0x31e   : > { %v2447_v48 = vpop.f32.mrb[112].mxu0  ;;  %v2835_v30 = vmax.bf16 %v6258_v63, %v2771_v37 }
 0x31f   : > { %v2449_v55 = vpop.f32.mrb[113].mxu0 }
 0x320   : > { %v2451_v41 = vpop.f32.mrb[114].mxu0  ;;  %3210 = vmatprep.mubr.bf16.mxu1 %v2835_v30 }
 0x321   : > { %v2670_v43 = vpack.c.bf16 %v2451_v41, %v2447_v48  ;;  %v2453_v4 = vpop.f32.mrb[115].mxu0  ;;  %3211 = vmatmul.mubr.bf16.gmra.mrb[236].mxu1 %v2834_v25 }
 0x322   : > { %v2671_v33 = vpack.c.bf16 %v2453_v4, %v2449_v55 }
 0x323   : > { %v2772_v22 = vadd.bf16 %v5699_v12, %v2670_v43 }
 0x324   : > { %v2773_v39 = vadd.bf16 %v5702_v8, %v2671_v33 }
 0x325   : > { %v2836_v31 = vmax.bf16 %v6258_v63, %v2772_v22 }
 0x326   : > { %v2457_v3 = vpop.f32.mrb[116].mxu0  ;;  %v2837_v53 = vmax.bf16 %v6258_v63, %v2773_v39 }
 0x327   : > { %v2459_v61 = vpop.f32.mrb[117].mxu0 }
 0x328   : > { %v2461_v44 = vpop.f32.mrb[118].mxu0  ;;  %3220 = vmatprep.mubr.bf16.mxu1 %v2837_v53 }
 0x329   : > { %v2672_v28 = vpack.c.bf16 %v2461_v44, %v2457_v3  ;;  %v2463_v40 = vpop.f32.mrb[119].mxu0  ;;  %3221 = vmatmul.mubr.bf16.gmra.mrb[240].mxu1 %v2836_v31 }
 0x32a   : > { %v2673_v46 = vpack.c.bf16 %v2463_v40, %v2459_v61 }
 0x32b   : > { %v2774_v62 = vadd.bf16 %v5699_v12, %v2672_v28 }
 0x32c   : > { %v2775_v5 = vadd.bf16 %v5702_v8, %v2673_v46 }
 0x32d   : > { %v2838_v16 = vmax.bf16 %v6258_v63, %v2774_v62 }
 0x32e   : > { %v2467_v10 = vpop.f32.mrb[120].mxu0  ;;  %v2839_v2 = vmax.bf16 %v6258_v63, %v2775_v5 }
 0x32f   : > { %v2469_v1 = vpop.f32.mrb[121].mxu0 }
 0x330   : > { %v2471_v60 = vpop.f32.mrb[122].mxu0  ;;  %3230 = vmatprep.mubr.bf16.mxu1 %v2839_v2 }
 0x331   : > { %v2674_v20 = vpack.c.bf16 %v2471_v60, %v2467_v10  ;;  %v2473_v35 = vpop.f32.mrb[123].mxu0  ;;  %3231 = vmatmul.mubr.bf16.gmra.mrb[244].mxu1 %v2838_v16 }
 0x332   : > { %v2675_v54 = vpack.c.bf16 %v2473_v35, %v2469_v1 }
 0x333   : > { %v2776_v26 = vadd.bf16 %v5699_v12, %v2674_v20 }
 0x334   : > { %v2777_v29 = vadd.bf16 %v5702_v8, %v2675_v54 }
 0x335   : > { %v2840_v47 = vmax.bf16 %v6258_v63, %v2776_v26 }
 0x336   : > { %v2477_v45 = vpop.f32.mrb[124].mxu0  ;;  %v2841_v49 = vmax.bf16 %v6258_v63, %v2777_v29 }
 0x337   : > { %v2479_v9 = vpop.f32.mrb[125].mxu0 }
 0x338   : > { %v2481_v59 = vpop.f32.mrb[126].mxu0  ;;  %3240 = vmatprep.mubr.bf16.mxu1 %v2841_v49 }
 0x339   : > { %v2676_v56 = vpack.c.bf16 %v2481_v59, %v2477_v45  ;;  %v2483_v6 = vpop.f32.mrb[127].mxu0  ;;  %3241 = vmatmul.mubr.bf16.gmra.mrb[248].mxu1 %v2840_v47 }
 0x33a   : > { %v2677_v18 = vpack.c.bf16 %v2483_v6, %v2479_v9 }
 0x33b   : > { %v2778_v32 = vadd.bf16 %v5699_v12, %v2676_v56 }
 0x33c   : > { %v2779_v0 = vadd.bf16 %v5702_v8, %v2677_v18 }
 0x33d   : > { %v2842_v24 = vmax.bf16 %v6258_v63, %v2778_v32 }
 0x33e   : > { %v2487_v21 = vpop.f32.mrb[128].mxu0  ;;  %v2843_v11 = vmax.bf16 %v6258_v63, %v2779_v0 }
 0x33f   : > { %v2489_v34 = vpop.f32.mrb[129].mxu0 }
 0x340   : > { %v2491_v58 = vpop.f32.mrb[130].mxu0  ;;  %3250 = vmatprep.mubr.bf16.mxu1 %v2843_v11 }
 0x341   : > { %v2678_v57 = vpack.c.bf16 %v2491_v58, %v2487_v21  ;;  %v2493_v17 = vpop.f32.mrb[131].mxu0  ;;  %3251 = vmatmul.mubr.bf16.gmra.mrb[252].mxu1 %v2842_v24 }
 0x342   : > { %v2679_v36 = vpack.c.bf16 %v2493_v17, %v2489_v34 }
 0x343   : > { %v2780_v13 = vadd.bf16 %v5699_v12, %v2678_v57 }
 0x344   : > { %v2781_v38 = vadd.bf16 %v5702_v8, %v2679_v36 }
 0x345   : > { %v2844_v23 = vmax.bf16 %v6258_v63, %v2780_v13 }
 0x346   : > { %v2497_v42 = vpop.f32.mrb[132].mxu0  ;;  %v2845_v52 = vmax.bf16 %v6258_v63, %v2781_v38 }
 0x347   : > { %v2499_v7 = vpop.f32.mrb[133].mxu0 }
 0x348   : > { %v2501_v14 = vpop.f32.mrb[134].mxu0  ;;  %3260 = vmatprep.mubr.bf16.mxu1 %v2845_v52 }
 0x349   : > { %v2680_v19 = vpack.c.bf16 %v2501_v14, %v2497_v42  ;;  %v2503_v15 = vpop.f32.mrb[135].mxu0  ;;  %3261 = vmatmul.mubr.bf16.gmra.mrb[0].mxu1 %v2844_v23 }
 0x34a   : > { %v2681_v51 = vpack.c.bf16 %v2503_v15, %v2499_v7 }
 0x34b   : > { %v2782_v37 = vadd.bf16 %v5699_v12, %v2680_v19 }
 0x34c   : > { %v2783_v48 = vadd.bf16 %v5702_v8, %v2681_v51 }
 0x34d   : > { %v2846_v25 = vmax.bf16 %v6258_v63, %v2782_v37 }
 0x34e   : > { %v2507_v30 = vpop.f32.mrb[136].mxu0  ;;  %v2847_v55 = vmax.bf16 %v6258_v63, %v2783_v48 }
 0x34f   : > { %v2509_v41 = vpop.f32.mrb[137].mxu0 }
 0x350   : > { %v2511_v43 = vpop.f32.mrb[138].mxu0  ;;  %3270 = vmatprep.mubr.bf16.mxu1 %v2847_v55 }
 0x351   : > { %v2682_v4 = vpack.c.bf16 %v2511_v43, %v2507_v30  ;;  %v2513_v33 = vpop.f32.mrb[139].mxu0  ;;  %3271 = vmatmul.mubr.bf16.gmra.mrb[4].mxu1 %v2846_v25 }
 0x352   : > { %v2683_v22 = vpack.c.bf16 %v2513_v33, %v2509_v41 }
 0x353   : > { %v2784_v39 = vadd.bf16 %v5699_v12, %v2682_v4 }
 0x354   : > { %v2785_v3 = vadd.bf16 %v5702_v8, %v2683_v22 }
 0x355   : > { %v2848_v31 = vmax.bf16 %v6258_v63, %v2784_v39 }
 0x356   : > { %v2517_v53 = vpop.f32.mrb[140].mxu0  ;;  %v2849_v61 = vmax.bf16 %v6258_v63, %v2785_v3 }
 0x357   : > { %v2519_v44 = vpop.f32.mrb[141].mxu0 }
 0x358   : > { %v2521_v28 = vpop.f32.mrb[142].mxu0  ;;  %3280 = vmatprep.mubr.bf16.mxu1 %v2849_v61 }
 0x359   : > { %v2684_v40 = vpack.c.bf16 %v2521_v28, %v2517_v53  ;;  %v2523_v46 = vpop.f32.mrb[143].mxu0  ;;  %3281 = vmatmul.mubr.bf16.gmra.mrb[8].mxu1 %v2848_v31 }
 0x35a   : > { %v2685_v62 = vpack.c.bf16 %v2523_v46, %v2519_v44 }
 0x35b   : > { %v2786_v5 = vadd.bf16 %v5699_v12, %v2684_v40 }
 0x35c   : > { %v2787_v10 = vadd.bf16 %v5702_v8, %v2685_v62 }
 0x35d   : > { %v2850_v16 = vmax.bf16 %v6258_v63, %v2786_v5 }
 0x35e   : > { %v2527_v2 = vpop.f32.mrb[144].mxu0  ;;  %v2851_v1 = vmax.bf16 %v6258_v63, %v2787_v10 }
 0x35f   : > { %v2529_v60 = vpop.f32.mrb[145].mxu0 }
 0x360   : > { %v2531_v20 = vpop.f32.mrb[146].mxu0  ;;  %3290 = vmatprep.mubr.bf16.mxu1 %v2851_v1 }
 0x361   : > { %v2686_v35 = vpack.c.bf16 %v2531_v20, %v2527_v2  ;;  %v2533_v54 = vpop.f32.mrb[147].mxu0  ;;  %3291 = vmatmul.mubr.bf16.gmra.mrb[12].mxu1 %v2850_v16 }
 0x362   : > { %v2687_v26 = vpack.c.bf16 %v2533_v54, %v2529_v60 }
 0x363   : > { %v2788_v29 = vadd.bf16 %v5699_v12, %v2686_v35  ;;  %v4352_v35 = vld.sshfl [vmem:[%s6226_s8] sm:$0x11 pattern:$0x75316420] }
 0x364   : > { %v2789_v45 = vadd.bf16 %v5702_v8, %v2687_v26 }
 0x365   : > { %v2852_v47 = vmax.bf16 %v6258_v63, %v2788_v29 }
 0x366   : > { %v2537_v49 = vpop.f32.mrb[148].mxu0  ;;  %v2853_v9 = vmax.bf16 %v6258_v63, %v2789_v45 }
 0x367   : > { %v2539_v59 = vpop.f32.mrb[149].mxu0 }
 0x368   : > { %v2541_v56 = vpop.f32.mrb[150].mxu0  ;;  %3300 = vmatprep.mubr.bf16.mxu1 %v2853_v9 }
 0x369   : > { %v2688_v6 = vpack.c.bf16 %v2541_v56, %v2537_v49  ;;  %v2543_v18 = vpop.f32.mrb[151].mxu0  ;;  %3301 = vmatmul.mubr.bf16.gmra.mrb[16].mxu1 %v2852_v47  ;;  %v3494_v49 = vcombine.high %v4352_v35, %v4352_v35 }
 0x36a   : > { %v2689_v32 = vpack.c.bf16 %v2543_v18, %v2539_v59  ;;  %v3501_v59 = vrot.slane %v4352_v35, %v6295_v50 }
 0x36b   : > { %v2790_v0 = vadd.bf16 %v5699_v12, %v2688_v6  ;;  %v3508_v18 = vrot.slane %v3494_v49, %v6295_v50 }
 0x36c   : > { %v2791_v21 = vadd.bf16 %v5702_v8, %v2689_v32 }
 0x36d   : > { %v2854_v24 = vmax.bf16 %v6258_v63, %v2790_v0 }
 0x36e   : > { %v2547_v11 = vpop.f32.mrb[152].mxu0  ;;  %v2855_v34 = vmax.bf16 %v6258_v63, %v2791_v21 }
 0x36f   : > { %v2549_v58 = vpop.f32.mrb[153].mxu0 }
 0x370   : > { %v2551_v57 = vpop.f32.mrb[154].mxu0  ;;  %3310 = vmatprep.mubr.bf16.mxu1 %v2855_v34 }
 0x371   : > { %v2690_v17 = vpack.c.bf16 %v2551_v57, %v2547_v11  ;;  %v2553_v36 = vpop.f32.mrb[155].mxu0  ;;  %3311 = vmatmul.mubr.bf16.gmra.mrb[20].mxu1 %v2854_v24  ;;  %v3510_v24 = vpack.i.b16 %v3501_v59, %v3501_v59  ;;  %v3517_v57 = vpack.i.b16 %v3508_v18, %v3508_v18 }
 0x372   : > { %v2691_v13 = vpack.c.bf16 %v2553_v36, %v2549_v58 }
 0x373   : > { %v2792_v38 = vadd.bf16 %v5699_v12, %v2690_v17 }
 0x374   : > { %v2793_v42 = vadd.bf16 %v5702_v8, %v2691_v13 }
 0x375   : > { %v2856_v7 = vmax.bf16 %v6258_v63, %v2792_v38 }
 0x376   : > { %v2557_v52 = vpop.f32.mrb[156].mxu0  ;;  %v2857_v23 = vmax.bf16 %v6258_v63, %v2793_v42  ;;  %v5861_v42 = vrot.slane %v3510_v24, %v6302_v27 }
 0x377   : > { %v2559_v14 = vpop.f32.mrb[157].mxu0 }
 0x378   : > { %v2561_v19 = vpop.f32.mrb[158].mxu0  ;;  %3320 = vmatprep.mubr.bf16.mxu1 %v2857_v23  ;;  %v5864_v23 = vrot.slane %v3517_v57, %v6302_v27 }
 0x379   : > { %v2692_v15 = vpack.c.bf16 %v2561_v19, %v2557_v52  ;;  %v2563_v51 = vpop.f32.mrb[159].mxu0  ;;  %3321 = vmatmul.mubr.bf16.gmra.mrb[24].mxu1 %v2856_v7 }
 0x37a   : > { %v2693_v37 = vpack.c.bf16 %v2563_v51, %v2559_v14 }
 0x37b   : > { %v2794_v48 = vadd.bf16 %v5699_v12, %v2692_v15 }
 0x37c   : > { %v2795_v30 = vadd.bf16 %v5702_v8, %v2693_v37 }
 0x37d   : > { %v2858_v41 = vmax.bf16 %v6258_v63, %v2794_v48 }
 0x37e   : > { %v2567_v55 = vpop.f32.mrb[160].mxu0  ;;  %v2859_v25 = vmax.bf16 %v6258_v63, %v2795_v30 }
 0x37f   : > { %v2569_v43 = vpop.f32.mrb[161].mxu0 }
 0x380   : > { %v2571_v4 = vpop.f32.mrb[162].mxu0  ;;  %3330 = vmatprep.mubr.bf16.mxu1 %v2859_v25 }
 0x381   : > { %v2694_v33 = vpack.c.bf16 %v2571_v4, %v2567_v55  ;;  %v2573_v22 = vpop.f32.mrb[163].mxu0  ;;  %3331 = vmatmul.mubr.bf16.gmra.mrb[28].mxu1 %v2858_v41 }
 0x382   : > { %v2695_v39 = vpack.c.bf16 %v2573_v22, %v2569_v43 }
 0x383   : > { %v2796_v3 = vadd.bf16 %v5699_v12, %v2694_v33 }
 0x384   : > { %v2797_v53 = vadd.bf16 %v5702_v8, %v2695_v39 }
 0x385   : > { %v2860_v44 = vmax.bf16 %v6258_v63, %v2796_v3 }
 0x386   : > { %v2577_v61 = vpop.f32.mrb[164].mxu0  ;;  %v2861_v31 = vmax.bf16 %v6258_v63, %v2797_v53 }
 0x387   : > { %v2579_v28 = vpop.f32.mrb[165].mxu0 }
 0x388   : > { %v2581_v40 = vpop.f32.mrb[166].mxu0  ;;  %3340 = vmatprep.mubr.bf16.mxu1 %v2861_v31 }
 0x389   : > { %v2696_v46 = vpack.c.bf16 %v2581_v40, %v2577_v61  ;;  %v2583_v62 = vpop.f32.mrb[167].mxu0  ;;  %3341 = vmatmul.mubr.bf16.gmra.mrb[32].mxu1 %v2860_v44 }
 0x38a   : > { %v2697_v5 = vpack.c.bf16 %v2583_v62, %v2579_v28 }
 0x38b   : > { %v2798_v10 = vadd.bf16 %v5699_v12, %v2696_v46 }
 0x38c   : > { %v2799_v2 = vadd.bf16 %v5702_v8, %v2697_v5 }
 0x38d   : > { %v2862_v60 = vmax.bf16 %v6258_v63, %v2798_v10 }
 0x38e   : > { %v2587_v1 = vpop.f32.mrb[168].mxu0  ;;  %v2863_v16 = vmax.bf16 %v6258_v63, %v2799_v2 }
 0x38f   : > { %v2589_v20 = vpop.f32.mrb[169].mxu0 }
 0x390   : > { %v2591_v54 = vpop.f32.mrb[170].mxu0  ;;  %3350 = vmatprep.mubr.bf16.mxu1 %v2863_v16 }
 0x391   : > { %v2698_v26 = vpack.c.bf16 %v2591_v54, %v2587_v1  ;;  %v2593_v29 = vpop.f32.mrb[171].mxu0  ;;  %3351 = vmatmul.mubr.bf16.gmra.mrb[36].mxu1 %v2862_v60 }
 0x392   : > { %v2699_v45 = vpack.c.bf16 %v2593_v29, %v2589_v20 }
 0x393   : > { %v2800_v9 = vadd.bf16 %v5699_v12, %v2698_v26 }
 0x394   : > { %v2801_v47 = vadd.bf16 %v5702_v8, %v2699_v45 }
 0x395   : > { %v2864_v32 = vmax.bf16 %v6258_v63, %v2800_v9 }
 0x396   : > { %v2597_v56 = vpop.f32.mrb[172].mxu0  ;;  %v2865_v6 = vmax.bf16 %v6258_v63, %v2801_v47 }
 0x397   : > { %v2599_v0 = vpop.f32.mrb[173].mxu0 }
 0x398   : > { %v2601_v21 = vpop.f32.mrb[174].mxu0  ;;  %3360 = vmatprep.mubr.bf16.mxu1 %v2865_v6 }
 0x399   : > { %v2700_v11 = vpack.c.bf16 %v2601_v21, %v2597_v56  ;;  %v2603_v34 = vpop.f32.mrb[175].mxu0  ;;  %3361 = vmatmul.mubr.bf16.gmra.mrb[40].mxu1 %v2864_v32 }
 0x39a   : > { %v2701_v58 = vpack.c.bf16 %v2603_v34, %v2599_v0 }
 0x39b   : > { %v2802_v17 = vadd.bf16 %v5699_v12, %v2700_v11 }
 0x39c   : > { %v2803_v36 = vadd.bf16 %v5702_v8, %v2701_v58  ;;  %v3102_v13 = vpop.f32.mrb[192].mxu1 }
 0x39d   : > { %v3104_v38 = vpop.f32.mrb[193].mxu1  ;;  %v2866_v14 = vmax.bf16 %v6258_v63, %v2802_v17 }
 0x39e   : > { %v2607_v50 = vpop.f32.mrb[176].mxu0  ;;  %v3106_v52 = vpop.f32.mrb[194].mxu1  ;;  %v2867_v7 = vmax.bf16 %v6258_v63, %v2803_v36 }
 0x39f   : > { %v3421_v19 = vpack.c.bf16 %v3106_v52, %v3102_v13  ;;  %v2609_v15 = vpop.f32.mrb[177].mxu0  ;;  %v3108_v51 = vpop.f32.mrb[195].mxu1 }
 0x3a0   : > { %v3422_v37 = vpack.c.bf16 %v3108_v51, %v3104_v38  ;;  %v2611_v48 = vpop.f32.mrb[178].mxu0  ;;  %3370 = vmatprep.mubr.bf16.mxu1 %v2867_v7 }
 0x3a1   : > { %v3523_v30 = vadd.bf16 %v5861_v42, %v3421_v19  ;;  %v2702_v55 = vpack.c.bf16 %v2611_v48, %v2607_v50  ;;  %v2613_v25 = vpop.f32.mrb[179].mxu0  ;;  %3371 = vmatmul.mubr.bf16.gmra.mrb[44].mxu1 %v2866_v14 }
 0x3a2   : > { %v3524_v41 = vadd.bf16 %v5864_v23, %v3422_v37  ;;  %v2703_v43 = vpack.c.bf16 %v2613_v25, %v2609_v15 }
 0x3a3   : > { %v2804_v27 = vadd.bf16 %v5699_v12, %v2702_v55  ;;  %v3587_v39 = vmax.bf16 %v6258_v63, %v3523_v30 }
 0x3a4   : > { %v2805_v4 = vadd.bf16 %v5702_v8, %v2703_v43  ;;  %v3112_v33 = vpop.f32.mrb[196].mxu1  ;;  %v3588_v22 = vmax.bf16 %v6258_v63, %v3524_v41 }
 0x3a5   : > { %v3114_v3 = vpop.f32.mrb[197].mxu1  ;;  %v2868_v44 = vmax.bf16 %v6258_v63, %v2804_v27 }
 0x3a6   : > { %v2617_v53 = vpop.f32.mrb[180].mxu0  ;;  %v3116_v61 = vpop.f32.mrb[198].mxu1  ;;  %3818 = vmatprep.mubr.bf16.mxu0 %v3588_v22  ;;  %v2869_v31 = vmax.bf16 %v6258_v63, %v2805_v4 }
 0x3a7   : > { %v3423_v28 = vpack.c.bf16 %v3116_v61, %v3112_v33  ;;  %v2619_v40 = vpop.f32.mrb[181].mxu0  ;;  %v3118_v46 = vpop.f32.mrb[199].mxu1  ;;  %3819 = vmatmul.mubr.bf16.vlgmr.msra.gmra.mrb[192].mxu0 %v3587_v39 }
 0x3a8   : > { %v3424_v62 = vpack.c.bf16 %v3118_v46, %v3114_v3  ;;  %v2621_v5 = vpop.f32.mrb[182].mxu0  ;;  %3380 = vmatprep.mubr.bf16.mxu1 %v2869_v31 }
 0x3a9   : > { %v3525_v10 = vadd.bf16 %v5861_v42, %v3423_v28  ;;  %v2704_v2 = vpack.c.bf16 %v2621_v5, %v2617_v53  ;;  %v2623_v1 = vpop.f32.mrb[183].mxu0  ;;  %3381 = vmatmul.mubr.bf16.gmra.mrb[48].mxu1 %v2868_v44 }
 0x3aa   : > { %v3526_v16 = vadd.bf16 %v5864_v23, %v3424_v62  ;;  %v2705_v60 = vpack.c.bf16 %v2623_v1, %v2619_v40 }
 0x3ab   : > { %v2806_v20 = vadd.bf16 %v5699_v12, %v2704_v2  ;;  %v3589_v45 = vmax.bf16 %v6258_v63, %v3525_v10 }
 0x3ac   : > { %v2807_v35 = vadd.bf16 %v5702_v8, %v2705_v60  ;;  %v3122_v54 = vpop.f32.mrb[200].mxu1  ;;  %v3590_v26 = vmax.bf16 %v6258_v63, %v3526_v16 }
 0x3ad   : > { %v3124_v29 = vpop.f32.mrb[201].mxu1  ;;  %v2870_v59 = vmax.bf16 %v6258_v63, %v2806_v20 }
 0x3ae   : > { %v2627_v49 = vpop.f32.mrb[184].mxu0  ;;  %v3126_v9 = vpop.f32.mrb[202].mxu1  ;;  %3826 = vmatprep.mubr.bf16.mxu0 %v3590_v26  ;;  %v2871_v47 = vmax.bf16 %v6258_v63, %v2807_v35 }
 0x3af   : > { %v3425_v56 = vpack.c.bf16 %v3126_v9, %v3122_v54  ;;  %v2629_v6 = vpop.f32.mrb[185].mxu0  ;;  %v3128_v18 = vpop.f32.mrb[203].mxu1  ;;  %3827 = vmatmul.mubr.bf16.gmra.mrb[196].mxu0 %v3589_v45 }
 0x3b0   : > { %v3426_v32 = vpack.c.bf16 %v3128_v18, %v3124_v29  ;;  %v2631_v0 = vpop.f32.mrb[186].mxu0  ;;  %3390 = vmatprep.mubr.bf16.mxu1 %v2871_v47 }
 0x3b1   : > { %v3527_v21 = vadd.bf16 %v5861_v42, %v3425_v56  ;;  %v2706_v11 = vpack.c.bf16 %v2631_v0, %v2627_v49  ;;  %v2633_v34 = vpop.f32.mrb[187].mxu0  ;;  %3391 = vmatmul.mubr.bf16.gmra.mrb[52].mxu1 %v2870_v59 }
 0x3b2   : > { %v3528_v24 = vadd.bf16 %v5864_v23, %v3426_v32  ;;  %v2707_v58 = vpack.c.bf16 %v2633_v34, %v2629_v6 }
 0x3b3   : > { %v2808_v57 = vadd.bf16 %v5699_v12, %v2706_v11  ;;  %v3591_v50 = vmax.bf16 %v6258_v63, %v3527_v21 }
 0x3b4   : > { %v2809_v17 = vadd.bf16 %v5702_v8, %v2707_v58  ;;  %v3132_v36 = vpop.f32.mrb[204].mxu1  ;;  %v3592_v13 = vmax.bf16 %v6258_v63, %v3528_v24 }
 0x3b5   : > { %v3134_v38 = vpop.f32.mrb[205].mxu1  ;;  %v2872_v19 = vmax.bf16 %v6258_v63, %v2808_v57 }
 0x3b6   : > { %v2637_v52 = vpop.f32.mrb[188].mxu0  ;;  %v3136_v7 = vpop.f32.mrb[206].mxu1  ;;  %3834 = vmatprep.mubr.bf16.mxu0 %v3592_v13  ;;  %v2873_v14 = vmax.bf16 %v6258_v63, %v2809_v17 }
 0x3b7   : > { %v3427_v15 = vpack.c.bf16 %v3136_v7, %v3132_v36  ;;  %v2639_v51 = vpop.f32.mrb[189].mxu0  ;;  %v3138_v37 = vpop.f32.mrb[207].mxu1  ;;  %3835 = vmatmul.mubr.bf16.gmra.mrb[200].mxu0 %v3591_v50 }
 0x3b8   : > { %v3428_v48 = vpack.c.bf16 %v3138_v37, %v3134_v38  ;;  %v2641_v30 = vpop.f32.mrb[190].mxu0  ;;  %3400 = vmatprep.mubr.bf16.mxu1 %v2873_v14 }
 0x3b9   : > { %v3529_v55 = vadd.bf16 %v5861_v42, %v3427_v15  ;;  %v2708_v25 = vpack.c.bf16 %v2641_v30, %v2637_v52  ;;  %v2643_v41 = vpop.f32.mrb[191].mxu0  ;;  %3401 = vmatmul.mubr.bf16.gmra.mrb[56].mxu1 %v2872_v19 }
 0x3ba   : > { %v3530_v43 = vadd.bf16 %v5864_v23, %v3428_v48  ;;  %v2709_v27 = vpack.c.bf16 %v2643_v41, %v2639_v51 }
 0x3bb   : > { %v2810_v4 = vadd.bf16 %v5699_v12, %v2708_v25  ;;  %v3593_v53 = vmax.bf16 %v6258_v63, %v3529_v55 }
 0x3bc   : > { %v2811_v33 = vadd.bf16 %v5702_v8, %v2709_v27  ;;  %v3142_v22 = vpop.f32.mrb[208].mxu1  ;;  %v3594_v39 = vmax.bf16 %v6258_v63, %v3530_v43 }
 0x3bd   : > { %v3144_v3 = vpop.f32.mrb[209].mxu1  ;;  %v2874_v44 = vmax.bf16 %v6258_v63, %v2810_v4 }
 0x3be   : > { %v3146_v61 = vpop.f32.mrb[210].mxu1  ;;  %3842 = vmatprep.mubr.bf16.mxu0 %v3594_v39  ;;  %v2875_v31 = vmax.bf16 %v6258_v63, %v2811_v33 }
 0x3bf   : > { %v3429_v28 = vpack.c.bf16 %v3146_v61, %v3142_v22  ;;  %v3148_v40 = vpop.f32.mrb[211].mxu1  ;;  %3843 = vmatmul.mubr.bf16.gmra.mrb[204].mxu0 %v3593_v53 }
 0x3c0   : > { %v3430_v46 = vpack.c.bf16 %v3148_v40, %v3144_v3  ;;  %3410 = vmatprep.mubr.bf16.mxu1 %v2875_v31 }
 0x3c1   : > { %v3531_v12 = vadd.bf16 %v5861_v42, %v3429_v28  ;;  %3411 = vmatmul.mubr.bf16.gmra.mrb[60].mxu1 %v2874_v44 }
 0x3c2   : > { %v3532_v8 = vadd.bf16 %v5864_v23, %v3430_v46 }
 0x3c3   : > { %v3595_v2 = vmax.bf16 %v6258_v63, %v3531_v12 }
 0x3c4   : > { %v3152_v62 = vpop.f32.mrb[212].mxu1  ;;  %v3596_v5 = vmax.bf16 %v6258_v63, %v3532_v8 }
 0x3c5   : > { %v3154_v10 = vpop.f32.mrb[213].mxu1 }
 0x3c6   : > { %v3156_v1 = vpop.f32.mrb[214].mxu1  ;;  %3850 = vmatprep.mubr.bf16.mxu0 %v3596_v5 }
 0x3c7   : > { %v3431_v16 = vpack.c.bf16 %v3156_v1, %v3152_v62  ;;  %v3158_v60 = vpop.f32.mrb[215].mxu1  ;;  %3851 = vmatmul.mubr.bf16.gmra.mrb[208].mxu0 %v3595_v2 }
 0x3c8   : > { %v3432_v20 = vpack.c.bf16 %v3158_v60, %v3154_v10 }
 0x3c9   : > { %v3533_v35 = vadd.bf16 %v5861_v42, %v3431_v16 }
 0x3ca   : > { %v3534_v54 = vadd.bf16 %v5864_v23, %v3432_v20 }
 0x3cb   : > { %v3597_v49 = vmax.bf16 %v6258_v63, %v3533_v35 }
 0x3cc   : > { %v3162_v26 = vpop.f32.mrb[216].mxu1  ;;  %v3598_v29 = vmax.bf16 %v6258_v63, %v3534_v54 }
 0x3cd   : > { %v3164_v45 = vpop.f32.mrb[217].mxu1 }
 0x3ce   : > { %v3166_v9 = vpop.f32.mrb[218].mxu1  ;;  %3858 = vmatprep.mubr.bf16.mxu0 %v3598_v29 }
 0x3cf   : > { %v3433_v47 = vpack.c.bf16 %v3166_v9, %v3162_v26  ;;  %v3168_v59 = vpop.f32.mrb[219].mxu1  ;;  %3859 = vmatmul.mubr.bf16.gmra.mrb[212].mxu0 %v3597_v49 }
 0x3d0   : > { %v3434_v56 = vpack.c.bf16 %v3168_v59, %v3164_v45 }
 0x3d1   : > { %v3535_v6 = vadd.bf16 %v5861_v42, %v3433_v47 }
 0x3d2   : > { %v3536_v18 = vadd.bf16 %v5864_v23, %v3434_v56 }
 0x3d3   : > { %v3599_v11 = vmax.bf16 %v6258_v63, %v3535_v6 }
 0x3d4   : > { %v3172_v32 = vpop.f32.mrb[220].mxu1  ;;  %v3600_v0 = vmax.bf16 %v6258_v63, %v3536_v18 }
 0x3d5   : > { %v3174_v21 = vpop.f32.mrb[221].mxu1 }
 0x3d6   : > { %v3176_v34 = vpop.f32.mrb[222].mxu1  ;;  %3866 = vmatprep.mubr.bf16.mxu0 %v3600_v0 }
 0x3d7   : > { %v3435_v24 = vpack.c.bf16 %v3176_v34, %v3172_v32  ;;  %v3178_v58 = vpop.f32.mrb[223].mxu1  ;;  %3867 = vmatmul.mubr.bf16.gmra.mrb[216].mxu0 %v3599_v11 }
 0x3d8   : > { %v3436_v57 = vpack.c.bf16 %v3178_v58, %v3174_v21 }
 0x3d9   : > { %v3537_v17 = vadd.bf16 %v5861_v42, %v3435_v24 }
 0x3da   : > { %v3538_v36 = vadd.bf16 %v5864_v23, %v3436_v57 }
 0x3db   : > { %v3601_v52 = vmax.bf16 %v6258_v63, %v3537_v17 }
 0x3dc   : > { %v3182_v13 = vpop.f32.mrb[224].mxu1  ;;  %v3602_v38 = vmax.bf16 %v6258_v63, %v3538_v36 }
 0x3dd   : > { %v3184_v50 = vpop.f32.mrb[225].mxu1 }
 0x3de   : > { %v3186_v7 = vpop.f32.mrb[226].mxu1  ;;  %3874 = vmatprep.mubr.bf16.mxu0 %v3602_v38 }
 0x3df   : > { %v3437_v14 = vpack.c.bf16 %v3186_v7, %v3182_v13  ;;  %v3188_v19 = vpop.f32.mrb[227].mxu1  ;;  %3875 = vmatmul.mubr.bf16.gmra.mrb[220].mxu0 %v3601_v52 }
 0x3e0   : > { %v3438_v15 = vpack.c.bf16 %v3188_v19, %v3184_v50 }
 0x3e1   : > { %v3539_v51 = vadd.bf16 %v5861_v42, %v3437_v14 }
 0x3e2   : > { %v3540_v37 = vadd.bf16 %v5864_v23, %v3438_v15 }
 0x3e3   : > { %v3603_v25 = vmax.bf16 %v6258_v63, %v3539_v51 }
 0x3e4   : > { %v3192_v48 = vpop.f32.mrb[228].mxu1  ;;  %v3604_v30 = vmax.bf16 %v6258_v63, %v3540_v37 }
 0x3e5   : > { %v3194_v55 = vpop.f32.mrb[229].mxu1 }
 0x3e6   : > { %v3196_v41 = vpop.f32.mrb[230].mxu1  ;;  %3882 = vmatprep.mubr.bf16.mxu0 %v3604_v30 }
 0x3e7   : > { %v3439_v43 = vpack.c.bf16 %v3196_v41, %v3192_v48  ;;  %v3198_v27 = vpop.f32.mrb[231].mxu1  ;;  %3883 = vmatmul.mubr.bf16.gmra.mrb[224].mxu0 %v3603_v25 }
 0x3e8   : > { %v3440_v4 = vpack.c.bf16 %v3198_v27, %v3194_v55 }
 0x3e9   : > { %v3541_v33 = vadd.bf16 %v5861_v42, %v3439_v43 }
 0x3ea   : > { %v3542_v22 = vadd.bf16 %v5864_v23, %v3440_v4 }
 0x3eb   : > { %v3605_v61 = vmax.bf16 %v6258_v63, %v3541_v33 }
 0x3ec   : > { %v3202_v39 = vpop.f32.mrb[232].mxu1  ;;  %v3606_v3 = vmax.bf16 %v6258_v63, %v3542_v22 }
 0x3ed   : > { %v3204_v53 = vpop.f32.mrb[233].mxu1 }
 0x3ee   : > { %v3206_v31 = vpop.f32.mrb[234].mxu1  ;;  %3890 = vmatprep.mubr.bf16.mxu0 %v3606_v3 }
 0x3ef   : > { %v3441_v44 = vpack.c.bf16 %v3206_v31, %v3202_v39  ;;  %v3208_v28 = vpop.f32.mrb[235].mxu1  ;;  %3891 = vmatmul.mubr.bf16.gmra.mrb[228].mxu0 %v3605_v61 }
 0x3f0   : > { %v3442_v40 = vpack.c.bf16 %v3208_v28, %v3204_v53 }
 0x3f1   : > { %v3543_v46 = vadd.bf16 %v5861_v42, %v3441_v44 }
 0x3f2   : > { %v3544_v12 = vadd.bf16 %v5864_v23, %v3442_v40 }
 0x3f3   : > { %v3607_v10 = vmax.bf16 %v6258_v63, %v3543_v46 }
 0x3f4   : > { %v3212_v8 = vpop.f32.mrb[236].mxu1  ;;  %v3608_v62 = vmax.bf16 %v6258_v63, %v3544_v12 }
 0x3f5   : > { %v3214_v5 = vpop.f32.mrb[237].mxu1 }
 0x3f6   : > { %v3216_v2 = vpop.f32.mrb[238].mxu1  ;;  %3898 = vmatprep.mubr.bf16.mxu0 %v3608_v62 }
 0x3f7   : > { %v3443_v1 = vpack.c.bf16 %v3216_v2, %v3212_v8  ;;  %v3218_v16 = vpop.f32.mrb[239].mxu1  ;;  %3899 = vmatmul.mubr.bf16.gmra.mrb[232].mxu0 %v3607_v10 }
 0x3f8   : > { %v3444_v60 = vpack.c.bf16 %v3218_v16, %v3214_v5 }
 0x3f9   : > { %v3545_v20 = vadd.bf16 %v5861_v42, %v3443_v1 }
 0x3fa   : > { %v3546_v35 = vadd.bf16 %v5864_v23, %v3444_v60 }
 0x3fb   : > { %v3609_v45 = vmax.bf16 %v6258_v63, %v3545_v20 }
 0x3fc   : > { %v3222_v54 = vpop.f32.mrb[240].mxu1  ;;  %v3610_v26 = vmax.bf16 %v6258_v63, %v3546_v35 }
 0x3fd   : > { %v3224_v29 = vpop.f32.mrb[241].mxu1 }
 0x3fe   : > { %v3226_v49 = vpop.f32.mrb[242].mxu1  ;;  %3906 = vmatprep.mubr.bf16.mxu0 %v3610_v26 }
 0x3ff   : > { %v3445_v9 = vpack.c.bf16 %v3226_v49, %v3222_v54  ;;  %v3228_v47 = vpop.f32.mrb[243].mxu1  ;;  %3907 = vmatmul.mubr.bf16.gmra.mrb[236].mxu0 %v3609_v45 }
 0x400   : > { %v3446_v59 = vpack.c.bf16 %v3228_v47, %v3224_v29 }
 0x401   : > { %v3547_v56 = vadd.bf16 %v5861_v42, %v3445_v9 }
 0x402   : > { %v3548_v6 = vadd.bf16 %v5864_v23, %v3446_v59 }
 0x403   : > { %v3611_v21 = vmax.bf16 %v6258_v63, %v3547_v56 }
 0x404   : > { %v3232_v18 = vpop.f32.mrb[244].mxu1  ;;  %v3612_v32 = vmax.bf16 %v6258_v63, %v3548_v6 }
 0x405   : > { %v3234_v0 = vpop.f32.mrb[245].mxu1 }
 0x406   : > { %v3236_v11 = vpop.f32.mrb[246].mxu1  ;;  %3914 = vmatprep.mubr.bf16.mxu0 %v3612_v32 }
 0x407   : > { %v3447_v34 = vpack.c.bf16 %v3236_v11, %v3232_v18  ;;  %v3238_v24 = vpop.f32.mrb[247].mxu1  ;;  %3915 = vmatmul.mubr.bf16.gmra.mrb[240].mxu0 %v3611_v21 }
 0x408   : > { %v3448_v58 = vpack.c.bf16 %v3238_v24, %v3234_v0 }
 0x409   : > { %v3549_v57 = vadd.bf16 %v5861_v42, %v3447_v34 }
 0x40a   : > { %v3550_v17 = vadd.bf16 %v5864_v23, %v3448_v58 }
 0x40b   : > { %v3613_v50 = vmax.bf16 %v6258_v63, %v3549_v57 }
 0x40c   : > { %v3242_v36 = vpop.f32.mrb[248].mxu1  ;;  %v3614_v13 = vmax.bf16 %v6258_v63, %v3550_v17 }
 0x40d   : > { %v3244_v38 = vpop.f32.mrb[249].mxu1 }
 0x40e   : > { %v3246_v52 = vpop.f32.mrb[250].mxu1  ;;  %3922 = vmatprep.mubr.bf16.mxu0 %v3614_v13 }
 0x40f   : > { %v3449_v7 = vpack.c.bf16 %v3246_v52, %v3242_v36  ;;  %v3248_v14 = vpop.f32.mrb[251].mxu1  ;;  %3923 = vmatmul.mubr.bf16.gmra.mrb[244].mxu0 %v3613_v50 }
 0x410   : > { %v3450_v19 = vpack.c.bf16 %v3248_v14, %v3244_v38 }
 0x411   : > { %v3551_v15 = vadd.bf16 %v5861_v42, %v3449_v7 }
 0x412   : > { %v3552_v51 = vadd.bf16 %v5864_v23, %v3450_v19 }
 0x413   : > { %v3615_v55 = vmax.bf16 %v6258_v63, %v3551_v15 }
 0x414   : > { %v3252_v37 = vpop.f32.mrb[252].mxu1  ;;  %v3616_v48 = vmax.bf16 %v6258_v63, %v3552_v51 }
 0x415   : > { %v3254_v30 = vpop.f32.mrb[253].mxu1 }
 0x416   : > { %v3256_v25 = vpop.f32.mrb[254].mxu1  ;;  %3930 = vmatprep.mubr.bf16.mxu0 %v3616_v48 }
 0x417   : > { %v3451_v41 = vpack.c.bf16 %v3256_v25, %v3252_v37  ;;  %v3258_v43 = vpop.f32.mrb[255].mxu1  ;;  %3931 = vmatmul.mubr.bf16.gmra.mrb[248].mxu0 %v3615_v55 }
 0x418   : > { %v3452_v27 = vpack.c.bf16 %v3258_v43, %v3254_v30 }
 0x419   : > { %v3553_v4 = vadd.bf16 %v5861_v42, %v3451_v41 }
 0x41a   : > { %v3554_v33 = vadd.bf16 %v5864_v23, %v3452_v27 }
 0x41b   : > { %v3617_v53 = vmax.bf16 %v6258_v63, %v3553_v4 }
 0x41c   : > { %v3262_v22 = vpop.f32.mrb[0].mxu1  ;;  %v3618_v39 = vmax.bf16 %v6258_v63, %v3554_v33 }
 0x41d   : > { %v3264_v3 = vpop.f32.mrb[1].mxu1 }
 0x41e   : > { %v3266_v61 = vpop.f32.mrb[2].mxu1  ;;  %3938 = vmatprep.mubr.bf16.mxu0 %v3618_v39 }
 0x41f   : > { %v3453_v31 = vpack.c.bf16 %v3266_v61, %v3262_v22  ;;  %v3268_v44 = vpop.f32.mrb[3].mxu1  ;;  %3939 = vmatmul.mubr.bf16.gmra.mrb[252].mxu0 %v3617_v53 }
 0x420   : > { %v3454_v28 = vpack.c.bf16 %v3268_v44, %v3264_v3 }
 0x421   : > { %v3555_v40 = vadd.bf16 %v5861_v42, %v3453_v31 }
 0x422   : > { %v3556_v46 = vadd.bf16 %v5864_v23, %v3454_v28 }
 0x423   : > { %v3619_v62 = vmax.bf16 %v6258_v63, %v3555_v40 }
 0x424   : > { %v3272_v12 = vpop.f32.mrb[4].mxu1  ;;  %v3620_v8 = vmax.bf16 %v6258_v63, %v3556_v46 }
 0x425   : > { %v3274_v5 = vpop.f32.mrb[5].mxu1 }
 0x426   : > { %v3276_v10 = vpop.f32.mrb[6].mxu1  ;;  %3946 = vmatprep.mubr.bf16.mxu0 %v3620_v8 }
 0x427   : > { %v3455_v2 = vpack.c.bf16 %v3276_v10, %v3272_v12  ;;  %v3278_v1 = vpop.f32.mrb[7].mxu1  ;;  %3947 = vmatmul.mubr.bf16.gmra.mrb[0].mxu0 %v3619_v62 }
 0x428   : > { %v3456_v16 = vpack.c.bf16 %v3278_v1, %v3274_v5 }
 0x429   : > { %v3557_v60 = vadd.bf16 %v5861_v42, %v3455_v2 }
 0x42a   : > { %v3558_v20 = vadd.bf16 %v5864_v23, %v3456_v16 }
 0x42b   : > { %v3621_v26 = vmax.bf16 %v6258_v63, %v3557_v60 }
 0x42c   : > { %v3282_v35 = vpop.f32.mrb[8].mxu1  ;;  %v3622_v54 = vmax.bf16 %v6258_v63, %v3558_v20 }
 0x42d   : > { %v3284_v29 = vpop.f32.mrb[9].mxu1 }
 0x42e   : > { %v3286_v45 = vpop.f32.mrb[10].mxu1  ;;  %3954 = vmatprep.mubr.bf16.mxu0 %v3622_v54 }
 0x42f   : > { %v3457_v49 = vpack.c.bf16 %v3286_v45, %v3282_v35  ;;  %v3288_v9 = vpop.f32.mrb[11].mxu1  ;;  %3955 = vmatmul.mubr.bf16.gmra.mrb[4].mxu0 %v3621_v26 }
 0x430   : > { %v3458_v47 = vpack.c.bf16 %v3288_v9, %v3284_v29 }
 0x431   : > { %v3559_v59 = vadd.bf16 %v5861_v42, %v3457_v49 }
 0x432   : > { %v3560_v56 = vadd.bf16 %v5864_v23, %v3458_v47 }
 0x433   : > { %v3623_v32 = vmax.bf16 %v6258_v63, %v3559_v59 }
 0x434   : > { %v3292_v6 = vpop.f32.mrb[12].mxu1  ;;  %v3624_v18 = vmax.bf16 %v6258_v63, %v3560_v56 }
 0x435   : > { %v3294_v0 = vpop.f32.mrb[13].mxu1 }
 0x436   : > { %v3296_v21 = vpop.f32.mrb[14].mxu1  ;;  %3962 = vmatprep.mubr.bf16.mxu0 %v3624_v18 }
 0x437   : > { %v3459_v11 = vpack.c.bf16 %v3296_v21, %v3292_v6  ;;  %v3298_v34 = vpop.f32.mrb[15].mxu1  ;;  %3963 = vmatmul.mubr.bf16.gmra.mrb[8].mxu0 %v3623_v32 }
 0x438   : > { %v3460_v24 = vpack.c.bf16 %v3298_v34, %v3294_v0 }
 0x439   : > { %v3561_v58 = vadd.bf16 %v5861_v42, %v3459_v11 }
 0x43a   : > { %v3562_v57 = vadd.bf16 %v5864_v23, %v3460_v24 }
 0x43b   : > { %v3625_v13 = vmax.bf16 %v6258_v63, %v3561_v58 }
 0x43c   : > { %v3302_v17 = vpop.f32.mrb[16].mxu1  ;;  %v3626_v36 = vmax.bf16 %v6258_v63, %v3562_v57 }
 0x43d   : > { %v3304_v38 = vpop.f32.mrb[17].mxu1 }
 0x43e   : > { %v3306_v50 = vpop.f32.mrb[18].mxu1  ;;  %3970 = vmatprep.mubr.bf16.mxu0 %v3626_v36 }
 0x43f   : > { %v3461_v52 = vpack.c.bf16 %v3306_v50, %v3302_v17  ;;  %v3308_v7 = vpop.f32.mrb[19].mxu1  ;;  %3971 = vmatmul.mubr.bf16.gmra.mrb[12].mxu0 %v3625_v13 }
 0x440   : > { %v3462_v14 = vpack.c.bf16 %v3308_v7, %v3304_v38 }
 0x441   : > { %v3563_v19 = vadd.bf16 %v5861_v42, %v3461_v52 }
 0x442   : > { %v3564_v15 = vadd.bf16 %v5864_v23, %v3462_v14 }
 0x443   : > { %v3627_v48 = vmax.bf16 %v6258_v63, %v3563_v19 }
 0x444   : > { %v3312_v51 = vpop.f32.mrb[20].mxu1  ;;  %v3628_v37 = vmax.bf16 %v6258_v63, %v3564_v15 }
 0x445   : > { %v3314_v30 = vpop.f32.mrb[21].mxu1 }
 0x446   : > { %v3316_v55 = vpop.f32.mrb[22].mxu1  ;;  %3978 = vmatprep.mubr.bf16.mxu0 %v3628_v37 }
 0x447   : > { %v3463_v25 = vpack.c.bf16 %v3316_v55, %v3312_v51  ;;  %v3318_v41 = vpop.f32.mrb[23].mxu1  ;;  %3979 = vmatmul.mubr.bf16.gmra.mrb[16].mxu0 %v3627_v48 }
 0x448   : > { %v3464_v43 = vpack.c.bf16 %v3318_v41, %v3314_v30 }
 0x449   : > { %v3565_v27 = vadd.bf16 %v5861_v42, %v3463_v25 }
 0x44a   : > { %v3566_v4 = vadd.bf16 %v5864_v23, %v3464_v43  ;;  %v5996_v43 = vld [vmem:[%s6228_s10] ss:$0 sm:$0xff] }
 0x44b   : > { %v3629_v39 = vmax.bf16 %v6258_v63, %v3565_v27 }
 0x44c   : > { %v3322_v33 = vpop.f32.mrb[24].mxu1  ;;  %v3630_v22 = vmax.bf16 %v6258_v63, %v3566_v4 }
 0x44d   : > { %v3324_v3 = vpop.f32.mrb[25].mxu1 }
 0x44e   : > { %v3326_v53 = vpop.f32.mrb[26].mxu1  ;;  %3986 = vmatprep.mubr.bf16.mxu0 %v3630_v22 }
 0x44f   : > { %v3465_v61 = vpack.c.bf16 %v3326_v53, %v3322_v33  ;;  %v3328_v31 = vpop.f32.mrb[27].mxu1  ;;  %3987 = vmatmul.mubr.bf16.gmra.mrb[20].mxu0 %v3629_v39 }
 0x450   : > { %v3466_v44 = vpack.c.bf16 %v3328_v31, %v3324_v3 }
 0x451   : > { %v3567_v28 = vadd.bf16 %v5861_v42, %v3465_v61 }
 0x452   : > { %v3568_v40 = vadd.bf16 %v5864_v23, %v3466_v44 }
 0x453   : > { %v3631_v8 = vmax.bf16 %v6258_v63, %v3567_v28 }
 0x454   : > { %v3332_v46 = vpop.f32.mrb[28].mxu1  ;;  %v3632_v12 = vmax.bf16 %v6258_v63, %v3568_v40 }
 0x455   : > { %v3334_v62 = vpop.f32.mrb[29].mxu1 }
 0x456   : > { %v3336_v5 = vpop.f32.mrb[30].mxu1  ;;  %3994 = vmatprep.mubr.bf16.mxu0 %v3632_v12 }
 0x457   : > { %v3467_v10 = vpack.c.bf16 %v3336_v5, %v3332_v46  ;;  %v3338_v2 = vpop.f32.mrb[31].mxu1  ;;  %3995 = vmatmul.mubr.bf16.gmra.mrb[24].mxu0 %v3631_v8 }
 0x458   : > { %v3468_v1 = vpack.c.bf16 %v3338_v2, %v3334_v62 }
 0x459   : > { %v3569_v16 = vadd.bf16 %v5861_v42, %v3467_v10 }
 0x45a   : > { %v3570_v60 = vadd.bf16 %v5864_v23, %v3468_v1 }
 0x45b   : > { %v3633_v54 = vmax.bf16 %v6258_v63, %v3569_v16 }
 0x45c   : > { %v3342_v20 = vpop.f32.mrb[32].mxu1  ;;  %v3634_v35 = vmax.bf16 %v6258_v63, %v3570_v60 }
 0x45d   : > { %v3344_v26 = vpop.f32.mrb[33].mxu1 }
 0x45e   : > { %v3346_v29 = vpop.f32.mrb[34].mxu1  ;;  %4002 = vmatprep.mubr.bf16.mxu0 %v3634_v35 }
 0x45f   : > { %v3469_v45 = vpack.c.bf16 %v3346_v29, %v3342_v20  ;;  %v3348_v49 = vpop.f32.mrb[35].mxu1  ;;  %4003 = vmatmul.mubr.bf16.gmra.mrb[28].mxu0 %v3633_v54 }
 0x460   : > { %v3470_v9 = vpack.c.bf16 %v3348_v49, %v3344_v26 }
 0x461   : > { %v3571_v47 = vadd.bf16 %v5861_v42, %v3469_v45 }
 0x462   : > { %v3572_v59 = vadd.bf16 %v5864_v23, %v3470_v9 }
 0x463   : > { %v3635_v18 = vmax.bf16 %v6258_v63, %v3571_v47 }
 0x464   : > { %v3352_v56 = vpop.f32.mrb[36].mxu1  ;;  %v3636_v6 = vmax.bf16 %v6258_v63, %v3572_v59 }
 0x465   : > { %v3354_v32 = vpop.f32.mrb[37].mxu1 }
 0x466   : > { %v3356_v0 = vpop.f32.mrb[38].mxu1  ;;  %4010 = vmatprep.mubr.bf16.mxu0 %v3636_v6 }
 0x467   : > { %v3471_v21 = vpack.c.bf16 %v3356_v0, %v3352_v56  ;;  %v3358_v11 = vpop.f32.mrb[39].mxu1  ;;  %4011 = vmatmul.mubr.bf16.gmra.mrb[32].mxu0 %v3635_v18 }
 0x468   : > { %v3472_v34 = vpack.c.bf16 %v3358_v11, %v3354_v32 }
 0x469   : > { %v3573_v24 = vadd.bf16 %v5861_v42, %v3471_v21 }
 0x46a   : > { %v3574_v58 = vadd.bf16 %v5864_v23, %v3472_v34 }
 0x46b   : > { %v3637_v36 = vmax.bf16 %v6258_v63, %v3573_v24 }
 0x46c   : > { %v3362_v57 = vpop.f32.mrb[40].mxu1  ;;  %v3638_v17 = vmax.bf16 %v6258_v63, %v3574_v58 }
 0x46d   : > { %v3364_v13 = vpop.f32.mrb[41].mxu1 }
 0x46e   : > { %v3366_v38 = vpop.f32.mrb[42].mxu1  ;;  %4018 = vmatprep.mubr.bf16.mxu0 %v3638_v17 }
 0x46f   : > { %v3473_v50 = vpack.c.bf16 %v3366_v38, %v3362_v57  ;;  %v3368_v52 = vpop.f32.mrb[43].mxu1  ;;  %4019 = vmatmul.mubr.bf16.gmra.mrb[36].mxu0 %v3637_v36 }
 0x470   : > { %v3474_v7 = vpack.c.bf16 %v3368_v52, %v3364_v13 }
 0x471   : > { %v3575_v14 = vadd.bf16 %v5861_v42, %v3473_v50 }
 0x472   : > { %v3576_v19 = vadd.bf16 %v5864_v23, %v3474_v7 }
 0x473   : > { %v3639_v37 = vmax.bf16 %v6258_v63, %v3575_v14 }
 0x474   : > { %v3372_v15 = vpop.f32.mrb[44].mxu1  ;;  %v3640_v51 = vmax.bf16 %v6258_v63, %v3576_v19 }
 0x475   : > { %v3374_v48 = vpop.f32.mrb[45].mxu1 }
 0x476   : > { %v3376_v30 = vpop.f32.mrb[46].mxu1  ;;  %4026 = vmatprep.mubr.bf16.mxu0 %v3640_v51 }
 0x477   : > { %v3475_v55 = vpack.c.bf16 %v3376_v30, %v3372_v15  ;;  %v3378_v25 = vpop.f32.mrb[47].mxu1  ;;  %4027 = vmatmul.mubr.bf16.gmra.mrb[40].mxu0 %v3639_v37 }
 0x478   : > { %v3476_v41 = vpack.c.bf16 %v3378_v25, %v3374_v48 }
 0x479   : > { %v3577_v27 = vadd.bf16 %v5861_v42, %v3475_v55 }
 0x47a   : > { %v3578_v4 = vadd.bf16 %v5864_v23, %v3476_v41  ;;  %v3820_v33 = vpop.f32.mrb[192].mxu0 }
 0x47b   : > { %v3821_v22 = vadd.f32 %v5996_v43, %v3820_v33  ;;  %v3822_v39 = vpop.f32.mrb[193].mxu0  ;;  %v3641_v31 = vmax.bf16 %v6258_v63, %v3577_v27 }
 0x47c   : > { %v3382_v3 = vpop.f32.mrb[48].mxu1  ;;  %v3823_v53 = vpop.f32.mrb[194].mxu0  ;;  %v3642_v61 = vmax.bf16 %v6258_v63, %v3578_v4 }
 0x47d   : > { %4076 = vst.msk [vmem:[%s6003_s26] sm:$0xff] %vm4075_vm0, %v3821_v22  ;;  %v3824_v44 = vadd.f32 %v5996_v43, %v3823_v53  ;;  %v3384_v28 = vpop.f32.mrb[49].mxu1  ;;  %v3825_v40 = vpop.f32.mrb[195].mxu0 }
 0x47e   : > { %v3386_v46 = vpop.f32.mrb[50].mxu1  ;;  %4034 = vmatprep.mubr.bf16.mxu0 %v3642_v61 }
 0x47f   : > { %4077 = vst.msk [vmem:[%s6003_s26 + $0x8] sm:$0xff] %vm4075_vm0, %v3824_v44  ;;  %v3477_v12 = vpack.c.bf16 %v3386_v46, %v3382_v3  ;;  %v3388_v8 = vpop.f32.mrb[51].mxu1  ;;  %4035 = vmatmul.mubr.bf16.gmra.mrb[44].mxu0 %v3641_v31 }
 0x480   : > { %v3478_v62 = vpack.c.bf16 %v3388_v8, %v3384_v28 }
 0x481   : > { %v3579_v5 = vadd.bf16 %v5861_v42, %v3477_v12 }
 0x482   : > { %v3580_v10 = vadd.bf16 %v5864_v23, %v3478_v62  ;;  %v3828_v2 = vpop.f32.mrb[196].mxu0 }
 0x483   : > { %v3829_v1 = vadd.f32 %v5996_v43, %v3828_v2  ;;  %v3830_v16 = vpop.f32.mrb[197].mxu0  ;;  %v3643_v54 = vmax.bf16 %v6258_v63, %v3579_v5 }
 0x484   : > { %v3392_v60 = vpop.f32.mrb[52].mxu1  ;;  %v3831_v20 = vpop.f32.mrb[198].mxu0  ;;  %v3644_v35 = vmax.bf16 %v6258_v63, %v3580_v10 }
 0x485   : > { %4078 = vst.msk [vmem:[%s6003_s26 + $0x10] sm:$0xff] %vm4075_vm0, %v3829_v1  ;;  %v3832_v26 = vadd.f32 %v5996_v43, %v3831_v20  ;;  %v3394_v29 = vpop.f32.mrb[53].mxu1  ;;  %v3833_v45 = vpop.f32.mrb[199].mxu0 }
 0x486   : > { %v3396_v49 = vpop.f32.mrb[54].mxu1  ;;  %4042 = vmatprep.mubr.bf16.mxu0 %v3644_v35 }
 0x487   : > { %4079 = vst.msk [vmem:[%s6003_s26 + $0x18] sm:$0xff] %vm4075_vm0, %v3832_v26  ;;  %v3479_v9 = vpack.c.bf16 %v3396_v49, %v3392_v60  ;;  %v3398_v47 = vpop.f32.mrb[55].mxu1  ;;  %4043 = vmatmul.mubr.bf16.gmra.mrb[48].mxu0 %v3643_v54 }
 0x488   : > { %v3480_v59 = vpack.c.bf16 %v3398_v47, %v3394_v29 }
 0x489   : > { %v3581_v56 = vadd.bf16 %v5861_v42, %v3479_v9 }
 0x48a   : > { %v3582_v6 = vadd.bf16 %v5864_v23, %v3480_v59  ;;  %v3836_v18 = vpop.f32.mrb[200].mxu0 }
 0x48b   : > { %v3837_v32 = vadd.f32 %v5996_v43, %v3836_v18  ;;  %v3838_v0 = vpop.f32.mrb[201].mxu0  ;;  %v3645_v24 = vmax.bf16 %v6258_v63, %v3581_v56 }
 0x48c   : > { %v3402_v21 = vpop.f32.mrb[56].mxu1  ;;  %v3839_v11 = vpop.f32.mrb[202].mxu0  ;;  %v3646_v34 = vmax.bf16 %v6258_v63, %v3582_v6 }
 0x48d   : > { %4080 = vst.msk [vmem:[%s6003_s26 + $0x20] sm:$0xff] %vm4075_vm0, %v3837_v32  ;;  %v3840_v58 = vadd.f32 %v5996_v43, %v3839_v11  ;;  %v3404_v57 = vpop.f32.mrb[57].mxu1  ;;  %v3841_v17 = vpop.f32.mrb[203].mxu0 }
 0x48e   : > { %v3406_v36 = vpop.f32.mrb[58].mxu1  ;;  %4050 = vmatprep.mubr.bf16.mxu0 %v3646_v34 }
 0x48f   : > { %4081 = vst.msk [vmem:[%s6003_s26 + $0x28] sm:$0xff] %vm4075_vm0, %v3840_v58  ;;  %v3481_v13 = vpack.c.bf16 %v3406_v36, %v3402_v21  ;;  %v3408_v38 = vpop.f32.mrb[59].mxu1  ;;  %4051 = vmatmul.mubr.bf16.gmra.mrb[52].mxu0 %v3645_v24 }
 0x490   : > { %v3482_v50 = vpack.c.bf16 %v3408_v38, %v3404_v57 }
 0x491   : > { %v3583_v52 = vadd.bf16 %v5861_v42, %v3481_v13 }
 0x492   : > { %v3584_v7 = vadd.bf16 %v5864_v23, %v3482_v50  ;;  %v3844_v14 = vpop.f32.mrb[204].mxu0 }
 0x493   : > { %v3845_v19 = vadd.f32 %v5996_v43, %v3844_v14  ;;  %v3846_v15 = vpop.f32.mrb[205].mxu0  ;;  %v3647_v30 = vmax.bf16 %v6258_v63, %v3583_v52 }
 0x494   : > { %v3412_v51 = vpop.f32.mrb[60].mxu1  ;;  %v3847_v37 = vpop.f32.mrb[206].mxu0  ;;  %v3648_v48 = vmax.bf16 %v6258_v63, %v3584_v7 }
 0x495   : > { %4082 = vst.msk [vmem:[%s6003_s26 + $0x30] sm:$0xff] %vm4075_vm0, %v3845_v19  ;;  %v3848_v55 = vadd.f32 %v5996_v43, %v3847_v37  ;;  %v3414_v25 = vpop.f32.mrb[61].mxu1  ;;  %v3849_v41 = vpop.f32.mrb[207].mxu0 }
 0x496   : > { %v3416_v27 = vpop.f32.mrb[62].mxu1  ;;  %4058 = vmatprep.mubr.bf16.mxu0 %v3648_v48 }
 0x497   : > { %4083 = vst.msk [vmem:[%s6003_s26 + $0x38] sm:$0xff] %vm4075_vm0, %v3848_v55  ;;  %v3483_v4 = vpack.c.bf16 %v3416_v27, %v3412_v51  ;;  %v3418_v33 = vpop.f32.mrb[63].mxu1  ;;  %4059 = vmatmul.mubr.bf16.gmra.mrb[56].mxu0 %v3647_v30 }
 0x498   : > { %v3484_v22 = vpack.c.bf16 %v3418_v33, %v3414_v25 }
 0x499   : > { %v3585_v39 = vadd.bf16 %v5861_v42, %v3483_v4 }
 0x49a   : > { %v3586_v3 = vadd.bf16 %v5864_v23, %v3484_v22  ;;  %v3852_v53 = vpop.f32.mrb[208].mxu0 }
 0x49b   : > { %v3853_v61 = vadd.f32 %v5996_v43, %v3852_v53  ;;  %v3854_v31 = vpop.f32.mrb[209].mxu0  ;;  %v3649_v40 = vmax.bf16 %v6258_v63, %v3585_v39 }
 0x49c   : > { %v3855_v44 = vpop.f32.mrb[210].mxu0  ;;  %v3650_v28 = vmax.bf16 %v6258_v63, %v3586_v3 }
 0x49d   : > { %4084 = vst.msk [vmem:[%s6003_s26 + $0x40] sm:$0xff] %vm4075_vm0, %v3853_v61  ;;  %v3856_v46 = vadd.f32 %v5996_v43, %v3855_v44  ;;  %v3857_v12 = vpop.f32.mrb[211].mxu0 }
 0x49e   : > { %4066 = vmatprep.mubr.bf16.mxu0 %v3650_v28 }
 0x49f   : > { %4085 = vst.msk [vmem:[%s6003_s26 + $0x48] sm:$0xff] %vm4075_vm0, %v3856_v46  ;;  %4067 = vmatmul.mubr.bf16.gmra.mrb[60].mxu0 %v3649_v40 }
 0x4a2   : > { %v3860_v42 = vpop.f32.mrb[212].mxu0 }
 0x4a3   : > { %v3861_v23 = vadd.f32 %v5996_v43, %v3860_v42  ;;  %v3862_v8 = vpop.f32.mrb[213].mxu0 }
 0x4a4   : > { %v3863_v62 = vpop.f32.mrb[214].mxu0 }
 0x4a5   : > { %4086 = vst.msk [vmem:[%s6003_s26 + $0x50] sm:$0xff] %vm4075_vm0, %v3861_v23  ;;  %v3864_v63 = vadd.f32 %v5996_v43, %v3863_v62  ;;  %v3865_v5 = vpop.f32.mrb[215].mxu0 }
 0x4a7   : > { %4087 = vst.msk [vmem:[%s6003_s26 + $0x58] sm:$0xff] %vm4075_vm0, %v3864_v63 }
 0x4aa   : > { %v3868_v10 = vpop.f32.mrb[216].mxu0 }
 0x4ab   : > { %v3869_v2 = vadd.f32 %v5996_v43, %v3868_v10  ;;  %v3870_v1 = vpop.f32.mrb[217].mxu0 }
 0x4ac   : > { %v3871_v16 = vpop.f32.mrb[218].mxu0 }
 0x4ad   : > { %4088 = vst.msk [vmem:[%s6003_s26 + $0x60] sm:$0xff] %vm4075_vm0, %v3869_v2  ;;  %v3872_v60 = vadd.f32 %v5996_v43, %v3871_v16  ;;  %v3873_v20 = vpop.f32.mrb[219].mxu0 }
 0x4af   : > { %4089 = vst.msk [vmem:[%s6003_s26 + $0x68] sm:$0xff] %vm4075_vm0, %v3872_v60 }
 0x4b2   : > { %v3876_v35 = vpop.f32.mrb[220].mxu0 }
 0x4b3   : > { %v3877_v54 = vadd.f32 %v5996_v43, %v3876_v35  ;;  %v3878_v26 = vpop.f32.mrb[221].mxu0 }
 0x4b4   : > { %v3879_v29 = vpop.f32.mrb[222].mxu0 }
 0x4b5   : > { %4090 = vst.msk [vmem:[%s6003_s26 + $0x70] sm:$0xff] %vm4075_vm0, %v3877_v54  ;;  %v3880_v45 = vadd.f32 %v5996_v43, %v3879_v29  ;;  %v3881_v49 = vpop.f32.mrb[223].mxu0 }
 0x4b7   : > { %4091 = vst.msk [vmem:[%s6003_s26 + $0x78] sm:$0xff] %vm4075_vm0, %v3880_v45 }
 0x4ba   : > { %v3884_v9 = vpop.f32.mrb[224].mxu0 }
 0x4bb   : > { %v3885_v47 = vadd.f32 %v5996_v43, %v3884_v9  ;;  %v3886_v59 = vpop.f32.mrb[225].mxu0 }
 0x4bc   : > { %v3887_v56 = vpop.f32.mrb[226].mxu0 }
 0x4bd   : > { %4092 = vst.msk [vmem:[%s6003_s26 + $0x80] sm:$0xff] %vm4075_vm0, %v3885_v47  ;;  %v3888_v6 = vadd.f32 %v5996_v43, %v3887_v56  ;;  %v3889_v18 = vpop.f32.mrb[227].mxu0 }
 0x4bf   : > { %4093 = vst.msk [vmem:[%s6003_s26 + $0x88] sm:$0xff] %vm4075_vm0, %v3888_v6 }
 0x4c2   : > { %v3892_v32 = vpop.f32.mrb[228].mxu0 }
 0x4c3   : > { %v3893_v0 = vadd.f32 %v5996_v43, %v3892_v32  ;;  %v3894_v21 = vpop.f32.mrb[229].mxu0 }
 0x4c4   : > { %v3895_v11 = vpop.f32.mrb[230].mxu0 }
 0x4c5   : > { %4094 = vst.msk [vmem:[%s6003_s26 + $0x90] sm:$0xff] %vm4075_vm0, %v3893_v0  ;;  %v3896_v34 = vadd.f32 %v5996_v43, %v3895_v11  ;;  %v3897_v24 = vpop.f32.mrb[231].mxu0 }
 0x4c7   : > { %4095 = vst.msk [vmem:[%s6003_s26 + $0x98] sm:$0xff] %vm4075_vm0, %v3896_v34 }
 0x4ca   : > { %v3900_v58 = vpop.f32.mrb[232].mxu0 }
 0x4cb   : > { %v3901_v57 = vadd.f32 %v5996_v43, %v3900_v58  ;;  %v3902_v17 = vpop.f32.mrb[233].mxu0 }
 0x4cc   : > { %v3903_v36 = vpop.f32.mrb[234].mxu0 }
 0x4cd   : > { %4096 = vst.msk [vmem:[%s6003_s26 + $0xa0] sm:$0xff] %vm4075_vm0, %v3901_v57  ;;  %v3904_v13 = vadd.f32 %v5996_v43, %v3903_v36  ;;  %v3905_v38 = vpop.f32.mrb[235].mxu0 }
 0x4cf   : > { %4097 = vst.msk [vmem:[%s6003_s26 + $0xa8] sm:$0xff] %vm4075_vm0, %v3904_v13 }
 0x4d2   : > { %v3908_v50 = vpop.f32.mrb[236].mxu0 }
 0x4d3   : > { %v3909_v52 = vadd.f32 %v5996_v43, %v3908_v50  ;;  %v3910_v7 = vpop.f32.mrb[237].mxu0 }
 0x4d4   : > { %v3911_v14 = vpop.f32.mrb[238].mxu0 }
 0x4d5   : > { %4098 = vst.msk [vmem:[%s6003_s26 + $0xb0] sm:$0xff] %vm4075_vm0, %v3909_v52  ;;  %v3912_v19 = vadd.f32 %v5996_v43, %v3911_v14  ;;  %v3913_v15 = vpop.f32.mrb[239].mxu0 }
 0x4d7   : > { %4099 = vst.msk [vmem:[%s6003_s26 + $0xb8] sm:$0xff] %vm4075_vm0, %v3912_v19 }
 0x4da   : > { %v3916_v51 = vpop.f32.mrb[240].mxu0 }
 0x4db   : > { %v3917_v37 = vadd.f32 %v5996_v43, %v3916_v51  ;;  %v3918_v48 = vpop.f32.mrb[241].mxu0 }
 0x4dc   : > { %v3919_v30 = vpop.f32.mrb[242].mxu0 }
 0x4dd   : > { %4100 = vst.msk [vmem:[%s6003_s26 + $0xc0] sm:$0xff] %vm4075_vm0, %v3917_v37  ;;  %v3920_v55 = vadd.f32 %v5996_v43, %v3919_v30  ;;  %v3921_v25 = vpop.f32.mrb[243].mxu0 }
 0x4df   : > { %4101 = vst.msk [vmem:[%s6003_s26 + $0xc8] sm:$0xff] %vm4075_vm0, %v3920_v55 }
 0x4e2   : > { %v3924_v41 = vpop.f32.mrb[244].mxu0 }
 0x4e3   : > { %v3925_v27 = vadd.f32 %v5996_v43, %v3924_v41  ;;  %v3926_v4 = vpop.f32.mrb[245].mxu0 }
 0x4e4   : > { %v3927_v33 = vpop.f32.mrb[246].mxu0 }
 0x4e5   : > { %4102 = vst.msk [vmem:[%s6003_s26 + $0xd0] sm:$0xff] %vm4075_vm0, %v3925_v27  ;;  %v3928_v22 = vadd.f32 %v5996_v43, %v3927_v33  ;;  %v3929_v39 = vpop.f32.mrb[247].mxu0 }
 0x4e7   : > { %4103 = vst.msk [vmem:[%s6003_s26 + $0xd8] sm:$0xff] %vm4075_vm0, %v3928_v22 }
 0x4ea   : > { %v3932_v3 = vpop.f32.mrb[248].mxu0 }
 0x4eb   : > { %v3933_v53 = vadd.f32 %v5996_v43, %v3932_v3  ;;  %v3934_v61 = vpop.f32.mrb[249].mxu0 }
 0x4ec   : > { %v3935_v31 = vpop.f32.mrb[250].mxu0 }
 0x4ed   : > { %4104 = vst.msk [vmem:[%s6003_s26 + $0xe0] sm:$0xff] %vm4075_vm0, %v3933_v53  ;;  %v3936_v44 = vadd.f32 %v5996_v43, %v3935_v31  ;;  %v3937_v28 = vpop.f32.mrb[251].mxu0 }
 0x4ef   : > { %4105 = vst.msk [vmem:[%s6003_s26 + $0xe8] sm:$0xff] %vm4075_vm0, %v3936_v44 }
 0x4f2   : > { %v3940_v40 = vpop.f32.mrb[252].mxu0 }
 0x4f3   : > { %v3941_v46 = vadd.f32 %v5996_v43, %v3940_v40  ;;  %v3942_v12 = vpop.f32.mrb[253].mxu0 }
 0x4f4   : > { %v3943_v42 = vpop.f32.mrb[254].mxu0 }
 0x4f5   : > { %4106 = vst.msk [vmem:[%s6003_s26 + $0xf0] sm:$0xff] %vm4075_vm0, %v3941_v46  ;;  %v3944_v23 = vadd.f32 %v5996_v43, %v3943_v42  ;;  %v3945_v8 = vpop.f32.mrb[255].mxu0 }
 0x4f7   : > { %4107 = vst.msk [vmem:[%s6003_s26 + $0xf8] sm:$0xff] %vm4075_vm0, %v3944_v23 }
 0x4fa   : > { %v3948_v62 = vpop.f32.mrb[0].mxu0 }
 0x4fb   : > { %v3949_v63 = vadd.f32 %v5996_v43, %v3948_v62  ;;  %v3950_v5 = vpop.f32.mrb[1].mxu0 }
 0x4fc   : > { %v3951_v10 = vpop.f32.mrb[2].mxu0 }
 0x4fd   : > { %4108 = vst.msk [vmem:[%s6003_s26 + $0x100] sm:$0xff] %vm4075_vm0, %v3949_v63  ;;  %v3952_v2 = vadd.f32 %v5996_v43, %v3951_v10  ;;  %v3953_v1 = vpop.f32.mrb[3].mxu0 }
 0x4ff   : > { %4109 = vst.msk [vmem:[%s6003_s26 + $0x108] sm:$0xff] %vm4075_vm0, %v3952_v2 }
 0x502   : > { %v3956_v16 = vpop.f32.mrb[4].mxu0 }
 0x503   : > { %v3957_v60 = vadd.f32 %v5996_v43, %v3956_v16  ;;  %v3958_v20 = vpop.f32.mrb[5].mxu0 }
 0x504   : > { %v3959_v35 = vpop.f32.mrb[6].mxu0 }
 0x505   : > { %4110 = vst.msk [vmem:[%s6003_s26 + $0x110] sm:$0xff] %vm4075_vm0, %v3957_v60  ;;  %v3960_v54 = vadd.f32 %v5996_v43, %v3959_v35  ;;  %v3961_v26 = vpop.f32.mrb[7].mxu0 }
 0x507   : > { %4111 = vst.msk [vmem:[%s6003_s26 + $0x118] sm:$0xff] %vm4075_vm0, %v3960_v54 }
 0x50a   : > { %v3964_v29 = vpop.f32.mrb[8].mxu0 }
 0x50b   : > { %v3965_v45 = vadd.f32 %v5996_v43, %v3964_v29  ;;  %v3966_v49 = vpop.f32.mrb[9].mxu0 }
 0x50c   : > { %v3967_v9 = vpop.f32.mrb[10].mxu0 }
 0x50d   : > { %4112 = vst.msk [vmem:[%s6003_s26 + $0x120] sm:$0xff] %vm4075_vm0, %v3965_v45  ;;  %v3968_v47 = vadd.f32 %v5996_v43, %v3967_v9  ;;  %v3969_v59 = vpop.f32.mrb[11].mxu0 }
 0x50f   : > { %4113 = vst.msk [vmem:[%s6003_s26 + $0x128] sm:$0xff] %vm4075_vm0, %v3968_v47 }
 0x512   : > { %v3972_v56 = vpop.f32.mrb[12].mxu0 }
 0x513   : > { %v3973_v6 = vadd.f32 %v5996_v43, %v3972_v56  ;;  %v3974_v18 = vpop.f32.mrb[13].mxu0 }
 0x514   : > { %v3975_v32 = vpop.f32.mrb[14].mxu0 }
 0x515   : > { %4114 = vst.msk [vmem:[%s6003_s26 + $0x130] sm:$0xff] %vm4075_vm0, %v3973_v6  ;;  %v3976_v0 = vadd.f32 %v5996_v43, %v3975_v32  ;;  %v3977_v21 = vpop.f32.mrb[15].mxu0 }
 0x517   : > { %4115 = vst.msk [vmem:[%s6003_s26 + $0x138] sm:$0xff] %vm4075_vm0, %v3976_v0 }
 0x51a   : > { %v3980_v11 = vpop.f32.mrb[16].mxu0 }
 0x51b   : > { %v3981_v34 = vadd.f32 %v5996_v43, %v3980_v11  ;;  %v3982_v24 = vpop.f32.mrb[17].mxu0 }
 0x51c   : > { %v3983_v58 = vpop.f32.mrb[18].mxu0 }
 0x51d   : > { %4116 = vst.msk [vmem:[%s6003_s26 + $0x140] sm:$0xff] %vm4075_vm0, %v3981_v34  ;;  %v3984_v57 = vadd.f32 %v5996_v43, %v3983_v58  ;;  %v3985_v17 = vpop.f32.mrb[19].mxu0 }
 0x51f   : > { %4117 = vst.msk [vmem:[%s6003_s26 + $0x148] sm:$0xff] %vm4075_vm0, %v3984_v57 }
 0x522   : > { %v3988_v36 = vpop.f32.mrb[20].mxu0 }
 0x523   : > { %v3989_v13 = vadd.f32 %v5996_v43, %v3988_v36  ;;  %v3990_v38 = vpop.f32.mrb[21].mxu0 }
 0x524   : > { %v3991_v50 = vpop.f32.mrb[22].mxu0 }
 0x525   : > { %4118 = vst.msk [vmem:[%s6003_s26 + $0x150] sm:$0xff] %vm4075_vm0, %v3989_v13  ;;  %v3992_v52 = vadd.f32 %v5996_v43, %v3991_v50  ;;  %v3993_v7 = vpop.f32.mrb[23].mxu0 }
 0x527   : > { %4119 = vst.msk [vmem:[%s6003_s26 + $0x158] sm:$0xff] %vm4075_vm0, %v3992_v52 }
 0x52a   : > { %v3996_v14 = vpop.f32.mrb[24].mxu0 }
 0x52b   : > { %v3997_v19 = vadd.f32 %v5996_v43, %v3996_v14  ;;  %v3998_v15 = vpop.f32.mrb[25].mxu0 }
 0x52c   : > { %v3999_v51 = vpop.f32.mrb[26].mxu0 }
 0x52d   : > { %4120 = vst.msk [vmem:[%s6003_s26 + $0x160] sm:$0xff] %vm4075_vm0, %v3997_v19  ;;  %v4000_v37 = vadd.f32 %v5996_v43, %v3999_v51  ;;  %v4001_v48 = vpop.f32.mrb[27].mxu0 }
 0x52f   : > { %4121 = vst.msk [vmem:[%s6003_s26 + $0x168] sm:$0xff] %vm4075_vm0, %v4000_v37 }
 0x532   : > { %v4004_v30 = vpop.f32.mrb[28].mxu0 }
 0x533   : > { %v4005_v55 = vadd.f32 %v5996_v43, %v4004_v30  ;;  %v4006_v25 = vpop.f32.mrb[29].mxu0 }
 0x534   : > { %v4007_v41 = vpop.f32.mrb[30].mxu0 }
 0x535   : > { %4122 = vst.msk [vmem:[%s6003_s26 + $0x170] sm:$0xff] %vm4075_vm0, %v4005_v55  ;;  %v4008_v27 = vadd.f32 %v5996_v43, %v4007_v41  ;;  %v4009_v4 = vpop.f32.mrb[31].mxu0 }
 0x537   : > { %4123 = vst.msk [vmem:[%s6003_s26 + $0x178] sm:$0xff] %vm4075_vm0, %v4008_v27 }
 0x53a   : > { %v4012_v33 = vpop.f32.mrb[32].mxu0 }
 0x53b   : > { %v4013_v22 = vadd.f32 %v5996_v43, %v4012_v33  ;;  %v4014_v39 = vpop.f32.mrb[33].mxu0 }
 0x53c   : > { %v4015_v3 = vpop.f32.mrb[34].mxu0 }
 0x53d   : > { %4124 = vst.msk [vmem:[%s6003_s26 + $0x180] sm:$0xff] %vm4075_vm0, %v4013_v22  ;;  %v4016_v53 = vadd.f32 %v5996_v43, %v4015_v3  ;;  %v4017_v61 = vpop.f32.mrb[35].mxu0 }
 0x53f   : > { %4125 = vst.msk [vmem:[%s6003_s26 + $0x188] sm:$0xff] %vm4075_vm0, %v4016_v53 }
 0x542   : > { %v4020_v31 = vpop.f32.mrb[36].mxu0 }
 0x543   : > { %v4021_v44 = vadd.f32 %v5996_v43, %v4020_v31  ;;  %v4022_v28 = vpop.f32.mrb[37].mxu0 }
 0x544   : > { %v4023_v40 = vpop.f32.mrb[38].mxu0 }
 0x545   : > { %4126 = vst.msk [vmem:[%s6003_s26 + $0x190] sm:$0xff] %vm4075_vm0, %v4021_v44  ;;  %v4024_v46 = vadd.f32 %v5996_v43, %v4023_v40  ;;  %v4025_v12 = vpop.f32.mrb[39].mxu0 }
 0x547   : > { %4127 = vst.msk [vmem:[%s6003_s26 + $0x198] sm:$0xff] %vm4075_vm0, %v4024_v46 }
 0x54a   : > { %v4028_v42 = vpop.f32.mrb[40].mxu0 }
 0x54b   : > { %v4029_v23 = vadd.f32 %v5996_v43, %v4028_v42  ;;  %v4030_v8 = vpop.f32.mrb[41].mxu0 }
 0x54c   : > { %v4031_v62 = vpop.f32.mrb[42].mxu0 }
 0x54d   : > { %4128 = vst.msk [vmem:[%s6003_s26 + $0x1a0] sm:$0xff] %vm4075_vm0, %v4029_v23  ;;  %v4032_v63 = vadd.f32 %v5996_v43, %v4031_v62  ;;  %v4033_v5 = vpop.f32.mrb[43].mxu0 }
 0x54f   : > { %4129 = vst.msk [vmem:[%s6003_s26 + $0x1a8] sm:$0xff] %vm4075_vm0, %v4032_v63 }
 0x552   : > { %v4036_v10 = vpop.f32.mrb[44].mxu0 }
 0x553   : > { %v4037_v2 = vadd.f32 %v5996_v43, %v4036_v10  ;;  %v4038_v1 = vpop.f32.mrb[45].mxu0 }
 0x554   : > { %v4039_v16 = vpop.f32.mrb[46].mxu0 }
 0x555   : > { %4130 = vst.msk [vmem:[%s6003_s26 + $0x1b0] sm:$0xff] %vm4075_vm0, %v4037_v2  ;;  %v4040_v60 = vadd.f32 %v5996_v43, %v4039_v16  ;;  %v4041_v20 = vpop.f32.mrb[47].mxu0 }
 0x557   : > { %4131 = vst.msk [vmem:[%s6003_s26 + $0x1b8] sm:$0xff] %vm4075_vm0, %v4040_v60 }
 0x55a   : > { %v4044_v35 = vpop.f32.mrb[48].mxu0 }
 0x55b   : > { %v4045_v54 = vadd.f32 %v5996_v43, %v4044_v35  ;;  %v4046_v26 = vpop.f32.mrb[49].mxu0 }
 0x55c   : > { %v4047_v29 = vpop.f32.mrb[50].mxu0 }
 0x55d   : > { %4132 = vst.msk [vmem:[%s6003_s26 + $0x1c0] sm:$0xff] %vm4075_vm0, %v4045_v54  ;;  %v4048_v45 = vadd.f32 %v5996_v43, %v4047_v29  ;;  %v4049_v49 = vpop.f32.mrb[51].mxu0 }
 0x55f   : > { %4133 = vst.msk [vmem:[%s6003_s26 + $0x1c8] sm:$0xff] %vm4075_vm0, %v4048_v45 }
 0x562   : > { %v4052_v9 = vpop.f32.mrb[52].mxu0 }
 0x563   : > { %v4053_v47 = vadd.f32 %v5996_v43, %v4052_v9  ;;  %v4054_v59 = vpop.f32.mrb[53].mxu0 }
 0x564   : > { %v4055_v56 = vpop.f32.mrb[54].mxu0 }
 0x565   : > { %4134 = vst.msk [vmem:[%s6003_s26 + $0x1d0] sm:$0xff] %vm4075_vm0, %v4053_v47  ;;  %v4056_v6 = vadd.f32 %v5996_v43, %v4055_v56  ;;  %v4057_v18 = vpop.f32.mrb[55].mxu0 }
 0x567   : > { %4135 = vst.msk [vmem:[%s6003_s26 + $0x1d8] sm:$0xff] %vm4075_vm0, %v4056_v6 }
 0x56a   : > { %v4060_v32 = vpop.f32.mrb[56].mxu0 }
 0x56b   : > { %v4061_v0 = vadd.f32 %v5996_v43, %v4060_v32  ;;  %v4062_v21 = vpop.f32.mrb[57].mxu0 }
 0x56c   : > { %v4063_v11 = vpop.f32.mrb[58].mxu0 }
 0x56d   : > { %4136 = vst.msk [vmem:[%s6003_s26 + $0x1e0] sm:$0xff] %vm4075_vm0, %v4061_v0  ;;  %v4064_v34 = vadd.f32 %v5996_v43, %v4063_v11  ;;  %v4065_v24 = vpop.f32.mrb[59].mxu0 }
 0x56f   : > { %4137 = vst.msk [vmem:[%s6003_s26 + $0x1e8] sm:$0xff] %vm4075_vm0, %v4064_v34 }
 0x572   : > { %v4068_v58 = vpop.f32.mrb[60].mxu0 }
 0x573   : > { %v4069_v57 = vadd.f32 %v5996_v43, %v4068_v58  ;;  %v4070_v17 = vpop.f32.mrb[61].mxu0 }
 0x574   : > { %v4071_v36 = vpop.f32.mrb[62].mxu0 }
 0x575   : > { %4138 = vst.msk [vmem:[%s6003_s26 + $0x1f0] sm:$0xff] %vm4075_vm0, %v4069_v57  ;;  %v4072_v13 = vadd.f32 %v5996_v43, %v4071_v36  ;;  %v4073_v38 = vpop.f32.mrb[63].mxu0 }
 0x577   : > { %4139 = vst.msk [vmem:[%s6003_s26 + $0x1f8] sm:$0xff] %vm4075_vm0, %v4072_v13 }
 0x578 PF: > { %s21_s17 = sadd.s32 1, %s4620_s17  }
 0x579   : > { %p18_p4 = scmp.ge.s32.totalorder %s21_s17, 4  }
 0x57b   :  { %20 = sbr.rel (!%p18_p4) target bundleno = 1 (0x1), region = 94 }

// kernel: epi_feature_rebuild_forward.3
= control target key start
LH: loop header
LB: loop body
LE: loop exit
PB: predicated region body
PF: predicated region fallthrough
CT: control target
= control target key end

     0   :  { %s7373_s17 = smov 0   ;;  %s11645_s0 = inlined_call_operand.vmem [shape: bf16[2048,128], index: 0, kind: input, shape index: {}]   ;;  %s11646_s1 = inlined_call_operand.vmem [shape: bf16[128,256], index: 1, kind: input, shape index: {}]   ;;  %s11647_s2 = inlined_call_operand.vmem [shape: bf16[1,256], index: 2, kind: input, shape index: {}]   ;;  %s11648_s3 = inlined_call_operand.vmem [shape: bf16[256,256], index: 3, kind: input, shape index: {}]   ;;  %s11649_s4 = inlined_call_operand.vmem [shape: bf16[1,256], index: 4, kind: input, shape index: {}]   ;;  %s11650_s5 = inlined_call_operand.vmem [shape: bf16[256,256], index: 5, kind: input, shape index: {}]   ;;  %s11651_s6 = inlined_call_operand.vmem [shape: bf16[1,256], index: 6, kind: input, shape index: {}]   ;;  %s11652_s7 = inlined_call_operand.vmem [shape: bf16[256,256], index: 7, kind: input, shape index: {}]   ;;  %s11653_s8 = inlined_call_operand.vmem [shape: bf16[1,256], index: 8, kind: input, shape index: {}]   ;;  %s11654_s9 = inlined_call_operand.vmem [shape: bf16[256,4], index: 9, kind: input, shape index: {}]   ;;  %s11655_s10 = inlined_call_operand.vmem [shape: f32[1,4], index: 10, kind: input, shape index: {}]   ;;  %s11656_s11 = inlined_call_operand.vmem [shape: f32[2048,4], index: 11, kind: output, shape index: {}]  }
   0x1 LB: > { %s6820_s18 = sadd.s32 4294967295, %s7309_s17   ;;  %p6824_p0 = scmp.ge.s32.totalorder %s7309_s17, 1  ;;  %s7309_s17 = sphi %s7373_s17, %s21_s17  }
   0x2   : > { %p338_p1 = scmp.lt.s32.totalorder %s7309_s17, 3 }
   0x4   : > { %p339_p2 = pnand %p6824_p0, %p338_p1 }
   0x6   : > { %342 = sbr.rel (%p339_p2) target bundleno = 1758 (0x6de), region = 64 }
   0xd   : > { %v7054_v0 = vld [vmem:[%s11646_s1 + $0x4] ss:$8 sps:$4 sm:$0xff]   ;;  %s6825_s21 = sshll.u32 %s6820_s18, 7  ;;  %v7056_v1 = vld [vmem:[%s11646_s1] ss:$8 sps:$4 sm:$0xff]   ;;  %v11660_v2 = vmov 0  }
   0xe   : > { %1351 = vmatprep.mubr.bf16.mxu1 %v11660_v2  ;;  %p379_p3 = scmp.lt.s32.totalorder %s6825_s21, 255  ;;  %1031 = vmatprep.mubr.bf16.mxu0 %v11660_v2  ;;  %v7057_v3 = vld [vmem:[%s11646_s1 + $0x14] ss:$8 sps:$4 sm:$0xff]   ;;  %v7059_v4 = vld [vmem:[%s11646_s1 + $0x10] ss:$8 sps:$4 sm:$0xff]   ;;  %vm6635_vm0 = vcmask 31744  }
   0xf   : > { %7028 = vmatprep.subr.bf16.mxu1 %v7054_v0  ;;  %999 = vmatprep.subr.bf16.mxu0 %v7054_v0  ;;  %v7060_v5 = vld [vmem:[%s11646_s1 + $0x24] ss:$8 sps:$4 sm:$0xff]   ;;  %v7062_v6 = vld [vmem:[%s11646_s1 + $0x20] ss:$8 sps:$4 sm:$0xff]   ;;  %v7063_v7 = vld [vmem:[%s11646_s1 + $0x34] ss:$8 sps:$4 sm:$0xff]  }
  0x10   : > { %7036 = vmatpush1.bf16.msra.mxu1 %v7056_v1  ;;  %s12135_s21 = smov (!%p379_p3, %s6825_s21), 255  ;;  %1000 = vmatpush1.bf16.msra.mxu0 %v7056_v1  ;;  %v7065_v8 = vld [vmem:[%s11646_s1 + $0x30] ss:$8 sps:$4 sm:$0xff]   ;;  %v7066_v9 = vld [vmem:[%s11646_s1 + $0x44] ss:$8 sps:$4 sm:$0xff]  }
  0x11   : > { %7029 = vmatprep.subr.bf16.mxu1 %v7057_v3  ;;  %1001 = vmatprep.subr.bf16.mxu0 %v7057_v3  ;;  %s6826_s30 = sshll.u32 %s12135_s21, 2  ;;  %v7068_v10 = vld [vmem:[%s11646_s1 + $0x40] ss:$8 sps:$4 sm:$0xff]   ;;  %v7069_v11 = vld [vmem:[%s11646_s1 + $0x54] ss:$8 sps:$4 sm:$0xff]   ;;  %s6828_s23 = sshll.u32 %s12135_s21, 3 }
  0x12   : > { %s7410_s19 = scalar_lea.vmem %s11645_s0, %s6826_s30  ;;  %v7071_v12 = vld [vmem:[%s11646_s1 + $0x50] ss:$8 sps:$4 sm:$0xff]   ;;  %v7072_v13 = vld [vmem:[%s11646_s1 + $0x64] ss:$8 sps:$4 sm:$0xff]   ;;  %v7074_v14 = vld [vmem:[%s11646_s1 + $0x60] ss:$8 sps:$4 sm:$0xff]   ;;  %s11020_s28 = scalar_lea.vmem %s11656_s11, %s6828_s23 }
  0x13   : > { %v7075_v15 = vld [vmem:[%s11646_s1 + $0x74] ss:$8 sps:$4 sm:$0xff]   ;;  %v7077_v16 = vld [vmem:[%s11646_s1 + $0x70] ss:$8 sps:$4 sm:$0xff]   ;;  %v7081_v17 = vld [vmem:[%s11648_s3 + $0x4] ss:$8 sps:$4 sm:$0xff]  }
  0x14   : > { %7037 = vmatpush1.bf16.msra.mxu1 %v7059_v4  ;;  %1002 = vmatpush1.bf16.msra.mxu0 %v7059_v4  ;;  %v7078_v18 = vld [vmem:[%s7410_s19 + $0x100] sm:$0xff]   ;;  %v7086_v21 = vld [vmem:[%s11648_s3 + $0x14] ss:$8 sps:$4 sm:$0xff]   ;;  %v7084_v22 = vld [vmem:[%s11648_s3 + $0x10] ss:$8 sps:$4 sm:$0xff]  }
  0x15   : > { %7030 = vmatprep.subr.bf16.mxu1 %v7060_v5  ;;  %1003 = vmatprep.subr.bf16.mxu0 %v7060_v5  ;;  %v7088_v19 = vld [vmem:[%s7410_s19] sm:$0xff]   ;;  %v7082_v24 = vld [vmem:[%s7410_s19 + $0x108] sm:$0xff]   ;;  %v7099_v27 = vld [vmem:[%s11648_s3 + $0x34] ss:$8 sps:$4 sm:$0xff]  }
  0x16   : > { %v7079_v20 = vld [vmem:[%s11648_s3] ss:$8 sps:$4 sm:$0xff]   ;;  %v7092_v23 = vld [vmem:[%s11648_s3 + $0x24] ss:$8 sps:$4 sm:$0xff]   ;;  %v7097_v28 = vld [vmem:[%s11648_s3 + $0x30] ss:$8 sps:$4 sm:$0xff]  }
  0x17   : > { %v7093_v25 = vld [vmem:[%s7410_s19 + $0x8] sm:$0xff]   ;;  %v7083_v30 = vld [vmem:[%s7410_s19 + $0x110] sm:$0xff]   ;;  %v7087_v34 = vld [vmem:[%s7410_s19 + $0x118] sm:$0xff]  }
  0x18   : > { %7038 = vmatpush1.bf16.msra.mxu1 %v7062_v6  ;;  %1004 = vmatpush1.bf16.msra.mxu0 %v7062_v6  ;;  %v7090_v26 = vld [vmem:[%s11648_s3 + $0x20] ss:$8 sps:$4 sm:$0xff]   ;;  %v7106_v29 = vld [vmem:[%s11648_s3 + $0x44] ss:$8 sps:$4 sm:$0xff]   ;;  %v7095_v31 = vld [vmem:[%s7410_s19 + $0x10] sm:$0xff]  }
  0x19   : > { %7031 = vmatprep.subr.bf16.mxu1 %v7063_v7  ;;  %1005 = vmatprep.subr.bf16.mxu0 %v7063_v7  ;;  %v7104_v32 = vld [vmem:[%s11648_s3 + $0x40] ss:$8 sps:$4 sm:$0xff]   ;;  %v7113_v33 = vld [vmem:[%s11648_s3 + $0x54] ss:$8 sps:$4 sm:$0xff]   ;;  %v7111_v35 = vld [vmem:[%s11648_s3 + $0x50] ss:$8 sps:$4 sm:$0xff]  }
  0x1a   : > { %v7120_v36 = vld [vmem:[%s11648_s3 + $0x64] ss:$8 sps:$4 sm:$0xff]   ;;  %v7100_v37 = vld [vmem:[%s7410_s19 + $0x18] sm:$0xff]   ;;  %v7118_v38 = vld [vmem:[%s11648_s3 + $0x60] ss:$8 sps:$4 sm:$0xff]  }
  0x1b   : > { %v7127_v39 = vld [vmem:[%s11648_s3 + $0x74] ss:$8 sps:$4 sm:$0xff]   ;;  %v7089_v40 = vld [vmem:[%s7410_s19 + $0x120] sm:$0xff]   ;;  %v7125_v42 = vld [vmem:[%s11648_s3 + $0x70] ss:$8 sps:$4 sm:$0xff]  }
  0x1c   : > { %7039 = vmatpush1.bf16.msra.mxu1 %v7065_v8  ;;  %1006 = vmatpush1.bf16.msra.mxu0 %v7065_v8  ;;  %v7102_v41 = vld [vmem:[%s7410_s19 + $0x20] sm:$0xff]   ;;  %v7141_v45 = vld [vmem:[%s11648_s3 + $0x94] ss:$8 sps:$4 sm:$0xff]   ;;  %v7139_v46 = vld [vmem:[%s11648_s3 + $0x90] ss:$8 sps:$4 sm:$0xff]  }
  0x1d   : > { %7032 = vmatprep.subr.bf16.mxu1 %v7066_v9  ;;  %1007 = vmatprep.subr.bf16.mxu0 %v7066_v9  ;;  %v7134_v43 = vld [vmem:[%s11648_s3 + $0x84] ss:$8 sps:$4 sm:$0xff]   ;;  %v7132_v44 = vld [vmem:[%s11648_s3 + $0x80] ss:$8 sps:$4 sm:$0xff]   ;;  %v7096_v51 = vld [vmem:[%s7410_s19 + $0x130] sm:$0xff]  }
  0x1e   : > { %v7148_v47 = vld [vmem:[%s11648_s3 + $0xa4] ss:$8 sps:$4 sm:$0xff]   ;;  %v7146_v50 = vld [vmem:[%s11648_s3 + $0xa0] ss:$8 sps:$4 sm:$0xff]   ;;  %v7109_v52 = vld [vmem:[%s7410_s19 + $0x30] sm:$0xff]  }
  0x1f   : > { %v7094_v48 = vld [vmem:[%s7410_s19 + $0x128] sm:$0xff]   ;;  %v7153_v53 = vld [vmem:[%s11648_s3 + $0xb0] ss:$8 sps:$4 sm:$0xff]   ;;  %v7155_v54 = vld [vmem:[%s11648_s3 + $0xb4] ss:$8 sps:$4 sm:$0xff]  }
  0x20   : > { %7040 = vmatpush1.bf16.msra.mxu1 %v7068_v10  ;;  %1008 = vmatpush1.bf16.msra.mxu0 %v7068_v10  ;;  %v7107_v49 = vld [vmem:[%s7410_s19 + $0x28] sm:$0xff]   ;;  %v7101_v55 = vld [vmem:[%s7410_s19 + $0x138] sm:$0xff]   ;;  %v7103_v57 = vld [vmem:[%s7410_s19 + $0x140] sm:$0xff]  }
  0x21   : > { %7033 = vmatprep.subr.bf16.mxu1 %v7069_v11  ;;  %1009 = vmatprep.subr.bf16.mxu0 %v7069_v11  ;;  %v7114_v56 = vld [vmem:[%s7410_s19 + $0x38] sm:$0xff]   ;;  %v7116_v58 = vld [vmem:[%s7410_s19 + $0x40] sm:$0xff]   ;;  %v7108_v61 = vld [vmem:[%s7410_s19 + $0x148] sm:$0xff]  }
  0x22   : > { %v7160_v59 = vld [vmem:[%s11648_s3 + $0xc0] ss:$8 sps:$4 sm:$0xff]   ;;  %v7162_v60 = vld [vmem:[%s11648_s3 + $0xc4] ss:$8 sps:$4 sm:$0xff]   ;;  %v7110_v63 = vld [vmem:[%s7410_s19 + $0x150] sm:$0xff]  }
  0x23   : > { %v7121_v62 = vld [vmem:[%s7410_s19 + $0x48] sm:$0xff]   ;;  %v7123_v0 = vld [vmem:[%s7410_s19 + $0x50] sm:$0xff]   ;;  %v7115_v4 = vld [vmem:[%s7410_s19 + $0x158] sm:$0xff]  }
  0x24   : > { %7041 = vmatpush1.bf16.msra.mxu1 %v7071_v12  ;;  %1010 = vmatpush1.bf16.msra.mxu0 %v7071_v12  ;;  %v7167_v1 = vld [vmem:[%s11648_s3 + $0xd0] ss:$8 sps:$4 sm:$0xff]   ;;  %v7169_v3 = vld [vmem:[%s11648_s3 + $0xd4] ss:$8 sps:$4 sm:$0xff]   ;;  %v7117_v6 = vld [vmem:[%s7410_s19 + $0x160] sm:$0xff]  }
  0x25   : > { %7034 = vmatprep.subr.bf16.mxu1 %v7072_v13  ;;  %1011 = vmatprep.subr.bf16.mxu0 %v7072_v13  ;;  %v7128_v5 = vld [vmem:[%s7410_s19 + $0x58] sm:$0xff]   ;;  %v7130_v7 = vld [vmem:[%s7410_s19 + $0x60] sm:$0xff]   ;;  %v7122_v12 = vld [vmem:[%s7410_s19 + $0x168] sm:$0xff]  }
  0x26   : > { %v7172_v8 = vld [vmem:[%s11650_s5] ss:$8 sps:$4 sm:$0xff]   ;;  %v7174_v9 = vld [vmem:[%s11650_s5 + $0x4] ss:$8 sps:$4 sm:$0xff]  }
  0x27   : > { %v7177_v10 = vld [vmem:[%s11648_s3 + $0xe0] ss:$8 sps:$4 sm:$0xff]   ;;  %v7179_v11 = vld [vmem:[%s11648_s3 + $0xe4] ss:$8 sps:$4 sm:$0xff]  }
  0x28   : > { %7042 = vmatpush1.bf16.msra.mxu1 %v7074_v14  ;;  %1012 = vmatpush1.bf16.msra.mxu0 %v7074_v14  ;;  %v7135_v13 = vld [vmem:[%s7410_s19 + $0x68] sm:$0xff]   ;;  %v7124_v14 = vld [vmem:[%s7410_s19 + $0x170] sm:$0xff]  }
  0x29   : > { %7035 = vmatprep.subr.bf16.mxu1 %v7075_v15  ;;  %1013 = vmatprep.subr.bf16.mxu0 %v7075_v15  ;;  %v7137_v15 = vld [vmem:[%s7410_s19 + $0x70] sm:$0xff]  }
  0x2c   : > { %7043 = vmatpush1.bf16.msra.mxu1 %v7077_v16  ;;  %1014 = vmatpush1.bf16.msra.mxu0 %v7077_v16  ;;  %v7182_v16 = vld [vmem:[%s11650_s5 + $0x10] ss:$8 sps:$4 sm:$0xff]  }
  0x2d   : > { %2286 = vmatprep.subr.bf16.mxu1 %v7081_v17  ;;  %3573 = vmatprep.subr.bf16.mxu0 %v7174_v9  ;;  %v7184_v17 = vld [vmem:[%s11650_s5 + $0x14] ss:$8 sps:$4 sm:$0xff]  }
  0x2f   : > { %1352 = vmatmul.mubr.bf16.vlgmr.msra.gmra.mrb[0].mxu1 %v7078_v18  ;;  %1032 = vmatmul.mubr.bf16.vlgmr.msra.gmra.mrb[0].mxu0 %v7088_v19  ;;  %v7187_v18 = vld [vmem:[%s11648_s3 + $0xf0] ss:$8 sps:$4 sm:$0xff]   ;;  %v7189_v19 = vld [vmem:[%s11648_s3 + $0xf4] ss:$8 sps:$4 sm:$0xff]  }
  0x30   : > { %2287 = vmatpush1.bf16.msra.mxu1 %v7079_v20  ;;  %1361 = vmatprep.mubr.bf16.mxu1 %v11660_v2  ;;  %v7129_v20 = vld [vmem:[%s7410_s19 + $0x178] sm:$0xff]  }
  0x31   : > { %2288 = vmatprep.subr.bf16.mxu1 %v7086_v21  ;;  %1041 = vmatprep.mubr.bf16.mxu0 %v11660_v2  ;;  %v7142_v21 = vld [vmem:[%s7410_s19 + $0x78] sm:$0xff]  }
  0x32   : > { %3574 = vmatpush1.bf16.msra.mxu0 %v7172_v8  ;;  %v7312_v8 = vmov 1966171168  }
  0x33   : > { %3575 = vmatprep.subr.bf16.mxu0 %v7184_v17  ;;  %v1811_v9 = vunpack.c.l.s4 %v7312_v8 }
  0x34   : > { %2289 = vmatpush1.bf16.msra.mxu1 %v7084_v22  ;;  %v7131_v22 = vld [vmem:[%s7410_s19 + $0x180] sm:$0xff]  }
  0x35   : > { %2290 = vmatprep.subr.bf16.mxu1 %v7092_v23  ;;  %v7144_v23 = vld [vmem:[%s7410_s19 + $0x80] sm:$0xff]  }
  0x36   : > { %3576 = vmatpush1.bf16.msra.mxu0 %v7182_v16  ;;  %v7195_v16 = vld [vmem:[%s7410_s19 + $0xe0] sm:$0xff]  }
  0x37   : > { %1362 = vmatmul.mubr.bf16.gmra.mrb[4].mxu1 %v7082_v24  ;;  %1042 = vmatmul.mubr.bf16.gmra.mrb[4].mxu0 %v7093_v25  ;;  %v7192_v24 = vld [vmem:[%s11650_s5 + $0x20] ss:$8 sps:$4 sm:$0xff]   ;;  %v7194_v25 = vld [vmem:[%s11650_s5 + $0x24] ss:$8 sps:$4 sm:$0xff]  }
  0x38   : > { %1371 = vmatprep.mubr.bf16.mxu1 %v11660_v2  ;;  %2291 = vmatpush1.bf16.msra.mxu1 %v7090_v26  ;;  %v7198_v26 = vld [vmem:[%s11652_s7 + $0x4] ss:$8 sps:$4 sm:$0xff]  }
  0x39   : > { %1051 = vmatprep.mubr.bf16.mxu0 %v11660_v2  ;;  %2292 = vmatprep.subr.bf16.mxu1 %v7099_v27  ;;  %v7136_v27 = vld [vmem:[%s7410_s19 + $0x188] sm:$0xff]  }
  0x3a   : > { %3577 = vmatprep.subr.bf16.mxu0 %v7194_v25  ;;  %v7210_v25 = vld [vmem:[%s11652_s7 + $0x14] ss:$8 sps:$4 sm:$0xff]  }
  0x3b   : > { %3578 = vmatpush1.bf16.msra.mxu0 %v7192_v24 }
  0x3c   : > { %2293 = vmatpush1.bf16.msra.mxu1 %v7097_v28  ;;  %v7149_v28 = vld [vmem:[%s7410_s19 + $0x88] sm:$0xff]  }
  0x3d   : > { %2294 = vmatprep.subr.bf16.mxu1 %v7106_v29  ;;  %v7138_v29 = vld [vmem:[%s7410_s19 + $0x190] sm:$0xff]  }
  0x3f   : > { %1372 = vmatmul.mubr.bf16.gmra.mrb[8].mxu1 %v7083_v30  ;;  %1052 = vmatmul.mubr.bf16.gmra.mrb[8].mxu0 %v7095_v31  ;;  %v7151_v30 = vld [vmem:[%s7410_s19 + $0x90] sm:$0xff]  }
  0x40   : > { %1381 = vmatprep.mubr.bf16.mxu1 %v11660_v2  ;;  %1061 = vmatprep.mubr.bf16.mxu0 %v11660_v2  ;;  %v7200_v31 = vld [vmem:[%s11650_s5 + $0x30] ss:$8 sps:$4 sm:$0xff]  }
  0x41   : > { %2295 = vmatpush1.bf16.msra.mxu1 %v7104_v32  ;;  %v7202_v32 = vld [vmem:[%s11650_s5 + $0x34] ss:$8 sps:$4 sm:$0xff]  }
  0x42   : > { %2296 = vmatprep.subr.bf16.mxu1 %v7113_v33  ;;  %v7143_v33 = vld [vmem:[%s7410_s19 + $0x198] sm:$0xff]   ;;  %3579 = vmatprep.subr.bf16.mxu0 %v7202_v32 }
  0x43   : > { %3580 = vmatpush1.bf16.msra.mxu0 %v7200_v31 }
  0x45   : > { %2297 = vmatpush1.bf16.msra.mxu1 %v7111_v35  ;;  %v7145_v35 = vld [vmem:[%s7410_s19 + $0x1a0] sm:$0xff]  }
  0x46   : > { %2298 = vmatprep.subr.bf16.mxu1 %v7120_v36  ;;  %v7158_v36 = vld [vmem:[%s7410_s19 + $0xa0] sm:$0xff]  }
  0x47   : > { %1382 = vmatmul.mubr.bf16.gmra.mrb[12].mxu1 %v7087_v34  ;;  %1062 = vmatmul.mubr.bf16.gmra.mrb[12].mxu0 %v7100_v37  ;;  %v7156_v34 = vld [vmem:[%s7410_s19 + $0x98] sm:$0xff]   ;;  %v7205_v37 = vld [vmem:[%s11650_s5 + $0x40] ss:$8 sps:$4 sm:$0xff]  }
  0x48   : > { %1391 = vmatprep.mubr.bf16.mxu1 %v11660_v2  ;;  %1071 = vmatprep.mubr.bf16.mxu0 %v11660_v2 }
  0x49   : > { %2299 = vmatpush1.bf16.msra.mxu1 %v7118_v38  ;;  %v7207_v38 = vld [vmem:[%s11650_s5 + $0x44] ss:$8 sps:$4 sm:$0xff]  }
  0x4a   : > { %2300 = vmatprep.subr.bf16.mxu1 %v7127_v39  ;;  %v7150_v39 = vld [vmem:[%s7410_s19 + $0x1a8] sm:$0xff]   ;;  %3581 = vmatprep.subr.bf16.mxu0 %v7207_v38 }
  0x4b   : > { %3582 = vmatpush1.bf16.msra.mxu0 %v7205_v37  ;;  %v7199_v37 = vld [vmem:[%s7410_s19 + $0xe8] sm:$0xff]  }
  0x4d   : > { %2301 = vmatpush1.bf16.msra.mxu1 %v7125_v42  ;;  %v7165_v42 = vld [vmem:[%s7410_s19 + $0xb0] sm:$0xff]  }
  0x4e   : > { %2302 = vmatprep.subr.bf16.mxu1 %v7134_v43  ;;  %v7211_v43 = vld [vmem:[%s11650_s5 + $0x50] ss:$8 sps:$4 sm:$0xff]  }
  0x4f   : > { %1392 = vmatmul.mubr.bf16.gmra.mrb[16].mxu1 %v7089_v40  ;;  %1072 = vmatmul.mubr.bf16.gmra.mrb[16].mxu0 %v7102_v41  ;;  %v7163_v40 = vld [vmem:[%s7410_s19 + $0xa8] sm:$0xff]   ;;  %v7152_v41 = vld [vmem:[%s7410_s19 + $0x1b0] sm:$0xff]  }
  0x50   : > { %1401 = vmatprep.mubr.bf16.mxu1 %v11660_v2  ;;  %1081 = vmatprep.mubr.bf16.mxu0 %v11660_v2 }
  0x51   : > { %2303 = vmatpush1.bf16.msra.mxu1 %v7132_v44  ;;  %v7213_v44 = vld [vmem:[%s11650_s5 + $0x54] ss:$8 sps:$4 sm:$0xff]  }
  0x52   : > { %2304 = vmatprep.subr.bf16.mxu1 %v7141_v45  ;;  %v7157_v45 = vld [vmem:[%s7410_s19 + $0x1b8] sm:$0xff]   ;;  %3583 = vmatprep.subr.bf16.mxu0 %v7213_v44 }
  0x53   : > { %3584 = vmatpush1.bf16.msra.mxu0 %v7211_v43 }
  0x55   : > { %2305 = vmatpush1.bf16.msra.mxu1 %v7139_v46  ;;  %v7170_v46 = vld [vmem:[%s7410_s19 + $0xb8] sm:$0xff]  }
  0x56   : > { %2306 = vmatprep.subr.bf16.mxu1 %v7148_v47  ;;  %v7159_v47 = vld [vmem:[%s7410_s19 + $0x1c0] sm:$0xff]  }
  0x57   : > { %1402 = vmatmul.mubr.bf16.gmra.mrb[20].mxu1 %v7094_v48  ;;  %1082 = vmatmul.mubr.bf16.gmra.mrb[20].mxu0 %v7107_v49  ;;  %v7175_v48 = vld [vmem:[%s7410_s19 + $0xc0] sm:$0xff]  }
  0x58   : > { %1411 = vmatprep.mubr.bf16.mxu1 %v11660_v2  ;;  %1091 = vmatprep.mubr.bf16.mxu0 %v11660_v2  ;;  %v7214_v49 = vld [vmem:[%s11650_s5 + $0x60] ss:$8 sps:$4 sm:$0xff]  }
  0x59   : > { %2307 = vmatpush1.bf16.msra.mxu1 %v7146_v50  ;;  %v7216_v50 = vld [vmem:[%s11650_s5 + $0x64] ss:$8 sps:$4 sm:$0xff]  }
  0x5a   : > { %2308 = vmatprep.subr.bf16.mxu1 %v7155_v54  ;;  %3585 = vmatprep.subr.bf16.mxu0 %v7216_v50  ;;  %v7185_v54 = vld [vmem:[%s7410_s19 + $0xd0] sm:$0xff]  }
  0x5b   : > { %3586 = vmatpush1.bf16.msra.mxu0 %v7214_v49 }
  0x5d   : > { %2309 = vmatpush1.bf16.msra.mxu1 %v7153_v53  ;;  %v7166_v53 = vld [vmem:[%s7410_s19 + $0x1d0] sm:$0xff]  }
  0x5e   : > { %2310 = vmatprep.subr.bf16.mxu1 %v7162_v60  ;;  %v7171_v60 = vld [vmem:[%s7410_s19 + $0x1d8] sm:$0xff]  }
  0x5f   : > { %1412 = vmatmul.mubr.bf16.gmra.mrb[24].mxu1 %v7096_v51  ;;  %1092 = vmatmul.mubr.bf16.gmra.mrb[24].mxu0 %v7109_v52  ;;  %v7164_v51 = vld [vmem:[%s7410_s19 + $0x1c8] sm:$0xff]  }
  0x60   : > { %1421 = vmatprep.mubr.bf16.mxu1 %v11660_v2  ;;  %1101 = vmatprep.mubr.bf16.mxu0 %v11660_v2  ;;  %v7180_v52 = vld [vmem:[%s7410_s19 + $0xc8] sm:$0xff]  }
  0x61   : > { %2311 = vmatpush1.bf16.msra.mxu1 %v7160_v59 }
  0x62   : > { %2312 = vmatprep.subr.bf16.mxu1 %v7169_v3 }
  0x65   : > { %2313 = vmatpush1.bf16.msra.mxu1 %v7167_v1  ;;  %v7208_v1 = vld [vmem:[%s11652_s7 + $0x10] ss:$8 sps:$4 sm:$0xff]  }
  0x66   : > { %2314 = vmatprep.subr.bf16.mxu1 %v7179_v11 }
  0x67   : > { %1422 = vmatmul.mubr.bf16.gmra.mrb[28].mxu1 %v7101_v55  ;;  %1102 = vmatmul.mubr.bf16.gmra.mrb[28].mxu0 %v7114_v56  ;;  %v7220_v55 = vld [vmem:[%s11650_s5 + $0x70] ss:$8 sps:$4 sm:$0xff]   ;;  %v7222_v56 = vld [vmem:[%s11650_s5 + $0x74] ss:$8 sps:$4 sm:$0xff]  }
  0x68   : > { %1431 = vmatprep.mubr.bf16.mxu1 %v11660_v2  ;;  %1111 = vmatprep.mubr.bf16.mxu0 %v11660_v2 }
  0x69   : > { %2315 = vmatpush1.bf16.msra.mxu1 %v7177_v10  ;;  %3587 = vmatprep.subr.bf16.mxu0 %v7222_v56  ;;  %v1813_v10 = vlaneseq }
  0x6a   : > { %2316 = vmatprep.subr.bf16.mxu1 %v7189_v19  ;;  %3588 = vmatpush1.bf16.msra.mxu0 %v7220_v55 }
  0x6b   : > { %v1814_v24 = vshrl.u32 %v1813_v10, 7 }
  0x6d   : > { %2317 = vmatpush1.bf16.msra.mxu1 %v7187_v18 }
  0x6e   : > { %4860 = vmatprep.subr.bf16.mxu1 %v7198_v26 }
  0x6f   : > { %1432 = vmatmul.mubr.bf16.gmra.mrb[32].mxu1 %v7103_v57  ;;  %1112 = vmatmul.mubr.bf16.gmra.mrb[32].mxu0 %v7116_v58 }
  0x70   : > { %1441 = vmatprep.mubr.bf16.mxu1 %v11660_v2  ;;  %1121 = vmatprep.mubr.bf16.mxu0 %v11660_v2 }
  0x77   : > { %1442 = vmatmul.mubr.bf16.gmra.mrb[36].mxu1 %v7108_v61  ;;  %1122 = vmatmul.mubr.bf16.gmra.mrb[36].mxu0 %v7121_v62  ;;  %v7190_v62 = vld [vmem:[%s7410_s19 + $0xd8] sm:$0xff]  }
  0x78   : > { %1451 = vmatprep.mubr.bf16.mxu1 %v11660_v2  ;;  %1131 = vmatprep.mubr.bf16.mxu0 %v11660_v2 }
  0x7f   : > { %1452 = vmatmul.mubr.bf16.gmra.mrb[40].mxu1 %v7110_v63  ;;  %1132 = vmatmul.mubr.bf16.gmra.mrb[40].mxu0 %v7123_v0 }
  0x80   : > { %1461 = vmatprep.mubr.bf16.mxu1 %v11660_v2  ;;  %1141 = vmatprep.mubr.bf16.mxu0 %v11660_v2 }
  0x87   : > { %1462 = vmatmul.mubr.bf16.gmra.mrb[44].mxu1 %v7115_v4  ;;  %1142 = vmatmul.mubr.bf16.gmra.mrb[44].mxu0 %v7128_v5 }
  0x88   : > { %1471 = vmatprep.mubr.bf16.mxu1 %v11660_v2  ;;  %1151 = vmatprep.mubr.bf16.mxu0 %v11660_v2 }
  0x8f   : > { %1472 = vmatmul.mubr.bf16.gmra.mrb[48].mxu1 %v7117_v6  ;;  %1152 = vmatmul.mubr.bf16.gmra.mrb[48].mxu0 %v7130_v7  ;;  %v7217_v6 = vld [vmem:[%s11652_s7 + $0x20] ss:$8 sps:$4 sm:$0xff]  }
  0x90   : > { %1481 = vmatprep.mubr.bf16.mxu1 %v11660_v2  ;;  %1161 = vmatprep.mubr.bf16.mxu0 %v11660_v2 }
  0x97   : > { %1482 = vmatmul.mubr.bf16.gmra.mrb[52].mxu1 %v7122_v12  ;;  %1162 = vmatmul.mubr.bf16.gmra.mrb[52].mxu0 %v7135_v13 }
  0x98   : > { %1491 = vmatprep.mubr.bf16.mxu1 %v11660_v2  ;;  %1171 = vmatprep.mubr.bf16.mxu0 %v11660_v2 }
  0x9f   : > { %1492 = vmatmul.mubr.bf16.gmra.mrb[56].mxu1 %v7124_v14  ;;  %1172 = vmatmul.mubr.bf16.gmra.mrb[56].mxu0 %v7137_v15  ;;  %v7176_v14 = vld [vmem:[%s7410_s19 + $0x1e0] sm:$0xff]  }
  0xa0   : > { %1501 = vmatprep.mubr.bf16.mxu1 %v11660_v2  ;;  %1181 = vmatprep.mubr.bf16.mxu0 %v11660_v2 }
  0xa7   : > { %1502 = vmatmul.mubr.bf16.gmra.mrb[60].mxu1 %v7129_v20  ;;  %1182 = vmatmul.mubr.bf16.gmra.mrb[60].mxu0 %v7142_v21 }
  0xa8   : > { %1511 = vmatprep.mubr.bf16.mxu1 %v11660_v2  ;;  %1191 = vmatprep.mubr.bf16.mxu0 %v11660_v2 }
  0xaf   : > { %1512 = vmatmul.mubr.bf16.gmra.mrb[64].mxu1 %v7131_v22  ;;  %1192 = vmatmul.mubr.bf16.gmra.mrb[64].mxu0 %v7144_v23  ;;  %v1812_v23 = vunpack.c.0.s8 %v1811_v9 }
  0xb0   : > { %1521 = vmatprep.mubr.bf16.mxu1 %v11660_v2  ;;  %1201 = vmatprep.mubr.bf16.mxu0 %v11660_v2 }
  0xb7   : > { %1522 = vmatmul.mubr.bf16.gmra.mrb[68].mxu1 %v7136_v27  ;;  %1202 = vmatmul.mubr.bf16.gmra.mrb[68].mxu0 %v7149_v28  ;;  %v6909_v27 = vld.sshfl [vmem:[%s11647_s2] sm:$0x11 pattern:$0x75316420] }
  0xb8   : > { %1531 = vmatprep.mubr.bf16.mxu1 %v11660_v2  ;;  %1211 = vmatprep.mubr.bf16.mxu0 %v11660_v2  ;;  %v7223_v28 = vld [vmem:[%s11650_s5 + $0x80] ss:$8 sps:$4 sm:$0xff]   ;;  %v1809_v31 = vcombine.high %v6909_v27, %v6909_v27 }
  0xbf   : > { %1532 = vmatmul.mubr.bf16.gmra.mrb[72].mxu1 %v7138_v29  ;;  %1212 = vmatmul.mubr.bf16.gmra.mrb[72].mxu0 %v7151_v30  ;;  %v7225_v29 = vld [vmem:[%s11650_s5 + $0x84] ss:$8 sps:$4 sm:$0xff]   ;;  %v7759_v30 = vsub.s32 %v1812_v23, %v1814_v24 }
  0xc0   : > { %1541 = vmatprep.mubr.bf16.mxu1 %v11660_v2  ;;  %1221 = vmatprep.mubr.bf16.mxu0 %v11660_v2 }
  0xc1   : > { %11761 = vst [vmem:[#allocation2_spill] sm:$0xff] %v7759_v30  ;;  %3589 = vmatprep.subr.bf16.mxu0 %v7225_v29  ;;  %v1823_v44 = vrot.slane %v1809_v31, %v7759_v30  ;;  %v1816_v23 = vrot.slane %v6909_v27, %v7759_v30  ;;  %v7231_v29 = vld [vmem:[%s11650_s5 + $0x94] ss:$8 sps:$4 sm:$0xff]  }
  0xc2   : > { %3590 = vmatpush1.bf16.msra.mxu0 %v7223_v28  ;;  %v7229_v28 = vld [vmem:[%s11650_s5 + $0x90] ss:$8 sps:$4 sm:$0xff]  }
  0xc3   : > { %3591 = vmatprep.subr.bf16.mxu0 %v7231_v29 }
  0xc6   : > { %3592 = vmatpush1.bf16.msra.mxu0 %v7229_v28 }
  0xc7   : > { %1542 = vmatmul.mubr.bf16.gmra.mrb[76].mxu1 %v7143_v33  ;;  %1222 = vmatmul.mubr.bf16.gmra.mrb[76].mxu0 %v7156_v34 }
  0xc8   : > { %1551 = vmatprep.mubr.bf16.mxu1 %v11660_v2  ;;  %1231 = vmatprep.mubr.bf16.mxu0 %v11660_v2 }
  0xcf   : > { %1552 = vmatmul.mubr.bf16.gmra.mrb[80].mxu1 %v7145_v35  ;;  %1232 = vmatmul.mubr.bf16.gmra.mrb[80].mxu0 %v7158_v36  ;;  %v7181_v35 = vld [vmem:[%s7410_s19 + $0x1e8] sm:$0xff]  }
  0xd0   : > { %1561 = vmatprep.mubr.bf16.mxu1 %v11660_v2  ;;  %1241 = vmatprep.mubr.bf16.mxu0 %v11660_v2 }
  0xd7   : > { %1562 = vmatmul.mubr.bf16.gmra.mrb[84].mxu1 %v7150_v39  ;;  %1242 = vmatmul.mubr.bf16.gmra.mrb[84].mxu0 %v7163_v40 }
  0xd8   : > { %1571 = vmatprep.mubr.bf16.mxu1 %v11660_v2  ;;  %1251 = vmatprep.mubr.bf16.mxu0 %v11660_v2 }
  0xdf   : > { %1572 = vmatmul.mubr.bf16.gmra.mrb[88].mxu1 %v7152_v41  ;;  %1252 = vmatmul.mubr.bf16.gmra.mrb[88].mxu0 %v7165_v42 }
  0xe0   : > { %1581 = vmatprep.mubr.bf16.mxu1 %v11660_v2  ;;  %1261 = vmatprep.mubr.bf16.mxu0 %v11660_v2 }
  0xe7   : > { %1582 = vmatmul.mubr.bf16.gmra.mrb[92].mxu1 %v7157_v45  ;;  %1262 = vmatmul.mubr.bf16.gmra.mrb[92].mxu0 %v7170_v46 }
  0xe8   : > { %1591 = vmatprep.mubr.bf16.mxu1 %v11660_v2  ;;  %1271 = vmatprep.mubr.bf16.mxu0 %v11660_v2 }
  0xef   : > { %1592 = vmatmul.mubr.bf16.gmra.mrb[96].mxu1 %v7159_v47  ;;  %1272 = vmatmul.mubr.bf16.gmra.mrb[96].mxu0 %v7175_v48  ;;  %v7790_v47 = vsub.s32 0, %v1814_v24  ;;  %v1832_v48 = vpack.i.b16 %v1823_v44, %v1823_v44 }
  0xf0   : > { %1601 = vmatprep.mubr.bf16.mxu1 %v11660_v2  ;;  %1281 = vmatprep.mubr.bf16.mxu0 %v11660_v2 }
  0xf1   : > { %v7815_v10 = vrot.slane %v1832_v48, %v7790_v47 }
  0xf7   : > { %1602 = vmatmul.mubr.bf16.gmra.mrb[100].mxu1 %v7164_v51  ;;  %1282 = vmatmul.mubr.bf16.gmra.mrb[100].mxu0 %v7180_v52  ;;  %v7186_v52 = vld [vmem:[%s7410_s19 + $0x1f0] sm:$0xff]  }
  0xf8   : > { %1611 = vmatprep.mubr.bf16.mxu1 %v11660_v2  ;;  %1291 = vmatprep.mubr.bf16.mxu0 %v11660_v2 }
  0xff   : > { %1612 = vmatmul.mubr.bf16.gmra.mrb[104].mxu1 %v7166_v53  ;;  %1292 = vmatmul.mubr.bf16.gmra.mrb[104].mxu0 %v7185_v54  ;;  %v7203_v54 = vld [vmem:[%s7410_s19 + $0xf0] sm:$0xff]  }
 0x100   : > { %1621 = vmatprep.mubr.bf16.mxu1 %v11660_v2  ;;  %1301 = vmatprep.mubr.bf16.mxu0 %v11660_v2 }
 0x102   : > { %v7694_v57 = vpop.f32.mrb[0].mxu1  ;;  %v7696_v58 = vpop.f32.mrb[0].mxu0 }
 0x103   : > { %v7698_v59 = vpop.f32.mrb[1].mxu1  ;;  %v7701_v61 = vpop.f32.mrb[1].mxu0 }
 0x104   : > { %v7704_v63 = vpop.f32.mrb[2].mxu1  ;;  %v7706_v0 = vpop.f32.mrb[2].mxu0 }
 0x105   : > { %v7710_v3 = vpop.f32.mrb[3].mxu1  ;;  %v1672_v4 = vpack.c.bf16 %v7706_v0, %v7696_v58  ;;  %v7714_v5 = vpop.f32.mrb[3].mxu0 }
 0x106   : > { %v1673_v7 = vpack.c.bf16 %v7714_v5, %v7701_v61  ;;  %v7191_v5 = vld [vmem:[%s7410_s19 + $0x1f8] sm:$0xff]  }
 0x107   : > { %1622 = vmatmul.mubr.bf16.gmra.mrb[108].mxu1 %v7171_v60  ;;  %1302 = vmatmul.mubr.bf16.gmra.mrb[108].mxu0 %v7190_v62 }
 0x108   : > { %1631 = vmatprep.mubr.bf16.mxu1 %v11660_v2  ;;  %1311 = vmatprep.mubr.bf16.mxu0 %v11660_v2  ;;  %v1839_v24 = vadd.bf16 %v7815_v10, %v1673_v7 }
 0x10a   : > { %v7722_v11 = vpop.f32.mrb[4].mxu1  ;;  %v7724_v12 = vpop.f32.mrb[4].mxu0  ;;  %v1967_v48 = vmax.bf16 %v11660_v2, %v1839_v24 }
 0x10b   : > { %v7726_v13 = vpop.f32.mrb[5].mxu1  ;;  %v7729_v15 = vpop.f32.mrb[5].mxu0 }
 0x10c   : > { %v7732_v17 = vpop.f32.mrb[6].mxu1  ;;  %v7734_v18 = vpop.f32.mrb[6].mxu0 }
 0x10d   : > { %v7738_v20 = vpop.f32.mrb[7].mxu1  ;;  %v1674_v21 = vpack.c.bf16 %v7734_v18, %v7724_v12  ;;  %v7742_v22 = vpop.f32.mrb[7].mxu0 }
 0x10e   : > { %v1675_v26 = vpack.c.bf16 %v7742_v22, %v7729_v15  ;;  %v7196_v15 = vld [vmem:[%s11652_s7] ss:$8 sps:$4 sm:$0xff]  }
 0x10f   : > { %1632 = vmatmul.mubr.bf16.gmra.mrb[112].mxu1 %v7176_v14  ;;  %1312 = vmatmul.mubr.bf16.gmra.mrb[112].mxu0 %v7195_v16 }
 0x110   : > { %1641 = vmatprep.mubr.bf16.mxu1 %v11660_v2  ;;  %1321 = vmatprep.mubr.bf16.mxu0 %v11660_v2  ;;  %v1841_v28 = vadd.bf16 %v7815_v10, %v1675_v26 }
 0x112   : > { %v7761_v32 = vpop.f32.mrb[8].mxu1  ;;  %v7763_v33 = vpop.f32.mrb[8].mxu0  ;;  %v1969_v22 = vmax.bf16 %v11660_v2, %v1841_v28 }
 0x113   : > { %v7765_v34 = vpop.f32.mrb[9].mxu1  ;;  %v7768_v36 = vpop.f32.mrb[9].mxu0 }
 0x114   : > { %v7771_v38 = vpop.f32.mrb[10].mxu1  ;;  %v7773_v39 = vpop.f32.mrb[10].mxu0 }
 0x115   : > { %v7777_v41 = vpop.f32.mrb[11].mxu1  ;;  %v1676_v42 = vpack.c.bf16 %v7773_v39, %v7763_v33  ;;  %v7781_v43 = vpop.f32.mrb[11].mxu0  ;;  %v7235_v39 = vld [vmem:[%s11652_s7 + $0x40] ss:$8 sps:$4 sm:$0xff]  }
 0x116   : > { %v1677_v46 = vpack.c.bf16 %v7781_v43, %v7768_v36  ;;  %v7232_v36 = vld [vmem:[%s11650_s5 + $0xa0] ss:$8 sps:$4 sm:$0xff]   ;;  %v7234_v43 = vld [vmem:[%s11650_s5 + $0xa4] ss:$8 sps:$4 sm:$0xff]  }
 0x117   : > { %1642 = vmatmul.mubr.bf16.gmra.mrb[116].mxu1 %v7181_v35  ;;  %1322 = vmatmul.mubr.bf16.gmra.mrb[116].mxu0 %v7199_v37  ;;  %v1825_v35 = vpack.i.b16 %v1816_v23, %v1816_v23  ;;  %v7204_v37 = vld [vmem:[%s7410_s19 + $0xf8] sm:$0xff]  }
 0x118   : > { %1651 = vmatprep.mubr.bf16.mxu1 %v11660_v2  ;;  %1331 = vmatprep.mubr.bf16.mxu0 %v11660_v2  ;;  %v1843_v0 = vadd.bf16 %v7815_v10, %v1677_v46 }
 0x119   : > { %v7862_v24 = vrot.slane %v1825_v35, %v7790_v47  ;;  %3593 = vmatprep.subr.bf16.mxu0 %v7234_v43 }
 0x11a   : > { %v7792_v49 = vpop.f32.mrb[12].mxu1  ;;  %v7794_v50 = vpop.f32.mrb[12].mxu0  ;;  %3594 = vmatpush1.bf16.msra.mxu0 %v7232_v36 }
 0x11b   : > { %v7796_v51 = vpop.f32.mrb[13].mxu1  ;;  %v7799_v53 = vpop.f32.mrb[13].mxu0  ;;  %v1840_v28 = vadd.bf16 %v7862_v24, %v1674_v21 }
 0x11c   : > { %v7802_v55 = vpop.f32.mrb[14].mxu1  ;;  %v7804_v56 = vpop.f32.mrb[14].mxu0 }
 0x11d   : > { %v7808_v62 = vpop.f32.mrb[15].mxu1  ;;  %v7812_v9 = vpop.f32.mrb[15].mxu0 }
 0x11e   : > { %v1679_v16 = vpack.c.bf16 %v7812_v9, %v7799_v53 }
 0x11f   : > { %1652 = vmatmul.mubr.bf16.gmra.mrb[120].mxu1 %v7186_v52  ;;  %1332 = vmatmul.mubr.bf16.gmra.mrb[120].mxu0 %v7203_v54  ;;  %v1838_v54 = vadd.bf16 %v7862_v24, %v1672_v4 }
 0x120   : > { %1661 = vmatprep.mubr.bf16.mxu1 %v11660_v2  ;;  %1341 = vmatprep.mubr.bf16.mxu0 %v11660_v2 }
 0x121   : > { %v1966_v58 = vmax.bf16 %v11660_v2, %v1838_v54  ;;  %v1968_v54 = vmax.bf16 %v11660_v2, %v1840_v28  ;;  %v1845_v28 = vadd.bf16 %v7815_v10, %v1679_v16 }
 0x122   : > { %v7834_v27 = vpop.f32.mrb[16].mxu1  ;;  %v7836_v31 = vpop.f32.mrb[16].mxu0 }
 0x123   : > { %v7838_v61 = vpop.f32.mrb[17].mxu1  ;;  %v7841_v7 = vpop.f32.mrb[17].mxu0 }
 0x124   : > { %v7844_v44 = vpop.f32.mrb[18].mxu1  ;;  %v7847_v52 = vpop.f32.mrb[18].mxu0 }
 0x125   : > { %v7851_v60 = vpop.f32.mrb[19].mxu1  ;;  %v7855_v14 = vpop.f32.mrb[19].mxu0 }
 0x127   : > { %1662 = vmatmul.mubr.bf16.gmra.mrb[124].mxu1 %v7191_v5  ;;  %1342 = vmatmul.mubr.bf16.gmra.mrb[124].mxu0 %v7204_v37  ;;  %v1842_v37 = vadd.bf16 %v7862_v24, %v1676_v42  ;;  %v11768_v42 = vpack.c.bf16 %v7855_v14, %v7841_v7 }
 0x128   : > { %2318 = vmatprep.mubr.bf16.mxu1 %v1967_v48 }
 0x129   : > { %v1970_v43 = vmax.bf16 %v11660_v2, %v1842_v37  ;;  %v11769_v37 = vpack.c.bf16 %v7804_v56, %v7794_v50 }
 0x12a   : > { %v7872_v29 = vpop.f32.mrb[20].mxu1  ;;  %v7874_v45 = vpop.f32.mrb[20].mxu0 }
 0x12b   : > { %v7876_v19 = vpop.f32.mrb[21].mxu1  ;;  %v7878_v35 = vpop.f32.mrb[21].mxu0  ;;  %v1844_v36 = vadd.bf16 %v7862_v24, %v11769_v37 }
 0x12c   : > { %v7880_v5 = vpop.f32.mrb[22].mxu1  ;;  %v7886_v26 = vpop.f32.mrb[22].mxu0 }
 0x12d   : > { %v7891_v4 = vpop.f32.mrb[23].mxu1  ;;  %v7895_v48 = vpop.f32.mrb[23].mxu0 }
 0x12f   : > { %2319 = vmatmul.mubr.bf16.vlgmr.msra.gmra.mrb[128].mxu1 %v1966_v58 }
 0x130   : > { %4861 = vmatpush1.bf16.msra.mxu1 %v7196_v15  ;;  %2328 = vmatprep.mubr.bf16.mxu1 %v1969_v22  ;;  %v7219_v15 = vld [vmem:[%s11652_s7 + $0x24] ss:$8 sps:$4 sm:$0xff]  }
 0x131   : > { %4862 = vmatprep.subr.bf16.mxu1 %v7210_v25  ;;  %v1971_v25 = vmax.bf16 %v11660_v2, %v1843_v0  ;;  %v1973_v0 = vmax.bf16 %v11660_v2, %v1845_v28 }
 0x132   : > { %v7924_v46 = vpop.f32.mrb[24].mxu1  ;;  %v7926_v22 = vpop.f32.mrb[24].mxu0 }
 0x133   : > { %11762 = vst [vmem:[#allocation3_spill] sm:$0xff] %v7924_v46  ;;  %v7928_v12 = vpop.f32.mrb[25].mxu1  ;;  %v7930_v18 = vpop.f32.mrb[25].mxu0 }
 0x134   : > { %v7932_v21 = vpop.f32.mrb[26].mxu1  ;;  %4863 = vmatpush1.bf16.msra.mxu1 %v7208_v1  ;;  %v7935_v58 = vpop.f32.mrb[26].mxu0  ;;  %v7228_v1 = vld [vmem:[%s11652_s7 + $0x34] ss:$8 sps:$4 sm:$0xff]  }
 0x135   : > { %11763 = vst [vmem:[#allocation4_spill] sm:$0xff] %v7932_v21  ;;  %v7942_v23 = vpop.f32.mrb[27].mxu1  ;;  %v7947_v8 = vpop.f32.mrb[27].mxu0  ;;  %4864 = vmatprep.subr.bf16.mxu1 %v7219_v15  ;;  %v7226_v15 = vld [vmem:[%s11652_s7 + $0x30] ss:$8 sps:$4 sm:$0xff]  }
 0x137   : > { %2329 = vmatmul.mubr.bf16.gmra.mrb[132].mxu1 %v1968_v54  ;;  %v7237_v54 = vld [vmem:[%s11652_s7 + $0x44] ss:$8 sps:$4 sm:$0xff]  }
 0x138   : > { %2338 = vmatprep.mubr.bf16.mxu1 %v1971_v25  ;;  %4865 = vmatpush1.bf16.msra.mxu1 %v7217_v6 }
 0x139   : > { %4866 = vmatprep.subr.bf16.mxu1 %v7228_v1 }
 0x13a   : > { %v7970_v25 = vpop.f32.mrb[28].mxu1  ;;  %v7972_v53 = vpop.f32.mrb[28].mxu0 }
 0x13b   : > { %11764 = vst [vmem:[#allocation5_spill] sm:$0xff] %v7970_v25  ;;  %v7974_v9 = vpop.f32.mrb[29].mxu1  ;;  %v7976_v6 = vpop.f32.mrb[29].mxu0  ;;  %v1847_v25 = vadd.bf16 %v7815_v10, %v11768_v42 }
 0x13c   : > { %11765 = vst [vmem:[#allocation6_spill] sm:$0xff] %v7974_v9  ;;  %v7978_v16 = vpop.f32.mrb[30].mxu1  ;;  %v7981_v33 = vpop.f32.mrb[30].mxu0  ;;  %4867 = vmatpush1.bf16.msra.mxu1 %v7226_v15  ;;  %v1972_v15 = vmax.bf16 %v11660_v2, %v1844_v36  ;;  %v11775_v36 = vpack.c.bf16 %v7847_v52, %v7836_v31 }
 0x13d   : > { %11766 = vst [vmem:[#allocation7_spill] sm:$0xff] %v7978_v16  ;;  %v7988_v1 = vpop.f32.mrb[31].mxu1  ;;  %v7993_v40 = vpop.f32.mrb[31].mxu0  ;;  %4868 = vmatprep.subr.bf16.mxu1 %v7237_v54  ;;  %v7238_v54 = vld [vmem:[%s11650_s5 + $0xb0] ss:$8 sps:$4 sm:$0xff]   ;;  %v1975_v56 = vmax.bf16 %v11660_v2, %v1847_v25 }
 0x13e   : > { %11767 = vst [vmem:[#allocation8_spill] sm:$0xff] %v7988_v1  ;;  %v1846_v16 = vadd.bf16 %v7862_v24, %v11775_v36 }
 0x13f   : > { %2339 = vmatmul.mubr.bf16.gmra.mrb[136].mxu1 %v1970_v43  ;;  %v7240_v43 = vld [vmem:[%s11650_s5 + $0xb4] ss:$8 sps:$4 sm:$0xff]  }
 0x140   : > { %2348 = vmatprep.mubr.bf16.mxu1 %v1973_v0  ;;  %4869 = vmatpush1.bf16.msra.mxu1 %v7235_v39 }
 0x141   : > { %3595 = vmatprep.subr.bf16.mxu0 %v7240_v43 }
 0x142   : > { %v8013_v0 = vpop.f32.mrb[32].mxu1  ;;  %v8015_v28 = vpop.f32.mrb[32].mxu0  ;;  %3596 = vmatpush1.bf16.msra.mxu0 %v7238_v54  ;;  %v11774_v54 = vpack.c.bf16 %v7895_v48, %v7878_v35  ;;  %v11781_v48 = vpack.c.bf16 %v7947_v8, %v7930_v18 }
 0x143   : > { %11770 = vst [vmem:[#allocation9_spill] sm:$0xff] %v8013_v0  ;;  %v8017_v14 = vpop.f32.mrb[33].mxu1  ;;  %v8019_v7 = vpop.f32.mrb[33].mxu0 }
 0x144   : > { %11771 = vst [vmem:[#allocation10_spill] sm:$0xff] %v8017_v14  ;;  %v8021_v50 = vpop.f32.mrb[34].mxu1  ;;  %v8024_v39 = vpop.f32.mrb[34].mxu0  ;;  %v1849_v42 = vadd.bf16 %v7815_v10, %v11774_v54  ;;  %v7243_v14 = vld [vmem:[%s11650_s5 + $0xc4] ss:$8 sps:$4 sm:$0xff]  }
 0x145   : > { %11772 = vst [vmem:[#allocation11_spill] sm:$0xff] %v8021_v50  ;;  %v8028_v37 = vpop.f32.mrb[35].mxu1  ;;  %v8033_v9 = vpop.f32.mrb[35].mxu0  ;;  %3597 = vmatprep.subr.bf16.mxu0 %v7243_v14 }
 0x146   : > { %11773 = vst [vmem:[#allocation12_spill] sm:$0xff] %v8028_v37 }
 0x147   : > { %2349 = vmatmul.mubr.bf16.gmra.mrb[140].mxu1 %v1972_v15 }
 0x148   : > { %2358 = vmatprep.mubr.bf16.mxu1 %v1975_v56  ;;  %v11779_v56 = vmov 0  }
 0x149   : > { %v1977_v25 = vmax.bf16 %v11779_v56, %v1849_v42  ;;  %v1974_v52 = vmax.bf16 %v11779_v56, %v1846_v16  ;;  %v11782_v16 = vpack.c.bf16 %v7886_v26, %v7874_v45  ;;  %v7246_v45 = vld [vmem:[%s11652_s7 + $0x54] ss:$8 sps:$4 sm:$0xff]  }
 0x14a   : > { %v8047_v2 = vpop.f32.mrb[36].mxu1  ;;  %v8049_v0 = vpop.f32.mrb[36].mxu0  ;;  %4870 = vmatprep.subr.bf16.mxu1 %v7246_v45 }
 0x14b   : > { %11776 = vst [vmem:[#allocation13_spill] sm:$0xff] %v8047_v2  ;;  %v8051_v43 = vpop.f32.mrb[37].mxu1  ;;  %v8053_v50 = vpop.f32.mrb[37].mxu0  ;;  %v1851_v2 = vadd.bf16 %v7815_v10, %v11781_v48  ;;  %v1848_v54 = vadd.bf16 %v7862_v24, %v11782_v16 }
 0x14c   : > { %11777 = vst [vmem:[#allocation14_spill] sm:$0xff] %v8051_v43  ;;  %v8055_v15 = vpop.f32.mrb[38].mxu1  ;;  %v8058_v35 = vpop.f32.mrb[38].mxu0 }
 0x14d   : > { %11778 = vst [vmem:[#allocation15_spill] sm:$0xff] %v8055_v15  ;;  %v8062_v31 = vpop.f32.mrb[39].mxu1  ;;  %v8067_v36 = vpop.f32.mrb[39].mxu0  ;;  %v7241_v15 = vld [vmem:[%s11650_s5 + $0xc0] ss:$8 sps:$4 sm:$0xff]   ;;  %v1979_v16 = vmax.bf16 %v11779_v56, %v1851_v2  ;;  %v1976_v37 = vmax.bf16 %v11779_v56, %v1848_v54  ;;  %v11788_v54 = vpack.c.bf16 %v7935_v58, %v7926_v22 }
 0x14e   : > { %11780 = vst [vmem:[#allocation16_spill] sm:$0xff] %v8062_v31  ;;  %3598 = vmatpush1.bf16.msra.mxu0 %v7241_v15  ;;  %v11787_v15 = vpack.c.bf16 %v7993_v40, %v7976_v6 }
 0x14f   : > { %2359 = vmatmul.mubr.bf16.gmra.mrb[144].mxu1 %v1974_v52  ;;  %v1850_v43 = vadd.bf16 %v7862_v24, %v11788_v54  ;;  %v11793_v54 = vpack.c.bf16 %v8033_v9, %v8019_v7 }
 0x150   : > { %2368 = vmatprep.mubr.bf16.mxu1 %v1977_v25  ;;  %v7244_v25 = vld [vmem:[%s11652_s7 + $0x50] ss:$8 sps:$4 sm:$0xff]   ;;  %v1853_v45 = vadd.bf16 %v7815_v10, %v11787_v15  ;;  %v7249_v15 = vld [vmem:[%s11650_s5 + $0xd4] ss:$8 sps:$4 sm:$0xff]  }
 0x151   : > { %4871 = vmatpush1.bf16.msra.mxu1 %v7244_v25  ;;  %v1978_v58 = vmax.bf16 %v11779_v56, %v1850_v43  ;;  %v1855_v6 = vadd.bf16 %v7815_v10, %v11793_v54  ;;  %v11794_v43 = vpack.c.bf16 %v7981_v33, %v7972_v53  ;;  %3599 = vmatprep.subr.bf16.mxu0 %v7249_v15 }
 0x152   : > { %v8090_v8 = vpop.f32.mrb[40].mxu1  ;;  %v8092_v18 = vpop.f32.mrb[40].mxu0 }
 0x153   : > { %11783 = vst [vmem:[#allocation17_spill] sm:$0xff] %v8090_v8  ;;  %v8097_v26 = vpop.f32.mrb[41].mxu1  ;;  %v8099_v48 = vpop.f32.mrb[41].mxu0  ;;  %v1983_v33 = vmax.bf16 %v11779_v56, %v1855_v6  ;;  %v7252_v6 = vld [vmem:[%s11650_s5 + $0xe4] ss:$8 sps:$4 sm:$0xff]  }
 0x154   : > { %11784 = vst [vmem:[#allocation18_spill] sm:$0xff] %v8097_v26  ;;  %v8101_v52 = vpop.f32.mrb[42].mxu1  ;;  %v8104_v42 = vpop.f32.mrb[42].mxu0 }
 0x155   : > { %11785 = vst [vmem:[#allocation19_spill] sm:$0xff] %v8101_v52  ;;  %v8108_v31 = vpop.f32.mrb[43].mxu1  ;;  %v8113_v46 = vpop.f32.mrb[43].mxu0 }
 0x156   : > { %11786 = vst [vmem:[#allocation20_spill] sm:$0xff] %v8108_v31  ;;  %v1693_v14 = vpack.c.bf16 %v8113_v46, %v8099_v48  ;;  %v1852_v48 = vadd.bf16 %v7862_v24, %v11794_v43 }
 0x157   : > { %2369 = vmatmul.mubr.bf16.gmra.mrb[148].mxu1 %v1976_v37  ;;  %v1981_v37 = vmax.bf16 %v11779_v56, %v1853_v45 }
 0x158   : > { %2378 = vmatprep.mubr.bf16.mxu1 %v1979_v16 }
 0x15a   : > { %v8127_v1 = vpop.f32.mrb[44].mxu1  ;;  %v8129_v25 = vpop.f32.mrb[44].mxu0 }
 0x15b   : > { %11789 = vst [vmem:[#allocation21_spill] sm:$0xff] %v8127_v1  ;;  %v8131_v2 = vpop.f32.mrb[45].mxu1  ;;  %v8133_v8 = vpop.f32.mrb[45].mxu0  ;;  %v7247_v1 = vld [vmem:[%s11650_s5 + $0xd0] ss:$8 sps:$4 sm:$0xff]  }
 0x15c   : > { %11790 = vst [vmem:[#allocation22_spill] sm:$0xff] %v8131_v2  ;;  %v8135_v46 = vpop.f32.mrb[46].mxu1  ;;  %v8138_v40 = vpop.f32.mrb[46].mxu0  ;;  %3600 = vmatpush1.bf16.msra.mxu0 %v7247_v1  ;;  %v11799_v1 = vpack.c.bf16 %v8067_v36, %v8053_v50  ;;  %v11805_v36 = vpack.c.bf16 %v8058_v35, %v8049_v0  ;;  %v7255_v0 = vld [vmem:[%s11652_s7 + $0x64] ss:$8 sps:$4 sm:$0xff]  }
 0x15d   : > { %11791 = vst [vmem:[#allocation23_spill] sm:$0xff] %v8135_v46  ;;  %v8142_v22 = vpop.f32.mrb[47].mxu1  ;;  %v8147_v16 = vpop.f32.mrb[47].mxu0  ;;  %v1980_v46 = vmax.bf16 %v11779_v56, %v1852_v48  ;;  %v11800_v48 = vpack.c.bf16 %v8024_v39, %v8015_v28  ;;  %3601 = vmatprep.subr.bf16.mxu0 %v7252_v6  ;;  %4872 = vmatprep.subr.bf16.mxu1 %v7255_v0 }
 0x15e   : > { %11792 = vst [vmem:[#allocation24_spill] sm:$0xff] %v8142_v22  ;;  %v1857_v43 = vadd.bf16 %v7815_v10, %v11799_v1  ;;  %v7250_v1 = vld [vmem:[%s11650_s5 + $0xe0] ss:$8 sps:$4 sm:$0xff]  }
 0x15f   : > { %2379 = vmatmul.mubr.bf16.gmra.mrb[152].mxu1 %v1978_v58  ;;  %v1854_v2 = vadd.bf16 %v7862_v24, %v11800_v48 }
 0x160   : > { %2388 = vmatprep.mubr.bf16.mxu1 %v1981_v37  ;;  %3602 = vmatpush1.bf16.msra.mxu0 %v7250_v1  ;;  %v11810_v1 = vpack.c.bf16 %v8147_v16, %v8133_v8 }
 0x161   : > { %v1982_v39 = vmax.bf16 %v11779_v56, %v1854_v2  ;;  %v1856_v2 = vadd.bf16 %v7862_v24, %v11805_v36 }
 0x162   : > { %v8167_v58 = vpop.f32.mrb[48].mxu1  ;;  %v8169_v37 = vpop.f32.mrb[48].mxu0  ;;  %v1861_v0 = vadd.bf16 %v7815_v10, %v11810_v1  ;;  %v7258_v1 = vld [vmem:[%s11650_s5 + $0xf4] ss:$8 sps:$4 sm:$0xff]  }
 0x163   : > { %11795 = vst [vmem:[#allocation25_spill] sm:$0xff] %v8167_v58  ;;  %v8171_v9 = vpop.f32.mrb[49].mxu1  ;;  %v8173_v7 = vpop.f32.mrb[49].mxu0  ;;  %v1984_v52 = vmax.bf16 %v11779_v56, %v1856_v2  ;;  %v11811_v2 = vpack.c.bf16 %v8104_v42, %v8092_v18  ;;  %3603 = vmatprep.subr.bf16.mxu0 %v7258_v1 }
 0x164   : > { %11796 = vst [vmem:[#allocation26_spill] sm:$0xff] %v8171_v9  ;;  %v8175_v53 = vpop.f32.mrb[50].mxu1  ;;  %v8178_v54 = vpop.f32.mrb[50].mxu0 }
 0x165   : > { %11797 = vst [vmem:[#allocation27_spill] sm:$0xff] %v8175_v53  ;;  %v8182_v45 = vpop.f32.mrb[51].mxu1  ;;  %v8187_v22 = vpop.f32.mrb[51].mxu0 }
 0x166   : > { %11798 = vst [vmem:[#allocation28_spill] sm:$0xff] %v8182_v45  ;;  %v1859_v45 = vadd.bf16 %v7815_v10, %v1693_v14 }
 0x167   : > { %2389 = vmatmul.mubr.bf16.gmra.mrb[156].mxu1 %v1980_v46 }
 0x168   : > { %2398 = vmatprep.mubr.bf16.mxu1 %v1983_v33  ;;  %v1985_v33 = vmax.bf16 %v11779_v56, %v1857_v43 }
 0x16a   : > { %v8201_v58 = vpop.f32.mrb[52].mxu1  ;;  %v8203_v53 = vpop.f32.mrb[52].mxu0 }
 0x16b   : > { %11801 = vst [vmem:[#allocation29_spill] sm:$0xff] %v8201_v58  ;;  %v8205_v15 = vpop.f32.mrb[53].mxu1  ;;  %v8207_v9 = vpop.f32.mrb[53].mxu0  ;;  %v1987_v58 = vmax.bf16 %v11779_v56, %v1859_v45 }
 0x16c   : > { %11802 = vst [vmem:[#allocation30_spill] sm:$0xff] %v8205_v15  ;;  %v8209_v46 = vpop.f32.mrb[54].mxu1  ;;  %v8212_v50 = vpop.f32.mrb[54].mxu0  ;;  %v1858_v15 = vadd.bf16 %v7862_v24, %v11811_v2  ;;  %v11816_v2 = vpack.c.bf16 %v8187_v22, %v8173_v7 }
 0x16d   : > { %11803 = vst [vmem:[#allocation31_spill] sm:$0xff] %v8209_v46  ;;  %v8216_v28 = vpop.f32.mrb[55].mxu1  ;;  %v8221_v48 = vpop.f32.mrb[55].mxu0 }
 0x16e   : > { %11804 = vst [vmem:[#allocation32_spill] sm:$0xff] %v8216_v28  ;;  %v1986_v18 = vmax.bf16 %v11779_v56, %v1858_v15  ;;  %v1863_v16 = vadd.bf16 %v7815_v10, %v11816_v2  ;;  %v11817_v15 = vpack.c.bf16 %v8138_v40, %v8129_v25  ;;  %v11822_v1 = vpack.c.bf16 %v8221_v48, %v8207_v9  ;;  %v7260_v48 = vld [vmem:[%s11652_s7 + $0x70] ss:$8 sps:$4 sm:$0xff]  }
 0x16f   : > { %2399 = vmatmul.mubr.bf16.gmra.mrb[160].mxu1 %v1982_v39  ;;  %v7253_v39 = vld [vmem:[%s11652_s7 + $0x60] ss:$8 sps:$4 sm:$0xff]  }
 0x170   : > { %2408 = vmatprep.mubr.bf16.mxu1 %v1985_v33  ;;  %4873 = vmatpush1.bf16.msra.mxu1 %v7253_v39  ;;  %v1991_v40 = vmax.bf16 %v11779_v56, %v1863_v16 }
 0x172   : > { %v8241_v33 = vpop.f32.mrb[56].mxu1  ;;  %v8243_v14 = vpop.f32.mrb[56].mxu0 }
 0x173   : > { %11806 = vst [vmem:[#allocation33_spill] sm:$0xff] %v8241_v33  ;;  %v8248_v35 = vpop.f32.mrb[57].mxu1  ;;  %v8250_v36 = vpop.f32.mrb[57].mxu0 }
 0x174   : > { %11807 = vst [vmem:[#allocation34_spill] sm:$0xff] %v8248_v35  ;;  %v8252_v43 = vpop.f32.mrb[58].mxu1  ;;  %v8255_v46 = vpop.f32.mrb[58].mxu0 }
 0x175   : > { %11808 = vst [vmem:[#allocation35_spill] sm:$0xff] %v8252_v43  ;;  %v8259_v28 = vpop.f32.mrb[59].mxu1  ;;  %v8264_v31 = vpop.f32.mrb[59].mxu0 }
 0x176   : > { %11809 = vst [vmem:[#allocation36_spill] sm:$0xff] %v8259_v28  ;;  %v1701_v6 = vpack.c.bf16 %v8264_v31, %v8250_v36 }
 0x177   : > { %2409 = vmatmul.mubr.bf16.gmra.mrb[164].mxu1 %v1984_v52  ;;  %v1989_v52 = vmax.bf16 %v11779_v56, %v1861_v0 }
 0x178   : > { %2418 = vmatprep.mubr.bf16.mxu1 %v1987_v58  ;;  %v1860_v58 = vadd.bf16 %v7862_v24, %v11817_v15  ;;  %v11823_v15 = vpack.c.bf16 %v8178_v54, %v8169_v37 }
 0x17a   : > { %v8278_v26 = vpop.f32.mrb[60].mxu1  ;;  %v8280_v39 = vpop.f32.mrb[60].mxu0 }
 0x17b   : > { %11812 = vst [vmem:[#allocation37_spill] sm:$0xff] %v8278_v26  ;;  %v8282_v45 = vpop.f32.mrb[61].mxu1  ;;  %v8284_v33 = vpop.f32.mrb[61].mxu0  ;;  %v7256_v26 = vld [vmem:[%s11650_s5 + $0xf0] ss:$8 sps:$4 sm:$0xff]  }
 0x17c   : > { %11813 = vst [vmem:[#allocation38_spill] sm:$0xff] %v8282_v45  ;;  %v8286_v31 = vpop.f32.mrb[62].mxu1  ;;  %v8289_v8 = vpop.f32.mrb[62].mxu0  ;;  %3604 = vmatpush1.bf16.msra.mxu0 %v7256_v26  ;;  %v1862_v45 = vadd.bf16 %v7862_v24, %v11823_v15 }
 0x17d   : > { %11814 = vst [vmem:[#allocation39_spill] sm:$0xff] %v8286_v31  ;;  %v8293_v42 = vpop.f32.mrb[63].mxu1  ;;  %v8298_v36 = vpop.f32.mrb[63].mxu0  ;;  %v1988_v31 = vmax.bf16 %v11779_v56, %v1860_v58  ;;  %6090 = vmatprep.subr.bf16.mxu0 %v11779_v56  ;;  %v1865_v58 = vadd.bf16 %v7815_v10, %v11822_v1 }
 0x17e   : > { %11815 = vst [vmem:[#allocation40_spill] sm:$0xff] %v8293_v42  ;;  %v1990_v54 = vmax.bf16 %v11779_v56, %v1862_v45  ;;  %v7262_v45 = vld [vmem:[%s11652_s7 + $0x74] ss:$8 sps:$4 sm:$0xff]  }
 0x17f   : > { %2419 = vmatmul.mubr.bf16.gmra.mrb[168].mxu1 %v1986_v18  ;;  %4874 = vmatprep.subr.bf16.mxu1 %v7262_v45 }
 0x180   : > { %2428 = vmatprep.mubr.bf16.mxu1 %v1989_v52  ;;  %4875 = vmatpush1.bf16.msra.mxu1 %v7260_v48 }
 0x182   : > { %v8318_v18 = vpop.f32.mrb[64].mxu1  ;;  %v8320_v52 = vpop.f32.mrb[64].mxu0 }
 0x183   : > { %11818 = vst [vmem:[#allocation41_spill] sm:$0xff] %v8318_v18  ;;  %v8322_v22 = vpop.f32.mrb[65].mxu1  ;;  %v8324_v7 = vpop.f32.mrb[65].mxu0 }
 0x184   : > { %11819 = vst [vmem:[#allocation42_spill] sm:$0xff] %v8322_v22  ;;  %v8326_v25 = vpop.f32.mrb[66].mxu1  ;;  %v8329_v2 = vpop.f32.mrb[66].mxu0 }
 0x185   : > { %11820 = vst [vmem:[#allocation43_spill] sm:$0xff] %v8326_v25  ;;  %v8333_v0 = vpop.f32.mrb[67].mxu1  ;;  %v8338_v42 = vpop.f32.mrb[67].mxu0 }
 0x186   : > { %11821 = vst [vmem:[#allocation44_spill] sm:$0xff] %v8333_v0  ;;  %v1705_v26 = vpack.c.bf16 %v8338_v42, %v8324_v7  ;;  %v1993_v42 = vmax.bf16 %v11779_v56, %v1865_v58  ;;  %v1867_v58 = vadd.bf16 %v7815_v10, %v1701_v6  ;;  %v11828_v7 = vpack.c.bf16 %v8212_v50, %v8203_v53 }
 0x187   : > { %2429 = vmatmul.mubr.bf16.gmra.mrb[172].mxu1 %v1988_v31 }
 0x188   : > { %2438 = vmatprep.mubr.bf16.mxu1 %v1991_v40  ;;  %v1864_v15 = vadd.bf16 %v7862_v24, %v11828_v7 }
 0x18a   : > { %v8353_v18 = vpop.f32.mrb[68].mxu1  ;;  %v8355_v25 = vpop.f32.mrb[68].mxu0  ;;  %v1992_v7 = vmax.bf16 %v11779_v56, %v1864_v15 }
 0x18b   : > { %11824 = vst [vmem:[#allocation45_spill] sm:$0xff] %v8353_v18  ;;  %v8357_v16 = vpop.f32.mrb[69].mxu1  ;;  %v8359_v22 = vpop.f32.mrb[69].mxu0 }
 0x18c   : > { %11825 = vst [vmem:[#allocation46_spill] sm:$0xff] %v8357_v16  ;;  %v8361_v31 = vpop.f32.mrb[70].mxu1  ;;  %v8364_v9 = vpop.f32.mrb[70].mxu0 }
 0x18d   : > { %11826 = vst [vmem:[#allocation47_spill] sm:$0xff] %v8361_v31  ;;  %v8368_v37 = vpop.f32.mrb[71].mxu1  ;;  %v8373_v40 = vpop.f32.mrb[71].mxu0 }
 0x18e   : > { %11827 = vst [vmem:[#allocation48_spill] sm:$0xff] %v8368_v37  ;;  %v1707_v1 = vpack.c.bf16 %v8373_v40, %v8359_v22  ;;  %v1995_v40 = vmax.bf16 %v11779_v56, %v1867_v58  ;;  %v11833_v58 = vpack.c.bf16 %v8298_v36, %v8284_v33  ;;  %v11839_v36 = vpack.c.bf16 %v8289_v8, %v8280_v39 }
 0x18f   : > { %2439 = vmatmul.mubr.bf16.gmra.mrb[176].mxu1 %v1990_v54 }
 0x190   : > { %2448 = vmatprep.mubr.bf16.mxu1 %v1993_v42  ;;  %v1869_v53 = vadd.bf16 %v7815_v10, %v11833_v58  ;;  %v1871_v58 = vadd.bf16 %v7815_v10, %v1705_v26  ;;  %v11844_v26 = vpack.c.bf16 %v8329_v2, %v8320_v52 }
 0x192   : > { %v8390_v18 = vpop.f32.mrb[72].mxu1  ;;  %v8392_v22 = vpop.f32.mrb[72].mxu0 }
 0x193   : > { %11829 = vst [vmem:[#allocation49_spill] sm:$0xff] %v8390_v18  ;;  %v8394_v42 = vpop.f32.mrb[73].mxu1  ;;  %v8396_v6 = vpop.f32.mrb[73].mxu0  ;;  %v11834_v18 = vpack.c.bf16 %v8255_v46, %v8243_v14 }
 0x194   : > { %11830 = vst [vmem:[#allocation50_spill] sm:$0xff] %v8394_v42  ;;  %v8398_v54 = vpop.f32.mrb[74].mxu1  ;;  %v8401_v31 = vpop.f32.mrb[74].mxu0 }
 0x195   : > { %11831 = vst [vmem:[#allocation51_spill] sm:$0xff] %v8398_v54  ;;  %v8405_v50 = vpop.f32.mrb[75].mxu1  ;;  %v1219_v16 = vpop.f32.mrb[75].mxu0  ;;  %v1866_v15 = vadd.bf16 %v7862_v24, %v11834_v18 }
 0x196   : > { %11832 = vst [vmem:[#allocation52_spill] sm:$0xff] %v8405_v50  ;;  %v1709_v37 = vpack.c.bf16 %v1219_v16, %v8396_v6  ;;  %v1997_v6 = vmax.bf16 %v11779_v56, %v1869_v53 }
 0x197   : > { %2449 = vmatmul.mubr.bf16.gmra.mrb[180].mxu1 %v1992_v7  ;;  %v1994_v14 = vmax.bf16 %v11779_v56, %v1866_v15  ;;  %v1868_v15 = vadd.bf16 %v7862_v24, %v11839_v36 }
 0x198   : > { %2458 = vmatprep.mubr.bf16.mxu1 %v1995_v40 }
 0x199   : > { %v1996_v8 = vmax.bf16 %v11779_v56, %v1868_v15  ;;  %v1870_v15 = vadd.bf16 %v7862_v24, %v11844_v26  ;;  %v11849_v26 = vpack.c.bf16 %v8364_v9, %v8355_v25  ;;  %v11854_v25 = vpack.c.bf16 %v8401_v31, %v8392_v22 }
 0x19a   : > { %v8421_v54 = vpop.f32.mrb[76].mxu1  ;;  %v8423_v45 = vpop.f32.mrb[76].mxu0 }
 0x19b   : > { %11835 = vst [vmem:[#allocation53_spill] sm:$0xff] %v8421_v54  ;;  %v8425_v0 = vpop.f32.mrb[77].mxu1  ;;  %v8427_v48 = vpop.f32.mrb[77].mxu0  ;;  %v1998_v2 = vmax.bf16 %v11779_v56, %v1870_v15  ;;  %v7266_v15 = vld [vmem:[%s11652_s7 + $0x84] ss:$8 sps:$4 sm:$0xff]  }
 0x19c   : > { %11836 = vst [vmem:[#allocation54_spill] sm:$0xff] %v8425_v0  ;;  %v8429_v16 = vpop.f32.mrb[78].mxu1  ;;  %v8432_v33 = vpop.f32.mrb[78].mxu0  ;;  %v1873_v0 = vadd.bf16 %v7815_v10, %v1707_v1  ;;  %v7264_v1 = vld [vmem:[%s11652_s7 + $0x80] ss:$8 sps:$4 sm:$0xff]   ;;  %4876 = vmatprep.subr.bf16.mxu1 %v7266_v15 }
 0x19d   : > { %11837 = vst [vmem:[#allocation55_spill] sm:$0xff] %v8429_v16  ;;  %v8436_v46 = vpop.f32.mrb[79].mxu1  ;;  %v8441_v40 = vpop.f32.mrb[79].mxu0  ;;  %4877 = vmatpush1.bf16.msra.mxu1 %v7264_v1 }
 0x19e   : > { %11838 = vst [vmem:[#allocation56_spill] sm:$0xff] %v8436_v46  ;;  %v1711_v53 = vpack.c.bf16 %v8441_v40, %v8427_v48  ;;  %v1999_v48 = vmax.bf16 %v11779_v56, %v1871_v58 }
 0x19f   : > { %2459 = vmatmul.mubr.bf16.gmra.mrb[184].mxu1 %v1994_v14 }
 0x1a0   : > { %2468 = vmatprep.mubr.bf16.mxu1 %v1997_v6 }
 0x1a2   : > { %v8452_v54 = vpop.f32.mrb[80].mxu1  ;;  %v8454_v18 = vpop.f32.mrb[80].mxu0 }
 0x1a3   : > { %11840 = vst [vmem:[#allocation57_spill] sm:$0xff] %v8452_v54  ;;  %v8456_v16 = vpop.f32.mrb[81].mxu1  ;;  %v8458_v42 = vpop.f32.mrb[81].mxu0 }
 0x1a4   : > { %11841 = vst [vmem:[#allocation58_spill] sm:$0xff] %v8456_v16  ;;  %v8460_v7 = vpop.f32.mrb[82].mxu1  ;;  %v8463_v6 = vpop.f32.mrb[82].mxu0  ;;  %v1875_v16 = vadd.bf16 %v7815_v10, %v1709_v37 }
 0x1a5   : > { %11842 = vst [vmem:[#allocation59_spill] sm:$0xff] %v8460_v7  ;;  %v8467_v39 = vpop.f32.mrb[83].mxu1  ;;  %v8472_v14 = vpop.f32.mrb[83].mxu0 }
 0x1a6   : > { %11843 = vst [vmem:[#allocation60_spill] sm:$0xff] %v8467_v39  ;;  %v1713_v58 = vpack.c.bf16 %v8472_v14, %v8458_v42  ;;  %v2001_v42 = vmax.bf16 %v11779_v56, %v1873_v0  ;;  %v1872_v14 = vadd.bf16 %v7862_v24, %v11849_v26 }
 0x1a7   : > { %2469 = vmatmul.mubr.bf16.gmra.mrb[188].mxu1 %v1996_v8 }
 0x1a8   : > { %2478 = vmatprep.mubr.bf16.mxu1 %v1999_v48  ;;  %v2000_v26 = vmax.bf16 %v11779_v56, %v1872_v14 }
 0x1aa   : > { %v8483_v54 = vpop.f32.mrb[84].mxu1  ;;  %v8485_v36 = vpop.f32.mrb[84].mxu0 }
 0x1ab   : > { %11845 = vst [vmem:[#allocation61_spill] sm:$0xff] %v8483_v54  ;;  %v8487_v7 = vpop.f32.mrb[85].mxu1  ;;  %v8489_v46 = vpop.f32.mrb[85].mxu0 }
 0x1ac   : > { %11846 = vst [vmem:[#allocation62_spill] sm:$0xff] %v8487_v7  ;;  %v8491_v40 = vpop.f32.mrb[86].mxu1  ;;  %v8494_v48 = vpop.f32.mrb[86].mxu0 }
 0x1ad   : > { %11847 = vst [vmem:[#allocation63_spill] sm:$0xff] %v8491_v40  ;;  %v8498_v52 = vpop.f32.mrb[87].mxu1  ;;  %v8503_v8 = vpop.f32.mrb[87].mxu0 }
 0x1ae   : > { %11848 = vst [vmem:[#allocation64_spill] sm:$0xff] %v8498_v52  ;;  %v1715_v0 = vpack.c.bf16 %v8503_v8, %v8489_v46  ;;  %v2003_v8 = vmax.bf16 %v11779_v56, %v1875_v16  ;;  %v1877_v16 = vadd.bf16 %v7815_v10, %v1711_v53  ;;  %v11859_v53 = vpack.c.bf16 %v8432_v33, %v8423_v45 }
 0x1af   : > { %2479 = vmatmul.mubr.bf16.gmra.mrb[192].mxu1 %v1998_v2 }
 0x1b0   : > { %2488 = vmatprep.mubr.bf16.mxu1 %v2001_v42 }
 0x1b2   : > { %v8520_v54 = vpop.f32.mrb[88].mxu1  ;;  %v8522_v46 = vpop.f32.mrb[88].mxu0 }
 0x1b3   : > { %11850 = vst [vmem:[#allocation65_spill] sm:$0xff] %v8520_v54  ;;  %v8524_v42 = vpop.f32.mrb[89].mxu1  ;;  %v8526_v37 = vpop.f32.mrb[89].mxu0  ;;  %v1874_v54 = vadd.bf16 %v7862_v24, %v11854_v25 }
 0x1b4   : > { %11851 = vst [vmem:[#allocation66_spill] sm:$0xff] %v8524_v42  ;;  %v8528_v2 = vpop.f32.mrb[90].mxu1  ;;  %v8531_v40 = vpop.f32.mrb[90].mxu0  ;;  %v1879_v42 = vadd.bf16 %v7815_v10, %v1713_v58  ;;  %v11864_v58 = vpack.c.bf16 %v8463_v6, %v8454_v18 }
 0x1b5   : > { %11852 = vst [vmem:[#allocation67_spill] sm:$0xff] %v8528_v2  ;;  %v8535_v9 = vpop.f32.mrb[91].mxu1  ;;  %v1259_v7 = vpop.f32.mrb[91].mxu0  ;;  %v2002_v22 = vmax.bf16 %v11779_v56, %v1874_v54  ;;  %v1876_v54 = vadd.bf16 %v7862_v24, %v11859_v53 }
 0x1b6   : > { %11853 = vst [vmem:[#allocation68_spill] sm:$0xff] %v8535_v9  ;;  %v1717_v52 = vpack.c.bf16 %v1259_v7, %v8526_v37  ;;  %v2005_v7 = vmax.bf16 %v11779_v56, %v1877_v16 }
 0x1b7   : > { %2489 = vmatmul.mubr.bf16.gmra.mrb[196].mxu1 %v2000_v26  ;;  %v2004_v33 = vmax.bf16 %v11779_v56, %v1876_v54  ;;  %v1878_v54 = vadd.bf16 %v7862_v24, %v11864_v58  ;;  %v11869_v58 = vpack.c.bf16 %v8494_v48, %v8485_v36  ;;  %v11874_v36 = vpack.c.bf16 %v8531_v40, %v8522_v46 }
 0x1b8   : > { %2498 = vmatprep.mubr.bf16.mxu1 %v2003_v8 }
 0x1b9   : > { %v2006_v6 = vmax.bf16 %v11779_v56, %v1878_v54  ;;  %v7270_v54 = vld [vmem:[%s11652_s7 + $0x94] ss:$8 sps:$4 sm:$0xff]  }
 0x1ba   : > { %v8548_v2 = vpop.f32.mrb[92].mxu1  ;;  %v8550_v14 = vpop.f32.mrb[92].mxu0  ;;  %4878 = vmatprep.subr.bf16.mxu1 %v7270_v54 }
 0x1bb   : > { %11855 = vst [vmem:[#allocation69_spill] sm:$0xff] %v8548_v2  ;;  %v8552_v15 = vpop.f32.mrb[93].mxu1  ;;  %v8554_v39 = vpop.f32.mrb[93].mxu0 }
 0x1bc   : > { %11856 = vst [vmem:[#allocation70_spill] sm:$0xff] %v8552_v15  ;;  %v8556_v1 = vpop.f32.mrb[94].mxu1  ;;  %v8559_v37 = vpop.f32.mrb[94].mxu0  ;;  %v1881_v15 = vadd.bf16 %v7815_v10, %v1715_v0  ;;  %v7268_v0 = vld [vmem:[%s11652_s7 + $0x90] ss:$8 sps:$4 sm:$0xff]  }
 0x1bd   : > { %11857 = vst [vmem:[#allocation71_spill] sm:$0xff] %v8556_v1  ;;  %v8563_v31 = vpop.f32.mrb[95].mxu1  ;;  %v8568_v25 = vpop.f32.mrb[95].mxu0  ;;  %4879 = vmatpush1.bf16.msra.mxu1 %v7268_v0 }
 0x1be   : > { %11858 = vst [vmem:[#allocation72_spill] sm:$0xff] %v8563_v31  ;;  %v1719_v16 = vpack.c.bf16 %v8568_v25, %v8554_v39  ;;  %v2007_v39 = vmax.bf16 %v11779_v56, %v1879_v42 }
 0x1bf   : > { %2499 = vmatmul.mubr.bf16.gmra.mrb[200].mxu1 %v2002_v22 }
 0x1c0   : > { %2508 = vmatprep.mubr.bf16.mxu1 %v2005_v7 }
 0x1c2   : > { %v8579_v2 = vpop.f32.mrb[96].mxu1  ;;  %v8581_v8 = vpop.f32.mrb[96].mxu0 }
 0x1c3   : > { %11860 = vst [vmem:[#allocation73_spill] sm:$0xff] %v8579_v2  ;;  %v8583_v1 = vpop.f32.mrb[97].mxu1  ;;  %v8585_v9 = vpop.f32.mrb[97].mxu0 }
 0x1c4   : > { %11861 = vst [vmem:[#allocation74_spill] sm:$0xff] %v8583_v1  ;;  %v8587_v26 = vpop.f32.mrb[98].mxu1  ;;  %v8590_v7 = vpop.f32.mrb[98].mxu0  ;;  %v1883_v1 = vadd.bf16 %v7815_v10, %v1717_v52 }
 0x1c5   : > { %11862 = vst [vmem:[#allocation75_spill] sm:$0xff] %v8587_v26  ;;  %v8594_v45 = vpop.f32.mrb[99].mxu1  ;;  %v8599_v22 = vpop.f32.mrb[99].mxu0 }
 0x1c6   : > { %11863 = vst [vmem:[#allocation76_spill] sm:$0xff] %v8594_v45  ;;  %v1721_v42 = vpack.c.bf16 %v8599_v22, %v8585_v9  ;;  %v2009_v9 = vmax.bf16 %v11779_v56, %v1881_v15  ;;  %v1880_v22 = vadd.bf16 %v7862_v24, %v11869_v58 }
 0x1c7   : > { %2509 = vmatmul.mubr.bf16.gmra.mrb[204].mxu1 %v2004_v33 }
 0x1c8   : > { %2518 = vmatprep.mubr.bf16.mxu1 %v2007_v39  ;;  %v2008_v58 = vmax.bf16 %v11779_v56, %v1880_v22 }
 0x1ca   : > { %v8610_v2 = vpop.f32.mrb[100].mxu1  ;;  %v8612_v53 = vpop.f32.mrb[100].mxu0 }
 0x1cb   : > { %11865 = vst [vmem:[#allocation77_spill] sm:$0xff] %v8610_v2  ;;  %v8614_v26 = vpop.f32.mrb[101].mxu1  ;;  %v8616_v31 = vpop.f32.mrb[101].mxu0 }
 0x1cc   : > { %11866 = vst [vmem:[#allocation78_spill] sm:$0xff] %v8614_v26  ;;  %v8618_v25 = vpop.f32.mrb[102].mxu1  ;;  %v8621_v39 = vpop.f32.mrb[102].mxu0 }
 0x1cd   : > { %11867 = vst [vmem:[#allocation79_spill] sm:$0xff] %v8618_v25  ;;  %v8625_v18 = vpop.f32.mrb[103].mxu1  ;;  %v8630_v33 = vpop.f32.mrb[103].mxu0 }
 0x1ce   : > { %11868 = vst [vmem:[#allocation80_spill] sm:$0xff] %v8625_v18  ;;  %v1723_v15 = vpack.c.bf16 %v8630_v33, %v8616_v31  ;;  %v2011_v33 = vmax.bf16 %v11779_v56, %v1883_v1  ;;  %v1885_v1 = vadd.bf16 %v7815_v10, %v1719_v16  ;;  %v11879_v16 = vpack.c.bf16 %v8559_v37, %v8550_v14 }
 0x1cf   : > { %2519 = vmatmul.mubr.bf16.gmra.mrb[208].mxu1 %v2006_v6 }
 0x1d0   : > { %2528 = vmatprep.mubr.bf16.mxu1 %v2009_v9 }
 0x1d2   : > { %v8647_v2 = vpop.f32.mrb[104].mxu1  ;;  %v8649_v31 = vpop.f32.mrb[104].mxu0 }
 0x1d3   : > { %11870 = vst [vmem:[#allocation81_spill] sm:$0xff] %v8647_v2  ;;  %v8651_v9 = vpop.f32.mrb[105].mxu1  ;;  %v8653_v52 = vpop.f32.mrb[105].mxu0  ;;  %v1882_v2 = vadd.bf16 %v7862_v24, %v11874_v36 }
 0x1d4   : > { %11871 = vst [vmem:[#allocation82_spill] sm:$0xff] %v8651_v9  ;;  %v8655_v6 = vpop.f32.mrb[106].mxu1  ;;  %v8658_v25 = vpop.f32.mrb[106].mxu0  ;;  %v1887_v9 = vadd.bf16 %v7815_v10, %v1721_v42  ;;  %v11884_v42 = vpack.c.bf16 %v8590_v7, %v8581_v8 }
 0x1d5   : > { %11872 = vst [vmem:[#allocation83_spill] sm:$0xff] %v8655_v6  ;;  %v8662_v48 = vpop.f32.mrb[107].mxu1  ;;  %v1299_v26 = vpop.f32.mrb[107].mxu0  ;;  %v2010_v46 = vmax.bf16 %v11779_v56, %v1882_v2  ;;  %v1884_v2 = vadd.bf16 %v7862_v24, %v11879_v16 }
 0x1d6   : > { %11873 = vst [vmem:[#allocation84_spill] sm:$0xff] %v8662_v48  ;;  %v1725_v18 = vpack.c.bf16 %v1299_v26, %v8653_v52  ;;  %v2013_v26 = vmax.bf16 %v11779_v56, %v1885_v1 }
 0x1d7   : > { %2529 = vmatmul.mubr.bf16.gmra.mrb[212].mxu1 %v2008_v58  ;;  %v2012_v37 = vmax.bf16 %v11779_v56, %v1884_v2  ;;  %v1886_v2 = vadd.bf16 %v7862_v24, %v11884_v42  ;;  %v11889_v42 = vpack.c.bf16 %v8621_v39, %v8612_v53 }
 0x1d8   : > { %2538 = vmatprep.mubr.bf16.mxu1 %v2011_v33 }
 0x1d9   : > { %v2014_v7 = vmax.bf16 %v11779_v56, %v1886_v2  ;;  %v7274_v2 = vld [vmem:[%s11652_s7 + $0xa4] ss:$8 sps:$4 sm:$0xff]  }
 0x1da   : > { %v8675_v6 = vpop.f32.mrb[108].mxu1  ;;  %v8677_v22 = vpop.f32.mrb[108].mxu0  ;;  %4880 = vmatprep.subr.bf16.mxu1 %v7274_v2  ;;  %v6942_v2 = vld.sshfl [vmem:[%s11649_s4] sm:$0x11 pattern:$0x75316420] }
 0x1db   : > { %11875 = vst [vmem:[#allocation85_spill] sm:$0xff] %v8675_v6  ;;  %v8679_v54 = vpop.f32.mrb[109].mxu1  ;;  %v8681_v45 = vpop.f32.mrb[109].mxu0 }
 0x1dc   : > { %11876 = vst [vmem:[#allocation86_spill] sm:$0xff] %v8679_v54  ;;  %v8683_v0 = vpop.f32.mrb[110].mxu1  ;;  %v8686_v52 = vpop.f32.mrb[110].mxu0  ;;  %v1889_v54 = vadd.bf16 %v7815_v10, %v1723_v15  ;;  %v7272_v15 = vld [vmem:[%s11652_s7 + $0xa0] ss:$8 sps:$4 sm:$0xff]  }
 0x1dd   : > { %11877 = vst [vmem:[#allocation87_spill] sm:$0xff] %v8683_v0  ;;  %v8690_v40 = vpop.f32.mrb[111].mxu1  ;;  %v8695_v36 = vpop.f32.mrb[111].mxu0  ;;  %4881 = vmatpush1.bf16.msra.mxu1 %v7272_v15 }
 0x1de   : > { %11878 = vst [vmem:[#allocation88_spill] sm:$0xff] %v8690_v40  ;;  %v1727_v1 = vpack.c.bf16 %v8695_v36, %v8681_v45  ;;  %v2015_v45 = vmax.bf16 %v11779_v56, %v1887_v9 }
 0x1df   : > { %2539 = vmatmul.mubr.bf16.gmra.mrb[216].mxu1 %v2010_v46 }
 0x1e0   : > { %2548 = vmatprep.mubr.bf16.mxu1 %v2013_v26  ;;  %v1893_v53 = vadd.bf16 %v7815_v10, %v1727_v1 }
 0x1e2   : > { %v8706_v6 = vpop.f32.mrb[112].mxu1  ;;  %v8708_v33 = vpop.f32.mrb[112].mxu0  ;;  %v2021_v1 = vmax.bf16 %v11779_v56, %v1893_v53 }
 0x1e3   : > { %11880 = vst [vmem:[#allocation89_spill] sm:$0xff] %v8706_v6  ;;  %v8710_v0 = vpop.f32.mrb[113].mxu1  ;;  %v8712_v48 = vpop.f32.mrb[113].mxu0 }
 0x1e4   : > { %11881 = vst [vmem:[#allocation90_spill] sm:$0xff] %v8710_v0  ;;  %v8714_v58 = vpop.f32.mrb[114].mxu1  ;;  %v8717_v26 = vpop.f32.mrb[114].mxu0  ;;  %v1888_v0 = vadd.bf16 %v7862_v24, %v11889_v42 }
 0x1e5   : > { %11882 = vst [vmem:[#allocation91_spill] sm:$0xff] %v8714_v58  ;;  %v8721_v14 = vpop.f32.mrb[115].mxu1  ;;  %v8726_v46 = vpop.f32.mrb[115].mxu0 }
 0x1e6   : > { %11883 = vst [vmem:[#allocation92_spill] sm:$0xff] %v8721_v14  ;;  %v1891_v14 = vadd.bf16 %v7815_v10, %v1725_v18  ;;  %v2016_v42 = vmax.bf16 %v11779_v56, %v1888_v0  ;;  %v3096_v0 = vcombine.high %v6942_v2, %v6942_v2 }
 0x1e7   : > { %2549 = vmatmul.mubr.bf16.gmra.mrb[220].mxu1 %v2012_v37  ;;  %v2017_v37 = vmax.bf16 %v11779_v56, %v1889_v54 }
 0x1e8   : > { %2558 = vmatprep.mubr.bf16.mxu1 %v2015_v45 }
 0x1ea   : > { %v8737_v6 = vpop.f32.mrb[116].mxu1  ;;  %v8739_v16 = vpop.f32.mrb[116].mxu0 }
 0x1eb   : > { %11885 = vst [vmem:[#allocation93_spill] sm:$0xff] %v8737_v6  ;;  %v8741_v58 = vpop.f32.mrb[117].mxu1  ;;  %v8743_v40 = vpop.f32.mrb[117].mxu0 }
 0x1ec   : > { %11886 = vst [vmem:[#allocation94_spill] sm:$0xff] %v8741_v58  ;;  %v8745_v36 = vpop.f32.mrb[118].mxu1  ;;  %v8748_v45 = vpop.f32.mrb[118].mxu0 }
 0x1ed   : > { %11887 = vst [vmem:[#allocation95_spill] sm:$0xff] %v8745_v36  ;;  %v8752_v8 = vpop.f32.mrb[119].mxu1  ;;  %v8757_v9 = vpop.f32.mrb[119].mxu0  ;;  %v2019_v36 = vmax.bf16 %v11779_v56, %v1891_v14  ;;  %v3103_v14 = vrot.slane %v6942_v2, %v7759_v30  ;;  %v11898_v2 = vpack.c.bf16 %v8686_v52, %v8677_v22 }
 0x1ee   : > { %11888 = vst [vmem:[#allocation96_spill] sm:$0xff] %v8752_v8 }
 0x1ef   : > { %2559 = vmatmul.mubr.bf16.gmra.mrb[224].mxu1 %v2014_v7 }
 0x1f0   : > { %2568 = vmatprep.mubr.bf16.mxu1 %v2017_v37 }
 0x1f2   : > { %v8774_v6 = vpop.f32.mrb[120].mxu1  ;;  %v8776_v54 = vpop.f32.mrb[120].mxu0 }
 0x1f3   : > { %11890 = vst [vmem:[#allocation97_spill] sm:$0xff] %v8774_v6  ;;  %v8778_v37 = vpop.f32.mrb[121].mxu1  ;;  %v8780_v18 = vpop.f32.mrb[121].mxu0  ;;  %v11894_v6 = vpack.c.bf16 %v8658_v25, %v8649_v31  ;;  %v11897_v25 = vpack.c.bf16 %v8726_v46, %v8712_v48 }
 0x1f4   : > { %11891 = vst [vmem:[#allocation98_spill] sm:$0xff] %v8778_v37  ;;  %v8782_v7 = vpop.f32.mrb[122].mxu1  ;;  %v8785_v58 = vpop.f32.mrb[122].mxu0 }
 0x1f5   : > { %11892 = vst [vmem:[#allocation99_spill] sm:$0xff] %v8782_v7  ;;  %v8789_v39 = vpop.f32.mrb[123].mxu1  ;;  %v8797_v8 = vpop.f32.mrb[123].mxu0  ;;  %v1890_v7 = vadd.bf16 %v7862_v24, %v11894_v6 }
 0x1f6   : > { %11893 = vst [vmem:[#allocation100_spill] sm:$0xff] %v8789_v39 }
 0x1f7   : > { %2569 = vmatmul.mubr.bf16.gmra.mrb[228].mxu1 %v2016_v42  ;;  %v2018_v6 = vmax.bf16 %v11779_v56, %v1890_v7 }
 0x1f8   : > { %2578 = vmatprep.mubr.bf16.mxu1 %v2019_v36  ;;  %v3110_v36 = vrot.slane %v3096_v0, %v7759_v30  ;;  %v3112_v0 = vpack.i.b16 %v3103_v14, %v3103_v14 }
 0x1fa   : > { %v8808_v43 = vpop.f32.mrb[124].mxu1  ;;  %v8810_v15 = vpop.f32.mrb[124].mxu0  ;;  %v3119_v7 = vpack.i.b16 %v3110_v36, %v3110_v36  ;;  %v8845_v28 = vrot.slane %v3112_v0, %v7790_v47  ;;  %v11900_v0 = vpack.c.bf16 %v8717_v26, %v8708_v33 }
 0x1fb   : > { %11895 = vst [vmem:[#allocation101_spill] sm:$0xff] %v8808_v43  ;;  %v8812_v35 = vpop.f32.mrb[125].mxu1  ;;  %v8815_v37 = vpop.f32.mrb[125].mxu0  ;;  %v1895_v43 = vadd.bf16 %v7815_v10, %v11897_v25 }
 0x1fc   : > { %v8817_v42 = vpop.f32.mrb[126].mxu1  ;;  %v8821_v50 = vpop.f32.mrb[126].mxu0  ;;  %v8848_v14 = vrot.slane %v3119_v7, %v7790_v47 }
 0x1fd   : > { %11896 = vst [vmem:[#allocation102_spill] sm:$0xff] %v8817_v42  ;;  %v8825_v31 = vpop.f32.mrb[127].mxu1  ;;  %v8830_v39 = vpop.f32.mrb[127].mxu0  ;;  %v1892_v42 = vadd.bf16 %v7862_v24, %v11898_v2 }
 0x1ff   : > { %2579 = vmatmul.mubr.bf16.gmra.mrb[232].mxu1 %v2018_v6  ;;  %v2020_v36 = vmax.bf16 %v11779_v56, %v1892_v42  ;;  %v11899_v6 = vpack.c.bf16 %v8757_v9, %v8743_v40 }
 0x200   : > { %2588 = vmatprep.mubr.bf16.mxu1 %v2021_v1  ;;  %v2023_v1 = vmax.bf16 %v11779_v56, %v1895_v43 }
 0x201   : > { %v1897_v2 = vadd.bf16 %v7815_v10, %v11899_v6  ;;  %v7276_v6 = vld [vmem:[%s11652_s7 + $0xb0] ss:$8 sps:$4 sm:$0xff]  }
 0x202   : > { %v2320_v30 = vpop.f32.mrb[128].mxu1 }
 0x203   : > { %v2322_v21 = vpop.f32.mrb[129].mxu1  ;;  %v2025_v40 = vmax.bf16 %v11779_v56, %v1897_v2  ;;  %v7278_v2 = vld [vmem:[%s11652_s7 + $0xb4] ss:$8 sps:$4 sm:$0xff]  }
 0x204   : > { %v2324_v53 = vpop.f32.mrb[130].mxu1  ;;  %4882 = vmatprep.subr.bf16.mxu1 %v7278_v2 }
 0x205   : > { %v2959_v48 = vpack.c.bf16 %v2324_v53, %v2320_v30  ;;  %v2326_v46 = vpop.f32.mrb[131].mxu1  ;;  %v1894_v30 = vadd.bf16 %v7862_v24, %v11900_v0  ;;  %v11902_v0 = vpack.c.bf16 %v8748_v45, %v8739_v16  ;;  %4883 = vmatpush1.bf16.msra.mxu1 %v7276_v6  ;;  %v7275_v6 = vld [vmem:[%s11654_s9 + $0x20] sm:$0xff]  }
 0x206   : > { %v2960_v25 = vpack.c.bf16 %v2326_v46, %v2322_v21  ;;  %v7259_v21 = vld [vmem:[%s11654_s9] sm:$0xff]   ;;  %v7263_v46 = vld [vmem:[%s11654_s9 + $0x8] sm:$0xff]  }
 0x207   : > { %v3125_v22 = vadd.bf16 %v8845_v28, %v2959_v48  ;;  %2589 = vmatmul.mubr.bf16.gmra.mrb[236].mxu1 %v2020_v36  ;;  %v2022_v33 = vmax.bf16 %v11779_v56, %v1894_v30  ;;  %v1896_v30 = vadd.bf16 %v7862_v24, %v11902_v0 }
 0x208   : > { %v3126_v52 = vadd.bf16 %v8848_v14, %v2960_v25  ;;  %2598 = vmatprep.mubr.bf16.mxu1 %v2023_v1 }
 0x209   : > { %v3253_v53 = vmax.bf16 %v11779_v56, %v3125_v22  ;;  %v11901_v22 = vpack.c.bf16 %v8797_v8, %v8780_v18  ;;  %v7267_v8 = vld [vmem:[%s11654_s9 + $0x10] sm:$0xff]  }
 0x20a   : > { %v2330_v43 = vpop.f32.mrb[132].mxu1  ;;  %v3254_v42 = vmax.bf16 %v11779_v56, %v3126_v52 }
 0x20b   : > { %v2332_v7 = vpop.f32.mrb[133].mxu1  ;;  %v1899_v52 = vadd.bf16 %v7815_v10, %v11901_v22 }
 0x20c   : > { %v2334_v1 = vpop.f32.mrb[134].mxu1  ;;  %3605 = vmatprep.mubr.bf16.mxu0 %v3254_v42 }
 0x20d   : > { %v2961_v9 = vpack.c.bf16 %v2334_v1, %v2330_v43  ;;  %v2336_v48 = vpop.f32.mrb[135].mxu1  ;;  %3606 = vmatmul.mubr.bf16.vlgmr.msra.gmra.mrb[128].mxu0 %v3253_v53  ;;  %v2027_v16 = vmax.bf16 %v11779_v56, %v1899_v52  ;;  %v2024_v1 = vmax.bf16 %v11779_v56, %v1896_v30 }
 0x20e   : > { %v2962_v26 = vpack.c.bf16 %v2336_v48, %v2332_v7  ;;  %6091 = vmatpush1.bf16.msra.mxu0 %v7259_v21 }
 0x20f   : > { %v3127_v36 = vadd.bf16 %v8845_v28, %v2961_v9  ;;  %2599 = vmatmul.mubr.bf16.gmra.mrb[240].mxu1 %v2022_v33  ;;  %6092 = vmatprep.subr.bf16.mxu0 %v11779_v56  ;;  %v7271_v9 = vld [vmem:[%s11654_s9 + $0x18] sm:$0xff]  }
 0x210   : > { %v3128_v25 = vadd.bf16 %v8848_v14, %v2962_v26  ;;  %2608 = vmatprep.mubr.bf16.mxu1 %v2025_v40  ;;  %v11903_v26 = vpack.c.bf16 %v8830_v39, %v8815_v37 }
 0x211   : > { %v3255_v21 = vmax.bf16 %v11779_v56, %v3127_v36  ;;  %v11904_v36 = vpack.c.bf16 %v8785_v58, %v8776_v54 }
 0x212   : > { %v2340_v43 = vpop.f32.mrb[136].mxu1  ;;  %v3256_v42 = vmax.bf16 %v11779_v56, %v3128_v25  ;;  %6093 = vmatpush1.bf16.msra.mxu0 %v7263_v46  ;;  %v1901_v46 = vadd.bf16 %v7815_v10, %v11903_v26 }
 0x213   : > { %v2342_v18 = vpop.f32.mrb[137].mxu1  ;;  %6094 = vmatprep.subr.bf16.mxu0 %v11779_v56  ;;  %v1898_v25 = vadd.bf16 %v7862_v24, %v11904_v36 }
 0x214   : > { %v2344_v53 = vpop.f32.mrb[138].mxu1  ;;  %3615 = vmatprep.mubr.bf16.mxu0 %v3256_v42  ;;  %v2029_v39 = vmax.bf16 %v11779_v56, %v1901_v46  ;;  %v11907_v46 = vpack.c.bf16 %v7704_v63, %v7694_v57 }
 0x215   : > { %v2963_v45 = vpack.c.bf16 %v2344_v53, %v2340_v43  ;;  %v2346_v7 = vpop.f32.mrb[139].mxu1  ;;  %3616 = vmatmul.mubr.bf16.gmra.mrb[132].mxu0 %v3255_v21  ;;  %v2026_v30 = vmax.bf16 %v11779_v56, %v1898_v25  ;;  %v11906_v53 = vpack.c.bf16 %v7710_v3, %v7698_v59  ;;  %v11908_v25 = vpack.c.bf16 %v7738_v20, %v7726_v13 }
 0x216   : > { %v2964_v40 = vpack.c.bf16 %v2346_v7, %v2342_v18  ;;  %6095 = vmatpush1.bf16.msra.mxu0 %v7267_v8  ;;  %v11905_v18 = vpack.c.bf16 %v8821_v50, %v8810_v15  ;;  %v1902_v36 = vadd.bf16 %v7862_v24, %v11907_v46 }
 0x217   : > { %v3129_v48 = vadd.bf16 %v8845_v28, %v2963_v45  ;;  %2609 = vmatmul.mubr.bf16.gmra.mrb[244].mxu1 %v2024_v1  ;;  %6096 = vmatprep.subr.bf16.mxu0 %v11779_v56 }
 0x218   : > { %v3130_v33 = vadd.bf16 %v8848_v14, %v2964_v40  ;;  %2618 = vmatprep.mubr.bf16.mxu1 %v2027_v16  ;;  %v1900_v21 = vadd.bf16 %v7862_v24, %v11905_v18  ;;  %v1903_v16 = vadd.bf16 %v7815_v10, %v11906_v53 }
 0x219   : > { %v3257_v0 = vmax.bf16 %v11779_v56, %v3129_v48 }
 0x21a   : > { %v2350_v22 = vpop.f32.mrb[140].mxu1  ;;  %v3258_v52 = vmax.bf16 %v11779_v56, %v3130_v33  ;;  %6097 = vmatpush1.bf16.msra.mxu0 %v7271_v9  ;;  %v2028_v50 = vmax.bf16 %v11779_v56, %v1900_v21  ;;  %v2031_v26 = vmax.bf16 %v11779_v56, %v1903_v16  ;;  %v11910_v21 = vpack.c.bf16 %v7777_v41, %v7765_v34 }
 0x21b   : > { %v2352_v2 = vpop.f32.mrb[141].mxu1  ;;  %6098 = vmatprep.subr.bf16.mxu0 %v11779_v56 }
 0x21c   : > { %v2354_v37 = vpop.f32.mrb[142].mxu1  ;;  %3625 = vmatprep.mubr.bf16.mxu0 %v3258_v52  ;;  %v1907_v53 = vadd.bf16 %v7815_v10, %v11910_v21  ;;  %v11916_v21 = vpack.c.bf16 %v7891_v4, %v7876_v19 }
 0x21d   : > { %v2965_v58 = vpack.c.bf16 %v2354_v37, %v2350_v22  ;;  %v2356_v54 = vpop.f32.mrb[143].mxu1  ;;  %3626 = vmatmul.mubr.bf16.gmra.mrb[136].mxu0 %v3257_v0  ;;  %v1905_v22 = vadd.bf16 %v7815_v10, %v11908_v25 }
 0x21e   : > { %v2966_v43 = vpack.c.bf16 %v2356_v54, %v2352_v2  ;;  %6099 = vmatpush1.bf16.msra.mxu0 %v7275_v6  ;;  %v2035_v41 = vmax.bf16 %v11779_v56, %v1907_v53  ;;  %v1913_v53 = vadd.bf16 %v7815_v10, %v11916_v21 }
 0x21f   : > { %v3131_v42 = vadd.bf16 %v8845_v28, %v2965_v58  ;;  %2619 = vmatmul.mubr.bf16.gmra.mrb[248].mxu1 %v2026_v30  ;;  %6100 = vmatprep.subr.bf16.mxu0 %v11779_v56  ;;  %v2033_v63 = vmax.bf16 %v11779_v56, %v1905_v22  ;;  %v7279_v30 = vld [vmem:[%s11654_s9 + $0x28] sm:$0xff]  }
 0x220   : > { %v3132_v8 = vadd.bf16 %v8848_v14, %v2966_v43  ;;  %2628 = vmatprep.mubr.bf16.mxu1 %v2029_v39  ;;  %v2030_v39 = vmax.bf16 %v11779_v56, %v1902_v36  ;;  %v7280_v43 = vld [vmem:[%s11652_s7 + $0xc0] ss:$8 sps:$4 sm:$0xff]  }
 0x221   : > { %v3259_v40 = vmax.bf16 %v11779_v56, %v3131_v42  ;;  %v7282_v42 = vld [vmem:[%s11652_s7 + $0xc4] ss:$8 sps:$4 sm:$0xff]  }
 0x222   : > { %v2360_v45 = vpop.f32.mrb[144].mxu1  ;;  %v3260_v7 = vmax.bf16 %v11779_v56, %v3132_v8  ;;  %v11909_v8 = vpack.c.bf16 %v7732_v17, %v7722_v11  ;;  %6101 = vmatpush1.bf16.msra.mxu0 %v7279_v30  ;;  %4884 = vmatprep.subr.bf16.mxu1 %v7282_v42 }
 0x223   : > { %v2362_v1 = vpop.f32.mrb[145].mxu1  ;;  %4885 = vmatpush1.bf16.msra.mxu1 %v7280_v43  ;;  %6102 = vmatprep.subr.bf16.mxu0 %v11779_v56 }
 0x224   : > { %v2364_v9 = vpop.f32.mrb[146].mxu1  ;;  %3635 = vmatprep.mubr.bf16.mxu0 %v3260_v7  ;;  %v1904_v18 = vadd.bf16 %v7862_v24, %v11909_v8  ;;  %v11915_v8 = vpack.c.bf16 %v7844_v44, %v7834_v27  ;;  %v2041_v44 = vmax.bf16 %v11779_v56, %v1913_v53  ;;  %v11928_v53 = vld [vmem:[#allocation12_spill] sm:$0xff] }
 0x225   : > { %v2967_v48 = vpack.c.bf16 %v2364_v9, %v2360_v45  ;;  %v2366_v33 = vpop.f32.mrb[147].mxu1  ;;  %3636 = vmatmul.mubr.bf16.gmra.mrb[140].mxu0 %v3259_v40 }
 0x226   : > { %v2968_v15 = vpack.c.bf16 %v2366_v33, %v2362_v1  ;;  %v2032_v11 = vmax.bf16 %v11779_v56, %v1904_v18  ;;  %v1910_v18 = vadd.bf16 %v7862_v24, %v11915_v8  ;;  %v11926_v8 = vld [vmem:[#allocation5_spill] sm:$0xff] }
 0x227   : > { %v3133_v59 = vadd.bf16 %v8845_v28, %v2967_v48  ;;  %2629 = vmatmul.mubr.bf16.gmra.mrb[252].mxu1 %v2028_v50  ;;  %v11911_v50 = vpack.c.bf16 %v7771_v38, %v7761_v32 }
 0x228   : > { %v3134_v3 = vadd.bf16 %v8848_v14, %v2968_v15  ;;  %2638 = vmatprep.mubr.bf16.mxu1 %v2031_v26  ;;  %v11912_v26 = vpack.c.bf16 %v7808_v62, %v7796_v51 }
 0x229   : > { %v3261_v0 = vmax.bf16 %v11779_v56, %v3133_v59  ;;  %v1906_v15 = vadd.bf16 %v7862_v24, %v11911_v50 }
 0x22a   : > { %v2370_v52 = vpop.f32.mrb[148].mxu1  ;;  %v3262_v6 = vmax.bf16 %v11779_v56, %v3134_v3  ;;  %v1909_v59 = vadd.bf16 %v7815_v10, %v11912_v26 }
 0x22b   : > { %v2372_v2 = vpop.f32.mrb[149].mxu1 }
 0x22c   : > { %v2374_v37 = vpop.f32.mrb[150].mxu1  ;;  %3645 = vmatprep.mubr.bf16.mxu0 %v3262_v6  ;;  %v2037_v38 = vmax.bf16 %v11779_v56, %v1909_v59 }
 0x22d   : > { %v2969_v58 = vpack.c.bf16 %v2374_v37, %v2370_v52  ;;  %v2376_v54 = vpop.f32.mrb[151].mxu1  ;;  %3646 = vmatmul.mubr.bf16.gmra.mrb[144].mxu0 %v3261_v0  ;;  %v2034_v52 = vmax.bf16 %v11779_v56, %v1906_v15  ;;  %v11913_v0 = vpack.c.bf16 %v7802_v55, %v7792_v49  ;;  %v11918_v15 = vpack.c.bf16 %v7942_v23, %v7928_v12 }
 0x22e   : > { %v2970_v57 = vpack.c.bf16 %v2376_v54, %v2372_v2 }
 0x22f   : > { %v3135_v13 = vadd.bf16 %v8845_v28, %v2969_v58  ;;  %2639 = vmatmul.mubr.bf16.gmra.mrb[0].mxu1 %v2030_v39  ;;  %v1908_v37 = vadd.bf16 %v7862_v24, %v11913_v0  ;;  %v11914_v39 = vpack.c.bf16 %v7851_v60, %v7838_v61  ;;  %v1915_v26 = vadd.bf16 %v7815_v10, %v11918_v15  ;;  %v11923_v0 = vld [vmem:[#allocation6_spill] sm:$0xff] }
 0x230   : > { %v3136_v20 = vadd.bf16 %v8848_v14, %v2970_v57  ;;  %2648 = vmatprep.mubr.bf16.mxu1 %v2033_v63 }
 0x231   : > { %v3263_v1 = vmax.bf16 %v11779_v56, %v3135_v13  ;;  %v1911_v58 = vadd.bf16 %v7815_v10, %v11914_v39  ;;  %v2036_v30 = vmax.bf16 %v11779_v56, %v1908_v37  ;;  %v2043_v12 = vmax.bf16 %v11779_v56, %v1915_v26 }
 0x232   : > { %v2380_v16 = vpop.f32.mrb[152].mxu1  ;;  %v3264_v45 = vmax.bf16 %v11779_v56, %v3136_v20 }
 0x233   : > { %v2382_v7 = vpop.f32.mrb[153].mxu1  ;;  %v2039_v55 = vmax.bf16 %v11779_v56, %v1911_v58 }
 0x234   : > { %v2384_v40 = vpop.f32.mrb[154].mxu1  ;;  %3655 = vmatprep.mubr.bf16.mxu0 %v3264_v45 }
 0x235   : > { %v2971_v17 = vpack.c.bf16 %v2384_v40, %v2380_v16  ;;  %v2386_v9 = vpop.f32.mrb[155].mxu1  ;;  %3656 = vmatmul.mubr.bf16.gmra.mrb[148].mxu0 %v3263_v1 }
 0x236   : > { %v2972_v34 = vpack.c.bf16 %v2386_v9, %v2382_v7 }
 0x237   : > { %v3137_v48 = vadd.bf16 %v8845_v28, %v2971_v17  ;;  %2649 = vmatmul.mubr.bf16.gmra.mrb[4].mxu1 %v2032_v11  ;;  %v2038_v11 = vmax.bf16 %v11779_v56, %v1910_v18 }
 0x238   : > { %v3138_v33 = vadd.bf16 %v8848_v14, %v2972_v34  ;;  %2658 = vmatprep.mubr.bf16.mxu1 %v2035_v41  ;;  %v7283_v34 = vld [vmem:[%s11654_s9 + $0x30] sm:$0xff]  }
 0x239   : > { %v3265_v25 = vmax.bf16 %v11779_v56, %v3137_v48  ;;  %v7284_v41 = vld [vmem:[%s11652_s7 + $0xd0] ss:$8 sps:$4 sm:$0xff]   ;;  %v7286_v48 = vld [vmem:[%s11652_s7 + $0xd4] ss:$8 sps:$4 sm:$0xff]   ;;  %6103 = vmatpush1.bf16.msra.mxu0 %v7283_v34 }
 0x23a   : > { %v2390_v3 = vpop.f32.mrb[156].mxu1  ;;  %v3266_v46 = vmax.bf16 %v11779_v56, %v3138_v33  ;;  %v11917_v33 = vpack.c.bf16 %v7880_v5, %v7872_v29  ;;  %4886 = vmatprep.subr.bf16.mxu1 %v7286_v48  ;;  %6104 = vmatprep.subr.bf16.mxu0 %v11779_v56 }
 0x23b   : > { %v2392_v36 = vpop.f32.mrb[157].mxu1  ;;  %4887 = vmatpush1.bf16.msra.mxu1 %v7284_v41 }
 0x23c   : > { %v2394_v22 = vpop.f32.mrb[158].mxu1  ;;  %3665 = vmatprep.mubr.bf16.mxu0 %v3266_v46  ;;  %v1912_v50 = vadd.bf16 %v7862_v24, %v11917_v33  ;;  %v11931_v33 = vld [vmem:[#allocation11_spill] sm:$0xff] }
 0x23d   : > { %v2973_v6 = vpack.c.bf16 %v2394_v22, %v2390_v3  ;;  %v2396_v2 = vpop.f32.mrb[159].mxu1  ;;  %3666 = vmatmul.mubr.bf16.gmra.mrb[152].mxu0 %v3265_v25 }
 0x23e   : > { %v2974_v32 = vpack.c.bf16 %v2396_v2, %v2392_v36  ;;  %v2040_v29 = vmax.bf16 %v11779_v56, %v1912_v50  ;;  %v11919_v2 = vld [vmem:[#allocation4_spill] sm:$0xff]  ;;  %v11932_v50 = vld [vmem:[#allocation9_spill] sm:$0xff] }
 0x23f   : > { %v3139_v51 = vadd.bf16 %v8845_v28, %v2973_v6  ;;  %2659 = vmatmul.mubr.bf16.gmra.mrb[8].mxu1 %v2034_v52  ;;  %v11933_v15 = vpack.c.bf16 %v11931_v33, %v11932_v50 }
 0x240   : > { %v3140_v62 = vadd.bf16 %v8848_v14, %v2974_v32  ;;  %2668 = vmatprep.mubr.bf16.mxu1 %v2037_v38  ;;  %v11920_v32 = vld [vmem:[#allocation3_spill] sm:$0xff] }
 0x241   : > { %v3267_v13 = vmax.bf16 %v11779_v56, %v3139_v51  ;;  %v11921_v38 = vpack.c.bf16 %v11919_v2, %v11920_v32  ;;  %v1918_v26 = vadd.bf16 %v7862_v24, %v11933_v15 }
 0x242   : > { %v2400_v54 = vpop.f32.mrb[160].mxu1  ;;  %v3268_v57 = vmax.bf16 %v11779_v56, %v3140_v62  ;;  %v11922_v62 = vld [vmem:[#allocation8_spill] sm:$0xff] }
 0x243   : > { %v2402_v63 = vpop.f32.mrb[161].mxu1  ;;  %v1914_v51 = vadd.bf16 %v7862_v24, %v11921_v38  ;;  %v11924_v37 = vpack.c.bf16 %v11922_v62, %v11923_v0  ;;  %v7287_v62 = vld [vmem:[%s11654_s9 + $0x38] sm:$0xff]   ;;  %v7288_v0 = vld [vmem:[%s11652_s7 + $0xe0] ss:$8 sps:$4 sm:$0xff]  }
 0x244   : > { %v2404_v20 = vpop.f32.mrb[162].mxu1  ;;  %3675 = vmatprep.mubr.bf16.mxu0 %v3268_v57  ;;  %6105 = vmatpush1.bf16.msra.mxu0 %v7287_v62 }
 0x245   : > { %v2975_v43 = vpack.c.bf16 %v2404_v20, %v2400_v54  ;;  %v2406_v42 = vpop.f32.mrb[163].mxu1  ;;  %3676 = vmatmul.mubr.bf16.gmra.mrb[156].mxu0 %v3267_v13  ;;  %v1917_v39 = vadd.bf16 %v7815_v10, %v11924_v37  ;;  %v2042_v20 = vmax.bf16 %v11779_v56, %v1914_v51  ;;  %v7290_v37 = vld [vmem:[%s11652_s7 + $0xe4] ss:$8 sps:$4 sm:$0xff]   ;;  %6106 = vmatprep.subr.bf16.mxu0 %v11779_v56 }
 0x246   : > { %v2976_v49 = vpack.c.bf16 %v2406_v42, %v2402_v63  ;;  %4888 = vmatprep.subr.bf16.mxu1 %v7290_v37 }
 0x247   : > { %v3141_v60 = vadd.bf16 %v8845_v28, %v2975_v43  ;;  %2669 = vmatmul.mubr.bf16.gmra.mrb[12].mxu1 %v2036_v30 }
 0x248   : > { %v3142_v61 = vadd.bf16 %v8848_v14, %v2976_v49  ;;  %2678 = vmatprep.mubr.bf16.mxu1 %v2039_v55  ;;  %v2045_v49 = vmax.bf16 %v11779_v56, %v1917_v39  ;;  %v11937_v39 = vld [vmem:[#allocation15_spill] sm:$0xff]  ;;  %4889 = vmatpush1.bf16.msra.mxu1 %v7288_v0 }
 0x249   : > { %v3269_v1 = vmax.bf16 %v11779_v56, %v3141_v60 }
 0x24a   : > { %v2410_v16 = vpop.f32.mrb[164].mxu1  ;;  %v3270_v45 = vmax.bf16 %v11779_v56, %v3142_v61  ;;  %v11925_v61 = vld [vmem:[#allocation7_spill] sm:$0xff] }
 0x24b   : > { %v2412_v7 = vpop.f32.mrb[165].mxu1  ;;  %v11927_v18 = vpack.c.bf16 %v11925_v61, %v11926_v8 }
 0x24c   : > { %v2414_v40 = vpop.f32.mrb[166].mxu1  ;;  %3685 = vmatprep.mubr.bf16.mxu0 %v3270_v45 }
 0x24d   : > { %v2977_v17 = vpack.c.bf16 %v2414_v40, %v2410_v16  ;;  %v2416_v9 = vpop.f32.mrb[167].mxu1  ;;  %3686 = vmatmul.mubr.bf16.gmra.mrb[160].mxu0 %v3269_v1  ;;  %v1916_v21 = vadd.bf16 %v7862_v24, %v11927_v18  ;;  %v11929_v16 = vld [vmem:[#allocation10_spill] sm:$0xff] }
 0x24e   : > { %v2978_v27 = vpack.c.bf16 %v2416_v9, %v2412_v7  ;;  %v11930_v45 = vpack.c.bf16 %v11928_v53, %v11929_v16 }
 0x24f   : > { %v3143_v19 = vadd.bf16 %v8845_v28, %v2977_v17  ;;  %2679 = vmatmul.mubr.bf16.gmra.mrb[16].mxu1 %v2038_v11 }
 0x250   : > { %v3144_v4 = vadd.bf16 %v8848_v14, %v2978_v27  ;;  %2688 = vmatprep.mubr.bf16.mxu1 %v2041_v44  ;;  %v1919_v7 = vadd.bf16 %v7815_v10, %v11930_v45  ;;  %v2044_v27 = vmax.bf16 %v11779_v56, %v1916_v21 }
 0x251   : > { %v3271_v36 = vmax.bf16 %v11779_v56, %v3143_v19 }
 0x252   : > { %v2420_v59 = vpop.f32.mrb[168].mxu1  ;;  %v3272_v3 = vmax.bf16 %v11779_v56, %v3144_v4  ;;  %v2047_v34 = vmax.bf16 %v11779_v56, %v1919_v7  ;;  %v11943_v7 = vld [vmem:[#allocation19_spill] sm:$0xff] }
 0x253   : > { %v2422_v46 = vpop.f32.mrb[169].mxu1 }
 0x254   : > { %v2424_v25 = vpop.f32.mrb[170].mxu1  ;;  %3695 = vmatprep.mubr.bf16.mxu0 %v3272_v3  ;;  %v11935_v3 = vld [vmem:[#allocation14_spill] sm:$0xff] }
 0x255   : > { %v2979_v5 = vpack.c.bf16 %v2424_v25, %v2420_v59  ;;  %v2426_v22 = vpop.f32.mrb[171].mxu1  ;;  %3696 = vmatmul.mubr.bf16.gmra.mrb[164].mxu0 %v3271_v36  ;;  %v11934_v59 = vld [vmem:[#allocation16_spill] sm:$0xff] }
 0x256   : > { %v2980_v23 = vpack.c.bf16 %v2426_v22, %v2422_v46  ;;  %v11936_v46 = vpack.c.bf16 %v11934_v59, %v11935_v3 }
 0x257   : > { %v3145_v52 = vadd.bf16 %v8845_v28, %v2979_v5  ;;  %2689 = vmatmul.mubr.bf16.gmra.mrb[20].mxu1 %v2040_v29 }
 0x258   : > { %v3146_v6 = vadd.bf16 %v8848_v14, %v2980_v23  ;;  %2698 = vmatprep.mubr.bf16.mxu1 %v2043_v12  ;;  %v1921_v36 = vadd.bf16 %v7815_v10, %v11936_v46  ;;  %v2046_v12 = vmax.bf16 %v11779_v56, %v1918_v26 }
 0x259   : > { %v3273_v63 = vmax.bf16 %v11779_v56, %v3145_v52 }
 0x25a   : > { %v2430_v58 = vpop.f32.mrb[172].mxu1  ;;  %v3274_v54 = vmax.bf16 %v11779_v56, %v3146_v6  ;;  %v2049_v32 = vmax.bf16 %v11779_v56, %v1921_v36  ;;  %v11949_v36 = vld [vmem:[#allocation23_spill] sm:$0xff] }
 0x25b   : > { %v2432_v57 = vpop.f32.mrb[173].mxu1 }
 0x25c   : > { %v2434_v13 = vpop.f32.mrb[174].mxu1  ;;  %3705 = vmatprep.mubr.bf16.mxu0 %v3274_v54 }
 0x25d   : > { %v2981_v30 = vpack.c.bf16 %v2434_v13, %v2430_v58  ;;  %v2436_v43 = vpop.f32.mrb[175].mxu1  ;;  %3706 = vmatmul.mubr.bf16.gmra.mrb[168].mxu0 %v3273_v63  ;;  %v11938_v58 = vld [vmem:[#allocation13_spill] sm:$0xff]  ;;  %v11940_v63 = vld [vmem:[#allocation20_spill] sm:$0xff]  ;;  %v11941_v13 = vld [vmem:[#allocation18_spill] sm:$0xff] }
 0x25e   : > { %v2982_v42 = vpack.c.bf16 %v2436_v43, %v2432_v57  ;;  %v11939_v54 = vpack.c.bf16 %v11937_v39, %v11938_v58 }
 0x25f   : > { %v3147_v55 = vadd.bf16 %v8845_v28, %v2981_v30  ;;  %2699 = vmatmul.mubr.bf16.gmra.mrb[24].mxu1 %v2042_v20  ;;  %v11942_v20 = vpack.c.bf16 %v11940_v63, %v11941_v13  ;;  %v11955_v63 = vld [vmem:[#allocation27_spill] sm:$0xff]  ;;  %v11956_v13 = vld [vmem:[#allocation25_spill] sm:$0xff] }
 0x260   : > { %v3148_v60 = vadd.bf16 %v8848_v14, %v2982_v42  ;;  %2708 = vmatprep.mubr.bf16.mxu1 %v2045_v49  ;;  %v1920_v57 = vadd.bf16 %v7862_v24, %v11939_v54 }
 0x261   : > { %v3275_v17 = vmax.bf16 %v11779_v56, %v3147_v55  ;;  %v1923_v30 = vadd.bf16 %v7815_v10, %v11942_v20  ;;  %v11957_v20 = vpack.c.bf16 %v11955_v63, %v11956_v13 }
 0x262   : > { %v2440_v1 = vpop.f32.mrb[176].mxu1  ;;  %v3276_v40 = vmax.bf16 %v11779_v56, %v3148_v60  ;;  %v2048_v61 = vmax.bf16 %v11779_v56, %v1920_v57 }
 0x263   : > { %v2442_v11 = vpop.f32.mrb[177].mxu1  ;;  %v2051_v53 = vmax.bf16 %v11779_v56, %v1923_v30  ;;  %v1926_v30 = vadd.bf16 %v7862_v24, %v11957_v20 }
 0x264   : > { %v2444_v9 = vpop.f32.mrb[178].mxu1  ;;  %3715 = vmatprep.mubr.bf16.mxu0 %v3276_v40 }
 0x265   : > { %v2983_v44 = vpack.c.bf16 %v2444_v9, %v2440_v1  ;;  %v2446_v19 = vpop.f32.mrb[179].mxu1  ;;  %3716 = vmatmul.mubr.bf16.gmra.mrb[172].mxu0 %v3275_v17  ;;  %v11944_v1 = vld [vmem:[#allocation17_spill] sm:$0xff]  ;;  %v11946_v17 = vld [vmem:[#allocation24_spill] sm:$0xff]  ;;  %v11947_v9 = vld [vmem:[#allocation22_spill] sm:$0xff] }
 0x266   : > { %v2984_v4 = vpack.c.bf16 %v2446_v19, %v2442_v11  ;;  %v11945_v40 = vpack.c.bf16 %v11943_v7, %v11944_v1 }
 0x267   : > { %v3149_v41 = vadd.bf16 %v8845_v28, %v2983_v44  ;;  %2709 = vmatmul.mubr.bf16.gmra.mrb[28].mxu1 %v2044_v27  ;;  %v11948_v27 = vpack.c.bf16 %v11946_v17, %v11947_v9  ;;  %v11961_v17 = vld [vmem:[#allocation31_spill] sm:$0xff]  ;;  %v11962_v9 = vld [vmem:[#allocation29_spill] sm:$0xff] }
 0x268   : > { %v3150_v48 = vadd.bf16 %v8848_v14, %v2984_v4  ;;  %2718 = vmatprep.mubr.bf16.mxu1 %v2047_v34  ;;  %v1922_v11 = vadd.bf16 %v7862_v24, %v11945_v40 }
 0x269   : > { %v3277_v22 = vmax.bf16 %v11779_v56, %v3149_v41  ;;  %v1925_v44 = vadd.bf16 %v7815_v10, %v11948_v27  ;;  %v11963_v27 = vpack.c.bf16 %v11961_v17, %v11962_v9 }
 0x26a   : > { %v2450_v25 = vpop.f32.mrb[180].mxu1  ;;  %v3278_v29 = vmax.bf16 %v11779_v56, %v3150_v48  ;;  %v2050_v33 = vmax.bf16 %v11779_v56, %v1922_v11 }
 0x26b   : > { %v2452_v5 = vpop.f32.mrb[181].mxu1  ;;  %v2053_v59 = vmax.bf16 %v11779_v56, %v1925_v44  ;;  %v1928_v44 = vadd.bf16 %v7862_v24, %v11963_v27 }
 0x26c   : > { %v2454_v23 = vpop.f32.mrb[182].mxu1  ;;  %3725 = vmatprep.mubr.bf16.mxu0 %v3278_v29 }
 0x26d   : > { %v2985_v52 = vpack.c.bf16 %v2454_v23, %v2450_v25  ;;  %v2456_v6 = vpop.f32.mrb[183].mxu1  ;;  %3726 = vmatmul.mubr.bf16.gmra.mrb[176].mxu0 %v3277_v22  ;;  %v11950_v25 = vld [vmem:[#allocation21_spill] sm:$0xff]  ;;  %v11952_v22 = vld [vmem:[#allocation28_spill] sm:$0xff]  ;;  %v11953_v23 = vld [vmem:[#allocation26_spill] sm:$0xff] }
 0x26e   : > { %v2986_v2 = vpack.c.bf16 %v2456_v6, %v2452_v5  ;;  %v11951_v29 = vpack.c.bf16 %v11949_v36, %v11950_v25  ;;  %v2056_v36 = vmax.bf16 %v11779_v56, %v1928_v44 }
 0x26f   : > { %v3151_v38 = vadd.bf16 %v8845_v28, %v2985_v52  ;;  %2719 = vmatmul.mubr.bf16.gmra.mrb[32].mxu1 %v2046_v12  ;;  %v11954_v12 = vpack.c.bf16 %v11952_v22, %v11953_v23 }
 0x270   : > { %v3152_v51 = vadd.bf16 %v8848_v14, %v2986_v2  ;;  %2728 = vmatprep.mubr.bf16.mxu1 %v2049_v32  ;;  %v1924_v5 = vadd.bf16 %v7862_v24, %v11951_v29 }
 0x271   : > { %v3279_v55 = vmax.bf16 %v11779_v56, %v3151_v38  ;;  %v1927_v52 = vadd.bf16 %v7815_v10, %v11954_v12 }
 0x272   : > { %v2460_v43 = vpop.f32.mrb[184].mxu1  ;;  %v3280_v42 = vmax.bf16 %v11779_v56, %v3152_v51  ;;  %v2052_v62 = vmax.bf16 %v11779_v56, %v1924_v5 }
 0x273   : > { %v2462_v49 = vpop.f32.mrb[185].mxu1  ;;  %v2055_v58 = vmax.bf16 %v11779_v56, %v1927_v52  ;;  %v11967_v52 = vld [vmem:[#allocation35_spill] sm:$0xff] }
 0x274   : > { %v2464_v60 = vpop.f32.mrb[186].mxu1  ;;  %3735 = vmatprep.mubr.bf16.mxu0 %v3280_v42  ;;  %v11959_v42 = vld [vmem:[#allocation30_spill] sm:$0xff] }
 0x275   : > { %v2987_v8 = vpack.c.bf16 %v2464_v60, %v2460_v43  ;;  %v2466_v18 = vpop.f32.mrb[187].mxu1  ;;  %3736 = vmatmul.mubr.bf16.gmra.mrb[180].mxu0 %v3279_v55  ;;  %v11958_v43 = vld [vmem:[#allocation32_spill] sm:$0xff] }
 0x276   : > { %v2988_v21 = vpack.c.bf16 %v2466_v18, %v2462_v49  ;;  %v11960_v49 = vpack.c.bf16 %v11958_v43, %v11959_v42 }
 0x277   : > { %v3153_v16 = vadd.bf16 %v8845_v28, %v2987_v8  ;;  %2729 = vmatmul.mubr.bf16.gmra.mrb[36].mxu1 %v2048_v61 }
 0x278   : > { %v3154_v45 = vadd.bf16 %v8848_v14, %v2988_v21  ;;  %2738 = vmatprep.mubr.bf16.mxu1 %v2051_v53  ;;  %v1929_v55 = vadd.bf16 %v7815_v10, %v11960_v49  ;;  %v2054_v53 = vmax.bf16 %v11779_v56, %v1926_v30 }
 0x279   : > { %v3281_v41 = vmax.bf16 %v11779_v56, %v3153_v16 }
 0x27a   : > { %v2470_v19 = vpop.f32.mrb[188].mxu1  ;;  %v3282_v4 = vmax.bf16 %v11779_v56, %v3154_v45  ;;  %v2057_v1 = vmax.bf16 %v11779_v56, %v1929_v55  ;;  %v11973_v55 = vld [vmem:[#allocation39_spill] sm:$0xff] }
 0x27b   : > { %v2472_v34 = vpop.f32.mrb[189].mxu1 }
 0x27c   : > { %v2474_v48 = vpop.f32.mrb[190].mxu1  ;;  %3745 = vmatprep.mubr.bf16.mxu0 %v3282_v4  ;;  %v7292_v4 = vld [vmem:[%s11652_s7 + $0xf0] ss:$8 sps:$4 sm:$0xff]  }
 0x27d   : > { %v2989_v50 = vpack.c.bf16 %v2474_v48, %v2470_v19  ;;  %v2476_v15 = vpop.f32.mrb[191].mxu1  ;;  %3746 = vmatmul.mubr.bf16.gmra.mrb[184].mxu0 %v3281_v41  ;;  %v7291_v19 = vld [vmem:[%s11654_s9 + $0x40] sm:$0xff]   ;;  %v11964_v41 = vld [vmem:[#allocation36_spill] sm:$0xff] }
 0x27e   : > { %v2990_v26 = vpack.c.bf16 %v2476_v15, %v2472_v34  ;;  %v7294_v34 = vld [vmem:[%s11652_s7 + $0xf4] ss:$8 sps:$4 sm:$0xff]   ;;  %v11965_v48 = vld [vmem:[#allocation34_spill] sm:$0xff]  ;;  %6107 = vmatpush1.bf16.msra.mxu0 %v7291_v19 }
 0x27f   : > { %v3155_v3 = vadd.bf16 %v8845_v28, %v2989_v50  ;;  %2739 = vmatmul.mubr.bf16.gmra.mrb[40].mxu1 %v2050_v33  ;;  %v11966_v33 = vpack.c.bf16 %v11964_v41, %v11965_v48  ;;  %4890 = vmatprep.subr.bf16.mxu1 %v7294_v34  ;;  %v11979_v41 = vld [vmem:[#allocation43_spill] sm:$0xff]  ;;  %v11980_v48 = vld [vmem:[#allocation41_spill] sm:$0xff] }
 0x280   : > { %v3156_v46 = vadd.bf16 %v8848_v14, %v2990_v26  ;;  %2748 = vmatprep.mubr.bf16.mxu1 %v2053_v59  ;;  %4891 = vmatpush1.bf16.msra.mxu1 %v7292_v4 }
 0x281   : > { %v3283_v38 = vmax.bf16 %v11779_v56, %v3155_v3  ;;  %v1931_v50 = vadd.bf16 %v7815_v10, %v11966_v33  ;;  %6108 = vmatprep.subr.bf16.mxu0 %v11779_v56  ;;  %v11981_v33 = vpack.c.bf16 %v11979_v41, %v11980_v48 }
 0x282   : > { %v2480_v6 = vpop.f32.mrb[192].mxu1  ;;  %v3284_v2 = vmax.bf16 %v11779_v56, %v3156_v46 }
 0x283   : > { %v2482_v32 = vpop.f32.mrb[193].mxu1  ;;  %v2059_v22 = vmax.bf16 %v11779_v56, %v1931_v50  ;;  %v1934_v50 = vadd.bf16 %v7862_v24, %v11981_v33 }
 0x284   : > { %v2484_v51 = vpop.f32.mrb[194].mxu1  ;;  %3755 = vmatprep.mubr.bf16.mxu0 %v3284_v2 }
 0x285   : > { %v2991_v0 = vpack.c.bf16 %v2484_v51, %v2480_v6  ;;  %v2486_v37 = vpop.f32.mrb[195].mxu1  ;;  %3756 = vmatmul.mubr.bf16.gmra.mrb[188].mxu0 %v3283_v38  ;;  %v11968_v6 = vld [vmem:[#allocation33_spill] sm:$0xff]  ;;  %v11970_v38 = vld [vmem:[#allocation40_spill] sm:$0xff]  ;;  %v11971_v51 = vld [vmem:[#allocation38_spill] sm:$0xff] }
 0x286   : > { %v2992_v39 = vpack.c.bf16 %v2486_v37, %v2482_v32  ;;  %v11969_v2 = vpack.c.bf16 %v11967_v52, %v11968_v6 }
 0x287   : > { %v3157_v54 = vadd.bf16 %v8845_v28, %v2991_v0  ;;  %2749 = vmatmul.mubr.bf16.gmra.mrb[44].mxu1 %v2052_v62  ;;  %v11972_v62 = vpack.c.bf16 %v11970_v38, %v11971_v51  ;;  %v11985_v38 = vld [vmem:[#allocation47_spill] sm:$0xff]  ;;  %v11986_v51 = vld [vmem:[#allocation45_spill] sm:$0xff] }
 0x288   : > { %v3158_v57 = vadd.bf16 %v8848_v14, %v2992_v39  ;;  %2758 = vmatprep.mubr.bf16.mxu1 %v2055_v58  ;;  %v1930_v32 = vadd.bf16 %v7862_v24, %v11969_v2 }
 0x289   : > { %v3285_v18 = vmax.bf16 %v11779_v56, %v3157_v54  ;;  %v1933_v0 = vadd.bf16 %v7815_v10, %v11972_v62  ;;  %v11987_v62 = vpack.c.bf16 %v11985_v38, %v11986_v51 }
 0x28a   : > { %v2490_v60 = vpop.f32.mrb[196].mxu1  ;;  %v3286_v61 = vmax.bf16 %v11779_v56, %v3158_v57  ;;  %v2058_v63 = vmax.bf16 %v11779_v56, %v1930_v32 }
 0x28b   : > { %v2492_v8 = vpop.f32.mrb[197].mxu1  ;;  %v2061_v43 = vmax.bf16 %v11779_v56, %v1933_v0  ;;  %v1936_v0 = vadd.bf16 %v7862_v24, %v11987_v62 }
 0x28c   : > { %v2494_v21 = vpop.f32.mrb[198].mxu1  ;;  %3765 = vmatprep.mubr.bf16.mxu0 %v3286_v61 }
 0x28d   : > { %v2993_v16 = vpack.c.bf16 %v2494_v21, %v2490_v60  ;;  %v2496_v45 = vpop.f32.mrb[199].mxu1  ;;  %3766 = vmatmul.mubr.bf16.gmra.mrb[192].mxu0 %v3285_v18  ;;  %v11974_v60 = vld [vmem:[#allocation37_spill] sm:$0xff]  ;;  %v11976_v18 = vld [vmem:[#allocation44_spill] sm:$0xff]  ;;  %v11977_v21 = vld [vmem:[#allocation42_spill] sm:$0xff] }
 0x28e   : > { %v2994_v7 = vpack.c.bf16 %v2496_v45, %v2492_v8  ;;  %v11975_v61 = vpack.c.bf16 %v11973_v55, %v11974_v60 }
 0x28f   : > { %v3159_v40 = vadd.bf16 %v8845_v28, %v2993_v16  ;;  %2759 = vmatmul.mubr.bf16.gmra.mrb[48].mxu1 %v2054_v53  ;;  %v11978_v53 = vpack.c.bf16 %v11976_v18, %v11977_v21  ;;  %v11991_v21 = vld [vmem:[#allocation51_spill] sm:$0xff] }
 0x290   : > { %v3160_v11 = vadd.bf16 %v8848_v14, %v2994_v7  ;;  %2768 = vmatprep.mubr.bf16.mxu1 %v2057_v1  ;;  %v1932_v8 = vadd.bf16 %v7862_v24, %v11975_v61 }
 0x291   : > { %v3287_v3 = vmax.bf16 %v11779_v56, %v3159_v40  ;;  %v1935_v16 = vadd.bf16 %v7815_v10, %v11978_v53  ;;  %v11992_v53 = vld [vmem:[#allocation49_spill] sm:$0xff] }
 0x292   : > { %v2500_v15 = vpop.f32.mrb[200].mxu1  ;;  %v3288_v26 = vmax.bf16 %v11779_v56, %v3160_v11  ;;  %v2060_v17 = vmax.bf16 %v11779_v56, %v1932_v8 }
 0x293   : > { %v2502_v59 = vpop.f32.mrb[201].mxu1  ;;  %v2063_v19 = vmax.bf16 %v11779_v56, %v1935_v16  ;;  %v11993_v16 = vpack.c.bf16 %v11991_v21, %v11992_v53 }
 0x294   : > { %v2504_v46 = vpop.f32.mrb[202].mxu1  ;;  %3775 = vmatprep.mubr.bf16.mxu0 %v3288_v26  ;;  %v11983_v26 = vld [vmem:[#allocation46_spill] sm:$0xff] }
 0x295   : > { %v2995_v25 = vpack.c.bf16 %v2504_v46, %v2500_v15  ;;  %v2506_v29 = vpop.f32.mrb[203].mxu1  ;;  %3776 = vmatmul.mubr.bf16.gmra.mrb[196].mxu0 %v3287_v3  ;;  %v11982_v15 = vld [vmem:[#allocation48_spill] sm:$0xff] }
 0x296   : > { %v2996_v5 = vpack.c.bf16 %v2506_v29, %v2502_v59  ;;  %v11984_v59 = vpack.c.bf16 %v11982_v15, %v11983_v26  ;;  %v11997_v26 = vld [vmem:[#allocation55_spill] sm:$0xff] }
 0x297   : > { %v3161_v23 = vadd.bf16 %v8845_v28, %v2995_v25  ;;  %2769 = vmatmul.mubr.bf16.gmra.mrb[52].mxu1 %v2056_v36 }
 0x298   : > { %v3162_v12 = vadd.bf16 %v8848_v14, %v2996_v5  ;;  %2778 = vmatprep.mubr.bf16.mxu1 %v2059_v22  ;;  %v1937_v3 = vadd.bf16 %v7815_v10, %v11984_v59  ;;  %v2062_v22 = vmax.bf16 %v11779_v56, %v1934_v50  ;;  %v11998_v59 = vld [vmem:[#allocation53_spill] sm:$0xff] }
 0x299   : > { %v3289_v54 = vmax.bf16 %v11779_v56, %v3161_v23 }
 0x29a   : > { %v2510_v37 = vpop.f32.mrb[204].mxu1  ;;  %v3290_v39 = vmax.bf16 %v11779_v56, %v3162_v12  ;;  %v2065_v6 = vmax.bf16 %v11779_v56, %v1937_v3  ;;  %v11999_v3 = vpack.c.bf16 %v11997_v26, %v11998_v59 }
 0x29b   : > { %v2512_v58 = vpop.f32.mrb[205].mxu1 }
 0x29c   : > { %v2514_v57 = vpop.f32.mrb[206].mxu1  ;;  %3785 = vmatprep.mubr.bf16.mxu0 %v3290_v39  ;;  %v11988_v39 = vld [vmem:[#allocation52_spill] sm:$0xff] }
 0x29d   : > { %v2997_v13 = vpack.c.bf16 %v2514_v57, %v2510_v37  ;;  %v2516_v20 = vpop.f32.mrb[207].mxu1  ;;  %3786 = vmatmul.mubr.bf16.gmra.mrb[200].mxu0 %v3289_v54  ;;  %v7295_v37 = vld [vmem:[%s11654_s9 + $0x48] sm:$0xff]  }
 0x29e   : > { %v2998_v30 = vpack.c.bf16 %v2516_v20, %v2512_v58  ;;  %v11989_v58 = vld [vmem:[#allocation50_spill] sm:$0xff]  ;;  %6109 = vmatpush1.bf16.msra.mxu0 %v7295_v37 }
 0x29f   : > { %v3163_v42 = vadd.bf16 %v8845_v28, %v2997_v13  ;;  %2779 = vmatmul.mubr.bf16.gmra.mrb[56].mxu1 %v2058_v63  ;;  %v11990_v54 = vpack.c.bf16 %v11988_v39, %v11989_v58  ;;  %6110 = vmatprep.subr.bf16.mxu0 %v11779_v56  ;;  %v12003_v39 = vld [vmem:[#allocation59_spill] sm:$0xff]  ;;  %v12004_v58 = vld [vmem:[#allocation57_spill] sm:$0xff] }
 0x2a0   : > { %v3164_v49 = vadd.bf16 %v8848_v14, %v2998_v30  ;;  %2788 = vmatprep.mubr.bf16.mxu1 %v2061_v43 }
 0x2a1   : > { %v3291_v40 = vmax.bf16 %v11779_v56, %v3163_v42  ;;  %v1939_v57 = vadd.bf16 %v7815_v10, %v11990_v54  ;;  %v2064_v42 = vmax.bf16 %v11779_v56, %v1936_v0  ;;  %v12005_v54 = vpack.c.bf16 %v12003_v39, %v12004_v58 }
 0x2a2   : > { %v2520_v45 = vpop.f32.mrb[208].mxu1  ;;  %v3292_v7 = vmax.bf16 %v11779_v56, %v3164_v49 }
 0x2a3   : > { %v2522_v1 = vpop.f32.mrb[209].mxu1  ;;  %v2067_v61 = vmax.bf16 %v11779_v56, %v1939_v57  ;;  %v1942_v57 = vadd.bf16 %v7862_v24, %v12005_v54 }
 0x2a4   : > { %v2524_v11 = vpop.f32.mrb[210].mxu1  ;;  %3795 = vmatprep.mubr.bf16.mxu0 %v3292_v7  ;;  %v11994_v7 = vld [vmem:[#allocation56_spill] sm:$0xff] }
 0x2a5   : > { %v2999_v9 = vpack.c.bf16 %v2524_v11, %v2520_v45  ;;  %v2526_v27 = vpop.f32.mrb[211].mxu1  ;;  %3796 = vmatmul.mubr.bf16.gmra.mrb[204].mxu0 %v3291_v40  ;;  %v1938_v45 = vadd.bf16 %v7862_v24, %v11993_v16 }
 0x2a6   : > { %v3000_v44 = vpack.c.bf16 %v2526_v27, %v2522_v1  ;;  %v11995_v1 = vld [vmem:[#allocation54_spill] sm:$0xff] }
 0x2a7   : > { %v3165_v4 = vadd.bf16 %v8845_v28, %v2999_v9  ;;  %2789 = vmatmul.mubr.bf16.gmra.mrb[60].mxu1 %v2060_v17  ;;  %v11996_v40 = vpack.c.bf16 %v11994_v7, %v11995_v1  ;;  %v12009_v7 = vld [vmem:[#allocation63_spill] sm:$0xff]  ;;  %v12010_v1 = vld [vmem:[#allocation61_spill] sm:$0xff] }
 0x2a8   : > { %v3166_v34 = vadd.bf16 %v8848_v14, %v3000_v44  ;;  %2798 = vmatprep.mubr.bf16.mxu1 %v2063_v19 }
 0x2a9   : > { %v3293_v29 = vmax.bf16 %v11779_v56, %v3165_v4  ;;  %v1941_v11 = vadd.bf16 %v7815_v10, %v11996_v40  ;;  %v2066_v4 = vmax.bf16 %v11779_v56, %v1938_v45  ;;  %v12011_v40 = vpack.c.bf16 %v12009_v7, %v12010_v1 }
 0x2aa   : > { %v2530_v46 = vpop.f32.mrb[212].mxu1  ;;  %v3294_v36 = vmax.bf16 %v11779_v56, %v3166_v34 }
 0x2ab   : > { %v2532_v25 = vpop.f32.mrb[213].mxu1  ;;  %v2069_v33 = vmax.bf16 %v11779_v56, %v1941_v11  ;;  %v1944_v11 = vadd.bf16 %v7862_v24, %v12011_v40 }
 0x2ac   : > { %v2534_v5 = vpop.f32.mrb[214].mxu1  ;;  %3805 = vmatprep.mubr.bf16.mxu0 %v3294_v36  ;;  %v12000_v36 = vld [vmem:[#allocation60_spill] sm:$0xff] }
 0x2ad   : > { %v3001_v23 = vpack.c.bf16 %v2534_v5, %v2530_v46  ;;  %v2536_v12 = vpop.f32.mrb[215].mxu1  ;;  %3806 = vmatmul.mubr.bf16.gmra.mrb[208].mxu0 %v3293_v29  ;;  %v1940_v46 = vadd.bf16 %v7862_v24, %v11999_v3 }
 0x2ae   : > { %v3002_v52 = vpack.c.bf16 %v2536_v12, %v2532_v25  ;;  %v12001_v25 = vld [vmem:[#allocation58_spill] sm:$0xff] }
 0x2af   : > { %v3167_v2 = vadd.bf16 %v8845_v28, %v3001_v23  ;;  %2799 = vmatmul.mubr.bf16.gmra.mrb[64].mxu1 %v2062_v22  ;;  %v12002_v29 = vpack.c.bf16 %v12000_v36, %v12001_v25  ;;  %v12015_v25 = vld [vmem:[#allocation67_spill] sm:$0xff] }
 0x2b0   : > { %v3168_v32 = vadd.bf16 %v8848_v14, %v3002_v52  ;;  %2808 = vmatprep.mubr.bf16.mxu1 %v2065_v6 }
 0x2b1   : > { %v3295_v30 = vmax.bf16 %v11779_v56, %v3167_v2  ;;  %v1943_v5 = vadd.bf16 %v7815_v10, %v12002_v29  ;;  %v2068_v2 = vmax.bf16 %v11779_v56, %v1940_v46  ;;  %v12016_v29 = vld [vmem:[#allocation65_spill] sm:$0xff] }
 0x2b2   : > { %v2540_v63 = vpop.f32.mrb[216].mxu1  ;;  %v3296_v13 = vmax.bf16 %v11779_v56, %v3168_v32 }
 0x2b3   : > { %v2542_v20 = vpop.f32.mrb[217].mxu1  ;;  %v2071_v62 = vmax.bf16 %v11779_v56, %v1943_v5  ;;  %v12017_v5 = vpack.c.bf16 %v12015_v25, %v12016_v29 }
 0x2b4   : > { %v2544_v43 = vpop.f32.mrb[218].mxu1  ;;  %3815 = vmatprep.mubr.bf16.mxu0 %v3296_v13  ;;  %v12007_v13 = vld [vmem:[#allocation62_spill] sm:$0xff] }
 0x2b5   : > { %v3003_v49 = vpack.c.bf16 %v2544_v43, %v2540_v63  ;;  %v2546_v55 = vpop.f32.mrb[219].mxu1  ;;  %3816 = vmatmul.mubr.bf16.gmra.mrb[212].mxu0 %v3295_v30  ;;  %v12006_v63 = vld [vmem:[#allocation64_spill] sm:$0xff] }
 0x2b6   : > { %v3004_v60 = vpack.c.bf16 %v2546_v55, %v2542_v20  ;;  %v12008_v20 = vpack.c.bf16 %v12006_v63, %v12007_v13 }
 0x2b7   : > { %v3169_v8 = vadd.bf16 %v8845_v28, %v3003_v49  ;;  %2809 = vmatmul.mubr.bf16.gmra.mrb[68].mxu1 %v2064_v42 }
 0x2b8   : > { %v3170_v18 = vadd.bf16 %v8848_v14, %v3004_v60  ;;  %2818 = vmatprep.mubr.bf16.mxu1 %v2067_v61  ;;  %v1945_v30 = vadd.bf16 %v7815_v10, %v12008_v20  ;;  %v2070_v61 = vmax.bf16 %v11779_v56, %v1942_v57  ;;  %v12021_v20 = vld [vmem:[#allocation71_spill] sm:$0xff] }
 0x2b9   : > { %v3297_v44 = vmax.bf16 %v11779_v56, %v3169_v8 }
 0x2ba   : > { %v2550_v17 = vpop.f32.mrb[220].mxu1  ;;  %v3298_v9 = vmax.bf16 %v11779_v56, %v3170_v18  ;;  %v2073_v53 = vmax.bf16 %v11779_v56, %v1945_v30  ;;  %v12022_v30 = vld [vmem:[#allocation69_spill] sm:$0xff] }
 0x2bb   : > { %v2552_v27 = vpop.f32.mrb[221].mxu1 }
 0x2bc   : > { %v2554_v19 = vpop.f32.mrb[222].mxu1  ;;  %3825 = vmatprep.mubr.bf16.mxu0 %v3298_v9  ;;  %v12012_v9 = vld [vmem:[#allocation68_spill] sm:$0xff] }
 0x2bd   : > { %v3005_v34 = vpack.c.bf16 %v2554_v19, %v2550_v17  ;;  %v2556_v41 = vpop.f32.mrb[223].mxu1  ;;  %3826 = vmatmul.mubr.bf16.gmra.mrb[216].mxu0 %v3297_v44  ;;  %v7296_v17 = vld [vmem:[%s11654_s9 + $0x50] sm:$0xff]  }
 0x2be   : > { %v3006_v48 = vpack.c.bf16 %v2556_v41, %v2552_v27  ;;  %v12013_v27 = vld [vmem:[#allocation66_spill] sm:$0xff]  ;;  %6111 = vmatpush1.bf16.msra.mxu0 %v7296_v17 }
 0x2bf   : > { %v3171_v50 = vadd.bf16 %v8845_v28, %v3005_v34  ;;  %2819 = vmatmul.mubr.bf16.gmra.mrb[72].mxu1 %v2066_v4  ;;  %v12014_v44 = vpack.c.bf16 %v12012_v9, %v12013_v27  ;;  %6112 = vmatprep.subr.bf16.mxu0 %v11779_v56 }
 0x2c0   : > { %v3172_v15 = vadd.bf16 %v8848_v14, %v3006_v48  ;;  %2828 = vmatprep.mubr.bf16.mxu1 %v2069_v33 }
 0x2c1   : > { %v3299_v52 = vmax.bf16 %v11779_v56, %v3171_v50  ;;  %v1947_v19 = vadd.bf16 %v7815_v10, %v12014_v44  ;;  %v2072_v50 = vmax.bf16 %v11779_v56, %v1944_v11 }
 0x2c2   : > { %v2560_v22 = vpop.f32.mrb[224].mxu1  ;;  %v3300_v23 = vmax.bf16 %v11779_v56, %v3172_v15 }
 0x2c3   : > { %v2562_v12 = vpop.f32.mrb[225].mxu1  ;;  %v2075_v3 = vmax.bf16 %v11779_v56, %v1947_v19 }
 0x2c4   : > { %v2564_v6 = vpop.f32.mrb[226].mxu1  ;;  %3835 = vmatprep.mubr.bf16.mxu0 %v3300_v23  ;;  %v12018_v23 = vld [vmem:[#allocation72_spill] sm:$0xff] }
 0x2c5   : > { %v3007_v32 = vpack.c.bf16 %v2564_v6, %v2560_v22  ;;  %v2566_v38 = vpop.f32.mrb[227].mxu1  ;;  %3836 = vmatmul.mubr.bf16.gmra.mrb[220].mxu0 %v3299_v52  ;;  %v1946_v22 = vadd.bf16 %v7862_v24, %v12017_v5 }
 0x2c6   : > { %v3008_v51 = vpack.c.bf16 %v2566_v38, %v2562_v12  ;;  %v12019_v12 = vld [vmem:[#allocation70_spill] sm:$0xff] }
 0x2c7   : > { %v3173_v0 = vadd.bf16 %v8845_v28, %v3007_v32  ;;  %2829 = vmatmul.mubr.bf16.gmra.mrb[76].mxu1 %v2068_v2  ;;  %v12020_v52 = vpack.c.bf16 %v12018_v23, %v12019_v12 }
 0x2c8   : > { %v3174_v37 = vadd.bf16 %v8848_v14, %v3008_v51  ;;  %2838 = vmatprep.mubr.bf16.mxu1 %v2071_v62 }
 0x2c9   : > { %v3301_v55 = vmax.bf16 %v11779_v56, %v3173_v0  ;;  %v1949_v6 = vadd.bf16 %v7815_v10, %v12020_v52  ;;  %v2074_v0 = vmax.bf16 %v11779_v56, %v1946_v22 }
 0x2ca   : > { %v2570_v43 = vpop.f32.mrb[228].mxu1  ;;  %v3302_v42 = vmax.bf16 %v11779_v56, %v3174_v37 }
 0x2cb   : > { %v2572_v49 = vpop.f32.mrb[229].mxu1  ;;  %v2077_v54 = vmax.bf16 %v11779_v56, %v1949_v6 }
 0x2cc   : > { %v2574_v60 = vpop.f32.mrb[230].mxu1  ;;  %3845 = vmatprep.mubr.bf16.mxu0 %v3302_v42 }
 0x2cd   : > { %v3009_v8 = vpack.c.bf16 %v2574_v60, %v2570_v43  ;;  %v2576_v18 = vpop.f32.mrb[231].mxu1  ;;  %3846 = vmatmul.mubr.bf16.gmra.mrb[224].mxu0 %v3301_v55  ;;  %v12023_v43 = vpack.c.bf16 %v12021_v20, %v12022_v30  ;;  %v12024_v55 = vld [vmem:[#allocation76_spill] sm:$0xff]  ;;  %v12025_v60 = vld [vmem:[#allocation74_spill] sm:$0xff] }
 0x2ce   : > { %v3010_v21 = vpack.c.bf16 %v2576_v18, %v2572_v49 }
 0x2cf   : > { %v3175_v16 = vadd.bf16 %v8845_v28, %v3009_v8  ;;  %2839 = vmatmul.mubr.bf16.gmra.mrb[80].mxu1 %v2070_v61  ;;  %v1948_v42 = vadd.bf16 %v7862_v24, %v12023_v43  ;;  %v12026_v61 = vpack.c.bf16 %v12024_v55, %v12025_v60  ;;  %v7297_v43 = vld [vmem:[%s11654_s9 + $0x58] sm:$0xff]   ;;  %v12037_v55 = vld [vmem:[#allocation82_spill] sm:$0xff] }
 0x2d0   : > { %v3176_v45 = vadd.bf16 %v8848_v14, %v3010_v21  ;;  %2848 = vmatprep.mubr.bf16.mxu1 %v2073_v53  ;;  %6113 = vmatpush1.bf16.msra.mxu0 %v7297_v43 }
 0x2d1   : > { %v3303_v48 = vmax.bf16 %v11779_v56, %v3175_v16  ;;  %v1951_v8 = vadd.bf16 %v7815_v10, %v12026_v61  ;;  %v2076_v17 = vmax.bf16 %v11779_v56, %v1948_v42  ;;  %v12036_v42 = vld [vmem:[#allocation84_spill] sm:$0xff]  ;;  %6114 = vmatprep.subr.bf16.mxu0 %v11779_v56 }
 0x2d2   : > { %v2580_v4 = vpop.f32.mrb[232].mxu1  ;;  %v3304_v34 = vmax.bf16 %v11779_v56, %v3176_v45  ;;  %v12038_v60 = vpack.c.bf16 %v12036_v42, %v12037_v55 }
 0x2d3   : > { %v2582_v41 = vpop.f32.mrb[233].mxu1  ;;  %v2079_v19 = vmax.bf16 %v11779_v56, %v1951_v8 }
 0x2d4   : > { %v2584_v33 = vpop.f32.mrb[234].mxu1  ;;  %3855 = vmatprep.mubr.bf16.mxu0 %v3304_v34  ;;  %v1955_v61 = vadd.bf16 %v7815_v10, %v12038_v60 }
 0x2d5   : > { %v3011_v15 = vpack.c.bf16 %v2584_v33, %v2580_v4  ;;  %v2586_v26 = vpop.f32.mrb[235].mxu1  ;;  %3856 = vmatmul.mubr.bf16.gmra.mrb[228].mxu0 %v3303_v48  ;;  %v12027_v48 = vld [vmem:[#allocation75_spill] sm:$0xff]  ;;  %v12028_v33 = vld [vmem:[#allocation73_spill] sm:$0xff] }
 0x2d6   : > { %v3012_v59 = vpack.c.bf16 %v2586_v26, %v2582_v41 }
 0x2d7   : > { %v3177_v46 = vadd.bf16 %v8845_v28, %v3011_v15  ;;  %2849 = vmatmul.mubr.bf16.gmra.mrb[84].mxu1 %v2072_v50  ;;  %v12029_v50 = vpack.c.bf16 %v12027_v48, %v12028_v33  ;;  %v2083_v48 = vmax.bf16 %v11779_v56, %v1955_v61 }
 0x2d8   : > { %v3178_v36 = vadd.bf16 %v8848_v14, %v3012_v59  ;;  %2858 = vmatprep.mubr.bf16.mxu1 %v2075_v3  ;;  %v12030_v59 = vld [vmem:[#allocation80_spill] sm:$0xff]  ;;  %v12031_v3 = vld [vmem:[#allocation78_spill] sm:$0xff] }
 0x2d9   : > { %v3305_v51 = vmax.bf16 %v11779_v56, %v3177_v46  ;;  %v1950_v15 = vadd.bf16 %v7862_v24, %v12029_v50  ;;  %v12032_v46 = vpack.c.bf16 %v12030_v59, %v12031_v3  ;;  %v12039_v59 = vld [vmem:[#allocation83_spill] sm:$0xff]  ;;  %v12040_v3 = vld [vmem:[#allocation81_spill] sm:$0xff] }
 0x2da   : > { %v2590_v2 = vpop.f32.mrb[236].mxu1  ;;  %v3306_v32 = vmax.bf16 %v11779_v56, %v3178_v36 }
 0x2db   : > { %v2592_v38 = vpop.f32.mrb[237].mxu1  ;;  %v1953_v36 = vadd.bf16 %v7815_v10, %v12032_v46  ;;  %v12041_v46 = vpack.c.bf16 %v12039_v59, %v12040_v3 }
 0x2dc   : > { %v2594_v62 = vpop.f32.mrb[238].mxu1  ;;  %3865 = vmatprep.mubr.bf16.mxu0 %v3306_v32  ;;  %v2078_v32 = vmax.bf16 %v11779_v56, %v1950_v15 }
 0x2dd   : > { %v3013_v37 = vpack.c.bf16 %v2594_v62, %v2590_v2  ;;  %v2596_v39 = vpop.f32.mrb[239].mxu1  ;;  %3866 = vmatmul.mubr.bf16.gmra.mrb[232].mxu0 %v3305_v51 }
 0x2de   : > { %v3014_v58 = vpack.c.bf16 %v2596_v39, %v2592_v38 }
 0x2df   : > { %v3179_v57 = vadd.bf16 %v8845_v28, %v3013_v37  ;;  %2859 = vmatmul.mubr.bf16.gmra.mrb[88].mxu1 %v2074_v0  ;;  %v2081_v0 = vmax.bf16 %v11779_v56, %v1953_v36  ;;  %v1954_v36 = vadd.bf16 %v7862_v24, %v12041_v46 }
 0x2e0   : > { %v3180_v63 = vadd.bf16 %v8848_v14, %v3014_v58  ;;  %2868 = vmatprep.mubr.bf16.mxu1 %v2077_v54  ;;  %v9306_v13 = vpop.f32.mrb[128].mxu0  ;;  %v12033_v54 = vld [vmem:[#allocation79_spill] sm:$0xff] }
 0x2e1   : > { %v9312_v49 = vpop.f32.mrb[129].mxu0  ;;  %v3307_v1 = vmax.bf16 %v11779_v56, %v3179_v57  ;;  %v12034_v57 = vld [vmem:[#allocation77_spill] sm:$0xff] }
 0x2e2   : > { %v2600_v18 = vpop.f32.mrb[240].mxu1  ;;  %v9318_v21 = vpop.f32.mrb[130].mxu0  ;;  %v3308_v53 = vmax.bf16 %v11779_v56, %v3180_v63  ;;  %v12035_v63 = vpack.c.bf16 %v12033_v54, %v12034_v57 }
 0x2e3   : > { %v4246_v16 = vpack.c.bf16 %v9318_v21, %v9306_v13  ;;  %v2602_v45 = vpop.f32.mrb[241].mxu1  ;;  %v9323_v7 = vpop.f32.mrb[131].mxu0 }
 0x2e4   : > { %v4247_v40 = vpack.c.bf16 %v9323_v7, %v9312_v49  ;;  %v2604_v11 = vpop.f32.mrb[242].mxu1  ;;  %3875 = vmatprep.mubr.bf16.mxu0 %v3308_v53  ;;  %v1952_v20 = vadd.bf16 %v7862_v24, %v12035_v63  ;;  %v2082_v63 = vmax.bf16 %v11779_v56, %v1954_v36 }
 0x2e5   : > { %v3015_v9 = vpack.c.bf16 %v2604_v11, %v2600_v18  ;;  %v2606_v27 = vpop.f32.mrb[243].mxu1  ;;  %3876 = vmatmul.mubr.bf16.gmra.mrb[236].mxu0 %v3307_v1 }
 0x2e6   : > { %v3016_v44 = vpack.c.bf16 %v2606_v27, %v2602_v45 }
 0x2e7   : > { %v3181_v4 = vadd.bf16 %v8845_v28, %v3015_v9  ;;  %2869 = vmatmul.mubr.bf16.gmra.mrb[92].mxu1 %v2076_v17 }
 0x2e8   : > { %v3182_v34 = vadd.bf16 %v8848_v14, %v3016_v44  ;;  %2878 = vmatprep.mubr.bf16.mxu1 %v2079_v19  ;;  %v9332_v41 = vpop.f32.mrb[132].mxu0  ;;  %v2080_v44 = vmax.bf16 %v11779_v56, %v1952_v20 }
 0x2e9   : > { %v9338_v26 = vpop.f32.mrb[133].mxu0  ;;  %v3309_v52 = vmax.bf16 %v11779_v56, %v3181_v4 }
 0x2ea   : > { %v2610_v25 = vpop.f32.mrb[244].mxu1  ;;  %v9344_v29 = vpop.f32.mrb[134].mxu0  ;;  %v3310_v5 = vmax.bf16 %v11779_v56, %v3182_v34 }
 0x2eb   : > { %v4248_v22 = vpack.c.bf16 %v9344_v29, %v9332_v41  ;;  %v2612_v23 = vpop.f32.mrb[245].mxu1  ;;  %v9349_v12 = vpop.f32.mrb[135].mxu0 }
 0x2ec   : > { %v4249_v6 = vpack.c.bf16 %v9349_v12, %v9338_v26  ;;  %v2614_v2 = vpop.f32.mrb[246].mxu1  ;;  %3885 = vmatprep.mubr.bf16.mxu0 %v3310_v5  ;;  %v12042_v5 = vld [vmem:[#allocation88_spill] sm:$0xff] }
 0x2ed   : > { %v3017_v38 = vpack.c.bf16 %v2614_v2, %v2610_v25  ;;  %v2616_v51 = vpop.f32.mrb[247].mxu1  ;;  %3886 = vmatmul.mubr.bf16.gmra.mrb[240].mxu0 %v3309_v52 }
 0x2ee   : > { %v3018_v62 = vpack.c.bf16 %v2616_v51, %v2612_v23  ;;  %v12043_v23 = vld [vmem:[#allocation86_spill] sm:$0xff] }
 0x2ef   : > { %v3183_v37 = vadd.bf16 %v8845_v28, %v3017_v38  ;;  %2879 = vmatmul.mubr.bf16.gmra.mrb[96].mxu1 %v2078_v32  ;;  %v12044_v52 = vpack.c.bf16 %v12042_v5, %v12043_v23  ;;  %v12065_v23 = vld [vmem:[#allocation97_spill] sm:$0xff] }
 0x2f0   : > { %v3184_v39 = vadd.bf16 %v8848_v14, %v3018_v62  ;;  %2888 = vmatprep.mubr.bf16.mxu1 %v2081_v0  ;;  %v9358_v58 = vpop.f32.mrb[136].mxu0 }
 0x2f1   : > { %v9364_v30 = vpop.f32.mrb[137].mxu0  ;;  %v3311_v17 = vmax.bf16 %v11779_v56, %v3183_v37  ;;  %v1957_v2 = vadd.bf16 %v7815_v10, %v12044_v52 }
 0x2f2   : > { %v2620_v8 = vpop.f32.mrb[248].mxu1  ;;  %v9373_v18 = vpop.f32.mrb[138].mxu0  ;;  %v3312_v53 = vmax.bf16 %v11779_v56, %v3184_v39 }
 0x2f3   : > { %v4250_v45 = vpack.c.bf16 %v9373_v18, %v9358_v58  ;;  %v2622_v1 = vpop.f32.mrb[249].mxu1  ;;  %v9378_v11 = vpop.f32.mrb[139].mxu0  ;;  %v2085_v55 = vmax.bf16 %v11779_v56, %v1957_v2 }
 0x2f4   : > { %v4251_v9 = vpack.c.bf16 %v9378_v11, %v9364_v30  ;;  %v2624_v27 = vpop.f32.mrb[250].mxu1  ;;  %3895 = vmatprep.mubr.bf16.mxu0 %v3312_v53  ;;  %v12045_v53 = vld [vmem:[#allocation87_spill] sm:$0xff] }
 0x2f5   : > { %v3019_v19 = vpack.c.bf16 %v2624_v27, %v2620_v8  ;;  %v2626_v4 = vpop.f32.mrb[251].mxu1  ;;  %3896 = vmatmul.mubr.bf16.gmra.mrb[244].mxu0 %v3311_v17 }
 0x2f6   : > { %v3020_v34 = vpack.c.bf16 %v2626_v4, %v2622_v1  ;;  %v12046_v1 = vld [vmem:[#allocation85_spill] sm:$0xff]  ;;  %v12049_v4 = vld [vmem:[#allocation90_spill] sm:$0xff] }
 0x2f7   : > { %v3185_v33 = vadd.bf16 %v8845_v28, %v3019_v19  ;;  %2889 = vmatmul.mubr.bf16.gmra.mrb[100].mxu1 %v2080_v44  ;;  %v12047_v17 = vpack.c.bf16 %v12045_v53, %v12046_v1  ;;  %v12048_v19 = vld [vmem:[#allocation92_spill] sm:$0xff]  ;;  %v12055_v1 = vld [vmem:[#allocation94_spill] sm:$0xff] }
 0x2f8   : > { %v3186_v50 = vadd.bf16 %v8848_v14, %v3020_v34  ;;  %2898 = vmatprep.mubr.bf16.mxu1 %v2083_v48  ;;  %v9388_v15 = vpop.f32.mrb[140].mxu0  ;;  %v12050_v34 = vpack.c.bf16 %v12048_v19, %v12049_v4  ;;  %v12054_v53 = vld [vmem:[#allocation96_spill] sm:$0xff] }
 0x2f9   : > { %v9394_v25 = vpop.f32.mrb[141].mxu0  ;;  %v3313_v39 = vmax.bf16 %v11779_v56, %v3185_v33  ;;  %v1956_v27 = vadd.bf16 %v7862_v24, %v12047_v17  ;;  %v12056_v17 = vpack.c.bf16 %v12054_v53, %v12055_v1 }
 0x2fa   : > { %v2630_v32 = vpop.f32.mrb[252].mxu1  ;;  %v9400_v38 = vpop.f32.mrb[142].mxu0  ;;  %v3314_v51 = vmax.bf16 %v11779_v56, %v3186_v50  ;;  %v1959_v48 = vadd.bf16 %v7815_v10, %v12050_v34 }
 0x2fb   : > { %v2632_v0 = vpop.f32.mrb[253].mxu1  ;;  %v9405_v37 = vpop.f32.mrb[143].mxu0  ;;  %v2084_v2 = vmax.bf16 %v11779_v56, %v1956_v27  ;;  %v1961_v27 = vadd.bf16 %v7815_v10, %v12056_v17 }
 0x2fc   : > { %v4253_v54 = vpack.c.bf16 %v9405_v37, %v9394_v25  ;;  %v2634_v57 = vpop.f32.mrb[254].mxu1  ;;  %3905 = vmatprep.mubr.bf16.mxu0 %v3314_v51 }
 0x2fd   : > { %v3021_v20 = vpack.c.bf16 %v2634_v57, %v2630_v32  ;;  %v2636_v43 = vpop.f32.mrb[255].mxu1  ;;  %3906 = vmatmul.mubr.bf16.gmra.mrb[248].mxu0 %v3313_v39  ;;  %v2087_v39 = vmax.bf16 %v11779_v56, %v1959_v48 }
 0x2fe   : > { %v3022_v42 = vpack.c.bf16 %v2636_v43, %v2632_v0  ;;  %v12051_v43 = vld [vmem:[#allocation91_spill] sm:$0xff] }
 0x2ff   : > { %v3187_v60 = vadd.bf16 %v8845_v28, %v3021_v20  ;;  %2899 = vmatmul.mubr.bf16.gmra.mrb[104].mxu1 %v2082_v63 }
 0x300   : > { %v3188_v61 = vadd.bf16 %v8848_v14, %v3022_v42  ;;  %2908 = vmatprep.mubr.bf16.mxu1 %v2085_v55  ;;  %v9414_v8 = vpop.f32.mrb[144].mxu0  ;;  %v12052_v42 = vld [vmem:[#allocation89_spill] sm:$0xff] }
 0x301   : > { %v9420_v44 = vpop.f32.mrb[145].mxu0  ;;  %v3315_v5 = vmax.bf16 %v11779_v56, %v3187_v60  ;;  %v12053_v55 = vpack.c.bf16 %v12051_v43, %v12052_v42 }
 0x302   : > { %v2640_v33 = vpop.f32.mrb[0].mxu1  ;;  %v9426_v50 = vpop.f32.mrb[146].mxu0  ;;  %v3316_v59 = vmax.bf16 %v11779_v56, %v3188_v61 }
 0x303   : > { %v2642_v46 = vpop.f32.mrb[1].mxu1  ;;  %v9431_v36 = vpop.f32.mrb[147].mxu0  ;;  %v1958_v60 = vadd.bf16 %v7862_v24, %v12053_v55  ;;  %v12057_v55 = vld [vmem:[#allocation95_spill] sm:$0xff] }
 0x304   : > { %v2644_v52 = vpop.f32.mrb[2].mxu1  ;;  %3915 = vmatprep.mubr.bf16.mxu0 %v3316_v59 }
 0x305   : > { %v3023_v32 = vpack.c.bf16 %v2644_v52, %v2640_v33  ;;  %v2646_v51 = vpop.f32.mrb[3].mxu1  ;;  %3916 = vmatmul.mubr.bf16.gmra.mrb[252].mxu0 %v3315_v5 }
 0x306   : > { %v3024_v0 = vpack.c.bf16 %v2646_v51, %v2642_v46 }
 0x307   : > { %v3189_v57 = vadd.bf16 %v8845_v28, %v3023_v32  ;;  %2909 = vmatmul.mubr.bf16.gmra.mrb[108].mxu1 %v2084_v2  ;;  %v2086_v2 = vmax.bf16 %v11779_v56, %v1958_v60  ;;  %v12058_v60 = vld [vmem:[#allocation93_spill] sm:$0xff] }
 0x308   : > { %v3190_v63 = vadd.bf16 %v8848_v14, %v3024_v0  ;;  %2918 = vmatprep.mubr.bf16.mxu1 %v2087_v39  ;;  %v9440_v20 = vpop.f32.mrb[148].mxu0  ;;  %v2089_v39 = vmax.bf16 %v11779_v56, %v1961_v27  ;;  %v12059_v53 = vpack.c.bf16 %v12057_v55, %v12058_v60  ;;  %v7298_v27 = vld [vmem:[%s11654_s9 + $0x60] sm:$0xff]  }
 0x309   : > { %v9446_v61 = vpop.f32.mrb[149].mxu0  ;;  %v3317_v48 = vmax.bf16 %v11779_v56, %v3189_v57  ;;  %v6975_v57 = vld.sshfl [vmem:[%s11651_s6] sm:$0x11 pattern:$0x75316420]  ;;  %6115 = vmatpush1.bf16.msra.mxu0 %v7298_v27 }
 0x30a   : > { %v2650_v19 = vpop.f32.mrb[4].mxu1  ;;  %v9452_v4 = vpop.f32.mrb[150].mxu0  ;;  %v3318_v34 = vmax.bf16 %v11779_v56, %v3190_v63  ;;  %v1960_v1 = vadd.bf16 %v7862_v24, %v12059_v53  ;;  %6116 = vmatprep.subr.bf16.mxu0 %v11779_v56 }
 0x30b   : > { %v2652_v59 = vpop.f32.mrb[5].mxu1  ;;  %v9458_v46 = vpop.f32.mrb[151].mxu0 }
 0x30c   : > { %v2654_v52 = vpop.f32.mrb[6].mxu1  ;;  %3925 = vmatprep.mubr.bf16.mxu0 %v3318_v34  ;;  %v12061_v34 = vld [vmem:[#allocation98_spill] sm:$0xff] }
 0x30d   : > { %v3025_v32 = vpack.c.bf16 %v2654_v52, %v2650_v19  ;;  %v2656_v51 = vpop.f32.mrb[7].mxu1  ;;  %3926 = vmatmul.mubr.bf16.gmra.mrb[0].mxu0 %v3317_v48  ;;  %v12060_v19 = vld [vmem:[#allocation100_spill] sm:$0xff]  ;;  %v4383_v52 = vcombine.high %v6975_v57, %v6975_v57 }
 0x30e   : > { %v3026_v0 = vpack.c.bf16 %v2656_v51, %v2652_v59  ;;  %v12062_v48 = vpack.c.bf16 %v12060_v19, %v12061_v34  ;;  %v2088_v34 = vmax.bf16 %v11779_v56, %v1960_v1 }
 0x30f   : > { %v3191_v63 = vadd.bf16 %v8845_v28, %v3025_v32  ;;  %2919 = vmatmul.mubr.bf16.gmra.mrb[112].mxu1 %v2086_v2 }
 0x310   : > { %v3192_v43 = vadd.bf16 %v8848_v14, %v3026_v0  ;;  %2928 = vmatprep.mubr.bf16.mxu1 %v2089_v39  ;;  %v9469_v42 = vpop.f32.mrb[152].mxu0  ;;  %v1963_v59 = vadd.bf16 %v7815_v10, %v12062_v48 }
 0x311   : > { %v9475_v17 = vpop.f32.mrb[153].mxu0  ;;  %v3319_v0 = vmax.bf16 %v11779_v56, %v3191_v63  ;;  %v12063_v63 = vld [vmem:[#allocation2_spill] sm:$0xff] }
 0x312   : > { %v2660_v2 = vpop.f32.mrb[8].mxu1  ;;  %v9484_v32 = vpop.f32.mrb[154].mxu0  ;;  %v3320_v51 = vmax.bf16 %v11779_v56, %v3192_v43  ;;  %v4397_v33 = vrot.slane %v4383_v52, %v12063_v63  ;;  %v2091_v39 = vmax.bf16 %v11779_v56, %v1963_v59  ;;  %v12067_v52 = vpack.c.bf16 %v8825_v31, %v8812_v35 }
 0x313   : > { %v2662_v55 = vpop.f32.mrb[9].mxu1  ;;  %v9490_v60 = vpop.f32.mrb[155].mxu0  ;;  %v4390_v31 = vrot.slane %v6975_v57, %v12063_v63 }
 0x314   : > { %v2664_v19 = vpop.f32.mrb[10].mxu1  ;;  %3935 = vmatprep.mubr.bf16.mxu0 %v3320_v51  ;;  %v12064_v51 = vld [vmem:[#allocation99_spill] sm:$0xff]  ;;  %v1965_v59 = vadd.bf16 %v7815_v10, %v12067_v52 }
 0x315   : > { %v3027_v48 = vpack.c.bf16 %v2664_v19, %v2660_v2  ;;  %v2666_v43 = vpop.f32.mrb[11].mxu1  ;;  %3936 = vmatmul.mubr.bf16.gmra.mrb[4].mxu0 %v3319_v0  ;;  %v12066_v62 = vpack.c.bf16 %v12064_v51, %v12065_v23  ;;  %v4406_v0 = vpack.i.b16 %v4397_v33, %v4397_v33 }
 0x316   : > { %v3028_v5 = vpack.c.bf16 %v2666_v43, %v2662_v55  ;;  %v2093_v51 = vmax.bf16 %v11779_v56, %v1965_v59 }
 0x317   : > { %v3193_v3 = vadd.bf16 %v8845_v28, %v3027_v48  ;;  %2929 = vmatmul.mubr.bf16.gmra.mrb[116].mxu1 %v2088_v34  ;;  %v1962_v1 = vadd.bf16 %v7862_v24, %v12066_v62  ;;  %v12069_v48 = vld [vmem:[#allocation101_spill] sm:$0xff] }
 0x318   : > { %v3194_v27 = vadd.bf16 %v8848_v14, %v3028_v5  ;;  %2938 = vmatprep.mubr.bf16.mxu1 %v2091_v39  ;;  %v9500_v53 = vpop.f32.mrb[156].mxu0 }
 0x319   : > { %v9506_v2 = vpop.f32.mrb[157].mxu0  ;;  %v3321_v39 = vmax.bf16 %v11779_v56, %v3193_v3  ;;  %v2090_v10 = vmax.bf16 %v11779_v56, %v1962_v1  ;;  %v9525_v3 = vrot.slane %v4406_v0, %v7790_v47  ;;  %v12068_v1 = vld [vmem:[#allocation102_spill] sm:$0xff] }
 0x31a   : > { %v2670_v55 = vpop.f32.mrb[12].mxu1  ;;  %v9512_v19 = vpop.f32.mrb[158].mxu0  ;;  %v3322_v5 = vmax.bf16 %v11779_v56, %v3194_v27  ;;  %v12070_v57 = vpack.c.bf16 %v12068_v1, %v12069_v48 }
 0x31b   : > { %v2672_v34 = vpop.f32.mrb[13].mxu1  ;;  %v9518_v62 = vpop.f32.mrb[159].mxu0  ;;  %v4413_v59 = vadd.bf16 %v9525_v3, %v4247_v40 }
 0x31c   : > { %v2674_v35 = vpop.f32.mrb[14].mxu1  ;;  %3945 = vmatprep.mubr.bf16.mxu0 %v3322_v5 }
 0x31d   : > { %v3029_v33 = vpack.c.bf16 %v2674_v35, %v2670_v55  ;;  %v2676_v43 = vpop.f32.mrb[15].mxu1  ;;  %3946 = vmatmul.mubr.bf16.gmra.mrb[8].mxu0 %v3321_v39  ;;  %v1964_v55 = vadd.bf16 %v7862_v24, %v12070_v57  ;;  %v4399_v39 = vpack.i.b16 %v4390_v31, %v4390_v31 }
 0x31e   : > { %v3030_v27 = vpack.c.bf16 %v2676_v43, %v2672_v34 }
 0x31f   : > { %v3195_v52 = vadd.bf16 %v8845_v28, %v3029_v33  ;;  %2939 = vmatmul.mubr.bf16.gmra.mrb[120].mxu1 %v2090_v10  ;;  %v2092_v49 = vmax.bf16 %v11779_v56, %v1964_v55  ;;  %v9554_v7 = vrot.slane %v4399_v39, %v7790_v47 }
 0x320   : > { %v3196_v23 = vadd.bf16 %v8848_v14, %v3030_v27  ;;  %2948 = vmatprep.mubr.bf16.mxu1 %v2093_v51  ;;  %v9530_v5 = vpop.f32.mrb[160].mxu0 }
 0x321   : > { %v9536_v35 = vpop.f32.mrb[161].mxu0  ;;  %v3323_v33 = vmax.bf16 %v11779_v56, %v3195_v52  ;;  %v4541_v52 = vmax.bf16 %v11779_v56, %v4413_v59  ;;  %v4412_v55 = vadd.bf16 %v9554_v7, %v4246_v16  ;;  %v4415_v59 = vadd.bf16 %v9525_v3, %v4249_v6 }
 0x322   : > { %v2680_v0 = vpop.f32.mrb[16].mxu1  ;;  %v9542_v34 = vpop.f32.mrb[162].mxu0  ;;  %v3324_v10 = vmax.bf16 %v11779_v56, %v3196_v23 }
 0x323   : > { %v2682_v43 = vpop.f32.mrb[17].mxu1  ;;  %v9548_v24 = vpop.f32.mrb[163].mxu0  ;;  %v4540_v26 = vmax.bf16 %v11779_v56, %v4412_v55 }
 0x324   : > { %v4263_v31 = vpack.c.bf16 %v9548_v24, %v9536_v35  ;;  %v2684_v27 = vpop.f32.mrb[18].mxu1  ;;  %3955 = vmatprep.mubr.bf16.mxu0 %v3324_v10 }
 0x325   : > { %v3031_v40 = vpack.c.bf16 %v2684_v27, %v2680_v0  ;;  %v2686_v23 = vpop.f32.mrb[19].mxu1  ;;  %3956 = vmatmul.mubr.bf16.gmra.mrb[12].mxu0 %v3323_v33 }
 0x326   : > { %v3032_v51 = vpack.c.bf16 %v2686_v23, %v2682_v43  ;;  %v4543_v23 = vmax.bf16 %v11779_v56, %v4415_v59  ;;  %v4417_v59 = vadd.bf16 %v9525_v3, %v4251_v9 }
 0x327   : > { %v3197_v1 = vadd.bf16 %v8845_v28, %v3031_v40  ;;  %2949 = vmatmul.mubr.bf16.gmra.mrb[124].mxu1 %v2092_v49 }
 0x328   : > { %v3198_v57 = vadd.bf16 %v8848_v14, %v3032_v51  ;;  %v9559_v48 = vpop.f32.mrb[164].mxu0  ;;  %4892 = vmatprep.mubr.bf16.mxu1 %v4541_v52 }
 0x329   : > { %v9565_v39 = vpop.f32.mrb[165].mxu0  ;;  %v3325_v43 = vmax.bf16 %v11779_v56, %v3197_v1 }
 0x32a   : > { %v2690_v0 = vpop.f32.mrb[20].mxu1  ;;  %v9571_v10 = vpop.f32.mrb[166].mxu0  ;;  %v3326_v33 = vmax.bf16 %v11779_v56, %v3198_v57  ;;  %v4414_v57 = vadd.bf16 %v9554_v7, %v4248_v22 }
 0x32b   : > { %v4264_v27 = vpack.c.bf16 %v9571_v10, %v9559_v48  ;;  %v2692_v13 = vpop.f32.mrb[21].mxu1  ;;  %v9577_v21 = vpop.f32.mrb[167].mxu0 }
 0x32c   : > { %v4265_v16 = vpack.c.bf16 %v9577_v21, %v9565_v39  ;;  %v2694_v49 = vpop.f32.mrb[22].mxu1  ;;  %3965 = vmatprep.mubr.bf16.mxu0 %v3326_v33  ;;  %v4542_v11 = vmax.bf16 %v11779_v56, %v4414_v57 }
 0x32d   : > { %v3033_v12 = vpack.c.bf16 %v2694_v49, %v2690_v0  ;;  %v2696_v6 = vpop.f32.mrb[23].mxu1  ;;  %3966 = vmatmul.mubr.bf16.gmra.mrb[16].mxu0 %v3325_v43  ;;  %v7299_v0 = vld [vmem:[%s11654_s9 + $0x68] sm:$0xff]  }
 0x32e   : > { %v3034_v40 = vpack.c.bf16 %v2696_v6, %v2692_v13  ;;  %6117 = vmatpush1.bf16.msra.mxu0 %v7299_v0  ;;  %v4416_v0 = vadd.bf16 %v9554_v7, %v4250_v45 }
 0x32f   : > { %v3199_v51 = vadd.bf16 %v8845_v28, %v3033_v12  ;;  %4893 = vmatmul.mubr.bf16.vlgmr.msra.gmra.mrb[128].mxu1 %v4540_v26  ;;  %6118 = vmatprep.subr.bf16.mxu0 %v11779_v56 }
 0x330   : > { %v3200_v52 = vadd.bf16 %v8848_v14, %v3034_v40  ;;  %v9585_v1 = vpop.f32.mrb[168].mxu0  ;;  %4902 = vmatprep.mubr.bf16.mxu1 %v4543_v23  ;;  %v4545_v40 = vmax.bf16 %v11779_v56, %v4417_v59  ;;  %v4419_v59 = vadd.bf16 %v9525_v3, %v4253_v54  ;;  %v4544_v25 = vmax.bf16 %v11779_v56, %v4416_v0 }
 0x331   : > { %v9591_v55 = vpop.f32.mrb[169].mxu0  ;;  %v3327_v41 = vmax.bf16 %v11779_v56, %v3199_v51 }
 0x332   : > { %v2700_v33 = vpop.f32.mrb[24].mxu1  ;;  %v9600_v43 = vpop.f32.mrb[170].mxu0  ;;  %v3328_v13 = vmax.bf16 %v11779_v56, %v3200_v52 }
 0x333   : > { %v4266_v29 = vpack.c.bf16 %v9600_v43, %v9585_v1  ;;  %v2702_v22 = vpop.f32.mrb[25].mxu1  ;;  %v9606_v49 = vpop.f32.mrb[171].mxu0 }
 0x334   : > { %v4267_v26 = vpack.c.bf16 %v9606_v49, %v9591_v55  ;;  %v2704_v30 = vpop.f32.mrb[26].mxu1  ;;  %3975 = vmatprep.mubr.bf16.mxu0 %v3328_v13 }
 0x335   : > { %v3035_v9 = vpack.c.bf16 %v2704_v30, %v2700_v33  ;;  %v2706_v12 = vpop.f32.mrb[27].mxu1  ;;  %3976 = vmatmul.mubr.bf16.gmra.mrb[20].mxu0 %v3327_v41 }
 0x336   : > { %v3036_v6 = vpack.c.bf16 %v2706_v12, %v2702_v22  ;;  %v4547_v12 = vmax.bf16 %v11779_v56, %v4419_v59 }
 0x337   : > { %v3201_v23 = vadd.bf16 %v8845_v28, %v3035_v9  ;;  %4903 = vmatmul.mubr.bf16.gmra.mrb[132].mxu1 %v4542_v11 }
 0x338   : > { %v3202_v51 = vadd.bf16 %v8848_v14, %v3036_v6  ;;  %v9615_v52 = vpop.f32.mrb[172].mxu0  ;;  %4912 = vmatprep.mubr.bf16.mxu1 %v4545_v40 }
 0x339   : > { %v9621_v57 = vpop.f32.mrb[173].mxu0  ;;  %v3329_v22 = vmax.bf16 %v11779_v56, %v3201_v23 }
 0x33a   : > { %v2710_v33 = vpop.f32.mrb[28].mxu1  ;;  %v9627_v13 = vpop.f32.mrb[174].mxu0  ;;  %v3330_v41 = vmax.bf16 %v11779_v56, %v3202_v51  ;;  %v12071_v51 = vpack.c.bf16 %v9400_v38, %v9388_v15 }
 0x33b   : > { %v4268_v30 = vpack.c.bf16 %v9627_v13, %v9615_v52  ;;  %v2712_v58 = vpop.f32.mrb[29].mxu1  ;;  %v9633_v18 = vpop.f32.mrb[175].mxu0 }
 0x33c   : > { %v4269_v45 = vpack.c.bf16 %v9633_v18, %v9621_v57  ;;  %v2714_v11 = vpop.f32.mrb[30].mxu1  ;;  %3985 = vmatprep.mubr.bf16.mxu0 %v3330_v41  ;;  %v4418_v41 = vadd.bf16 %v9554_v7, %v12071_v51 }
 0x33d   : > { %v3037_v37 = vpack.c.bf16 %v2714_v11, %v2710_v33  ;;  %v2716_v54 = vpop.f32.mrb[31].mxu1  ;;  %3986 = vmatmul.mubr.bf16.gmra.mrb[24].mxu0 %v3329_v22  ;;  %v12072_v33 = vpack.c.bf16 %v9431_v36, %v9420_v44 }
 0x33e   : > { %v3038_v9 = vpack.c.bf16 %v2716_v54, %v2712_v58  ;;  %v4546_v44 = vmax.bf16 %v11779_v56, %v4418_v41  ;;  %v12073_v54 = vpack.c.bf16 %v9426_v50, %v9414_v8 }
 0x33f   : > { %v3203_v6 = vadd.bf16 %v8845_v28, %v3037_v37  ;;  %4913 = vmatmul.mubr.bf16.gmra.mrb[136].mxu1 %v4544_v25  ;;  %v4421_v59 = vadd.bf16 %v9525_v3, %v12072_v33 }
 0x340   : > { %v3204_v40 = vadd.bf16 %v8848_v14, %v3038_v9  ;;  %v9641_v23 = vpop.f32.mrb[176].mxu0  ;;  %4922 = vmatprep.mubr.bf16.mxu1 %v4547_v12 }
 0x341   : > { %v9647_v0 = vpop.f32.mrb[177].mxu0  ;;  %v3331_v25 = vmax.bf16 %v11779_v56, %v3203_v6 }
 0x342   : > { %v2720_v22 = vpop.f32.mrb[32].mxu1  ;;  %v9653_v58 = vpop.f32.mrb[178].mxu0  ;;  %v3332_v11 = vmax.bf16 %v11779_v56, %v3204_v40  ;;  %v4549_v40 = vmax.bf16 %v11779_v56, %v4421_v59 }
 0x343   : > { %v2722_v15 = vpop.f32.mrb[33].mxu1  ;;  %v9659_v38 = vpop.f32.mrb[179].mxu0 }
 0x344   : > { %v2724_v9 = vpop.f32.mrb[34].mxu1  ;;  %3995 = vmatprep.mubr.bf16.mxu0 %v3332_v11  ;;  %v4420_v11 = vadd.bf16 %v9554_v7, %v12073_v54  ;;  %v12075_v54 = vpack.c.bf16 %v9452_v4, %v9440_v20 }
 0x345   : > { %v3039_v36 = vpack.c.bf16 %v2724_v9, %v2720_v22  ;;  %v2726_v12 = vpop.f32.mrb[35].mxu1  ;;  %3996 = vmatmul.mubr.bf16.gmra.mrb[28].mxu0 %v3331_v25  ;;  %v12074_v22 = vpack.c.bf16 %v9458_v46, %v9446_v61 }
 0x346   : > { %v3040_v51 = vpack.c.bf16 %v2726_v12, %v2722_v15  ;;  %v4548_v61 = vmax.bf16 %v11779_v56, %v4420_v11 }
 0x347   : > { %v3205_v6 = vadd.bf16 %v8845_v28, %v3039_v36  ;;  %4923 = vmatmul.mubr.bf16.gmra.mrb[140].mxu1 %v4546_v44  ;;  %v4423_v59 = vadd.bf16 %v9525_v3, %v12074_v22 }
 0x348   : > { %v3206_v33 = vadd.bf16 %v8848_v14, %v3040_v51  ;;  %v9667_v37 = vpop.f32.mrb[180].mxu0  ;;  %4932 = vmatprep.mubr.bf16.mxu1 %v4549_v40 }
 0x349   : > { %v9673_v41 = vpop.f32.mrb[181].mxu0  ;;  %v3333_v44 = vmax.bf16 %v11779_v56, %v3205_v6 }
 0x34a   : > { %v2730_v25 = vpop.f32.mrb[36].mxu1  ;;  %v9679_v15 = vpop.f32.mrb[182].mxu0  ;;  %v3334_v9 = vmax.bf16 %v11779_v56, %v3206_v33  ;;  %v4551_v33 = vmax.bf16 %v11779_v56, %v4423_v59  ;;  %v12076_v59 = vpack.c.bf16 %v9490_v60, %v9475_v17 }
 0x34b   : > { %v2732_v8 = vpop.f32.mrb[37].mxu1  ;;  %v9685_v50 = vpop.f32.mrb[183].mxu0 }
 0x34c   : > { %v2734_v12 = vpop.f32.mrb[38].mxu1  ;;  %4005 = vmatprep.mubr.bf16.mxu0 %v3334_v9  ;;  %v4422_v9 = vadd.bf16 %v9554_v7, %v12075_v54 }
 0x34d   : > { %v3041_v46 = vpack.c.bf16 %v2734_v12, %v2730_v25  ;;  %v2736_v51 = vpop.f32.mrb[39].mxu1  ;;  %4006 = vmatmul.mubr.bf16.gmra.mrb[32].mxu0 %v3333_v44  ;;  %v7300_v25 = vld [vmem:[%s11654_s9 + $0x70] sm:$0xff]   ;;  %v4425_v44 = vadd.bf16 %v9525_v3, %v12076_v59 }
 0x34e   : > { %v3042_v40 = vpack.c.bf16 %v2736_v51, %v2732_v8  ;;  %6119 = vmatpush1.bf16.msra.mxu0 %v7300_v25  ;;  %v4550_v60 = vmax.bf16 %v11779_v56, %v4422_v9 }
 0x34f   : > { %v3207_v6 = vadd.bf16 %v8845_v28, %v3041_v46  ;;  %4933 = vmatmul.mubr.bf16.gmra.mrb[144].mxu1 %v4548_v61  ;;  %6120 = vmatprep.subr.bf16.mxu0 %v11779_v56 }
 0x350   : > { %v3208_v22 = vadd.bf16 %v8848_v14, %v3042_v40  ;;  %v9693_v36 = vpop.f32.mrb[184].mxu0  ;;  %4942 = vmatprep.mubr.bf16.mxu1 %v4551_v33 }
 0x351   : > { %v9699_v11 = vpop.f32.mrb[185].mxu0  ;;  %v3335_v20 = vmax.bf16 %v11779_v56, %v3207_v6 }
 0x352   : > { %v2740_v8 = vpop.f32.mrb[40].mxu1  ;;  %v9708_v12 = vpop.f32.mrb[186].mxu0  ;;  %v3336_v61 = vmax.bf16 %v11779_v56, %v3208_v22  ;;  %v4553_v22 = vmax.bf16 %v11779_v56, %v4425_v44 }
 0x353   : > { %v2742_v54 = vpop.f32.mrb[41].mxu1  ;;  %v9714_v46 = vpop.f32.mrb[187].mxu0 }
 0x354   : > { %v2744_v17 = vpop.f32.mrb[42].mxu1  ;;  %4015 = vmatprep.mubr.bf16.mxu0 %v3336_v61  ;;  %v12077_v61 = vpack.c.bf16 %v9484_v32, %v9469_v42 }
 0x355   : > { %v3043_v40 = vpack.c.bf16 %v2744_v17, %v2740_v8  ;;  %v2746_v33 = vpop.f32.mrb[43].mxu1  ;;  %4016 = vmatmul.mubr.bf16.gmra.mrb[36].mxu0 %v3335_v20  ;;  %v12078_v8 = vpack.c.bf16 %v9518_v62, %v9506_v2 }
 0x356   : > { %v3044_v6 = vpack.c.bf16 %v2746_v33, %v2742_v54  ;;  %v4424_v51 = vadd.bf16 %v9554_v7, %v12077_v61  ;;  %v12079_v33 = vpack.c.bf16 %v9512_v19, %v9500_v53 }
 0x357   : > { %v3209_v59 = vadd.bf16 %v8845_v28, %v3043_v40  ;;  %4943 = vmatmul.mubr.bf16.gmra.mrb[148].mxu1 %v4550_v60  ;;  %v4427_v44 = vadd.bf16 %v9525_v3, %v12078_v8 }
 0x358   : > { %v3210_v25 = vadd.bf16 %v8848_v14, %v3044_v6  ;;  %v9723_v4 = vpop.f32.mrb[188].mxu0  ;;  %4952 = vmatprep.mubr.bf16.mxu1 %v4553_v22  ;;  %v4552_v2 = vmax.bf16 %v11779_v56, %v4424_v51 }
 0x359   : > { %v9729_v9 = vpop.f32.mrb[189].mxu0  ;;  %v3337_v60 = vmax.bf16 %v11779_v56, %v3209_v59 }
 0x35a   : > { %v2750_v20 = vpop.f32.mrb[44].mxu1  ;;  %v9735_v54 = vpop.f32.mrb[190].mxu0  ;;  %v3338_v17 = vmax.bf16 %v11779_v56, %v3210_v25  ;;  %v4555_v25 = vmax.bf16 %v11779_v56, %v4427_v44  ;;  %v4429_v44 = vadd.bf16 %v9525_v3, %v4263_v31 }
 0x35b   : > { %v2752_v42 = vpop.f32.mrb[45].mxu1  ;;  %v9741_v32 = vpop.f32.mrb[191].mxu0 }
 0x35c   : > { %v2754_v6 = vpop.f32.mrb[46].mxu1  ;;  %4025 = vmatprep.mubr.bf16.mxu0 %v3338_v17  ;;  %v4426_v17 = vadd.bf16 %v9554_v7, %v12079_v33 }
 0x35d   : > { %v3045_v62 = vpack.c.bf16 %v2754_v6, %v2750_v20  ;;  %v2756_v22 = vpop.f32.mrb[47].mxu1  ;;  %4026 = vmatmul.mubr.bf16.gmra.mrb[40].mxu0 %v3337_v60 }
 0x35e   : > { %v3046_v61 = vpack.c.bf16 %v2756_v22, %v2752_v42  ;;  %v4554_v35 = vmax.bf16 %v11779_v56, %v4426_v17 }
 0x35f   : > { %v3211_v59 = vadd.bf16 %v8845_v28, %v3045_v62  ;;  %4953 = vmatmul.mubr.bf16.gmra.mrb[152].mxu1 %v4552_v2  ;;  %v12080_v2 = vpack.c.bf16 %v9542_v34, %v9530_v5 }
 0x360   : > { %v3212_v8 = vadd.bf16 %v8848_v14, %v3046_v61  ;;  %v9749_v40 = vpop.f32.mrb[192].mxu0  ;;  %4962 = vmatprep.mubr.bf16.mxu1 %v4555_v25  ;;  %v4557_v61 = vmax.bf16 %v11779_v56, %v4429_v44  ;;  %v4431_v44 = vadd.bf16 %v9525_v3, %v4265_v16 }
 0x361   : > { %v9755_v51 = vpop.f32.mrb[193].mxu0  ;;  %v3339_v6 = vmax.bf16 %v11779_v56, %v3211_v59 }
 0x362   : > { %v2760_v20 = vpop.f32.mrb[48].mxu1  ;;  %v9761_v60 = vpop.f32.mrb[194].mxu0  ;;  %v3340_v42 = vmax.bf16 %v11779_v56, %v3212_v8 }
 0x363   : > { %v2762_v53 = vpop.f32.mrb[49].mxu1  ;;  %v9767_v19 = vpop.f32.mrb[195].mxu0 }
 0x364   : > { %v4279_v33 = vpack.c.bf16 %v9767_v19, %v9755_v51  ;;  %v2764_v62 = vpop.f32.mrb[50].mxu1  ;;  %4035 = vmatprep.mubr.bf16.mxu0 %v3340_v42  ;;  %v4428_v42 = vadd.bf16 %v9554_v7, %v12080_v2 }
 0x365   : > { %v3047_v24 = vpack.c.bf16 %v2764_v62, %v2760_v20  ;;  %v2766_v31 = vpop.f32.mrb[51].mxu1  ;;  %4036 = vmatmul.mubr.bf16.gmra.mrb[44].mxu0 %v3339_v6 }
 0x366   : > { %v3048_v22 = vpack.c.bf16 %v2766_v31, %v2762_v53  ;;  %v4556_v39 = vmax.bf16 %v11779_v56, %v4428_v42 }
 0x367   : > { %v3213_v25 = vadd.bf16 %v8845_v28, %v3047_v24  ;;  %4963 = vmatmul.mubr.bf16.gmra.mrb[156].mxu1 %v4554_v35 }
 0x368   : > { %v3214_v59 = vadd.bf16 %v8848_v14, %v3048_v22  ;;  %v9775_v8 = vpop.f32.mrb[196].mxu0  ;;  %4972 = vmatprep.mubr.bf16.mxu1 %v4557_v61  ;;  %v4559_v22 = vmax.bf16 %v11779_v56, %v4431_v44  ;;  %v4433_v44 = vadd.bf16 %v9525_v3, %v4267_v26 }
 0x369   : > { %v9781_v17 = vpop.f32.mrb[197].mxu0  ;;  %v3341_v62 = vmax.bf16 %v11779_v56, %v3213_v25 }
 0x36a   : > { %v2770_v20 = vpop.f32.mrb[52].mxu1  ;;  %v9787_v6 = vpop.f32.mrb[198].mxu0  ;;  %v3342_v53 = vmax.bf16 %v11779_v56, %v3214_v59 }
 0x36b   : > { %v4280_v35 = vpack.c.bf16 %v9787_v6, %v9775_v8  ;;  %v2772_v5 = vpop.f32.mrb[53].mxu1  ;;  %v9793_v34 = vpop.f32.mrb[199].mxu0 }
 0x36c   : > { %v4281_v2 = vpack.c.bf16 %v9793_v34, %v9781_v17  ;;  %v2774_v24 = vpop.f32.mrb[54].mxu1  ;;  %4045 = vmatprep.mubr.bf16.mxu0 %v3342_v53  ;;  %v4430_v53 = vadd.bf16 %v9554_v7, %v4264_v27 }
 0x36d   : > { %v3049_v21 = vpack.c.bf16 %v2774_v24, %v2770_v20  ;;  %v2776_v16 = vpop.f32.mrb[55].mxu1  ;;  %4046 = vmatmul.mubr.bf16.gmra.mrb[48].mxu0 %v3341_v62  ;;  %v7301_v20 = vld [vmem:[%s11654_s9 + $0x78] sm:$0xff]  }
 0x36e   : > { %v3050_v31 = vpack.c.bf16 %v2776_v16, %v2772_v5  ;;  %6121 = vmatpush1.bf16.msra.mxu0 %v7301_v20  ;;  %v4558_v49 = vmax.bf16 %v11779_v56, %v4430_v53  ;;  %v4432_v20 = vadd.bf16 %v9554_v7, %v4266_v29 }
 0x36f   : > { %v3215_v61 = vadd.bf16 %v8845_v28, %v3049_v21  ;;  %4973 = vmatmul.mubr.bf16.gmra.mrb[160].mxu1 %v4556_v39 }
 0x370   : > { %v3216_v25 = vadd.bf16 %v8848_v14, %v3050_v31  ;;  %v9801_v59 = vpop.f32.mrb[200].mxu0  ;;  %4982 = vmatprep.mubr.bf16.mxu1 %v4559_v22  ;;  %v4561_v22 = vmax.bf16 %v11779_v56, %v4433_v44  ;;  %v4435_v44 = vadd.bf16 %v9525_v3, %v4269_v45  ;;  %v4560_v57 = vmax.bf16 %v11779_v56, %v4432_v20 }
 0x371   : > { %v9807_v42 = vpop.f32.mrb[201].mxu0  ;;  %v3343_v48 = vmax.bf16 %v11779_v56, %v3215_v61 }
 0x372   : > { %v2780_v62 = vpop.f32.mrb[56].mxu1  ;;  %v9816_v5 = vpop.f32.mrb[202].mxu0  ;;  %v3344_v24 = vmax.bf16 %v11779_v56, %v3216_v25 }
 0x373   : > { %v2782_v27 = vpop.f32.mrb[57].mxu1  ;;  %v9822_v39 = vpop.f32.mrb[203].mxu0 }
 0x374   : > { %v4283_v21 = vpack.c.bf16 %v9822_v39, %v9807_v42  ;;  %v2784_v55 = vpop.f32.mrb[58].mxu1  ;;  %4055 = vmatprep.mubr.bf16.mxu0 %v3344_v24 }
 0x375   : > { %v3051_v26 = vpack.c.bf16 %v2784_v55, %v2780_v62  ;;  %v2786_v16 = vpop.f32.mrb[59].mxu1  ;;  %4056 = vmatmul.mubr.bf16.gmra.mrb[52].mxu0 %v3343_v48 }
 0x376   : > { %v3052_v31 = vpack.c.bf16 %v2786_v16, %v2782_v27  ;;  %v4563_v16 = vmax.bf16 %v11779_v56, %v4435_v44 }
 0x377   : > { %v3217_v61 = vadd.bf16 %v8845_v28, %v3051_v26  ;;  %4983 = vmatmul.mubr.bf16.gmra.mrb[164].mxu1 %v4558_v49 }
 0x378   : > { %v3218_v25 = vadd.bf16 %v8848_v14, %v3052_v31  ;;  %v9830_v10 = vpop.f32.mrb[204].mxu0  ;;  %4992 = vmatprep.mubr.bf16.mxu1 %v4561_v22 }
 0x379   : > { %v9836_v53 = vpop.f32.mrb[205].mxu0  ;;  %v3345_v27 = vmax.bf16 %v11779_v56, %v3217_v61 }
 0x37a   : > { %v2790_v62 = vpop.f32.mrb[60].mxu1  ;;  %v9842_v24 = vpop.f32.mrb[206].mxu0  ;;  %v3346_v48 = vmax.bf16 %v11779_v56, %v3218_v25  ;;  %v4434_v25 = vadd.bf16 %v9554_v7, %v4268_v30 }
 0x37b   : > { %v4284_v55 = vpack.c.bf16 %v9842_v24, %v9830_v10  ;;  %v2792_v1 = vpop.f32.mrb[61].mxu1  ;;  %v9848_v43 = vpop.f32.mrb[207].mxu0 }
 0x37c   : > { %v4285_v29 = vpack.c.bf16 %v9848_v43, %v9836_v53  ;;  %v2794_v49 = vpop.f32.mrb[62].mxu1  ;;  %4065 = vmatprep.mubr.bf16.mxu0 %v3346_v48 }
 0x37d   : > { %v3053_v18 = vpack.c.bf16 %v2794_v49, %v2790_v62  ;;  %v2796_v45 = vpop.f32.mrb[63].mxu1  ;;  %4066 = vmatmul.mubr.bf16.gmra.mrb[56].mxu0 %v3345_v27  ;;  %v12081_v62 = vpack.c.bf16 %v9659_v38, %v9647_v0  ;;  %v4562_v0 = vmax.bf16 %v11779_v56, %v4434_v25 }
 0x37e   : > { %v3054_v26 = vpack.c.bf16 %v2796_v45, %v2792_v1 }
 0x37f   : > { %v3219_v31 = vadd.bf16 %v8845_v28, %v3053_v18  ;;  %4993 = vmatmul.mubr.bf16.gmra.mrb[168].mxu1 %v4560_v57  ;;  %v4437_v44 = vadd.bf16 %v9525_v3, %v12081_v62  ;;  %v12082_v57 = vpack.c.bf16 %v9653_v58, %v9641_v23 }
 0x380   : > { %v3220_v22 = vadd.bf16 %v8848_v14, %v3054_v26  ;;  %v9856_v61 = vpop.f32.mrb[208].mxu0  ;;  %5002 = vmatprep.mubr.bf16.mxu1 %v4563_v16 }
 0x381   : > { %v9862_v20 = vpop.f32.mrb[209].mxu0  ;;  %v3347_v49 = vmax.bf16 %v11779_v56, %v3219_v31  ;;  %v4565_v16 = vmax.bf16 %v11779_v56, %v4437_v44 }
 0x382   : > { %v2800_v48 = vpop.f32.mrb[64].mxu1  ;;  %v9868_v27 = vpop.f32.mrb[210].mxu0  ;;  %v3348_v1 = vmax.bf16 %v11779_v56, %v3220_v22 }
 0x383   : > { %v2802_v52 = vpop.f32.mrb[65].mxu1  ;;  %v9874_v13 = vpop.f32.mrb[211].mxu0 }
 0x384   : > { %v4287_v30 = vpack.c.bf16 %v9874_v13, %v9862_v20  ;;  %v2804_v18 = vpop.f32.mrb[66].mxu1  ;;  %4075 = vmatprep.mubr.bf16.mxu0 %v3348_v1  ;;  %v4436_v1 = vadd.bf16 %v9554_v7, %v12082_v57  ;;  %v12084_v57 = vpack.c.bf16 %v9679_v15, %v9667_v37 }
 0x385   : > { %v3055_v38 = vpack.c.bf16 %v2804_v18, %v2800_v48  ;;  %v2806_v45 = vpop.f32.mrb[67].mxu1  ;;  %4076 = vmatmul.mubr.bf16.gmra.mrb[60].mxu0 %v3347_v49  ;;  %v12083_v48 = vpack.c.bf16 %v9685_v50, %v9673_v41 }
 0x386   : > { %v3056_v26 = vpack.c.bf16 %v2806_v45, %v2802_v52  ;;  %v4564_v41 = vmax.bf16 %v11779_v56, %v4436_v1 }
 0x387   : > { %v3221_v31 = vadd.bf16 %v8845_v28, %v3055_v38  ;;  %5003 = vmatmul.mubr.bf16.gmra.mrb[172].mxu1 %v4562_v0  ;;  %v4439_v44 = vadd.bf16 %v9525_v3, %v12083_v48 }
 0x388   : > { %v3222_v22 = vadd.bf16 %v8848_v14, %v3056_v26  ;;  %v9882_v62 = vpop.f32.mrb[212].mxu0  ;;  %5012 = vmatprep.mubr.bf16.mxu1 %v4565_v16 }
 0x389   : > { %v9888_v25 = vpop.f32.mrb[213].mxu0  ;;  %v3349_v0 = vmax.bf16 %v11779_v56, %v3221_v31 }
 0x38a   : > { %v2810_v49 = vpop.f32.mrb[68].mxu1  ;;  %v9894_v52 = vpop.f32.mrb[214].mxu0  ;;  %v3350_v18 = vmax.bf16 %v11779_v56, %v3222_v22  ;;  %v4567_v22 = vmax.bf16 %v11779_v56, %v4439_v44 }
 0x38b   : > { %v2812_v23 = vpop.f32.mrb[69].mxu1  ;;  %v9900_v58 = vpop.f32.mrb[215].mxu0 }
 0x38c   : > { %v2814_v45 = vpop.f32.mrb[70].mxu1  ;;  %4085 = vmatprep.mubr.bf16.mxu0 %v3350_v18  ;;  %v4438_v18 = vadd.bf16 %v9554_v7, %v12084_v57  ;;  %v12086_v57 = vpack.c.bf16 %v9708_v12, %v9693_v36 }
 0x38d   : > { %v3057_v50 = vpack.c.bf16 %v2814_v45, %v2810_v49  ;;  %v2816_v26 = vpop.f32.mrb[71].mxu1  ;;  %4086 = vmatmul.mubr.bf16.gmra.mrb[64].mxu0 %v3349_v0  ;;  %v12085_v49 = vpack.c.bf16 %v9714_v46, %v9699_v11 }
 0x38e   : > { %v3058_v16 = vpack.c.bf16 %v2816_v26, %v2812_v23  ;;  %v4566_v11 = vmax.bf16 %v11779_v56, %v4438_v18 }
 0x38f   : > { %v3223_v31 = vadd.bf16 %v8845_v28, %v3057_v50  ;;  %5013 = vmatmul.mubr.bf16.gmra.mrb[176].mxu1 %v4564_v41  ;;  %v4441_v44 = vadd.bf16 %v9525_v3, %v12085_v49 }
 0x390   : > { %v3224_v48 = vadd.bf16 %v8848_v14, %v3058_v16  ;;  %v9908_v38 = vpop.f32.mrb[216].mxu0  ;;  %5022 = vmatprep.mubr.bf16.mxu1 %v4567_v22 }
 0x391   : > { %v9914_v1 = vpop.f32.mrb[217].mxu0  ;;  %v3351_v41 = vmax.bf16 %v11779_v56, %v3223_v31 }
 0x392   : > { %v2820_v0 = vpop.f32.mrb[72].mxu1  ;;  %v9920_v23 = vpop.f32.mrb[218].mxu0  ;;  %v3352_v45 = vmax.bf16 %v11779_v56, %v3224_v48  ;;  %v4569_v48 = vmax.bf16 %v11779_v56, %v4441_v44 }
 0x393   : > { %v2822_v37 = vpop.f32.mrb[73].mxu1  ;;  %v9926_v15 = vpop.f32.mrb[219].mxu0 }
 0x394   : > { %v2824_v26 = vpop.f32.mrb[74].mxu1  ;;  %4095 = vmatprep.mubr.bf16.mxu0 %v3352_v45  ;;  %v4440_v45 = vadd.bf16 %v9554_v7, %v12086_v57  ;;  %v12088_v57 = vpack.c.bf16 %v9735_v54, %v9723_v4 }
 0x395   : > { %v3059_v46 = vpack.c.bf16 %v2824_v26, %v2820_v0  ;;  %v2826_v16 = vpop.f32.mrb[75].mxu1  ;;  %4096 = vmatmul.mubr.bf16.gmra.mrb[68].mxu0 %v3351_v41  ;;  %v12087_v0 = vpack.c.bf16 %v9741_v32, %v9729_v9 }
 0x396   : > { %v3060_v22 = vpack.c.bf16 %v2826_v16, %v2822_v37  ;;  %v4568_v9 = vmax.bf16 %v11779_v56, %v4440_v45 }
 0x397   : > { %v3225_v31 = vadd.bf16 %v8845_v28, %v3059_v46  ;;  %5023 = vmatmul.mubr.bf16.gmra.mrb[180].mxu1 %v4566_v11  ;;  %v4443_v44 = vadd.bf16 %v9525_v3, %v12087_v0 }
 0x398   : > { %v3226_v49 = vadd.bf16 %v8848_v14, %v3060_v22  ;;  %v9934_v50 = vpop.f32.mrb[220].mxu0  ;;  %5032 = vmatprep.mubr.bf16.mxu1 %v4569_v48 }
 0x399   : > { %v9940_v18 = vpop.f32.mrb[221].mxu0  ;;  %v3353_v11 = vmax.bf16 %v11779_v56, %v3225_v31 }
 0x39a   : > { %v2830_v41 = vpop.f32.mrb[76].mxu1  ;;  %v9946_v37 = vpop.f32.mrb[222].mxu0  ;;  %v3354_v26 = vmax.bf16 %v11779_v56, %v3226_v49  ;;  %v4571_v49 = vmax.bf16 %v11779_v56, %v4443_v44  ;;  %v4445_v44 = vadd.bf16 %v9525_v3, %v4279_v33 }
 0x39b   : > { %v2832_v36 = vpop.f32.mrb[77].mxu1  ;;  %v9952_v12 = vpop.f32.mrb[223].mxu0 }
 0x39c   : > { %v2834_v16 = vpop.f32.mrb[78].mxu1  ;;  %4105 = vmatprep.mubr.bf16.mxu0 %v3354_v26  ;;  %v4442_v26 = vadd.bf16 %v9554_v7, %v12088_v57 }
 0x39d   : > { %v3061_v32 = vpack.c.bf16 %v2834_v16, %v2830_v41  ;;  %v2836_v22 = vpop.f32.mrb[79].mxu1  ;;  %4106 = vmatmul.mubr.bf16.gmra.mrb[72].mxu0 %v3353_v11 }
 0x39e   : > { %v3062_v48 = vpack.c.bf16 %v2836_v22, %v2832_v36  ;;  %v4570_v51 = vmax.bf16 %v11779_v56, %v4442_v26 }
 0x39f   : > { %v3227_v31 = vadd.bf16 %v8845_v28, %v3061_v32  ;;  %5033 = vmatmul.mubr.bf16.gmra.mrb[184].mxu1 %v4568_v9  ;;  %v12089_v9 = vpack.c.bf16 %v9761_v60, %v9749_v40 }
 0x3a0   : > { %v3228_v0 = vadd.bf16 %v8848_v14, %v3062_v48  ;;  %v9960_v46 = vpop.f32.mrb[224].mxu0  ;;  %5042 = vmatprep.mubr.bf16.mxu1 %v4571_v49  ;;  %v4573_v48 = vmax.bf16 %v11779_v56, %v4445_v44  ;;  %v4447_v44 = vadd.bf16 %v9525_v3, %v4281_v2 }
 0x3a1   : > { %v9966_v45 = vpop.f32.mrb[225].mxu0  ;;  %v3355_v16 = vmax.bf16 %v11779_v56, %v3227_v31 }
 0x3a2   : > { %v2840_v41 = vpop.f32.mrb[80].mxu1  ;;  %v9972_v11 = vpop.f32.mrb[226].mxu0  ;;  %v3356_v36 = vmax.bf16 %v11779_v56, %v3228_v0 }
 0x3a3   : > { %v2842_v4 = vpop.f32.mrb[81].mxu1  ;;  %v9978_v54 = vpop.f32.mrb[227].mxu0 }
 0x3a4   : > { %v4295_v57 = vpack.c.bf16 %v9978_v54, %v9966_v45  ;;  %v2844_v32 = vpop.f32.mrb[82].mxu1  ;;  %4115 = vmatprep.mubr.bf16.mxu0 %v3356_v36  ;;  %v4444_v36 = vadd.bf16 %v9554_v7, %v12089_v9 }
 0x3a5   : > { %v3063_v19 = vpack.c.bf16 %v2844_v32, %v2840_v41  ;;  %v2846_v33 = vpop.f32.mrb[83].mxu1  ;;  %4116 = vmatmul.mubr.bf16.gmra.mrb[76].mxu0 %v3355_v16 }
 0x3a6   : > { %v3064_v22 = vpack.c.bf16 %v2846_v33, %v2842_v4  ;;  %v4572_v17 = vmax.bf16 %v11779_v56, %v4444_v36 }
 0x3a7   : > { %v3229_v49 = vadd.bf16 %v8845_v28, %v3063_v19  ;;  %5043 = vmatmul.mubr.bf16.gmra.mrb[188].mxu1 %v4570_v51 }
 0x3a8   : > { %v3230_v31 = vadd.bf16 %v8848_v14, %v3064_v22  ;;  %v9986_v0 = vpop.f32.mrb[228].mxu0  ;;  %5052 = vmatprep.mubr.bf16.mxu1 %v4573_v48  ;;  %v4575_v22 = vmax.bf16 %v11779_v56, %v4447_v44  ;;  %v4449_v44 = vadd.bf16 %v9525_v3, %v4283_v21 }
 0x3a9   : > { %v9992_v26 = vpop.f32.mrb[229].mxu0  ;;  %v3357_v32 = vmax.bf16 %v11779_v56, %v3229_v49 }
 0x3aa   : > { %v2850_v41 = vpop.f32.mrb[84].mxu1  ;;  %v9998_v16 = vpop.f32.mrb[230].mxu0  ;;  %v3358_v4 = vmax.bf16 %v11779_v56, %v3230_v31 }
 0x3ab   : > { %v4296_v51 = vpack.c.bf16 %v9998_v16, %v9986_v0  ;;  %v2852_v40 = vpop.f32.mrb[85].mxu1  ;;  %v10004_v60 = vpop.f32.mrb[231].mxu0 }
 0x3ac   : > { %v4297_v9 = vpack.c.bf16 %v10004_v60, %v9992_v26  ;;  %v2854_v19 = vpop.f32.mrb[86].mxu1  ;;  %4125 = vmatprep.mubr.bf16.mxu0 %v3358_v4  ;;  %v4446_v4 = vadd.bf16 %v9554_v7, %v4280_v35 }
 0x3ad   : > { %v3065_v34 = vpack.c.bf16 %v2854_v19, %v2850_v41  ;;  %v2856_v2 = vpop.f32.mrb[87].mxu1  ;;  %4126 = vmatmul.mubr.bf16.gmra.mrb[80].mxu0 %v3357_v32 }
 0x3ae   : > { %v3066_v33 = vpack.c.bf16 %v2856_v2, %v2852_v40  ;;  %v4574_v42 = vmax.bf16 %v11779_v56, %v4446_v4 }
 0x3af   : > { %v3231_v48 = vadd.bf16 %v8845_v28, %v3065_v34  ;;  %5053 = vmatmul.mubr.bf16.gmra.mrb[192].mxu1 %v4572_v17  ;;  %v12090_v17 = vpack.c.bf16 %v9816_v5, %v9801_v59 }
 0x3b0   : > { %v3232_v49 = vadd.bf16 %v8848_v14, %v3066_v33  ;;  %v10012_v31 = vpop.f32.mrb[232].mxu0  ;;  %5062 = vmatprep.mubr.bf16.mxu1 %v4575_v22  ;;  %v4577_v33 = vmax.bf16 %v11779_v56, %v4449_v44  ;;  %v4451_v44 = vadd.bf16 %v9525_v3, %v4285_v29 }
 0x3b1   : > { %v10018_v36 = vpop.f32.mrb[233].mxu0  ;;  %v3359_v19 = vmax.bf16 %v11779_v56, %v3231_v48 }
 0x3b2   : > { %v2860_v41 = vpop.f32.mrb[88].mxu1  ;;  %v10024_v32 = vpop.f32.mrb[234].mxu0  ;;  %v3360_v40 = vmax.bf16 %v11779_v56, %v3232_v49 }
 0x3b3   : > { %v2862_v8 = vpop.f32.mrb[89].mxu1  ;;  %v10030_v6 = vpop.f32.mrb[235].mxu0 }
 0x3b4   : > { %v4299_v35 = vpack.c.bf16 %v10030_v6, %v10018_v36  ;;  %v2864_v34 = vpop.f32.mrb[90].mxu1  ;;  %4135 = vmatprep.mubr.bf16.mxu0 %v3360_v40  ;;  %v4448_v40 = vadd.bf16 %v9554_v7, %v12090_v17 }
 0x3b5   : > { %v3067_v39 = vpack.c.bf16 %v2864_v34, %v2860_v41  ;;  %v2866_v21 = vpop.f32.mrb[91].mxu1  ;;  %4136 = vmatmul.mubr.bf16.gmra.mrb[84].mxu0 %v3359_v19 }
 0x3b6   : > { %v3068_v2 = vpack.c.bf16 %v2866_v21, %v2862_v8  ;;  %v4576_v53 = vmax.bf16 %v11779_v56, %v4448_v40 }
 0x3b7   : > { %v3233_v22 = vadd.bf16 %v8845_v28, %v3067_v39  ;;  %5063 = vmatmul.mubr.bf16.gmra.mrb[196].mxu1 %v4574_v42 }
 0x3b8   : > { %v3234_v48 = vadd.bf16 %v8848_v14, %v3068_v2  ;;  %v10038_v49 = vpop.f32.mrb[236].mxu0  ;;  %5072 = vmatprep.mubr.bf16.mxu1 %v4577_v33  ;;  %v4579_v2 = vmax.bf16 %v11779_v56, %v4451_v44  ;;  %v4453_v44 = vadd.bf16 %v9525_v3, %v4287_v30 }
 0x3b9   : > { %v10044_v4 = vpop.f32.mrb[237].mxu0  ;;  %v3361_v34 = vmax.bf16 %v11779_v56, %v3233_v22 }
 0x3ba   : > { %v2870_v41 = vpop.f32.mrb[92].mxu1  ;;  %v10050_v19 = vpop.f32.mrb[238].mxu0  ;;  %v3362_v8 = vmax.bf16 %v11779_v56, %v3234_v48 }
 0x3bb   : > { %v4300_v42 = vpack.c.bf16 %v10050_v19, %v10038_v49  ;;  %v2872_v59 = vpop.f32.mrb[93].mxu1  ;;  %v10056_v5 = vpop.f32.mrb[239].mxu0 }
 0x3bc   : > { %v4301_v17 = vpack.c.bf16 %v10056_v5, %v10044_v4  ;;  %v2874_v39 = vpop.f32.mrb[94].mxu1  ;;  %4145 = vmatprep.mubr.bf16.mxu0 %v3362_v8  ;;  %v4450_v8 = vadd.bf16 %v9554_v7, %v4284_v55 }
 0x3bd   : > { %v3069_v43 = vpack.c.bf16 %v2874_v39, %v2870_v41  ;;  %v2876_v29 = vpop.f32.mrb[95].mxu1  ;;  %4146 = vmatmul.mubr.bf16.gmra.mrb[88].mxu0 %v3361_v34 }
 0x3be   : > { %v3070_v21 = vpack.c.bf16 %v2876_v29, %v2872_v59  ;;  %v4578_v20 = vmax.bf16 %v11779_v56, %v4450_v8 }
 0x3bf   : > { %v3235_v33 = vadd.bf16 %v8845_v28, %v3069_v43  ;;  %5073 = vmatmul.mubr.bf16.gmra.mrb[200].mxu1 %v4576_v53  ;;  %v12091_v53 = vpack.c.bf16 %v9868_v27, %v9856_v61 }
 0x3c0   : > { %v3236_v22 = vadd.bf16 %v8848_v14, %v3070_v21  ;;  %v10064_v48 = vpop.f32.mrb[240].mxu0  ;;  %5082 = vmatprep.mubr.bf16.mxu1 %v4579_v2  ;;  %v4581_v21 = vmax.bf16 %v11779_v56, %v4453_v44 }
 0x3c1   : > { %v10070_v40 = vpop.f32.mrb[241].mxu0  ;;  %v3363_v39 = vmax.bf16 %v11779_v56, %v3235_v33 }
 0x3c2   : > { %v2880_v41 = vpop.f32.mrb[96].mxu1  ;;  %v10076_v34 = vpop.f32.mrb[242].mxu0  ;;  %v3364_v59 = vmax.bf16 %v11779_v56, %v3236_v22 }
 0x3c3   : > { %v2882_v10 = vpop.f32.mrb[97].mxu1  ;;  %v10082_v24 = vpop.f32.mrb[243].mxu0 }
 0x3c4   : > { %v4303_v55 = vpack.c.bf16 %v10082_v24, %v10070_v40  ;;  %v2884_v43 = vpop.f32.mrb[98].mxu1  ;;  %4155 = vmatprep.mubr.bf16.mxu0 %v3364_v59  ;;  %v4452_v59 = vadd.bf16 %v9554_v7, %v12091_v53  ;;  %v12093_v53 = vpack.c.bf16 %v9894_v52, %v9882_v62 }
 0x3c5   : > { %v3071_v13 = vpack.c.bf16 %v2884_v43, %v2880_v41  ;;  %v2886_v30 = vpop.f32.mrb[99].mxu1  ;;  %4156 = vmatmul.mubr.bf16.gmra.mrb[92].mxu0 %v3363_v39  ;;  %v12092_v41 = vpack.c.bf16 %v9900_v58, %v9888_v25 }
 0x3c6   : > { %v3072_v29 = vpack.c.bf16 %v2886_v30, %v2882_v10  ;;  %v4580_v25 = vmax.bf16 %v11779_v56, %v4452_v59 }
 0x3c7   : > { %v3237_v2 = vadd.bf16 %v8845_v28, %v3071_v13  ;;  %5083 = vmatmul.mubr.bf16.gmra.mrb[204].mxu1 %v4578_v20  ;;  %v4455_v44 = vadd.bf16 %v9525_v3, %v12092_v41 }
 0x3c8   : > { %v3238_v33 = vadd.bf16 %v8848_v14, %v3072_v29  ;;  %v10090_v22 = vpop.f32.mrb[244].mxu0  ;;  %5092 = vmatprep.mubr.bf16.mxu1 %v4581_v21 }
 0x3c9   : > { %v10096_v8 = vpop.f32.mrb[245].mxu0  ;;  %v3365_v20 = vmax.bf16 %v11779_v56, %v3237_v2 }
 0x3ca   : > { %v2890_v39 = vpop.f32.mrb[100].mxu1  ;;  %v10102_v10 = vpop.f32.mrb[246].mxu0  ;;  %v3366_v43 = vmax.bf16 %v11779_v56, %v3238_v33  ;;  %v4583_v33 = vmax.bf16 %v11779_v56, %v4455_v44 }
 0x3cb   : > { %v2892_v61 = vpop.f32.mrb[101].mxu1  ;;  %v10108_v27 = vpop.f32.mrb[247].mxu0 }
 0x3cc   : > { %v2894_v30 = vpop.f32.mrb[102].mxu1  ;;  %4165 = vmatprep.mubr.bf16.mxu0 %v3366_v43  ;;  %v4454_v43 = vadd.bf16 %v9554_v7, %v12093_v53  ;;  %v12095_v53 = vpack.c.bf16 %v9920_v23, %v9908_v38 }
 0x3cd   : > { %v3073_v58 = vpack.c.bf16 %v2894_v30, %v2890_v39  ;;  %v2896_v29 = vpop.f32.mrb[103].mxu1  ;;  %4166 = vmatmul.mubr.bf16.gmra.mrb[96].mxu0 %v3365_v20  ;;  %v12094_v39 = vpack.c.bf16 %v9926_v15, %v9914_v1 }
 0x3ce   : > { %v3074_v21 = vpack.c.bf16 %v2896_v29, %v2892_v61  ;;  %v4582_v1 = vmax.bf16 %v11779_v56, %v4454_v43 }
 0x3cf   : > { %v3239_v2 = vadd.bf16 %v8845_v28, %v3073_v58  ;;  %5093 = vmatmul.mubr.bf16.gmra.mrb[208].mxu1 %v4580_v25  ;;  %v4457_v44 = vadd.bf16 %v9525_v3, %v12094_v39 }
 0x3d0   : > { %v3240_v41 = vadd.bf16 %v8848_v14, %v3074_v21  ;;  %v10116_v13 = vpop.f32.mrb[248].mxu0  ;;  %5102 = vmatprep.mubr.bf16.mxu1 %v4583_v33 }
 0x3d1   : > { %v10122_v59 = vpop.f32.mrb[249].mxu0  ;;  %v3367_v25 = vmax.bf16 %v11779_v56, %v3239_v2 }
 0x3d2   : > { %v2900_v20 = vpop.f32.mrb[104].mxu1  ;;  %v10128_v61 = vpop.f32.mrb[250].mxu0  ;;  %v3368_v30 = vmax.bf16 %v11779_v56, %v3240_v41  ;;  %v4585_v41 = vmax.bf16 %v11779_v56, %v4457_v44 }
 0x3d3   : > { %v2902_v62 = vpop.f32.mrb[105].mxu1  ;;  %v10134_v52 = vpop.f32.mrb[251].mxu0 }
 0x3d4   : > { %v2904_v29 = vpop.f32.mrb[106].mxu1  ;;  %4175 = vmatprep.mubr.bf16.mxu0 %v3368_v30  ;;  %v4456_v30 = vadd.bf16 %v9554_v7, %v12095_v53  ;;  %v12097_v53 = vpack.c.bf16 %v9946_v37, %v9934_v50 }
 0x3d5   : > { %v3075_v15 = vpack.c.bf16 %v2904_v29, %v2900_v20  ;;  %v2906_v21 = vpop.f32.mrb[107].mxu1  ;;  %4176 = vmatmul.mubr.bf16.gmra.mrb[100].mxu0 %v3367_v25  ;;  %v12096_v20 = vpack.c.bf16 %v9952_v12, %v9940_v18 }
 0x3d6   : > { %v3076_v33 = vpack.c.bf16 %v2906_v21, %v2902_v62  ;;  %v4584_v18 = vmax.bf16 %v11779_v56, %v4456_v30 }
 0x3d7   : > { %v3241_v2 = vadd.bf16 %v8845_v28, %v3075_v15  ;;  %5103 = vmatmul.mubr.bf16.gmra.mrb[212].mxu1 %v4582_v1  ;;  %v4459_v44 = vadd.bf16 %v9525_v3, %v12096_v20 }
 0x3d8   : > { %v3242_v39 = vadd.bf16 %v8848_v14, %v3076_v33  ;;  %v10142_v58 = vpop.f32.mrb[252].mxu0  ;;  %5112 = vmatprep.mubr.bf16.mxu1 %v4585_v41 }
 0x3d9   : > { %v10148_v43 = vpop.f32.mrb[253].mxu0  ;;  %v3369_v1 = vmax.bf16 %v11779_v56, %v3241_v2 }
 0x3da   : > { %v2910_v25 = vpop.f32.mrb[108].mxu1  ;;  %v10154_v62 = vpop.f32.mrb[254].mxu0  ;;  %v3370_v29 = vmax.bf16 %v11779_v56, %v3242_v39  ;;  %v4587_v39 = vmax.bf16 %v11779_v56, %v4459_v44  ;;  %v4461_v44 = vadd.bf16 %v9525_v3, %v4295_v57 }
 0x3db   : > { %v2912_v38 = vpop.f32.mrb[109].mxu1  ;;  %v10160_v23 = vpop.f32.mrb[255].mxu0 }
 0x3dc   : > { %v2914_v21 = vpop.f32.mrb[110].mxu1  ;;  %4185 = vmatprep.mubr.bf16.mxu0 %v3370_v29  ;;  %v4458_v29 = vadd.bf16 %v9554_v7, %v12097_v53 }
 0x3dd   : > { %v3077_v12 = vpack.c.bf16 %v2914_v21, %v2910_v25  ;;  %v2916_v33 = vpop.f32.mrb[111].mxu1  ;;  %4186 = vmatmul.mubr.bf16.gmra.mrb[104].mxu0 %v3369_v1 }
 0x3de   : > { %v3078_v41 = vpack.c.bf16 %v2916_v33, %v2912_v38  ;;  %v4586_v45 = vmax.bf16 %v11779_v56, %v4458_v29 }
 0x3df   : > { %v3243_v2 = vadd.bf16 %v8845_v28, %v3077_v12  ;;  %5113 = vmatmul.mubr.bf16.gmra.mrb[216].mxu1 %v4584_v18  ;;  %v12098_v18 = vpack.c.bf16 %v9972_v11, %v9960_v46 }
 0x3e0   : > { %v3244_v20 = vadd.bf16 %v8848_v14, %v3078_v41  ;;  %v10168_v15 = vpop.f32.mrb[0].mxu0  ;;  %5122 = vmatprep.mubr.bf16.mxu1 %v4587_v39  ;;  %v4589_v41 = vmax.bf16 %v11779_v56, %v4461_v44  ;;  %v4463_v44 = vadd.bf16 %v9525_v3, %v4297_v9 }
 0x3e1   : > { %v10174_v30 = vpop.f32.mrb[1].mxu0  ;;  %v3371_v21 = vmax.bf16 %v11779_v56, %v3243_v2 }
 0x3e2   : > { %v2920_v25 = vpop.f32.mrb[112].mxu1  ;;  %v10180_v1 = vpop.f32.mrb[2].mxu0  ;;  %v3372_v38 = vmax.bf16 %v11779_v56, %v3244_v20 }
 0x3e3   : > { %v2922_v50 = vpop.f32.mrb[113].mxu1  ;;  %v10186_v37 = vpop.f32.mrb[3].mxu0 }
 0x3e4   : > { %v4311_v53 = vpack.c.bf16 %v10186_v37, %v10174_v30  ;;  %v2924_v12 = vpop.f32.mrb[114].mxu1  ;;  %4195 = vmatprep.mubr.bf16.mxu0 %v3372_v38  ;;  %v4460_v38 = vadd.bf16 %v9554_v7, %v12098_v18 }
 0x3e5   : > { %v3079_v54 = vpack.c.bf16 %v2924_v12, %v2920_v25  ;;  %v2926_v57 = vpop.f32.mrb[115].mxu1  ;;  %4196 = vmatmul.mubr.bf16.gmra.mrb[108].mxu0 %v3371_v21 }
 0x3e6   : > { %v3080_v33 = vpack.c.bf16 %v2926_v57, %v2922_v50  ;;  %v4588_v26 = vmax.bf16 %v11779_v56, %v4460_v38 }
 0x3e7   : > { %v3245_v39 = vadd.bf16 %v8845_v28, %v3079_v54  ;;  %5123 = vmatmul.mubr.bf16.gmra.mrb[220].mxu1 %v4586_v45 }
 0x3e8   : > { %v3246_v2 = vadd.bf16 %v8848_v14, %v3080_v33  ;;  %v10194_v20 = vpop.f32.mrb[4].mxu0  ;;  %5132 = vmatprep.mubr.bf16.mxu1 %v4589_v41  ;;  %v4591_v33 = vmax.bf16 %v11779_v56, %v4463_v44  ;;  %v4465_v44 = vadd.bf16 %v9525_v3, %v4299_v35 }
 0x3e9   : > { %v10200_v29 = vpop.f32.mrb[5].mxu0  ;;  %v3373_v12 = vmax.bf16 %v11779_v56, %v3245_v39 }
 0x3ea   : > { %v2930_v25 = vpop.f32.mrb[116].mxu1  ;;  %v10206_v21 = vpop.f32.mrb[6].mxu0  ;;  %v3374_v50 = vmax.bf16 %v11779_v56, %v3246_v2 }
 0x3eb   : > { %v2932_v46 = vpop.f32.mrb[117].mxu1  ;;  %v10212_v11 = vpop.f32.mrb[7].mxu0 }
 0x3ec   : > { %v2934_v54 = vpop.f32.mrb[118].mxu1  ;;  %4205 = vmatprep.mubr.bf16.mxu0 %v3374_v50  ;;  %v4462_v50 = vadd.bf16 %v9554_v7, %v4296_v51 }
 0x3ed   : > { %v3081_v60 = vpack.c.bf16 %v2934_v54, %v2930_v25  ;;  %v2936_v9 = vpop.f32.mrb[119].mxu1  ;;  %4206 = vmatmul.mubr.bf16.gmra.mrb[112].mxu0 %v3373_v12 }
 0x3ee   : > { %v3082_v57 = vpack.c.bf16 %v2936_v9, %v2932_v46  ;;  %v4590_v36 = vmax.bf16 %v11779_v56, %v4462_v50  ;;  %v7008_v9 = vld.sshfl [vmem:[%s11653_s8] sm:$0x11 pattern:$0x75316420]  ;;  %v12099_v50 = vpack.c.bf16 %v10024_v32, %v10012_v31 }
 0x3ef   : > { %v3247_v41 = vadd.bf16 %v8845_v28, %v3081_v60  ;;  %5133 = vmatmul.mubr.bf16.gmra.mrb[224].mxu1 %v4588_v26 }
 0x3f0   : > { %v3248_v39 = vadd.bf16 %v8848_v14, %v3082_v57  ;;  %v10220_v2 = vpop.f32.mrb[8].mxu0  ;;  %5142 = vmatprep.mubr.bf16.mxu1 %v4591_v33  ;;  %v4593_v33 = vmax.bf16 %v11779_v56, %v4465_v44  ;;  %v4467_v44 = vadd.bf16 %v9525_v3, %v4301_v17 }
 0x3f1   : > { %v10226_v38 = vpop.f32.mrb[9].mxu0  ;;  %v3375_v54 = vmax.bf16 %v11779_v56, %v3247_v41 }
 0x3f2   : > { %v2940_v25 = vpop.f32.mrb[120].mxu1  ;;  %v10232_v12 = vpop.f32.mrb[10].mxu0  ;;  %v3376_v46 = vmax.bf16 %v11779_v56, %v3248_v39 }
 0x3f3   : > { %v2942_v0 = vpop.f32.mrb[121].mxu1  ;;  %v10238_v16 = vpop.f32.mrb[11].mxu0 }
 0x3f4   : > { %v2944_v60 = vpop.f32.mrb[122].mxu1  ;;  %4215 = vmatprep.mubr.bf16.mxu0 %v3376_v46  ;;  %v5670_v46 = vcombine.high %v7008_v9, %v7008_v9 }
 0x3f5   : > { %v3083_v6 = vpack.c.bf16 %v2944_v60, %v2940_v25  ;;  %v2946_v35 = vpop.f32.mrb[123].mxu1  ;;  %4216 = vmatmul.mubr.bf16.gmra.mrb[116].mxu0 %v3375_v54  ;;  %v4464_v25 = vadd.bf16 %v9554_v7, %v12099_v50 }
 0x3f6   : > { %v3084_v57 = vpack.c.bf16 %v2946_v35, %v2942_v0  ;;  %v5684_v17 = vrot.slane %v5670_v46, %v12063_v63  ;;  %v4595_v35 = vmax.bf16 %v11779_v56, %v4467_v44 }
 0x3f7   : > { %v3249_v41 = vadd.bf16 %v8845_v28, %v3083_v6  ;;  %5143 = vmatmul.mubr.bf16.gmra.mrb[228].mxu1 %v4590_v36 }
 0x3f8   : > { %v3250_v39 = vadd.bf16 %v8848_v14, %v3084_v57  ;;  %v10249_v26 = vpop.f32.mrb[12].mxu0  ;;  %5152 = vmatprep.mubr.bf16.mxu1 %v4593_v33  ;;  %v5677_v57 = vrot.slane %v7008_v9, %v12063_v63  ;;  %v4592_v33 = vmax.bf16 %v11779_v56, %v4464_v25  ;;  %v4466_v63 = vadd.bf16 %v9554_v7, %v4300_v42 }
 0x3f9   : > { %v10255_v54 = vpop.f32.mrb[13].mxu0  ;;  %v3377_v6 = vmax.bf16 %v11779_v56, %v3249_v41 }
 0x3fa   : > { %v2950_v0 = vpop.f32.mrb[124].mxu1  ;;  %v10261_v60 = vpop.f32.mrb[14].mxu0  ;;  %v3378_v36 = vmax.bf16 %v11779_v56, %v3250_v39  ;;  %v5686_v45 = vpack.i.b16 %v5677_v57, %v5677_v57 }
 0x3fb   : > { %v2952_v31 = vpop.f32.mrb[125].mxu1  ;;  %v10267_v32 = vpop.f32.mrb[15].mxu0 }
 0x3fc   : > { %v4317_v4 = vpack.c.bf16 %v10267_v32, %v10255_v54  ;;  %v2954_v5 = vpop.f32.mrb[126].mxu1  ;;  %4225 = vmatprep.mubr.bf16.mxu0 %v3378_v36  ;;  %v5693_v36 = vpack.i.b16 %v5684_v17, %v5684_v17  ;;  %v10298_v42 = vrot.slane %v5686_v45, %v7790_v47 }
 0x3fd   : > { %v3085_v39 = vpack.c.bf16 %v2954_v5, %v2950_v0  ;;  %v2956_v50 = vpop.f32.mrb[127].mxu1  ;;  %4226 = vmatmul.mubr.bf16.gmra.mrb[120].mxu0 %v3377_v6 }
 0x3fe   : > { %v3086_v41 = vpack.c.bf16 %v2956_v50, %v2952_v31 }
 0x3ff   : > { %v3251_v51 = vadd.bf16 %v8845_v28, %v3085_v39  ;;  %5153 = vmatmul.mubr.bf16.gmra.mrb[232].mxu1 %v4592_v33  ;;  %v4469_v28 = vadd.bf16 %v9525_v3, %v4303_v55  ;;  %v10303_v55 = vrot.slane %v5693_v36, %v7790_v47  ;;  %v12100_v47 = vpack.c.bf16 %v10076_v34, %v10064_v48 }
 0x400   : > { %v3252_v9 = vadd.bf16 %v8848_v14, %v3086_v41  ;;  %v10277_v18 = vpop.f32.mrb[16].mxu0  ;;  %5162 = vmatprep.mubr.bf16.mxu1 %v4595_v35  ;;  %v4594_v35 = vmax.bf16 %v11779_v56, %v4466_v63  ;;  %v12101_v41 = vpack.c.bf16 %v10108_v27, %v10096_v8 }
 0x401   : > { %v10283_v46 = vpop.f32.mrb[17].mxu0  ;;  %v3379_v0 = vmax.bf16 %v11779_v56, %v3251_v51  ;;  %v4597_v5 = vmax.bf16 %v11779_v56, %v4469_v28  ;;  %v4468_v39 = vadd.bf16 %v9554_v7, %v12100_v47 }
 0x402   : > { %v10289_v25 = vpop.f32.mrb[18].mxu0  ;;  %v4894_v44 = vpop.f32.mrb[128].mxu1  ;;  %v3380_v14 = vmax.bf16 %v11779_v56, %v3252_v9  ;;  %v4471_v9 = vadd.bf16 %v9525_v3, %v12101_v41 }
 0x403   : > { %v4318_v6 = vpack.c.bf16 %v10289_v25, %v10277_v18  ;;  %v10295_v49 = vpop.f32.mrb[19].mxu0  ;;  %v4896_v19 = vpop.f32.mrb[129].mxu1  ;;  %v4596_v8 = vmax.bf16 %v11779_v56, %v4468_v39  ;;  %v12103_v39 = vpack.c.bf16 %v10134_v52, %v10122_v59 }
 0x404   : > { %v4319_v40 = vpack.c.bf16 %v10295_v49, %v10283_v46  ;;  %4235 = vmatprep.mubr.bf16.mxu0 %v3380_v14  ;;  %v4898_v24 = vpop.f32.mrb[130].mxu1 }
 0x405   : > { %v5533_v51 = vpack.c.bf16 %v4898_v24, %v4894_v44  ;;  %4236 = vmatmul.mubr.bf16.gmra.mrb[124].mxu0 %v3379_v0  ;;  %v4900_v31 = vpop.f32.mrb[131].mxu1  ;;  %v4473_v41 = vadd.bf16 %v9525_v3, %v12103_v39 }
 0x406   : > { %v5534_v57 = vpack.c.bf16 %v4900_v31, %v4896_v19 }
 0x407   : > { %v5699_v17 = vadd.bf16 %v10298_v42, %v5533_v51  ;;  %5163 = vmatmul.mubr.bf16.gmra.mrb[236].mxu1 %v4594_v35  ;;  %v4599_v51 = vmax.bf16 %v11779_v56, %v4471_v9 }
 0x408   : > { %v5700_v45 = vadd.bf16 %v10303_v55, %v5534_v57  ;;  %v10309_v33 = vpop.f32.mrb[20].mxu0  ;;  %5172 = vmatprep.mubr.bf16.mxu1 %v4597_v5 }
 0x409   : > { %v10315_v50 = vpop.f32.mrb[21].mxu0  ;;  %v5827_v44 = vmax.bf16 %v11779_v56, %v5699_v17  ;;  %v12102_v17 = vpack.c.bf16 %v10102_v10, %v10090_v22 }
 0x40a   : > { %v10321_v36 = vpop.f32.mrb[22].mxu0  ;;  %v4904_v63 = vpop.f32.mrb[132].mxu1  ;;  %v5828_v28 = vmax.bf16 %v11779_v56, %v5700_v45 }
 0x40b   : > { %v4320_v14 = vpack.c.bf16 %v10321_v36, %v10309_v33  ;;  %v10327_v48 = vpop.f32.mrb[23].mxu0  ;;  %v4906_v34 = vpop.f32.mrb[133].mxu1  ;;  %v4470_v45 = vadd.bf16 %v9554_v7, %v12102_v17  ;;  %v12104_v17 = vpack.c.bf16 %v10128_v61, %v10116_v13 }
 0x40c   : > { %v4321_v0 = vpack.c.bf16 %v10327_v48, %v10315_v50  ;;  %v4908_v19 = vpop.f32.mrb[134].mxu1  ;;  %6122 = vmatprep.mubr.bf16.mxu0 %v5828_v28 }
 0x40d   : > { %v5535_v27 = vpack.c.bf16 %v4908_v19, %v4904_v63  ;;  %v4910_v24 = vpop.f32.mrb[135].mxu1  ;;  %6123 = vmatmul.mubr.bf16.vlgmr.msra.gmra.mrb[128].mxu0 %v5827_v44  ;;  %v4598_v59 = vmax.bf16 %v11779_v56, %v4470_v45  ;;  %v4472_v39 = vadd.bf16 %v9554_v7, %v12104_v17 }
 0x40e   : > { %v5536_v35 = vpack.c.bf16 %v4910_v24, %v4906_v34 }
 0x40f   : > { %v5701_v31 = vadd.bf16 %v10298_v42, %v5535_v27  ;;  %5173 = vmatmul.mubr.bf16.gmra.mrb[240].mxu1 %v4596_v8 }
 0x410   : > { %v5702_v57 = vadd.bf16 %v10303_v55, %v5536_v35  ;;  %v10335_v5 = vpop.f32.mrb[24].mxu0  ;;  %5182 = vmatprep.mubr.bf16.mxu1 %v4599_v51  ;;  %v4601_v35 = vmax.bf16 %v11779_v56, %v4473_v41 }
 0x411   : > { %v10341_v47 = vpop.f32.mrb[25].mxu0  ;;  %v5829_v44 = vmax.bf16 %v11779_v56, %v5701_v31 }
 0x412   : > { %v10347_v9 = vpop.f32.mrb[26].mxu0  ;;  %v4914_v63 = vpop.f32.mrb[136].mxu1  ;;  %v5830_v28 = vmax.bf16 %v11779_v56, %v5702_v57 }
 0x413   : > { %v4322_v34 = vpack.c.bf16 %v10347_v9, %v10335_v5  ;;  %v10353_v22 = vpop.f32.mrb[27].mxu0  ;;  %v4916_v10 = vpop.f32.mrb[137].mxu1 }
 0x414   : > { %v4323_v19 = vpack.c.bf16 %v10353_v22, %v10341_v47  ;;  %v4918_v8 = vpop.f32.mrb[138].mxu1  ;;  %6130 = vmatprep.mubr.bf16.mxu0 %v5830_v28 }
 0x415   : > { %v5537_v52 = vpack.c.bf16 %v4918_v8, %v4914_v63  ;;  %v4920_v27 = vpop.f32.mrb[139].mxu1  ;;  %6131 = vmatmul.mubr.bf16.gmra.mrb[132].mxu0 %v5829_v44  ;;  %v12105_v63 = vpack.c.bf16 %v10160_v23, %v10148_v43  ;;  %v4600_v43 = vmax.bf16 %v11779_v56, %v4472_v39 }
 0x416   : > { %v5538_v24 = vpack.c.bf16 %v4920_v27, %v4916_v10 }
 0x417   : > { %v5703_v51 = vadd.bf16 %v10298_v42, %v5537_v52  ;;  %5183 = vmatmul.mubr.bf16.gmra.mrb[244].mxu1 %v4598_v59  ;;  %v4475_v41 = vadd.bf16 %v9525_v3, %v12105_v63  ;;  %v12106_v59 = vpack.c.bf16 %v10154_v62, %v10142_v58 }
 0x418   : > { %v5704_v31 = vadd.bf16 %v10303_v55, %v5538_v24  ;;  %v10361_v57 = vpop.f32.mrb[28].mxu0  ;;  %5192 = vmatprep.mubr.bf16.mxu1 %v4601_v35 }
 0x419   : > { %v10367_v45 = vpop.f32.mrb[29].mxu0  ;;  %v5831_v8 = vmax.bf16 %v11779_v56, %v5703_v51 }
 0x41a   : > { %v10373_v28 = vpop.f32.mrb[30].mxu0  ;;  %v4924_v44 = vpop.f32.mrb[140].mxu1  ;;  %v5832_v10 = vmax.bf16 %v11779_v56, %v5704_v31  ;;  %v4603_v31 = vmax.bf16 %v11779_v56, %v4475_v41  ;;  %v4477_v41 = vadd.bf16 %v9525_v3, %v4311_v53 }
 0x41b   : > { %v10379_v13 = vpop.f32.mrb[31].mxu0  ;;  %v4926_v61 = vpop.f32.mrb[141].mxu1 }
 0x41c   : > { %v4325_v52 = vpack.c.bf16 %v10379_v13, %v10367_v45  ;;  %v4928_v27 = vpop.f32.mrb[142].mxu1  ;;  %6138 = vmatprep.mubr.bf16.mxu0 %v5832_v10  ;;  %v4474_v10 = vadd.bf16 %v9554_v7, %v12106_v59 }
 0x41d   : > { %v5539_v23 = vpack.c.bf16 %v4928_v27, %v4924_v44  ;;  %v4930_v24 = vpop.f32.mrb[143].mxu1  ;;  %6139 = vmatmul.mubr.bf16.gmra.mrb[136].mxu0 %v5831_v8 }
 0x41e   : > { %v5540_v35 = vpack.c.bf16 %v4930_v24, %v4926_v61  ;;  %v4602_v30 = vmax.bf16 %v11779_v56, %v4474_v10 }
 0x41f   : > { %v5705_v51 = vadd.bf16 %v10298_v42, %v5539_v23  ;;  %5193 = vmatmul.mubr.bf16.gmra.mrb[248].mxu1 %v4600_v43  ;;  %v12107_v43 = vpack.c.bf16 %v10180_v1, %v10168_v15 }
 0x420   : > { %v5706_v17 = vadd.bf16 %v10303_v55, %v5540_v35  ;;  %v10387_v63 = vpop.f32.mrb[32].mxu0  ;;  %5202 = vmatprep.mubr.bf16.mxu1 %v4603_v31  ;;  %v4605_v35 = vmax.bf16 %v11779_v56, %v4477_v41 }
 0x421   : > { %v10393_v39 = vpop.f32.mrb[33].mxu0  ;;  %v5833_v27 = vmax.bf16 %v11779_v56, %v5705_v51 }
 0x422   : > { %v10399_v44 = vpop.f32.mrb[34].mxu0  ;;  %v4934_v8 = vpop.f32.mrb[144].mxu1  ;;  %v5834_v61 = vmax.bf16 %v11779_v56, %v5706_v17 }
 0x423   : > { %v10405_v58 = vpop.f32.mrb[35].mxu0  ;;  %v4936_v62 = vpop.f32.mrb[145].mxu1 }
 0x424   : > { %v4327_v59 = vpack.c.bf16 %v10405_v58, %v10393_v39  ;;  %v4938_v23 = vpop.f32.mrb[146].mxu1  ;;  %6146 = vmatprep.mubr.bf16.mxu0 %v5834_v61  ;;  %v4476_v61 = vadd.bf16 %v9554_v7, %v12107_v43  ;;  %v12109_v43 = vpack.c.bf16 %v10206_v21, %v10194_v20 }
 0x425   : > { %v5541_v37 = vpack.c.bf16 %v4938_v23, %v4934_v8  ;;  %v4940_v53 = vpop.f32.mrb[147].mxu1  ;;  %6147 = vmatmul.mubr.bf16.gmra.mrb[140].mxu0 %v5833_v27  ;;  %v12108_v8 = vpack.c.bf16 %v10212_v11, %v10200_v29 }
 0x426   : > { %v5542_v24 = vpack.c.bf16 %v4940_v53, %v4936_v62  ;;  %v4604_v29 = vmax.bf16 %v11779_v56, %v4476_v61 }
 0x427   : > { %v5707_v31 = vadd.bf16 %v10298_v42, %v5541_v37  ;;  %5203 = vmatmul.mubr.bf16.gmra.mrb[252].mxu1 %v4602_v30  ;;  %v4479_v41 = vadd.bf16 %v9525_v3, %v12108_v8 }
 0x428   : > { %v5708_v51 = vadd.bf16 %v10303_v55, %v5542_v24  ;;  %v10413_v17 = vpop.f32.mrb[36].mxu0  ;;  %5212 = vmatprep.mubr.bf16.mxu1 %v4605_v35 }
 0x429   : > { %v10419_v10 = vpop.f32.mrb[37].mxu0  ;;  %v5835_v30 = vmax.bf16 %v11779_v56, %v5707_v31 }
 0x42a   : > { %v10425_v27 = vpop.f32.mrb[38].mxu0  ;;  %v4944_v62 = vpop.f32.mrb[148].mxu1  ;;  %v5836_v23 = vmax.bf16 %v11779_v56, %v5708_v51  ;;  %v4607_v51 = vmax.bf16 %v11779_v56, %v4479_v41 }
 0x42b   : > { %v10431_v15 = vpop.f32.mrb[39].mxu0  ;;  %v4946_v1 = vpop.f32.mrb[149].mxu1 }
 0x42c   : > { %v4948_v53 = vpop.f32.mrb[150].mxu1  ;;  %6154 = vmatprep.mubr.bf16.mxu0 %v5836_v23  ;;  %v4478_v23 = vadd.bf16 %v9554_v7, %v12109_v43  ;;  %v12111_v43 = vpack.c.bf16 %v10232_v12, %v10220_v2 }
 0x42d   : > { %v5543_v11 = vpack.c.bf16 %v4948_v53, %v4944_v62  ;;  %v4950_v24 = vpop.f32.mrb[151].mxu1  ;;  %6155 = vmatmul.mubr.bf16.gmra.mrb[144].mxu0 %v5835_v30  ;;  %v12110_v62 = vpack.c.bf16 %v10238_v16, %v10226_v38 }
 0x42e   : > { %v5544_v35 = vpack.c.bf16 %v4950_v24, %v4946_v1  ;;  %v4606_v38 = vmax.bf16 %v11779_v56, %v4478_v23 }
 0x42f   : > { %v5709_v31 = vadd.bf16 %v10298_v42, %v5543_v11  ;;  %5213 = vmatmul.mubr.bf16.gmra.mrb[0].mxu1 %v4604_v29  ;;  %v4481_v41 = vadd.bf16 %v9525_v3, %v12110_v62 }
 0x430   : > { %v5710_v8 = vadd.bf16 %v10303_v55, %v5544_v35  ;;  %v10439_v37 = vpop.f32.mrb[40].mxu0  ;;  %5222 = vmatprep.mubr.bf16.mxu1 %v4607_v51 }
 0x431   : > { %v10445_v61 = vpop.f32.mrb[41].mxu0  ;;  %v5837_v29 = vmax.bf16 %v11779_v56, %v5709_v31 }
 0x432   : > { %v10451_v30 = vpop.f32.mrb[42].mxu0  ;;  %v4954_v1 = vpop.f32.mrb[152].mxu1  ;;  %v5838_v53 = vmax.bf16 %v11779_v56, %v5710_v8  ;;  %v4609_v8 = vmax.bf16 %v11779_v56, %v4481_v41  ;;  %v4483_v41 = vadd.bf16 %v9525_v3, %v4317_v4 }
 0x433   : > { %v10457_v20 = vpop.f32.mrb[43].mxu0  ;;  %v4956_v21 = vpop.f32.mrb[153].mxu1 }
 0x434   : > { %v4958_v24 = vpop.f32.mrb[154].mxu1  ;;  %6162 = vmatprep.mubr.bf16.mxu0 %v5838_v53  ;;  %v4480_v53 = vadd.bf16 %v9554_v7, %v12111_v43 }
 0x435   : > { %v5545_v16 = vpack.c.bf16 %v4958_v24, %v4954_v1  ;;  %v4960_v35 = vpop.f32.mrb[155].mxu1  ;;  %6163 = vmatmul.mubr.bf16.gmra.mrb[148].mxu0 %v5837_v29 }
 0x436   : > { %v5546_v51 = vpack.c.bf16 %v4960_v35, %v4956_v21  ;;  %v4608_v54 = vmax.bf16 %v11779_v56, %v4480_v53 }
 0x437   : > { %v5711_v31 = vadd.bf16 %v10298_v42, %v5545_v16  ;;  %5223 = vmatmul.mubr.bf16.gmra.mrb[4].mxu1 %v4606_v38  ;;  %v12112_v38 = vpack.c.bf16 %v10261_v60, %v10249_v26 }
 0x438   : > { %v5712_v62 = vadd.bf16 %v10303_v55, %v5546_v51  ;;  %v10465_v11 = vpop.f32.mrb[44].mxu0  ;;  %5232 = vmatprep.mubr.bf16.mxu1 %v4609_v8  ;;  %v4611_v51 = vmax.bf16 %v11779_v56, %v4483_v41  ;;  %v4485_v41 = vadd.bf16 %v9525_v3, %v4319_v40 }
 0x439   : > { %v10471_v23 = vpop.f32.mrb[45].mxu0  ;;  %v5839_v24 = vmax.bf16 %v11779_v56, %v5711_v31 }
 0x43a   : > { %v10477_v1 = vpop.f32.mrb[46].mxu0  ;;  %v4964_v29 = vpop.f32.mrb[156].mxu1  ;;  %v5840_v21 = vmax.bf16 %v11779_v56, %v5712_v62 }
 0x43b   : > { %v10483_v2 = vpop.f32.mrb[47].mxu0  ;;  %v4966_v12 = vpop.f32.mrb[157].mxu1 }
 0x43c   : > { %v4333_v43 = vpack.c.bf16 %v10483_v2, %v10471_v23  ;;  %v4968_v16 = vpop.f32.mrb[158].mxu1  ;;  %6170 = vmatprep.mubr.bf16.mxu0 %v5840_v21  ;;  %v4482_v21 = vadd.bf16 %v9554_v7, %v12112_v38 }
 0x43d   : > { %v5547_v32 = vpack.c.bf16 %v4968_v16, %v4964_v29  ;;  %v4970_v4 = vpop.f32.mrb[159].mxu1  ;;  %6171 = vmatmul.mubr.bf16.gmra.mrb[152].mxu0 %v5839_v24 }
 0x43e   : > { %v5548_v35 = vpack.c.bf16 %v4970_v4, %v4966_v12  ;;  %v4610_v46 = vmax.bf16 %v11779_v56, %v4482_v21 }
 0x43f   : > { %v5713_v8 = vadd.bf16 %v10298_v42, %v5547_v32  ;;  %5233 = vmatmul.mubr.bf16.gmra.mrb[8].mxu1 %v4608_v54 }
 0x440   : > { %v5714_v31 = vadd.bf16 %v10303_v55, %v5548_v35  ;;  %v10491_v62 = vpop.f32.mrb[48].mxu0  ;;  %5242 = vmatprep.mubr.bf16.mxu1 %v4611_v51  ;;  %v4613_v35 = vmax.bf16 %v11779_v56, %v4485_v41  ;;  %v4487_v41 = vadd.bf16 %v9525_v3, %v4321_v0 }
 0x441   : > { %v10497_v53 = vpop.f32.mrb[49].mxu0  ;;  %v5841_v16 = vmax.bf16 %v11779_v56, %v5713_v8 }
 0x442   : > { %v10503_v29 = vpop.f32.mrb[50].mxu0  ;;  %v4974_v24 = vpop.f32.mrb[160].mxu1  ;;  %v5842_v12 = vmax.bf16 %v11779_v56, %v5714_v31 }
 0x443   : > { %v4334_v54 = vpack.c.bf16 %v10503_v29, %v10491_v62  ;;  %v10509_v26 = vpop.f32.mrb[51].mxu0  ;;  %v4976_v60 = vpop.f32.mrb[161].mxu1 }
 0x444   : > { %v4335_v38 = vpack.c.bf16 %v10509_v26, %v10497_v53  ;;  %v4978_v32 = vpop.f32.mrb[162].mxu1  ;;  %6178 = vmatprep.mubr.bf16.mxu0 %v5842_v12  ;;  %v4484_v12 = vadd.bf16 %v9554_v7, %v4318_v6 }
 0x445   : > { %v5549_v49 = vpack.c.bf16 %v4978_v32, %v4974_v24  ;;  %v4980_v40 = vpop.f32.mrb[163].mxu1  ;;  %6179 = vmatmul.mubr.bf16.gmra.mrb[156].mxu0 %v5841_v16 }
 0x446   : > { %v5550_v4 = vpack.c.bf16 %v4980_v40, %v4976_v60  ;;  %v4612_v50 = vmax.bf16 %v11779_v56, %v4484_v12 }
 0x447   : > { %v5715_v51 = vadd.bf16 %v10298_v42, %v5549_v49  ;;  %5243 = vmatmul.mubr.bf16.gmra.mrb[12].mxu1 %v4610_v46 }
 0x448   : > { %v5716_v8 = vadd.bf16 %v10303_v55, %v5550_v4  ;;  %v10517_v31 = vpop.f32.mrb[52].mxu0  ;;  %5252 = vmatprep.mubr.bf16.mxu1 %v4613_v35  ;;  %v4615_v4 = vmax.bf16 %v11779_v56, %v4487_v41  ;;  %v4489_v41 = vadd.bf16 %v9525_v3, %v4323_v19 }
 0x449   : > { %v10523_v21 = vpop.f32.mrb[53].mxu0  ;;  %v5843_v32 = vmax.bf16 %v11779_v56, %v5715_v51 }
 0x44a   : > { %v10529_v24 = vpop.f32.mrb[54].mxu0  ;;  %v4984_v16 = vpop.f32.mrb[164].mxu1  ;;  %v5844_v60 = vmax.bf16 %v11779_v56, %v5716_v8 }
 0x44b   : > { %v4336_v46 = vpack.c.bf16 %v10529_v24, %v10517_v31  ;;  %v10535_v18 = vpop.f32.mrb[55].mxu0  ;;  %v4986_v25 = vpop.f32.mrb[165].mxu1 }
 0x44c   : > { %v4337_v6 = vpack.c.bf16 %v10535_v18, %v10523_v21  ;;  %v4988_v49 = vpop.f32.mrb[166].mxu1  ;;  %6186 = vmatprep.mubr.bf16.mxu0 %v5844_v60  ;;  %v4486_v60 = vadd.bf16 %v9554_v7, %v4320_v14 }
 0x44d   : > { %v5551_v48 = vpack.c.bf16 %v4988_v49, %v4984_v16  ;;  %v4990_v0 = vpop.f32.mrb[167].mxu1  ;;  %6187 = vmatmul.mubr.bf16.gmra.mrb[160].mxu0 %v5843_v32 }
 0x44e   : > { %v5552_v40 = vpack.c.bf16 %v4990_v0, %v4986_v25  ;;  %v4614_v47 = vmax.bf16 %v11779_v56, %v4486_v60 }
 0x44f   : > { %v5717_v35 = vadd.bf16 %v10298_v42, %v5551_v48  ;;  %5253 = vmatmul.mubr.bf16.gmra.mrb[16].mxu1 %v4612_v50 }
 0x450   : > { %v5718_v51 = vadd.bf16 %v10303_v55, %v5552_v40  ;;  %v10543_v8 = vpop.f32.mrb[56].mxu0  ;;  %5262 = vmatprep.mubr.bf16.mxu1 %v4615_v4  ;;  %v4617_v40 = vmax.bf16 %v11779_v56, %v4489_v41  ;;  %v4491_v41 = vadd.bf16 %v9525_v3, %v4325_v52 }
 0x451   : > { %v10549_v12 = vpop.f32.mrb[57].mxu0  ;;  %v5845_v49 = vmax.bf16 %v11779_v56, %v5717_v35 }
 0x452   : > { %v10555_v16 = vpop.f32.mrb[58].mxu0  ;;  %v4994_v32 = vpop.f32.mrb[168].mxu1  ;;  %v5846_v25 = vmax.bf16 %v11779_v56, %v5718_v51 }
 0x453   : > { %v4338_v50 = vpack.c.bf16 %v10555_v16, %v10543_v8  ;;  %v10561_v33 = vpop.f32.mrb[59].mxu0  ;;  %v4996_v36 = vpop.f32.mrb[169].mxu1 }
 0x454   : > { %v4339_v14 = vpack.c.bf16 %v10561_v33, %v10549_v12  ;;  %v4998_v48 = vpop.f32.mrb[170].mxu1  ;;  %6194 = vmatprep.mubr.bf16.mxu0 %v5846_v25  ;;  %v4488_v25 = vadd.bf16 %v9554_v7, %v4322_v34 }
 0x455   : > { %v5553_v22 = vpack.c.bf16 %v4998_v48, %v4994_v32  ;;  %v5000_v19 = vpop.f32.mrb[171].mxu1  ;;  %6195 = vmatmul.mubr.bf16.gmra.mrb[164].mxu0 %v5845_v49 }
 0x456   : > { %v5554_v0 = vpack.c.bf16 %v5000_v19, %v4996_v36  ;;  %v4616_v45 = vmax.bf16 %v11779_v56, %v4488_v25 }
 0x457   : > { %v5719_v4 = vadd.bf16 %v10298_v42, %v5553_v22  ;;  %5263 = vmatmul.mubr.bf16.gmra.mrb[20].mxu1 %v4614_v47  ;;  %v12113_v47 = vpack.c.bf16 %v10373_v28, %v10361_v57 }
 0x458   : > { %v5720_v35 = vadd.bf16 %v10303_v55, %v5554_v0  ;;  %v10569_v51 = vpop.f32.mrb[60].mxu0  ;;  %5272 = vmatprep.mubr.bf16.mxu1 %v4617_v40  ;;  %v4619_v0 = vmax.bf16 %v11779_v56, %v4491_v41  ;;  %v4493_v41 = vadd.bf16 %v9525_v3, %v4327_v59 }
 0x459   : > { %v10575_v60 = vpop.f32.mrb[61].mxu0  ;;  %v5847_v48 = vmax.bf16 %v11779_v56, %v5719_v4 }
 0x45a   : > { %v10581_v32 = vpop.f32.mrb[62].mxu0  ;;  %v5004_v49 = vpop.f32.mrb[172].mxu1  ;;  %v5848_v36 = vmax.bf16 %v11779_v56, %v5720_v35 }
 0x45b   : > { %v10587_v5 = vpop.f32.mrb[63].mxu0  ;;  %v5006_v9 = vpop.f32.mrb[173].mxu1 }
 0x45c   : > { %v4341_v34 = vpack.c.bf16 %v10587_v5, %v10575_v60  ;;  %v5008_v22 = vpop.f32.mrb[174].mxu1  ;;  %6202 = vmatprep.mubr.bf16.mxu0 %v5848_v36  ;;  %v4490_v36 = vadd.bf16 %v9554_v7, %v12113_v47 }
 0x45d   : > { %v5555_v13 = vpack.c.bf16 %v5008_v22, %v5004_v49  ;;  %v5010_v52 = vpop.f32.mrb[175].mxu1  ;;  %6203 = vmatmul.mubr.bf16.gmra.mrb[168].mxu0 %v5847_v48 }
 0x45e   : > { %v5556_v19 = vpack.c.bf16 %v5010_v52, %v5006_v9  ;;  %v4618_v39 = vmax.bf16 %v11779_v56, %v4490_v36 }
 0x45f   : > { %v5721_v40 = vadd.bf16 %v10298_v42, %v5555_v13  ;;  %5273 = vmatmul.mubr.bf16.gmra.mrb[24].mxu1 %v4616_v45  ;;  %v12114_v45 = vpack.c.bf16 %v10399_v44, %v10387_v63 }
 0x460   : > { %v5722_v4 = vadd.bf16 %v10303_v55, %v5556_v19  ;;  %v10595_v35 = vpop.f32.mrb[64].mxu0  ;;  %5282 = vmatprep.mubr.bf16.mxu1 %v4619_v0  ;;  %v4621_v19 = vmax.bf16 %v11779_v56, %v4493_v41 }
 0x461   : > { %v10601_v25 = vpop.f32.mrb[65].mxu0  ;;  %v5849_v22 = vmax.bf16 %v11779_v56, %v5721_v40 }
 0x462   : > { %v10607_v49 = vpop.f32.mrb[66].mxu0  ;;  %v5014_v48 = vpop.f32.mrb[176].mxu1  ;;  %v5850_v9 = vmax.bf16 %v11779_v56, %v5722_v4 }
 0x463   : > { %v10613_v57 = vpop.f32.mrb[67].mxu0  ;;  %v5016_v28 = vpop.f32.mrb[177].mxu1 }
 0x464   : > { %v4343_v47 = vpack.c.bf16 %v10613_v57, %v10601_v25  ;;  %v5018_v13 = vpop.f32.mrb[178].mxu1  ;;  %6210 = vmatprep.mubr.bf16.mxu0 %v5850_v9  ;;  %v4492_v9 = vadd.bf16 %v9554_v7, %v12114_v45  ;;  %v12116_v45 = vpack.c.bf16 %v10425_v27, %v10413_v17 }
 0x465   : > { %v5557_v58 = vpack.c.bf16 %v5018_v13, %v5014_v48  ;;  %v5020_v59 = vpop.f32.mrb[179].mxu1  ;;  %6211 = vmatmul.mubr.bf16.gmra.mrb[172].mxu0 %v5849_v22  ;;  %v12115_v48 = vpack.c.bf16 %v10431_v15, %v10419_v10 }
 0x466   : > { %v5558_v52 = vpack.c.bf16 %v5020_v59, %v5016_v28  ;;  %v4620_v10 = vmax.bf16 %v11779_v56, %v4492_v9 }
 0x467   : > { %v5723_v0 = vadd.bf16 %v10298_v42, %v5557_v58  ;;  %5283 = vmatmul.mubr.bf16.gmra.mrb[28].mxu1 %v4618_v39  ;;  %v4495_v41 = vadd.bf16 %v9525_v3, %v12115_v48 }
 0x468   : > { %v5724_v40 = vadd.bf16 %v10303_v55, %v5558_v52  ;;  %v10621_v4 = vpop.f32.mrb[68].mxu0  ;;  %5292 = vmatprep.mubr.bf16.mxu1 %v4621_v19 }
 0x469   : > { %v10627_v36 = vpop.f32.mrb[69].mxu0  ;;  %v5851_v39 = vmax.bf16 %v11779_v56, %v5723_v0 }
 0x46a   : > { %v10633_v22 = vpop.f32.mrb[70].mxu0  ;;  %v5024_v28 = vpop.f32.mrb[180].mxu1  ;;  %v5852_v13 = vmax.bf16 %v11779_v56, %v5724_v40  ;;  %v4623_v40 = vmax.bf16 %v11779_v56, %v4495_v41 }
 0x46b   : > { %v10639_v63 = vpop.f32.mrb[71].mxu0  ;;  %v5026_v44 = vpop.f32.mrb[181].mxu1 }
 0x46c   : > { %v5028_v59 = vpop.f32.mrb[182].mxu1  ;;  %6218 = vmatprep.mubr.bf16.mxu0 %v5852_v13  ;;  %v4494_v13 = vadd.bf16 %v9554_v7, %v12116_v45  ;;  %v12118_v45 = vpack.c.bf16 %v10451_v30, %v10439_v37 }
 0x46d   : > { %v5559_v15 = vpack.c.bf16 %v5028_v59, %v5024_v28  ;;  %v5030_v52 = vpop.f32.mrb[183].mxu1  ;;  %6219 = vmatmul.mubr.bf16.gmra.mrb[176].mxu0 %v5851_v39  ;;  %v12117_v28 = vpack.c.bf16 %v10457_v20, %v10445_v61 }
 0x46e   : > { %v5560_v19 = vpack.c.bf16 %v5030_v52, %v5026_v44  ;;  %v4622_v61 = vmax.bf16 %v11779_v56, %v4494_v13 }
 0x46f   : > { %v5725_v0 = vadd.bf16 %v10298_v42, %v5559_v15  ;;  %5293 = vmatmul.mubr.bf16.gmra.mrb[32].mxu1 %v4620_v10  ;;  %v4497_v41 = vadd.bf16 %v9525_v3, %v12117_v28 }
 0x470   : > { %v5726_v48 = vadd.bf16 %v10303_v55, %v5560_v19  ;;  %v10647_v58 = vpop.f32.mrb[72].mxu0  ;;  %5302 = vmatprep.mubr.bf16.mxu1 %v4623_v40 }
 0x471   : > { %v10653_v9 = vpop.f32.mrb[73].mxu0  ;;  %v5853_v10 = vmax.bf16 %v11779_v56, %v5725_v0 }
 0x472   : > { %v10659_v39 = vpop.f32.mrb[74].mxu0  ;;  %v5034_v44 = vpop.f32.mrb[184].mxu1  ;;  %v5854_v59 = vmax.bf16 %v11779_v56, %v5726_v48  ;;  %v4625_v48 = vmax.bf16 %v11779_v56, %v4497_v41  ;;  %v4499_v41 = vadd.bf16 %v9525_v3, %v4333_v43 }
 0x473   : > { %v10665_v17 = vpop.f32.mrb[75].mxu0  ;;  %v5036_v27 = vpop.f32.mrb[185].mxu1 }
 0x474   : > { %v5038_v52 = vpop.f32.mrb[186].mxu1  ;;  %6226 = vmatprep.mubr.bf16.mxu0 %v5854_v59  ;;  %v4496_v59 = vadd.bf16 %v9554_v7, %v12118_v45 }
 0x475   : > { %v5561_v20 = vpack.c.bf16 %v5038_v52, %v5034_v44  ;;  %v5040_v19 = vpop.f32.mrb[187].mxu1  ;;  %6227 = vmatmul.mubr.bf16.gmra.mrb[180].mxu0 %v5853_v10 }
 0x476   : > { %v5562_v40 = vpack.c.bf16 %v5040_v19, %v5036_v27  ;;  %v4624_v23 = vmax.bf16 %v11779_v56, %v4496_v59 }
 0x477   : > { %v5727_v0 = vadd.bf16 %v10298_v42, %v5561_v20  ;;  %5303 = vmatmul.mubr.bf16.gmra.mrb[36].mxu1 %v4622_v61  ;;  %v12119_v61 = vpack.c.bf16 %v10477_v1, %v10465_v11 }
 0x478   : > { %v5728_v28 = vadd.bf16 %v10303_v55, %v5562_v40  ;;  %v10673_v15 = vpop.f32.mrb[76].mxu0  ;;  %5312 = vmatprep.mubr.bf16.mxu1 %v4625_v48  ;;  %v4627_v40 = vmax.bf16 %v11779_v56, %v4499_v41  ;;  %v4501_v41 = vadd.bf16 %v9525_v3, %v4335_v38 }
 0x479   : > { %v10679_v13 = vpop.f32.mrb[77].mxu0  ;;  %v5855_v52 = vmax.bf16 %v11779_v56, %v5727_v0 }
 0x47a   : > { %v10685_v44 = vpop.f32.mrb[78].mxu0  ;;  %v5044_v10 = vpop.f32.mrb[188].mxu1  ;;  %v5856_v27 = vmax.bf16 %v11779_v56, %v5728_v28 }
 0x47b   : > { %v10691_v37 = vpop.f32.mrb[79].mxu0  ;;  %v5046_v30 = vpop.f32.mrb[189].mxu1 }
 0x47c   : > { %v4349_v45 = vpack.c.bf16 %v10691_v37, %v10679_v13  ;;  %v5048_v20 = vpop.f32.mrb[190].mxu1  ;;  %6234 = vmatprep.mubr.bf16.mxu0 %v5856_v27  ;;  %v4498_v27 = vadd.bf16 %v9554_v7, %v12119_v61 }
 0x47d   : > { %v5563_v2 = vpack.c.bf16 %v5048_v20, %v5044_v10  ;;  %v5050_v43 = vpop.f32.mrb[191].mxu1  ;;  %6235 = vmatmul.mubr.bf16.gmra.mrb[184].mxu0 %v5855_v52 }
 0x47e   : > { %v5564_v19 = vpack.c.bf16 %v5050_v43, %v5046_v30  ;;  %v4626_v53 = vmax.bf16 %v11779_v56, %v4498_v27 }
 0x47f   : > { %v5729_v48 = vadd.bf16 %v10298_v42, %v5563_v2  ;;  %5313 = vmatmul.mubr.bf16.gmra.mrb[40].mxu1 %v4624_v23 }
 0x480   : > { %v5730_v0 = vadd.bf16 %v10303_v55, %v5564_v19  ;;  %v10699_v28 = vpop.f32.mrb[80].mxu0  ;;  %5322 = vmatprep.mubr.bf16.mxu1 %v4627_v40  ;;  %v4629_v19 = vmax.bf16 %v11779_v56, %v4501_v41  ;;  %v4503_v41 = vadd.bf16 %v9525_v3, %v4337_v6 }
 0x481   : > { %v10705_v59 = vpop.f32.mrb[81].mxu0  ;;  %v5857_v20 = vmax.bf16 %v11779_v56, %v5729_v48 }
 0x482   : > { %v10711_v10 = vpop.f32.mrb[82].mxu0  ;;  %v5054_v52 = vpop.f32.mrb[192].mxu1  ;;  %v5858_v30 = vmax.bf16 %v11779_v56, %v5730_v0 }
 0x483   : > { %v4350_v23 = vpack.c.bf16 %v10711_v10, %v10699_v28  ;;  %v10717_v11 = vpop.f32.mrb[83].mxu0  ;;  %v5056_v1 = vpop.f32.mrb[193].mxu1 }
 0x484   : > { %v4351_v61 = vpack.c.bf16 %v10717_v11, %v10705_v59  ;;  %v5058_v2 = vpop.f32.mrb[194].mxu1  ;;  %6242 = vmatprep.mubr.bf16.mxu0 %v5858_v30  ;;  %v4500_v30 = vadd.bf16 %v9554_v7, %v4334_v54 }
 0x485   : > { %v5565_v26 = vpack.c.bf16 %v5058_v2, %v5054_v52  ;;  %v5060_v38 = vpop.f32.mrb[195].mxu1  ;;  %6243 = vmatmul.mubr.bf16.gmra.mrb[188].mxu0 %v5857_v20 }
 0x486   : > { %v5566_v43 = vpack.c.bf16 %v5060_v38, %v5056_v1  ;;  %v4628_v21 = vmax.bf16 %v11779_v56, %v4500_v30 }
 0x487   : > { %v5731_v40 = vadd.bf16 %v10298_v42, %v5565_v26  ;;  %5323 = vmatmul.mubr.bf16.gmra.mrb[44].mxu1 %v4626_v53 }
 0x488   : > { %v5732_v48 = vadd.bf16 %v10303_v55, %v5566_v43  ;;  %v10725_v0 = vpop.f32.mrb[84].mxu0  ;;  %5332 = vmatprep.mubr.bf16.mxu1 %v4629_v19  ;;  %v4631_v43 = vmax.bf16 %v11779_v56, %v4503_v41  ;;  %v4505_v41 = vadd.bf16 %v9525_v3, %v4339_v14 }
 0x489   : > { %v10731_v27 = vpop.f32.mrb[85].mxu0  ;;  %v5859_v2 = vmax.bf16 %v11779_v56, %v5731_v40 }
 0x48a   : > { %v10737_v52 = vpop.f32.mrb[86].mxu0  ;;  %v5064_v20 = vpop.f32.mrb[196].mxu1  ;;  %v5860_v1 = vmax.bf16 %v11779_v56, %v5732_v48 }
 0x48b   : > { %v4352_v53 = vpack.c.bf16 %v10737_v52, %v10725_v0  ;;  %v10743_v62 = vpop.f32.mrb[87].mxu0  ;;  %v5066_v29 = vpop.f32.mrb[197].mxu1 }
 0x48c   : > { %v4353_v54 = vpack.c.bf16 %v10743_v62, %v10731_v27  ;;  %v5068_v26 = vpop.f32.mrb[198].mxu1  ;;  %6250 = vmatprep.mubr.bf16.mxu0 %v5860_v1  ;;  %v4502_v1 = vadd.bf16 %v9554_v7, %v4336_v46 }
 0x48d   : > { %v5567_v18 = vpack.c.bf16 %v5068_v26, %v5064_v20  ;;  %v5070_v6 = vpop.f32.mrb[199].mxu1  ;;  %6251 = vmatmul.mubr.bf16.gmra.mrb[192].mxu0 %v5859_v2 }
 0x48e   : > { %v5568_v38 = vpack.c.bf16 %v5070_v6, %v5066_v29  ;;  %v4630_v12 = vmax.bf16 %v11779_v56, %v4502_v1 }
 0x48f   : > { %v5733_v19 = vadd.bf16 %v10298_v42, %v5567_v18  ;;  %5333 = vmatmul.mubr.bf16.gmra.mrb[48].mxu1 %v4628_v21 }
 0x490   : > { %v5734_v40 = vadd.bf16 %v10303_v55, %v5568_v38  ;;  %v10751_v48 = vpop.f32.mrb[88].mxu0  ;;  %5342 = vmatprep.mubr.bf16.mxu1 %v4631_v43  ;;  %v4633_v38 = vmax.bf16 %v11779_v56, %v4505_v41  ;;  %v4507_v41 = vadd.bf16 %v9525_v3, %v4341_v34 }
 0x491   : > { %v10757_v30 = vpop.f32.mrb[89].mxu0  ;;  %v5861_v26 = vmax.bf16 %v11779_v56, %v5733_v19 }
 0x492   : > { %v10763_v20 = vpop.f32.mrb[90].mxu0  ;;  %v5074_v2 = vpop.f32.mrb[200].mxu1  ;;  %v5862_v29 = vmax.bf16 %v11779_v56, %v5734_v40 }
 0x493   : > { %v4354_v21 = vpack.c.bf16 %v10763_v20, %v10751_v48  ;;  %v10769_v31 = vpop.f32.mrb[91].mxu0  ;;  %v5076_v24 = vpop.f32.mrb[201].mxu1 }
 0x494   : > { %v4355_v46 = vpack.c.bf16 %v10769_v31, %v10757_v30  ;;  %v5078_v18 = vpop.f32.mrb[202].mxu1  ;;  %6258 = vmatprep.mubr.bf16.mxu0 %v5862_v29  ;;  %v4504_v29 = vadd.bf16 %v9554_v7, %v4338_v50 }
 0x495   : > { %v5569_v33 = vpack.c.bf16 %v5078_v18, %v5074_v2  ;;  %v5080_v14 = vpop.f32.mrb[203].mxu1  ;;  %6259 = vmatmul.mubr.bf16.gmra.mrb[196].mxu0 %v5861_v26 }
 0x496   : > { %v5570_v6 = vpack.c.bf16 %v5080_v14, %v5076_v24  ;;  %v4632_v60 = vmax.bf16 %v11779_v56, %v4504_v29 }
 0x497   : > { %v5735_v43 = vadd.bf16 %v10298_v42, %v5569_v33  ;;  %5343 = vmatmul.mubr.bf16.gmra.mrb[52].mxu1 %v4630_v12  ;;  %v12120_v12 = vpack.c.bf16 %v10581_v32, %v10569_v51 }
 0x498   : > { %v5736_v19 = vadd.bf16 %v10303_v55, %v5570_v6  ;;  %v10777_v40 = vpop.f32.mrb[92].mxu0  ;;  %5352 = vmatprep.mubr.bf16.mxu1 %v4633_v38  ;;  %v4635_v6 = vmax.bf16 %v11779_v56, %v4507_v41  ;;  %v4509_v41 = vadd.bf16 %v9525_v3, %v4343_v47 }
 0x499   : > { %v10783_v1 = vpop.f32.mrb[93].mxu0  ;;  %v5863_v18 = vmax.bf16 %v11779_v56, %v5735_v43 }
 0x49a   : > { %v10789_v2 = vpop.f32.mrb[94].mxu0  ;;  %v5084_v26 = vpop.f32.mrb[204].mxu1  ;;  %v5864_v24 = vmax.bf16 %v11779_v56, %v5736_v19 }
 0x49b   : > { %v10795_v8 = vpop.f32.mrb[95].mxu0  ;;  %v5086_v16 = vpop.f32.mrb[205].mxu1 }
 0x49c   : > { %v4357_v50 = vpack.c.bf16 %v10795_v8, %v10783_v1  ;;  %v5088_v33 = vpop.f32.mrb[206].mxu1  ;;  %6266 = vmatprep.mubr.bf16.mxu0 %v5864_v24  ;;  %v4506_v24 = vadd.bf16 %v9554_v7, %v12120_v12 }
 0x49d   : > { %v5571_v5 = vpack.c.bf16 %v5088_v33, %v5084_v26  ;;  %v5090_v34 = vpop.f32.mrb[207].mxu1  ;;  %6267 = vmatmul.mubr.bf16.gmra.mrb[200].mxu0 %v5863_v18 }
 0x49e   : > { %v5572_v14 = vpack.c.bf16 %v5090_v34, %v5086_v16  ;;  %v4634_v25 = vmax.bf16 %v11779_v56, %v4506_v24 }
 0x49f   : > { %v5737_v38 = vadd.bf16 %v10298_v42, %v5571_v5  ;;  %5353 = vmatmul.mubr.bf16.gmra.mrb[56].mxu1 %v4632_v60  ;;  %v12121_v60 = vpack.c.bf16 %v10607_v49, %v10595_v35 }
 0x4a0   : > { %v5738_v43 = vadd.bf16 %v10303_v55, %v5572_v14  ;;  %v10803_v19 = vpop.f32.mrb[96].mxu0  ;;  %5362 = vmatprep.mubr.bf16.mxu1 %v4635_v6  ;;  %v4637_v14 = vmax.bf16 %v11779_v56, %v4509_v41 }
 0x4a1   : > { %v10809_v29 = vpop.f32.mrb[97].mxu0  ;;  %v5865_v33 = vmax.bf16 %v11779_v56, %v5737_v38 }
 0x4a2   : > { %v10815_v26 = vpop.f32.mrb[98].mxu0  ;;  %v5094_v18 = vpop.f32.mrb[208].mxu1  ;;  %v5866_v16 = vmax.bf16 %v11779_v56, %v5738_v43 }
 0x4a3   : > { %v10821_v51 = vpop.f32.mrb[99].mxu0  ;;  %v5096_v32 = vpop.f32.mrb[209].mxu1 }
 0x4a4   : > { %v4359_v12 = vpack.c.bf16 %v10821_v51, %v10809_v29  ;;  %v5098_v5 = vpop.f32.mrb[210].mxu1  ;;  %6274 = vmatprep.mubr.bf16.mxu0 %v5866_v16  ;;  %v4508_v16 = vadd.bf16 %v9554_v7, %v12121_v60  ;;  %v12123_v60 = vpack.c.bf16 %v10633_v22, %v10621_v4 }
 0x4a5   : > { %v5573_v57 = vpack.c.bf16 %v5098_v5, %v5094_v18  ;;  %v5100_v47 = vpop.f32.mrb[211].mxu1  ;;  %6275 = vmatmul.mubr.bf16.gmra.mrb[204].mxu0 %v5865_v33  ;;  %v12122_v18 = vpack.c.bf16 %v10639_v63, %v10627_v36 }
 0x4a6   : > { %v5574_v34 = vpack.c.bf16 %v5100_v47, %v5096_v32  ;;  %v4636_v36 = vmax.bf16 %v11779_v56, %v4508_v16 }
 0x4a7   : > { %v5739_v6 = vadd.bf16 %v10298_v42, %v5573_v57  ;;  %5363 = vmatmul.mubr.bf16.gmra.mrb[60].mxu1 %v4634_v25  ;;  %v4511_v41 = vadd.bf16 %v9525_v3, %v12122_v18 }
 0x4a8   : > { %v5740_v38 = vadd.bf16 %v10303_v55, %v5574_v34  ;;  %v10829_v43 = vpop.f32.mrb[100].mxu0  ;;  %5372 = vmatprep.mubr.bf16.mxu1 %v4637_v14 }
 0x4a9   : > { %v10835_v24 = vpop.f32.mrb[101].mxu0  ;;  %v5867_v25 = vmax.bf16 %v11779_v56, %v5739_v6 }
 0x4aa   : > { %v10841_v33 = vpop.f32.mrb[102].mxu0  ;;  %v5104_v32 = vpop.f32.mrb[212].mxu1  ;;  %v5868_v5 = vmax.bf16 %v11779_v56, %v5740_v38  ;;  %v4639_v38 = vmax.bf16 %v11779_v56, %v4511_v41 }
 0x4ab   : > { %v10847_v35 = vpop.f32.mrb[103].mxu0  ;;  %v5106_v49 = vpop.f32.mrb[213].mxu1 }
 0x4ac   : > { %v5108_v47 = vpop.f32.mrb[214].mxu1  ;;  %6282 = vmatprep.mubr.bf16.mxu0 %v5868_v5  ;;  %v4510_v5 = vadd.bf16 %v9554_v7, %v12123_v60  ;;  %v12125_v60 = vpack.c.bf16 %v10659_v39, %v10647_v58 }
 0x4ad   : > { %v5575_v63 = vpack.c.bf16 %v5108_v47, %v5104_v32  ;;  %v5110_v34 = vpop.f32.mrb[215].mxu1  ;;  %6283 = vmatmul.mubr.bf16.gmra.mrb[208].mxu0 %v5867_v25  ;;  %v12124_v32 = vpack.c.bf16 %v10665_v17, %v10653_v9 }
 0x4ae   : > { %v5576_v14 = vpack.c.bf16 %v5110_v34, %v5106_v49  ;;  %v4638_v9 = vmax.bf16 %v11779_v56, %v4510_v5 }
 0x4af   : > { %v5741_v6 = vadd.bf16 %v10298_v42, %v5575_v63  ;;  %5373 = vmatmul.mubr.bf16.gmra.mrb[64].mxu1 %v4636_v36  ;;  %v4513_v41 = vadd.bf16 %v9525_v3, %v12124_v32 }
 0x4b0   : > { %v5742_v18 = vadd.bf16 %v10303_v55, %v5576_v14  ;;  %v10855_v57 = vpop.f32.mrb[104].mxu0  ;;  %5382 = vmatprep.mubr.bf16.mxu1 %v4639_v38 }
 0x4b1   : > { %v10861_v16 = vpop.f32.mrb[105].mxu0  ;;  %v5869_v36 = vmax.bf16 %v11779_v56, %v5741_v6 }
 0x4b2   : > { %v10867_v25 = vpop.f32.mrb[106].mxu0  ;;  %v5114_v49 = vpop.f32.mrb[216].mxu1  ;;  %v5870_v47 = vmax.bf16 %v11779_v56, %v5742_v18  ;;  %v4641_v18 = vmax.bf16 %v11779_v56, %v4513_v41  ;;  %v4515_v41 = vadd.bf16 %v9525_v3, %v4349_v45 }
 0x4b3   : > { %v10873_v4 = vpop.f32.mrb[107].mxu0  ;;  %v5116_v22 = vpop.f32.mrb[217].mxu1 }
 0x4b4   : > { %v5118_v34 = vpop.f32.mrb[218].mxu1  ;;  %6290 = vmatprep.mubr.bf16.mxu0 %v5870_v47  ;;  %v4512_v47 = vadd.bf16 %v9554_v7, %v12125_v60 }
 0x4b5   : > { %v5577_v17 = vpack.c.bf16 %v5118_v34, %v5114_v49  ;;  %v5120_v14 = vpop.f32.mrb[219].mxu1  ;;  %6291 = vmatmul.mubr.bf16.gmra.mrb[212].mxu0 %v5869_v36 }
 0x4b6   : > { %v5578_v38 = vpack.c.bf16 %v5120_v14, %v5116_v22  ;;  %v4640_v13 = vmax.bf16 %v11779_v56, %v4512_v47 }
 0x4b7   : > { %v5743_v6 = vadd.bf16 %v10298_v42, %v5577_v17  ;;  %5383 = vmatmul.mubr.bf16.gmra.mrb[68].mxu1 %v4638_v9  ;;  %v12126_v9 = vpack.c.bf16 %v10685_v44, %v10673_v15 }
 0x4b8   : > { %v5744_v32 = vadd.bf16 %v10303_v55, %v5578_v38  ;;  %v10881_v63 = vpop.f32.mrb[108].mxu0  ;;  %5392 = vmatprep.mubr.bf16.mxu1 %v4641_v18  ;;  %v4643_v38 = vmax.bf16 %v11779_v56, %v4515_v41  ;;  %v4517_v41 = vadd.bf16 %v9525_v3, %v4351_v61 }
 0x4b9   : > { %v10887_v5 = vpop.f32.mrb[109].mxu0  ;;  %v5871_v34 = vmax.bf16 %v11779_v56, %v5743_v6 }
 0x4ba   : > { %v10893_v49 = vpop.f32.mrb[110].mxu0  ;;  %v5124_v36 = vpop.f32.mrb[220].mxu1  ;;  %v5872_v22 = vmax.bf16 %v11779_v56, %v5744_v32 }
 0x4bb   : > { %v10899_v58 = vpop.f32.mrb[111].mxu0  ;;  %v5126_v39 = vpop.f32.mrb[221].mxu1 }
 0x4bc   : > { %v4365_v60 = vpack.c.bf16 %v10899_v58, %v10887_v5  ;;  %v5128_v17 = vpop.f32.mrb[222].mxu1  ;;  %6298 = vmatprep.mubr.bf16.mxu0 %v5872_v22  ;;  %v4514_v22 = vadd.bf16 %v9554_v7, %v12126_v9 }
 0x4bd   : > { %v5579_v37 = vpack.c.bf16 %v5128_v17, %v5124_v36  ;;  %v5130_v45 = vpop.f32.mrb[223].mxu1  ;;  %6299 = vmatmul.mubr.bf16.gmra.mrb[216].mxu0 %v5871_v34 }
 0x4be   : > { %v5580_v14 = vpack.c.bf16 %v5130_v45, %v5126_v39  ;;  %v4642_v59 = vmax.bf16 %v11779_v56, %v4514_v22 }
 0x4bf   : > { %v5745_v18 = vadd.bf16 %v10298_v42, %v5579_v37  ;;  %5393 = vmatmul.mubr.bf16.gmra.mrb[72].mxu1 %v4640_v13 }
 0x4c0   : > { %v5746_v6 = vadd.bf16 %v10303_v55, %v5580_v14  ;;  %v10907_v32 = vpop.f32.mrb[112].mxu0  ;;  %5402 = vmatprep.mubr.bf16.mxu1 %v4643_v38  ;;  %v4645_v14 = vmax.bf16 %v11779_v56, %v4517_v41  ;;  %v4519_v41 = vadd.bf16 %v9525_v3, %v4353_v54 }
 0x4c1   : > { %v10913_v47 = vpop.f32.mrb[113].mxu0  ;;  %v5873_v17 = vmax.bf16 %v11779_v56, %v5745_v18 }
 0x4c2   : > { %v10919_v36 = vpop.f32.mrb[114].mxu0  ;;  %v5134_v34 = vpop.f32.mrb[224].mxu1  ;;  %v5874_v39 = vmax.bf16 %v11779_v56, %v5746_v6 }
 0x4c3   : > { %v4366_v13 = vpack.c.bf16 %v10919_v36, %v10907_v32  ;;  %v10925_v15 = vpop.f32.mrb[115].mxu0  ;;  %v5136_v44 = vpop.f32.mrb[225].mxu1 }
 0x4c4   : > { %v4367_v9 = vpack.c.bf16 %v10925_v15, %v10913_v47  ;;  %v5138_v37 = vpop.f32.mrb[226].mxu1  ;;  %6306 = vmatprep.mubr.bf16.mxu0 %v5874_v39  ;;  %v4516_v39 = vadd.bf16 %v9554_v7, %v4350_v23 }
 0x4c5   : > { %v5581_v11 = vpack.c.bf16 %v5138_v37, %v5134_v34  ;;  %v5140_v61 = vpop.f32.mrb[227].mxu1  ;;  %6307 = vmatmul.mubr.bf16.gmra.mrb[220].mxu0 %v5873_v17 }
 0x4c6   : > { %v5582_v45 = vpack.c.bf16 %v5140_v61, %v5136_v44  ;;  %v4644_v27 = vmax.bf16 %v11779_v56, %v4516_v39 }
 0x4c7   : > { %v5747_v38 = vadd.bf16 %v10298_v42, %v5581_v11  ;;  %5403 = vmatmul.mubr.bf16.gmra.mrb[76].mxu1 %v4642_v59 }
 0x4c8   : > { %v5748_v18 = vadd.bf16 %v10303_v55, %v5582_v45  ;;  %v10933_v6 = vpop.f32.mrb[116].mxu0  ;;  %5412 = vmatprep.mubr.bf16.mxu1 %v4645_v14  ;;  %v4647_v45 = vmax.bf16 %v11779_v56, %v4519_v41  ;;  %v4521_v41 = vadd.bf16 %v9525_v3, %v4355_v46 }
 0x4c9   : > { %v10939_v22 = vpop.f32.mrb[117].mxu0  ;;  %v5875_v37 = vmax.bf16 %v11779_v56, %v5747_v38 }
 0x4ca   : > { %v10945_v34 = vpop.f32.mrb[118].mxu0  ;;  %v5144_v17 = vpop.f32.mrb[228].mxu1  ;;  %v5876_v44 = vmax.bf16 %v11779_v56, %v5748_v18 }
 0x4cb   : > { %v4368_v59 = vpack.c.bf16 %v10945_v34, %v10933_v6  ;;  %v10951_v28 = vpop.f32.mrb[119].mxu0  ;;  %v5146_v10 = vpop.f32.mrb[229].mxu1 }
 0x4cc   : > { %v4369_v23 = vpack.c.bf16 %v10951_v28, %v10939_v22  ;;  %v5148_v11 = vpop.f32.mrb[230].mxu1  ;;  %6314 = vmatprep.mubr.bf16.mxu0 %v5876_v44  ;;  %v4518_v44 = vadd.bf16 %v9554_v7, %v4352_v53 }
 0x4cd   : > { %v5583_v62 = vpack.c.bf16 %v5148_v11, %v5144_v17  ;;  %v5150_v54 = vpop.f32.mrb[231].mxu1  ;;  %6315 = vmatmul.mubr.bf16.gmra.mrb[224].mxu0 %v5875_v37 }
 0x4ce   : > { %v5584_v61 = vpack.c.bf16 %v5150_v54, %v5146_v10  ;;  %v4646_v30 = vmax.bf16 %v11779_v56, %v4518_v44 }
 0x4cf   : > { %v5749_v14 = vadd.bf16 %v10298_v42, %v5583_v62  ;;  %5413 = vmatmul.mubr.bf16.gmra.mrb[80].mxu1 %v4644_v27 }
 0x4d0   : > { %v5750_v38 = vadd.bf16 %v10303_v55, %v5584_v61  ;;  %v10959_v18 = vpop.f32.mrb[120].mxu0  ;;  %5422 = vmatprep.mubr.bf16.mxu1 %v4647_v45  ;;  %v4649_v61 = vmax.bf16 %v11779_v56, %v4521_v41  ;;  %v4523_v41 = vadd.bf16 %v9525_v3, %v4357_v50 }
 0x4d1   : > { %v10965_v39 = vpop.f32.mrb[121].mxu0  ;;  %v5877_v11 = vmax.bf16 %v11779_v56, %v5749_v14 }
 0x4d2   : > { %v10971_v17 = vpop.f32.mrb[122].mxu0  ;;  %v5154_v37 = vpop.f32.mrb[232].mxu1  ;;  %v5878_v10 = vmax.bf16 %v11779_v56, %v5750_v38 }
 0x4d3   : > { %v4370_v27 = vpack.c.bf16 %v10971_v17, %v10959_v18  ;;  %v10977_v0 = vpop.f32.mrb[123].mxu0  ;;  %v5156_v52 = vpop.f32.mrb[233].mxu1 }
 0x4d4   : > { %v4371_v53 = vpack.c.bf16 %v10977_v0, %v10965_v39  ;;  %v5158_v62 = vpop.f32.mrb[234].mxu1  ;;  %6322 = vmatprep.mubr.bf16.mxu0 %v5878_v10  ;;  %v4520_v10 = vadd.bf16 %v9554_v7, %v4354_v21 }
 0x4d5   : > { %v5585_v31 = vpack.c.bf16 %v5158_v62, %v5154_v37  ;;  %v5160_v46 = vpop.f32.mrb[235].mxu1  ;;  %6323 = vmatmul.mubr.bf16.gmra.mrb[228].mxu0 %v5877_v11 }
 0x4d6   : > { %v5586_v54 = vpack.c.bf16 %v5160_v46, %v5156_v52  ;;  %v4648_v8 = vmax.bf16 %v11779_v56, %v4520_v10 }
 0x4d7   : > { %v5751_v45 = vadd.bf16 %v10298_v42, %v5585_v31  ;;  %5423 = vmatmul.mubr.bf16.gmra.mrb[84].mxu1 %v4646_v30 }
 0x4d8   : > { %v5752_v14 = vadd.bf16 %v10303_v55, %v5586_v54  ;;  %v10985_v38 = vpop.f32.mrb[124].mxu0  ;;  %5432 = vmatprep.mubr.bf16.mxu1 %v4649_v61  ;;  %v4651_v54 = vmax.bf16 %v11779_v56, %v4523_v41  ;;  %v11013_v61 = vld [vmem:[%s11655_s10] ss:$0 sm:$0xff]  ;;  %v12127_v41 = vpack.c.bf16 %v10789_v2, %v10777_v40 }
 0x4d9   : > { %v10991_v44 = vpop.f32.mrb[125].mxu0  ;;  %v5879_v62 = vmax.bf16 %v11779_v56, %v5751_v45 }
 0x4da   : > { %v10997_v37 = vpop.f32.mrb[126].mxu0  ;;  %v5164_v11 = vpop.f32.mrb[236].mxu1  ;;  %v5880_v52 = vmax.bf16 %v11779_v56, %v5752_v14 }
 0x4db   : > { %v4372_v48 = vpack.c.bf16 %v10997_v37, %v10985_v38  ;;  %v11003_v20 = vpop.f32.mrb[127].mxu0  ;;  %v5166_v21 = vpop.f32.mrb[237].mxu1 }
 0x4dc   : > { %v4373_v30 = vpack.c.bf16 %v11003_v20, %v10991_v44  ;;  %v5168_v1 = vpop.f32.mrb[238].mxu1  ;;  %6330 = vmatprep.mubr.bf16.mxu0 %v5880_v52 }
 0x4dd   : > { %v5587_v50 = vpack.c.bf16 %v5168_v1, %v5164_v11  ;;  %v5170_v31 = vpop.f32.mrb[239].mxu1  ;;  %6331 = vmatmul.mubr.bf16.gmra.mrb[232].mxu0 %v5879_v62  ;;  %v4522_v11 = vadd.bf16 %v9554_v7, %v12127_v41 }
 0x4de   : > { %v5588_v46 = vpack.c.bf16 %v5170_v31, %v5166_v21  ;;  %v4525_v21 = vadd.bf16 %v9525_v3, %v4359_v12 }
 0x4df   : > { %v5753_v45 = vadd.bf16 %v10298_v42, %v5587_v50  ;;  %5433 = vmatmul.mubr.bf16.gmra.mrb[88].mxu1 %v4648_v8 }
 0x4e0   : > { %v5754_v14 = vadd.bf16 %v10303_v55, %v5588_v46  ;;  %5442 = vmatprep.mubr.bf16.mxu1 %v4651_v54  ;;  %v6124_v10 = vpop.f32.mrb[128].mxu0 }
 0x4e1   : > { %v6125_v52 = vadd.f32 %v11013_v61, %v6124_v10  ;;  %v6126_v62 = vpop.f32.mrb[129].mxu0  ;;  %v5881_v31 = vmax.bf16 %v11779_v56, %v5753_v45  ;;  %v4650_v10 = vmax.bf16 %v11779_v56, %v4522_v11 }
 0x4e2   : > { %v5174_v1 = vpop.f32.mrb[240].mxu1  ;;  %v6127_v8 = vpop.f32.mrb[130].mxu0  ;;  %v5882_v50 = vmax.bf16 %v11779_v56, %v5754_v14  ;;  %v4653_v14 = vmax.bf16 %v11779_v56, %v4525_v21  ;;  %v12128_v62 = vpack.c.bf16 %v10815_v26, %v10803_v19 }
 0x4e3   : > { %6636 = vst.msk [vmem:[%s11020_s28] sm:$0xff] %vm6635_vm0, %v6125_v52  ;;  %v6128_v40 = vadd.f32 %v11013_v61, %v6127_v8  ;;  %v5176_v2 = vpop.f32.mrb[241].mxu1  ;;  %v6129_v46 = vpop.f32.mrb[131].mxu0 }
 0x4e4   : > { %v5178_v54 = vpop.f32.mrb[242].mxu1  ;;  %6338 = vmatprep.mubr.bf16.mxu0 %v5882_v50  ;;  %v4524_v11 = vadd.bf16 %v9554_v7, %v12128_v62  ;;  %v12129_v50 = vpack.c.bf16 %v10847_v35, %v10835_v24 }
 0x4e5   : > { %6637 = vst.msk [vmem:[%s11020_s28 + $0x8] sm:$0xff] %vm6635_vm0, %v6128_v40  ;;  %v5589_v29 = vpack.c.bf16 %v5178_v54, %v5174_v1  ;;  %v5180_v51 = vpop.f32.mrb[243].mxu1  ;;  %6339 = vmatmul.mubr.bf16.gmra.mrb[236].mxu0 %v5881_v31 }
 0x4e6   : > { %v5590_v12 = vpack.c.bf16 %v5180_v51, %v5176_v2  ;;  %v4527_v21 = vadd.bf16 %v9525_v3, %v12129_v50 }
 0x4e7   : > { %v5755_v45 = vadd.bf16 %v10298_v42, %v5589_v29  ;;  %5443 = vmatmul.mubr.bf16.gmra.mrb[92].mxu1 %v4650_v10  ;;  %v4652_v29 = vmax.bf16 %v11779_v56, %v4524_v11 }
 0x4e8   : > { %v5756_v41 = vadd.bf16 %v10303_v55, %v5590_v12  ;;  %5452 = vmatprep.mubr.bf16.mxu1 %v4653_v14  ;;  %v6132_v52 = vpop.f32.mrb[132].mxu0  ;;  %v4655_v12 = vmax.bf16 %v11779_v56, %v4527_v21 }
 0x4e9   : > { %v6133_v1 = vadd.f32 %v11013_v61, %v6132_v52  ;;  %v6134_v8 = vpop.f32.mrb[133].mxu0  ;;  %v5883_v46 = vmax.bf16 %v11779_v56, %v5755_v45  ;;  %v12130_v52 = vpack.c.bf16 %v10841_v33, %v10829_v43 }
 0x4ea   : > { %v5184_v31 = vpop.f32.mrb[244].mxu1  ;;  %v6135_v40 = vpop.f32.mrb[134].mxu0  ;;  %v5884_v2 = vmax.bf16 %v11779_v56, %v5756_v41  ;;  %v12131_v8 = vpack.c.bf16 %v10873_v4, %v10861_v16 }
 0x4eb   : > { %6638 = vst.msk [vmem:[%s11020_s28 + $0x10] sm:$0xff] %vm6635_vm0, %v6133_v1  ;;  %v6136_v19 = vadd.f32 %v11013_v61, %v6135_v40  ;;  %v5186_v26 = vpop.f32.mrb[245].mxu1  ;;  %v6137_v54 = vpop.f32.mrb[135].mxu0  ;;  %v4526_v62 = vadd.bf16 %v9554_v7, %v12130_v52 }
 0x4ec   : > { %v5188_v10 = vpop.f32.mrb[246].mxu1  ;;  %6346 = vmatprep.mubr.bf16.mxu0 %v5884_v2  ;;  %v4529_v50 = vadd.bf16 %v9525_v3, %v12131_v8 }
 0x4ed   : > { %6639 = vst.msk [vmem:[%s11020_s28 + $0x18] sm:$0xff] %vm6635_vm0, %v6136_v19  ;;  %v5591_v24 = vpack.c.bf16 %v5188_v10, %v5184_v31  ;;  %v5190_v35 = vpop.f32.mrb[247].mxu1  ;;  %6347 = vmatmul.mubr.bf16.gmra.mrb[240].mxu0 %v5883_v46 }
 0x4ee   : > { %v5592_v51 = vpack.c.bf16 %v5190_v35, %v5186_v26  ;;  %v4654_v26 = vmax.bf16 %v11779_v56, %v4526_v62  ;;  %v4657_v10 = vmax.bf16 %v11779_v56, %v4529_v50 }
 0x4ef   : > { %v5757_v14 = vadd.bf16 %v10298_v42, %v5591_v24  ;;  %5453 = vmatmul.mubr.bf16.gmra.mrb[96].mxu1 %v4652_v29 }
 0x4f0   : > { %v5758_v45 = vadd.bf16 %v10303_v55, %v5592_v51  ;;  %5462 = vmatprep.mubr.bf16.mxu1 %v4655_v12  ;;  %v6140_v41 = vpop.f32.mrb[136].mxu0  ;;  %v12132_v51 = vpack.c.bf16 %v10867_v25, %v10855_v57 }
 0x4f1   : > { %v6141_v11 = vadd.f32 %v11013_v61, %v6140_v41  ;;  %v6142_v1 = vpop.f32.mrb[137].mxu0  ;;  %v5885_v2 = vmax.bf16 %v11779_v56, %v5757_v14  ;;  %v4531_v41 = vadd.bf16 %v9525_v3, %v4365_v60 }
 0x4f2   : > { %v5194_v21 = vpop.f32.mrb[248].mxu1  ;;  %v6143_v31 = vpop.f32.mrb[138].mxu0  ;;  %v5886_v40 = vmax.bf16 %v11779_v56, %v5758_v45  ;;  %v4528_v12 = vadd.bf16 %v9554_v7, %v12132_v51 }
 0x4f3   : > { %6640 = vst.msk [vmem:[%s11020_s28 + $0x20] sm:$0xff] %vm6635_vm0, %v6141_v11  ;;  %v6144_v43 = vadd.f32 %v11013_v61, %v6143_v31  ;;  %v5196_v33 = vpop.f32.mrb[249].mxu1  ;;  %v6145_v46 = vpop.f32.mrb[139].mxu0  ;;  %v4659_v31 = vmax.bf16 %v11779_v56, %v4531_v41 }
 0x4f4   : > { %v5198_v19 = vpop.f32.mrb[250].mxu1  ;;  %6354 = vmatprep.mubr.bf16.mxu0 %v5886_v40 }
 0x4f5   : > { %6641 = vst.msk [vmem:[%s11020_s28 + $0x28] sm:$0xff] %vm6635_vm0, %v6144_v43  ;;  %v5593_v16 = vpack.c.bf16 %v5198_v19, %v5194_v21  ;;  %v5200_v4 = vpop.f32.mrb[251].mxu1  ;;  %6355 = vmatmul.mubr.bf16.gmra.mrb[244].mxu0 %v5885_v2  ;;  %v4656_v21 = vmax.bf16 %v11779_v56, %v4528_v12 }
 0x4f6   : > { %v5594_v54 = vpack.c.bf16 %v5200_v4, %v5196_v33  ;;  %v12133_v33 = vpack.c.bf16 %v10893_v49, %v10881_v63 }
 0x4f7   : > { %v5759_v29 = vadd.bf16 %v10298_v42, %v5593_v16  ;;  %5463 = vmatmul.mubr.bf16.gmra.mrb[100].mxu1 %v4654_v26  ;;  %v4533_v16 = vadd.bf16 %v9525_v3, %v4367_v9 }
 0x4f8   : > { %v5760_v24 = vadd.bf16 %v10303_v55, %v5594_v54  ;;  %5472 = vmatprep.mubr.bf16.mxu1 %v4657_v10  ;;  %v6148_v35 = vpop.f32.mrb[140].mxu0  ;;  %v4530_v46 = vadd.bf16 %v9554_v7, %v12133_v33 }
 0x4f9   : > { %v6149_v14 = vadd.f32 %v11013_v61, %v6148_v35  ;;  %v6150_v45 = vpop.f32.mrb[141].mxu0  ;;  %v5887_v1 = vmax.bf16 %v11779_v56, %v5759_v29  ;;  %v4661_v12 = vmax.bf16 %v11779_v56, %v4533_v16 }
 0x4fa   : > { %v5204_v52 = vpop.f32.mrb[252].mxu1  ;;  %v6151_v62 = vpop.f32.mrb[142].mxu0  ;;  %v5888_v11 = vmax.bf16 %v11779_v56, %v5760_v24  ;;  %v4658_v51 = vmax.bf16 %v11779_v56, %v4530_v46  ;;  %v4537_v46 = vadd.bf16 %v9525_v3, %v4371_v53 }
 0x4fb   : > { %6642 = vst.msk [vmem:[%s11020_s28 + $0x30] sm:$0xff] %vm6635_vm0, %v6149_v14  ;;  %v6152_v57 = vadd.f32 %v11013_v61, %v6151_v62  ;;  %v5206_v25 = vpop.f32.mrb[253].mxu1  ;;  %v6153_v8 = vpop.f32.mrb[143].mxu0 }
 0x4fc   : > { %v5208_v50 = vpop.f32.mrb[254].mxu1  ;;  %6362 = vmatprep.mubr.bf16.mxu0 %v5888_v11 }
 0x4fd   : > { %6643 = vst.msk [vmem:[%s11020_s28 + $0x38] sm:$0xff] %vm6635_vm0, %v6152_v57  ;;  %v5595_v5 = vpack.c.bf16 %v5208_v50, %v5204_v52  ;;  %v5210_v58 = vpop.f32.mrb[255].mxu1  ;;  %6363 = vmatmul.mubr.bf16.gmra.mrb[248].mxu0 %v5887_v1  ;;  %v4532_v52 = vadd.bf16 %v9554_v7, %v4366_v13  ;;  %v4535_v1 = vadd.bf16 %v9525_v3, %v4369_v23 }
 0x4fe   : > { %v5596_v60 = vpack.c.bf16 %v5210_v58, %v5206_v25 }
 0x4ff   : > { %v5761_v40 = vadd.bf16 %v10298_v42, %v5595_v5  ;;  %5473 = vmatmul.mubr.bf16.gmra.mrb[104].mxu1 %v4656_v21  ;;  %v4660_v5 = vmax.bf16 %v11779_v56, %v4532_v52  ;;  %v4663_v58 = vmax.bf16 %v11779_v56, %v4535_v1 }
 0x500   : > { %v5762_v2 = vadd.bf16 %v10303_v55, %v5596_v60  ;;  %5482 = vmatprep.mubr.bf16.mxu1 %v4659_v31  ;;  %v6156_v43 = vpop.f32.mrb[144].mxu0 }
 0x501   : > { %v6157_v19 = vadd.f32 %v11013_v61, %v6156_v43  ;;  %v6158_v26 = vpop.f32.mrb[145].mxu0  ;;  %v5889_v29 = vmax.bf16 %v11779_v56, %v5761_v40 }
 0x502   : > { %v5214_v4 = vpop.f32.mrb[0].mxu1  ;;  %v6159_v54 = vpop.f32.mrb[146].mxu0  ;;  %v5890_v10 = vmax.bf16 %v11779_v56, %v5762_v2  ;;  %v4534_v2 = vadd.bf16 %v9554_v7, %v4368_v59 }
 0x503   : > { %6644 = vst.msk [vmem:[%s11020_s28 + $0x40] sm:$0xff] %vm6635_vm0, %v6157_v19  ;;  %v6160_v63 = vadd.f32 %v11013_v61, %v6159_v54  ;;  %v5216_v49 = vpop.f32.mrb[1].mxu1  ;;  %v6161_v24 = vpop.f32.mrb[147].mxu0 }
 0x504   : > { %v5218_v35 = vpop.f32.mrb[2].mxu1  ;;  %6370 = vmatprep.mubr.bf16.mxu0 %v5890_v10  ;;  %v4662_v10 = vmax.bf16 %v11779_v56, %v4534_v2 }
 0x505   : > { %6645 = vst.msk [vmem:[%s11020_s28 + $0x48] sm:$0xff] %vm6635_vm0, %v6160_v63  ;;  %v5597_v47 = vpack.c.bf16 %v5218_v35, %v5214_v4  ;;  %v5220_v15 = vpop.f32.mrb[3].mxu1  ;;  %6371 = vmatmul.mubr.bf16.gmra.mrb[252].mxu0 %v5889_v29  ;;  %v4665_v29 = vmax.bf16 %v11779_v56, %v4537_v46  ;;  %v4536_v35 = vadd.bf16 %v9554_v7, %v4370_v27 }
 0x506   : > { %v5598_v9 = vpack.c.bf16 %v5220_v15, %v5216_v49  ;;  %v4539_v15 = vadd.bf16 %v9525_v3, %v4373_v30 }
 0x507   : > { %v5763_v14 = vadd.bf16 %v10298_v42, %v5597_v47  ;;  %5483 = vmatmul.mubr.bf16.gmra.mrb[108].mxu1 %v4658_v51  ;;  %v4664_v52 = vmax.bf16 %v11779_v56, %v4536_v35 }
 0x508   : > { %v5764_v45 = vadd.bf16 %v10303_v55, %v5598_v9  ;;  %5492 = vmatprep.mubr.bf16.mxu1 %v4661_v12  ;;  %v6164_v41 = vpop.f32.mrb[148].mxu0  ;;  %v4667_v30 = vmax.bf16 %v11779_v56, %v4539_v15 }
 0x509   : > { %v6165_v62 = vadd.f32 %v11013_v61, %v6164_v41  ;;  %v6166_v11 = vpop.f32.mrb[149].mxu0  ;;  %v5891_v50 = vmax.bf16 %v11779_v56, %v5763_v14 }
 0x50a   : > { %v5224_v57 = vpop.f32.mrb[4].mxu1  ;;  %v6167_v25 = vpop.f32.mrb[150].mxu0  ;;  %v5892_v8 = vmax.bf16 %v11779_v56, %v5764_v45 }
 0x50b   : > { %6646 = vst.msk [vmem:[%s11020_s28 + $0x50] sm:$0xff] %vm6635_vm0, %v6165_v62  ;;  %v6168_v32 = vadd.f32 %v11013_v61, %v6167_v25  ;;  %v5226_v36 = vpop.f32.mrb[5].mxu1  ;;  %v6169_v13 = vpop.f32.mrb[151].mxu0 }
 0x50c   : > { %v5228_v21 = vpop.f32.mrb[6].mxu1  ;;  %6378 = vmatprep.mubr.bf16.mxu0 %v5892_v8 }
 0x50d   : > { %6647 = vst.msk [vmem:[%s11020_s28 + $0x58] sm:$0xff] %vm6635_vm0, %v6168_v32  ;;  %v5599_v22 = vpack.c.bf16 %v5228_v21, %v5224_v57  ;;  %v5230_v28 = vpop.f32.mrb[7].mxu1  ;;  %6379 = vmatmul.mubr.bf16.gmra.mrb[0].mxu0 %v5891_v50  ;;  %v4538_v57 = vadd.bf16 %v9554_v7, %v4372_v48 }
 0x50e   : > { %v5600_v23 = vpack.c.bf16 %v5230_v28, %v5226_v36 }
 0x50f   : > { %v5765_v60 = vadd.bf16 %v10298_v42, %v5599_v22  ;;  %5493 = vmatmul.mubr.bf16.gmra.mrb[112].mxu1 %v4660_v5  ;;  %v4666_v38 = vmax.bf16 %v11779_v56, %v4538_v57 }
 0x510   : > { %v5766_v31 = vadd.bf16 %v10303_v55, %v5600_v23  ;;  %5502 = vmatprep.mubr.bf16.mxu1 %v4663_v58  ;;  %v6172_v40 = vpop.f32.mrb[152].mxu0 }
 0x511   : > { %v6173_v43 = vadd.f32 %v11013_v61, %v6172_v40  ;;  %v6174_v33 = vpop.f32.mrb[153].mxu0  ;;  %v5893_v4 = vmax.bf16 %v11779_v56, %v5765_v60 }
 0x512   : > { %v5234_v19 = vpop.f32.mrb[8].mxu1  ;;  %v6175_v26 = vpop.f32.mrb[154].mxu0  ;;  %v5894_v16 = vmax.bf16 %v11779_v56, %v5766_v31 }
 0x513   : > { %6648 = vst.msk [vmem:[%s11020_s28 + $0x60] sm:$0xff] %vm6635_vm0, %v6173_v43  ;;  %v6176_v6 = vadd.f32 %v11013_v61, %v6175_v26  ;;  %v5236_v34 = vpop.f32.mrb[9].mxu1  ;;  %v6177_v59 = vpop.f32.mrb[155].mxu0 }
 0x514   : > { %v5238_v54 = vpop.f32.mrb[10].mxu1  ;;  %6386 = vmatprep.mubr.bf16.mxu0 %v5894_v16 }
 0x515   : > { %6649 = vst.msk [vmem:[%s11020_s28 + $0x68] sm:$0xff] %vm6635_vm0, %v6176_v6  ;;  %v5601_v39 = vpack.c.bf16 %v5238_v54, %v5234_v19  ;;  %v5240_v0 = vpop.f32.mrb[11].mxu1  ;;  %6387 = vmatmul.mubr.bf16.gmra.mrb[4].mxu0 %v5893_v4 }
 0x516   : > { %v5602_v53 = vpack.c.bf16 %v5240_v0, %v5236_v34 }
 0x517   : > { %v5767_v63 = vadd.bf16 %v10298_v42, %v5601_v39  ;;  %5503 = vmatmul.mubr.bf16.gmra.mrb[116].mxu1 %v4662_v10 }
 0x518   : > { %v5768_v49 = vadd.bf16 %v10303_v55, %v5602_v53  ;;  %5512 = vmatprep.mubr.bf16.mxu1 %v4665_v29  ;;  %v6180_v24 = vpop.f32.mrb[156].mxu0 }
 0x519   : > { %v6181_v51 = vadd.f32 %v11013_v61, %v6180_v24  ;;  %v6182_v47 = vpop.f32.mrb[157].mxu0  ;;  %v5895_v45 = vmax.bf16 %v11779_v56, %v5767_v63 }
 0x51a   : > { %v5244_v9 = vpop.f32.mrb[12].mxu1  ;;  %v6183_v12 = vpop.f32.mrb[158].mxu0  ;;  %v5896_v14 = vmax.bf16 %v11779_v56, %v5768_v49 }
 0x51b   : > { %6650 = vst.msk [vmem:[%s11020_s28 + $0x70] sm:$0xff] %vm6635_vm0, %v6181_v51  ;;  %v6184_v18 = vadd.f32 %v11013_v61, %v6183_v12  ;;  %v5246_v17 = vpop.f32.mrb[13].mxu1  ;;  %v6185_v27 = vpop.f32.mrb[159].mxu0 }
 0x51c   : > { %v5248_v41 = vpop.f32.mrb[14].mxu1  ;;  %6394 = vmatprep.mubr.bf16.mxu0 %v5896_v14 }
 0x51d   : > { %6651 = vst.msk [vmem:[%s11020_s28 + $0x78] sm:$0xff] %vm6635_vm0, %v6184_v18  ;;  %v5603_v44 = vpack.c.bf16 %v5248_v41, %v5244_v9  ;;  %v5250_v3 = vpop.f32.mrb[15].mxu1  ;;  %6395 = vmatmul.mubr.bf16.gmra.mrb[8].mxu0 %v5895_v45 }
 0x51e   : > { %v5604_v20 = vpack.c.bf16 %v5250_v3, %v5246_v17 }
 0x51f   : > { %v5769_v62 = vadd.bf16 %v10298_v42, %v5603_v44  ;;  %5513 = vmatmul.mubr.bf16.gmra.mrb[120].mxu1 %v4664_v52 }
 0x520   : > { %v5770_v11 = vadd.bf16 %v10303_v55, %v5604_v20  ;;  %5522 = vmatprep.mubr.bf16.mxu1 %v4667_v30  ;;  %v6188_v1 = vpop.f32.mrb[160].mxu0 }
 0x521   : > { %v6189_v25 = vadd.f32 %v11013_v61, %v6188_v1  ;;  %v6190_v8 = vpop.f32.mrb[161].mxu0  ;;  %v5897_v13 = vmax.bf16 %v11779_v56, %v5769_v62 }
 0x522   : > { %v5254_v50 = vpop.f32.mrb[16].mxu1  ;;  %v6191_v32 = vpop.f32.mrb[162].mxu0  ;;  %v5898_v36 = vmax.bf16 %v11779_v56, %v5770_v11 }
 0x523   : > { %6652 = vst.msk [vmem:[%s11020_s28 + $0x80] sm:$0xff] %vm6635_vm0, %v6189_v25  ;;  %v6192_v21 = vadd.f32 %v11013_v61, %v6191_v32  ;;  %v5256_v5 = vpop.f32.mrb[17].mxu1  ;;  %v6193_v22 = vpop.f32.mrb[163].mxu0 }
 0x524   : > { %v5258_v28 = vpop.f32.mrb[18].mxu1  ;;  %6402 = vmatprep.mubr.bf16.mxu0 %v5898_v36 }
 0x525   : > { %6653 = vst.msk [vmem:[%s11020_s28 + $0x88] sm:$0xff] %vm6635_vm0, %v6192_v21  ;;  %v5605_v7 = vpack.c.bf16 %v5258_v28, %v5254_v50  ;;  %v5260_v37 = vpop.f32.mrb[19].mxu1  ;;  %6403 = vmatmul.mubr.bf16.gmra.mrb[12].mxu0 %v5897_v13 }
 0x526   : > { %v5606_v48 = vpack.c.bf16 %v5260_v37, %v5256_v5 }
 0x527   : > { %v5771_v23 = vadd.bf16 %v10298_v42, %v5605_v7  ;;  %5523 = vmatmul.mubr.bf16.gmra.mrb[124].mxu1 %v4666_v38 }
 0x528   : > { %v5772_v58 = vadd.bf16 %v10303_v55, %v5606_v48  ;;  %v6196_v60 = vpop.f32.mrb[164].mxu0 }
 0x529   : > { %v6197_v31 = vadd.f32 %v11013_v61, %v6196_v60  ;;  %v6198_v40 = vpop.f32.mrb[165].mxu0  ;;  %v5899_v46 = vmax.bf16 %v11779_v56, %v5771_v23 }
 0x52a   : > { %v5264_v2 = vpop.f32.mrb[20].mxu1  ;;  %v6199_v43 = vpop.f32.mrb[166].mxu0  ;;  %v5900_v33 = vmax.bf16 %v11779_v56, %v5772_v58 }
 0x52b   : > { %6654 = vst.msk [vmem:[%s11020_s28 + $0x90] sm:$0xff] %vm6635_vm0, %v6197_v31  ;;  %v6200_v19 = vadd.f32 %v11013_v61, %v6199_v43  ;;  %v5266_v26 = vpop.f32.mrb[21].mxu1  ;;  %v6201_v16 = vpop.f32.mrb[167].mxu0 }
 0x52c   : > { %v5268_v4 = vpop.f32.mrb[22].mxu1  ;;  %6410 = vmatprep.mubr.bf16.mxu0 %v5900_v33 }
 0x52d   : > { %6655 = vst.msk [vmem:[%s11020_s28 + $0x98] sm:$0xff] %vm6635_vm0, %v6200_v19  ;;  %v5607_v6 = vpack.c.bf16 %v5268_v4, %v5264_v2  ;;  %v5270_v34 = vpop.f32.mrb[23].mxu1  ;;  %6411 = vmatmul.mubr.bf16.gmra.mrb[16].mxu0 %v5899_v46 }
 0x52e   : > { %v5608_v59 = vpack.c.bf16 %v5270_v34, %v5266_v26 }
 0x52f   : > { %v5773_v54 = vadd.bf16 %v10298_v42, %v5607_v6 }
 0x530   : > { %v5774_v10 = vadd.bf16 %v10303_v55, %v5608_v59  ;;  %v6204_v39 = vpop.f32.mrb[168].mxu0 }
 0x531   : > { %v6205_v0 = vadd.f32 %v11013_v61, %v6204_v39  ;;  %v6206_v53 = vpop.f32.mrb[169].mxu0  ;;  %v5901_v24 = vmax.bf16 %v11779_v56, %v5773_v54 }
 0x532   : > { %v5274_v29 = vpop.f32.mrb[24].mxu1  ;;  %v6207_v63 = vpop.f32.mrb[170].mxu0  ;;  %v5902_v49 = vmax.bf16 %v11779_v56, %v5774_v10 }
 0x533   : > { %6656 = vst.msk [vmem:[%s11020_s28 + $0xa0] sm:$0xff] %vm6635_vm0, %v6205_v0  ;;  %v6208_v35 = vadd.f32 %v11013_v61, %v6207_v63  ;;  %v5276_v51 = vpop.f32.mrb[25].mxu1  ;;  %v6209_v47 = vpop.f32.mrb[171].mxu0 }
 0x534   : > { %v5278_v15 = vpop.f32.mrb[26].mxu1  ;;  %6418 = vmatprep.mubr.bf16.mxu0 %v5902_v49 }
 0x535   : > { %6657 = vst.msk [vmem:[%s11020_s28 + $0xa8] sm:$0xff] %vm6635_vm0, %v6208_v35  ;;  %v5609_v9 = vpack.c.bf16 %v5278_v15, %v5274_v29  ;;  %v5280_v12 = vpop.f32.mrb[27].mxu1  ;;  %6419 = vmatmul.mubr.bf16.gmra.mrb[20].mxu0 %v5901_v24 }
 0x536   : > { %v5610_v14 = vpack.c.bf16 %v5280_v12, %v5276_v51 }
 0x537   : > { %v5775_v45 = vadd.bf16 %v10298_v42, %v5609_v9 }
 0x538   : > { %v5776_v18 = vadd.bf16 %v10303_v55, %v5610_v14  ;;  %v6212_v17 = vpop.f32.mrb[172].mxu0 }
 0x539   : > { %v6213_v27 = vadd.f32 %v11013_v61, %v6212_v17  ;;  %v6214_v41 = vpop.f32.mrb[173].mxu0  ;;  %v5903_v20 = vmax.bf16 %v11779_v56, %v5775_v45 }
 0x53a   : > { %v5284_v52 = vpop.f32.mrb[28].mxu1  ;;  %v6215_v44 = vpop.f32.mrb[174].mxu0  ;;  %v5904_v3 = vmax.bf16 %v11779_v56, %v5776_v18 }
 0x53b   : > { %6658 = vst.msk [vmem:[%s11020_s28 + $0xb0] sm:$0xff] %vm6635_vm0, %v6213_v27  ;;  %v6216_v30 = vadd.f32 %v11013_v61, %v6215_v44  ;;  %v5286_v62 = vpop.f32.mrb[29].mxu1  ;;  %v6217_v11 = vpop.f32.mrb[175].mxu0 }
 0x53c   : > { %v5288_v1 = vpop.f32.mrb[30].mxu1  ;;  %6426 = vmatprep.mubr.bf16.mxu0 %v5904_v3 }
 0x53d   : > { %6659 = vst.msk [vmem:[%s11020_s28 + $0xb8] sm:$0xff] %vm6635_vm0, %v6216_v30  ;;  %v5611_v57 = vpack.c.bf16 %v5288_v1, %v5284_v52  ;;  %v5290_v25 = vpop.f32.mrb[31].mxu1  ;;  %6427 = vmatmul.mubr.bf16.gmra.mrb[24].mxu0 %v5903_v20 }
 0x53e   : > { %v5612_v8 = vpack.c.bf16 %v5290_v25, %v5286_v62 }
 0x53f   : > { %v5777_v50 = vadd.bf16 %v10298_v42, %v5611_v57 }
 0x540   : > { %v5778_v32 = vadd.bf16 %v10303_v55, %v5612_v8  ;;  %v6220_v36 = vpop.f32.mrb[176].mxu0 }
 0x541   : > { %v6221_v13 = vadd.f32 %v11013_v61, %v6220_v36  ;;  %v6222_v21 = vpop.f32.mrb[177].mxu0  ;;  %v5905_v38 = vmax.bf16 %v11779_v56, %v5777_v50 }
 0x542   : > { %v5294_v5 = vpop.f32.mrb[32].mxu1  ;;  %v6223_v22 = vpop.f32.mrb[178].mxu0  ;;  %v5906_v28 = vmax.bf16 %v11779_v56, %v5778_v32 }
 0x543   : > { %6660 = vst.msk [vmem:[%s11020_s28 + $0xc0] sm:$0xff] %vm6635_vm0, %v6221_v13  ;;  %v6224_v7 = vadd.f32 %v11013_v61, %v6223_v22  ;;  %v5296_v37 = vpop.f32.mrb[33].mxu1  ;;  %v6225_v48 = vpop.f32.mrb[179].mxu0 }
 0x544   : > { %v5298_v23 = vpop.f32.mrb[34].mxu1  ;;  %6434 = vmatprep.mubr.bf16.mxu0 %v5906_v28 }
 0x545   : > { %6661 = vst.msk [vmem:[%s11020_s28 + $0xc8] sm:$0xff] %vm6635_vm0, %v6224_v7  ;;  %v5613_v58 = vpack.c.bf16 %v5298_v23, %v5294_v5  ;;  %v5300_v60 = vpop.f32.mrb[35].mxu1  ;;  %6435 = vmatmul.mubr.bf16.gmra.mrb[28].mxu0 %v5905_v38 }
 0x546   : > { %v5614_v31 = vpack.c.bf16 %v5300_v60, %v5296_v37 }
 0x547   : > { %v5779_v40 = vadd.bf16 %v10298_v42, %v5613_v58 }
 0x548   : > { %v5780_v2 = vadd.bf16 %v10303_v55, %v5614_v31  ;;  %v6228_v43 = vpop.f32.mrb[180].mxu0 }
 0x549   : > { %v6229_v33 = vadd.f32 %v11013_v61, %v6228_v43  ;;  %v6230_v46 = vpop.f32.mrb[181].mxu0  ;;  %v5907_v4 = vmax.bf16 %v11779_v56, %v5779_v40 }
 0x54a   : > { %v5304_v19 = vpop.f32.mrb[36].mxu1  ;;  %v6231_v26 = vpop.f32.mrb[182].mxu0  ;;  %v5908_v16 = vmax.bf16 %v11779_v56, %v5780_v2 }
 0x54b   : > { %6662 = vst.msk [vmem:[%s11020_s28 + $0xd0] sm:$0xff] %vm6635_vm0, %v6229_v33  ;;  %v6232_v6 = vadd.f32 %v11013_v61, %v6231_v26  ;;  %v5306_v34 = vpop.f32.mrb[37].mxu1  ;;  %v6233_v59 = vpop.f32.mrb[183].mxu0 }
 0x54c   : > { %v5308_v54 = vpop.f32.mrb[38].mxu1  ;;  %6442 = vmatprep.mubr.bf16.mxu0 %v5908_v16 }
 0x54d   : > { %6663 = vst.msk [vmem:[%s11020_s28 + $0xd8] sm:$0xff] %vm6635_vm0, %v6232_v6  ;;  %v5615_v10 = vpack.c.bf16 %v5308_v54, %v5304_v19  ;;  %v5310_v39 = vpop.f32.mrb[39].mxu1  ;;  %6443 = vmatmul.mubr.bf16.gmra.mrb[32].mxu0 %v5907_v4 }
 0x54e   : > { %v5616_v0 = vpack.c.bf16 %v5310_v39, %v5306_v34 }
 0x54f   : > { %v5781_v53 = vadd.bf16 %v10298_v42, %v5615_v10 }
 0x550   : > { %v5782_v29 = vadd.bf16 %v10303_v55, %v5616_v0  ;;  %v6236_v63 = vpop.f32.mrb[184].mxu0 }
 0x551   : > { %v6237_v49 = vadd.f32 %v11013_v61, %v6236_v63  ;;  %v6238_v24 = vpop.f32.mrb[185].mxu0  ;;  %v5909_v15 = vmax.bf16 %v11779_v56, %v5781_v53 }
 0x552   : > { %v5314_v35 = vpop.f32.mrb[40].mxu1  ;;  %v6239_v51 = vpop.f32.mrb[186].mxu0  ;;  %v5910_v47 = vmax.bf16 %v11779_v56, %v5782_v29 }
 0x553   : > { %6664 = vst.msk [vmem:[%s11020_s28 + $0xe0] sm:$0xff] %vm6635_vm0, %v6237_v49  ;;  %v6240_v9 = vadd.f32 %v11013_v61, %v6239_v51  ;;  %v5316_v12 = vpop.f32.mrb[41].mxu1  ;;  %v6241_v14 = vpop.f32.mrb[187].mxu0 }
 0x554   : > { %v5318_v45 = vpop.f32.mrb[42].mxu1  ;;  %6450 = vmatprep.mubr.bf16.mxu0 %v5910_v47 }
 0x555   : > { %6665 = vst.msk [vmem:[%s11020_s28 + $0xe8] sm:$0xff] %vm6635_vm0, %v6240_v9  ;;  %v5617_v18 = vpack.c.bf16 %v5318_v45, %v5314_v35  ;;  %v5320_v17 = vpop.f32.mrb[43].mxu1  ;;  %6451 = vmatmul.mubr.bf16.gmra.mrb[36].mxu0 %v5909_v15 }
 0x556   : > { %v5618_v27 = vpack.c.bf16 %v5320_v17, %v5316_v12 }
 0x557   : > { %v5783_v41 = vadd.bf16 %v10298_v42, %v5617_v18 }
 0x558   : > { %v5784_v52 = vadd.bf16 %v10303_v55, %v5618_v27  ;;  %v6244_v44 = vpop.f32.mrb[188].mxu0 }
 0x559   : > { %v6245_v3 = vadd.f32 %v11013_v61, %v6244_v44  ;;  %v6246_v20 = vpop.f32.mrb[189].mxu0  ;;  %v5911_v1 = vmax.bf16 %v11779_v56, %v5783_v41 }
 0x55a   : > { %v5324_v30 = vpop.f32.mrb[44].mxu1  ;;  %v6247_v62 = vpop.f32.mrb[190].mxu0  ;;  %v5912_v11 = vmax.bf16 %v11779_v56, %v5784_v52 }
 0x55b   : > { %6666 = vst.msk [vmem:[%s11020_s28 + $0xf0] sm:$0xff] %vm6635_vm0, %v6245_v3  ;;  %v6248_v57 = vadd.f32 %v11013_v61, %v6247_v62  ;;  %v5326_v25 = vpop.f32.mrb[45].mxu1  ;;  %v6249_v8 = vpop.f32.mrb[191].mxu0 }
 0x55c   : > { %v5328_v50 = vpop.f32.mrb[46].mxu1  ;;  %6458 = vmatprep.mubr.bf16.mxu0 %v5912_v11 }
 0x55d   : > { %6667 = vst.msk [vmem:[%s11020_s28 + $0xf8] sm:$0xff] %vm6635_vm0, %v6248_v57  ;;  %v5619_v32 = vpack.c.bf16 %v5328_v50, %v5324_v30  ;;  %v5330_v36 = vpop.f32.mrb[47].mxu1  ;;  %6459 = vmatmul.mubr.bf16.gmra.mrb[40].mxu0 %v5911_v1 }
 0x55e   : > { %v5620_v13 = vpack.c.bf16 %v5330_v36, %v5326_v25 }
 0x55f   : > { %v5785_v21 = vadd.bf16 %v10298_v42, %v5619_v32 }
 0x560   : > { %v5786_v5 = vadd.bf16 %v10303_v55, %v5620_v13  ;;  %v6252_v22 = vpop.f32.mrb[192].mxu0 }
 0x561   : > { %v6253_v28 = vadd.f32 %v11013_v61, %v6252_v22  ;;  %v6254_v38 = vpop.f32.mrb[193].mxu0  ;;  %v5913_v23 = vmax.bf16 %v11779_v56, %v5785_v21 }
 0x562   : > { %v5334_v7 = vpop.f32.mrb[48].mxu1  ;;  %v6255_v37 = vpop.f32.mrb[194].mxu0  ;;  %v5914_v48 = vmax.bf16 %v11779_v56, %v5786_v5 }
 0x563   : > { %6668 = vst.msk [vmem:[%s11020_s28 + $0x100] sm:$0xff] %vm6635_vm0, %v6253_v28  ;;  %v6256_v58 = vadd.f32 %v11013_v61, %v6255_v37  ;;  %v5336_v60 = vpop.f32.mrb[49].mxu1  ;;  %v6257_v31 = vpop.f32.mrb[195].mxu0 }
 0x564   : > { %v5338_v40 = vpop.f32.mrb[50].mxu1  ;;  %6466 = vmatprep.mubr.bf16.mxu0 %v5914_v48 }
 0x565   : > { %6669 = vst.msk [vmem:[%s11020_s28 + $0x108] sm:$0xff] %vm6635_vm0, %v6256_v58  ;;  %v5621_v2 = vpack.c.bf16 %v5338_v40, %v5334_v7  ;;  %v5340_v43 = vpop.f32.mrb[51].mxu1  ;;  %6467 = vmatmul.mubr.bf16.gmra.mrb[44].mxu0 %v5913_v23 }
 0x566   : > { %v5622_v33 = vpack.c.bf16 %v5340_v43, %v5336_v60 }
 0x567   : > { %v5787_v46 = vadd.bf16 %v10298_v42, %v5621_v2 }
 0x568   : > { %v5788_v19 = vadd.bf16 %v10303_v55, %v5622_v33  ;;  %v6260_v26 = vpop.f32.mrb[196].mxu0 }
 0x569   : > { %v6261_v16 = vadd.f32 %v11013_v61, %v6260_v26  ;;  %v6262_v4 = vpop.f32.mrb[197].mxu0  ;;  %v5915_v54 = vmax.bf16 %v11779_v56, %v5787_v46 }
 0x56a   : > { %v5344_v6 = vpop.f32.mrb[52].mxu1  ;;  %v6263_v34 = vpop.f32.mrb[198].mxu0  ;;  %v5916_v59 = vmax.bf16 %v11779_v56, %v5788_v19 }
 0x56b   : > { %6670 = vst.msk [vmem:[%s11020_s28 + $0x110] sm:$0xff] %vm6635_vm0, %v6261_v16  ;;  %v6264_v10 = vadd.f32 %v11013_v61, %v6263_v34  ;;  %v5346_v39 = vpop.f32.mrb[53].mxu1  ;;  %v6265_v0 = vpop.f32.mrb[199].mxu0 }
 0x56c   : > { %v5348_v53 = vpop.f32.mrb[54].mxu1  ;;  %6474 = vmatprep.mubr.bf16.mxu0 %v5916_v59 }
 0x56d   : > { %6671 = vst.msk [vmem:[%s11020_s28 + $0x118] sm:$0xff] %vm6635_vm0, %v6264_v10  ;;  %v5623_v29 = vpack.c.bf16 %v5348_v53, %v5344_v6  ;;  %v5350_v63 = vpop.f32.mrb[55].mxu1  ;;  %6475 = vmatmul.mubr.bf16.gmra.mrb[48].mxu0 %v5915_v54 }
 0x56e   : > { %v5624_v49 = vpack.c.bf16 %v5350_v63, %v5346_v39 }
 0x56f   : > { %v5789_v24 = vadd.bf16 %v10298_v42, %v5623_v29 }
 0x570   : > { %v5790_v35 = vadd.bf16 %v10303_v55, %v5624_v49  ;;  %v6268_v51 = vpop.f32.mrb[200].mxu0 }
 0x571   : > { %v6269_v47 = vadd.f32 %v11013_v61, %v6268_v51  ;;  %v6270_v15 = vpop.f32.mrb[201].mxu0  ;;  %v5917_v45 = vmax.bf16 %v11779_v56, %v5789_v24 }
 0x572   : > { %v5354_v9 = vpop.f32.mrb[56].mxu1  ;;  %v6271_v12 = vpop.f32.mrb[202].mxu0  ;;  %v5918_v14 = vmax.bf16 %v11779_v56, %v5790_v35 }
 0x573   : > { %6672 = vst.msk [vmem:[%s11020_s28 + $0x120] sm:$0xff] %vm6635_vm0, %v6269_v47  ;;  %v6272_v18 = vadd.f32 %v11013_v61, %v6271_v12  ;;  %v5356_v17 = vpop.f32.mrb[57].mxu1  ;;  %v6273_v27 = vpop.f32.mrb[203].mxu0 }
 0x574   : > { %v5358_v41 = vpop.f32.mrb[58].mxu1  ;;  %6482 = vmatprep.mubr.bf16.mxu0 %v5918_v14 }
 0x575   : > { %6673 = vst.msk [vmem:[%s11020_s28 + $0x128] sm:$0xff] %vm6635_vm0, %v6272_v18  ;;  %v5625_v52 = vpack.c.bf16 %v5358_v41, %v5354_v9  ;;  %v5360_v44 = vpop.f32.mrb[59].mxu1  ;;  %6483 = vmatmul.mubr.bf16.gmra.mrb[52].mxu0 %v5917_v45 }
 0x576   : > { %v5626_v3 = vpack.c.bf16 %v5360_v44, %v5356_v17 }
 0x577   : > { %v5791_v20 = vadd.bf16 %v10298_v42, %v5625_v52 }
 0x578   : > { %v5792_v30 = vadd.bf16 %v10303_v55, %v5626_v3  ;;  %v6276_v62 = vpop.f32.mrb[204].mxu0 }
 0x579   : > { %v6277_v11 = vadd.f32 %v11013_v61, %v6276_v62  ;;  %v6278_v1 = vpop.f32.mrb[205].mxu0  ;;  %v5919_v50 = vmax.bf16 %v11779_v56, %v5791_v20 }
 0x57a   : > { %v5364_v57 = vpop.f32.mrb[60].mxu1  ;;  %v6279_v25 = vpop.f32.mrb[206].mxu0  ;;  %v5920_v8 = vmax.bf16 %v11779_v56, %v5792_v30 }
 0x57b   : > { %6674 = vst.msk [vmem:[%s11020_s28 + $0x130] sm:$0xff] %vm6635_vm0, %v6277_v11  ;;  %v6280_v32 = vadd.f32 %v11013_v61, %v6279_v25  ;;  %v5366_v36 = vpop.f32.mrb[61].mxu1  ;;  %v6281_v13 = vpop.f32.mrb[207].mxu0 }
 0x57c   : > { %v5368_v21 = vpop.f32.mrb[62].mxu1  ;;  %6490 = vmatprep.mubr.bf16.mxu0 %v5920_v8 }
 0x57d   : > { %6675 = vst.msk [vmem:[%s11020_s28 + $0x138] sm:$0xff] %vm6635_vm0, %v6280_v32  ;;  %v5627_v5 = vpack.c.bf16 %v5368_v21, %v5364_v57  ;;  %v5370_v22 = vpop.f32.mrb[63].mxu1  ;;  %6491 = vmatmul.mubr.bf16.gmra.mrb[56].mxu0 %v5919_v50 }
 0x57e   : > { %v5628_v28 = vpack.c.bf16 %v5370_v22, %v5366_v36 }
 0x57f   : > { %v5793_v38 = vadd.bf16 %v10298_v42, %v5627_v5 }
 0x580   : > { %v5794_v7 = vadd.bf16 %v10303_v55, %v5628_v28  ;;  %v6284_v37 = vpop.f32.mrb[208].mxu0 }
 0x581   : > { %v6285_v48 = vadd.f32 %v11013_v61, %v6284_v37  ;;  %v6286_v23 = vpop.f32.mrb[209].mxu0  ;;  %v5921_v40 = vmax.bf16 %v11779_v56, %v5793_v38 }
 0x582   : > { %v5374_v58 = vpop.f32.mrb[64].mxu1  ;;  %v6287_v60 = vpop.f32.mrb[210].mxu0  ;;  %v5922_v31 = vmax.bf16 %v11779_v56, %v5794_v7 }
 0x583   : > { %6676 = vst.msk [vmem:[%s11020_s28 + $0x140] sm:$0xff] %vm6635_vm0, %v6285_v48  ;;  %v6288_v2 = vadd.f32 %v11013_v61, %v6287_v60  ;;  %v5376_v43 = vpop.f32.mrb[65].mxu1  ;;  %v6289_v33 = vpop.f32.mrb[211].mxu0 }
 0x584   : > { %v5378_v46 = vpop.f32.mrb[66].mxu1  ;;  %6498 = vmatprep.mubr.bf16.mxu0 %v5922_v31 }
 0x585   : > { %6677 = vst.msk [vmem:[%s11020_s28 + $0x148] sm:$0xff] %vm6635_vm0, %v6288_v2  ;;  %v5629_v19 = vpack.c.bf16 %v5378_v46, %v5374_v58  ;;  %v5380_v26 = vpop.f32.mrb[67].mxu1  ;;  %6499 = vmatmul.mubr.bf16.gmra.mrb[60].mxu0 %v5921_v40 }
 0x586   : > { %v5630_v16 = vpack.c.bf16 %v5380_v26, %v5376_v43 }
 0x587   : > { %v5795_v4 = vadd.bf16 %v10298_v42, %v5629_v19 }
 0x588   : > { %v5796_v6 = vadd.bf16 %v10303_v55, %v5630_v16  ;;  %v6292_v34 = vpop.f32.mrb[212].mxu0 }
 0x589   : > { %v6293_v59 = vadd.f32 %v11013_v61, %v6292_v34  ;;  %v6294_v54 = vpop.f32.mrb[213].mxu0  ;;  %v5923_v53 = vmax.bf16 %v11779_v56, %v5795_v4 }
 0x58a   : > { %v5384_v10 = vpop.f32.mrb[68].mxu1  ;;  %v6295_v39 = vpop.f32.mrb[214].mxu0  ;;  %v5924_v0 = vmax.bf16 %v11779_v56, %v5796_v6 }
 0x58b   : > { %6678 = vst.msk [vmem:[%s11020_s28 + $0x150] sm:$0xff] %vm6635_vm0, %v6293_v59  ;;  %v6296_v29 = vadd.f32 %v11013_v61, %v6295_v39  ;;  %v5386_v63 = vpop.f32.mrb[69].mxu1  ;;  %v6297_v49 = vpop.f32.mrb[215].mxu0 }
 0x58c   : > { %v5388_v24 = vpop.f32.mrb[70].mxu1  ;;  %6506 = vmatprep.mubr.bf16.mxu0 %v5924_v0 }
 0x58d   : > { %6679 = vst.msk [vmem:[%s11020_s28 + $0x158] sm:$0xff] %vm6635_vm0, %v6296_v29  ;;  %v5631_v35 = vpack.c.bf16 %v5388_v24, %v5384_v10  ;;  %v5390_v51 = vpop.f32.mrb[71].mxu1  ;;  %6507 = vmatmul.mubr.bf16.gmra.mrb[64].mxu0 %v5923_v53 }
 0x58e   : > { %v5632_v47 = vpack.c.bf16 %v5390_v51, %v5386_v63 }
 0x58f   : > { %v5797_v15 = vadd.bf16 %v10298_v42, %v5631_v35 }
 0x590   : > { %v5798_v9 = vadd.bf16 %v10303_v55, %v5632_v47  ;;  %v6300_v12 = vpop.f32.mrb[216].mxu0 }
 0x591   : > { %v6301_v14 = vadd.f32 %v11013_v61, %v6300_v12  ;;  %v6302_v45 = vpop.f32.mrb[217].mxu0  ;;  %v5925_v41 = vmax.bf16 %v11779_v56, %v5797_v15 }
 0x592   : > { %v5394_v18 = vpop.f32.mrb[72].mxu1  ;;  %v6303_v17 = vpop.f32.mrb[218].mxu0  ;;  %v5926_v27 = vmax.bf16 %v11779_v56, %v5798_v9 }
 0x593   : > { %6680 = vst.msk [vmem:[%s11020_s28 + $0x160] sm:$0xff] %vm6635_vm0, %v6301_v14  ;;  %v6304_v52 = vadd.f32 %v11013_v61, %v6303_v17  ;;  %v5396_v44 = vpop.f32.mrb[73].mxu1  ;;  %v6305_v3 = vpop.f32.mrb[219].mxu0  ;;  %v11340_v61 = vld [vmem:[%s11655_s10] ss:$0 sm:$0xff] }
 0x594   : > { %v5398_v20 = vpop.f32.mrb[74].mxu1  ;;  %6514 = vmatprep.mubr.bf16.mxu0 %v5926_v27 }
 0x595   : > { %6681 = vst.msk [vmem:[%s11020_s28 + $0x168] sm:$0xff] %vm6635_vm0, %v6304_v52  ;;  %v5633_v30 = vpack.c.bf16 %v5398_v20, %v5394_v18  ;;  %v5400_v62 = vpop.f32.mrb[75].mxu1  ;;  %6515 = vmatmul.mubr.bf16.gmra.mrb[68].mxu0 %v5925_v41 }
 0x596   : > { %v5634_v11 = vpack.c.bf16 %v5400_v62, %v5396_v44 }
 0x597   : > { %v5799_v1 = vadd.bf16 %v10298_v42, %v5633_v30 }
 0x598   : > { %v5800_v57 = vadd.bf16 %v10303_v55, %v5634_v11  ;;  %v6308_v25 = vpop.f32.mrb[220].mxu0 }
 0x599   : > { %v6309_v8 = vadd.f32 %v11340_v61, %v6308_v25  ;;  %v6310_v50 = vpop.f32.mrb[221].mxu0  ;;  %v5927_v21 = vmax.bf16 %v11779_v56, %v5799_v1 }
 0x59a   : > { %v5404_v32 = vpop.f32.mrb[76].mxu1  ;;  %v6311_v36 = vpop.f32.mrb[222].mxu0  ;;  %v5928_v13 = vmax.bf16 %v11779_v56, %v5800_v57 }
 0x59b   : > { %6682 = vst.msk [vmem:[%s11020_s28 + $0x170] sm:$0xff] %vm6635_vm0, %v6309_v8  ;;  %v6312_v5 = vadd.f32 %v11340_v61, %v6311_v36  ;;  %v5406_v22 = vpop.f32.mrb[77].mxu1  ;;  %v6313_v28 = vpop.f32.mrb[223].mxu0 }
 0x59c   : > { %v5408_v38 = vpop.f32.mrb[78].mxu1  ;;  %6522 = vmatprep.mubr.bf16.mxu0 %v5928_v13 }
 0x59d   : > { %6683 = vst.msk [vmem:[%s11020_s28 + $0x178] sm:$0xff] %vm6635_vm0, %v6312_v5  ;;  %v5635_v7 = vpack.c.bf16 %v5408_v38, %v5404_v32  ;;  %v5410_v37 = vpop.f32.mrb[79].mxu1  ;;  %6523 = vmatmul.mubr.bf16.gmra.mrb[72].mxu0 %v5927_v21 }
 0x59e   : > { %v5636_v48 = vpack.c.bf16 %v5410_v37, %v5406_v22 }
 0x59f   : > { %v5801_v23 = vadd.bf16 %v10298_v42, %v5635_v7 }
 0x5a0   : > { %v5802_v58 = vadd.bf16 %v10303_v55, %v5636_v48  ;;  %v6316_v60 = vpop.f32.mrb[224].mxu0 }
 0x5a1   : > { %v6317_v31 = vadd.f32 %v11340_v61, %v6316_v60  ;;  %v6318_v40 = vpop.f32.mrb[225].mxu0  ;;  %v5929_v46 = vmax.bf16 %v11779_v56, %v5801_v23 }
 0x5a2   : > { %v5414_v2 = vpop.f32.mrb[80].mxu1  ;;  %v6319_v43 = vpop.f32.mrb[226].mxu0  ;;  %v5930_v33 = vmax.bf16 %v11779_v56, %v5802_v58 }
 0x5a3   : > { %6684 = vst.msk [vmem:[%s11020_s28 + $0x180] sm:$0xff] %vm6635_vm0, %v6317_v31  ;;  %v6320_v19 = vadd.f32 %v11340_v61, %v6319_v43  ;;  %v5416_v26 = vpop.f32.mrb[81].mxu1  ;;  %v6321_v16 = vpop.f32.mrb[227].mxu0 }
 0x5a4   : > { %v5418_v4 = vpop.f32.mrb[82].mxu1  ;;  %6530 = vmatprep.mubr.bf16.mxu0 %v5930_v33 }
 0x5a5   : > { %6685 = vst.msk [vmem:[%s11020_s28 + $0x188] sm:$0xff] %vm6635_vm0, %v6320_v19  ;;  %v5637_v6 = vpack.c.bf16 %v5418_v4, %v5414_v2  ;;  %v5420_v34 = vpop.f32.mrb[83].mxu1  ;;  %6531 = vmatmul.mubr.bf16.gmra.mrb[76].mxu0 %v5929_v46 }
 0x5a6   : > { %v5638_v59 = vpack.c.bf16 %v5420_v34, %v5416_v26 }
 0x5a7   : > { %v5803_v54 = vadd.bf16 %v10298_v42, %v5637_v6 }
 0x5a8   : > { %v5804_v10 = vadd.bf16 %v10303_v55, %v5638_v59  ;;  %v6324_v39 = vpop.f32.mrb[228].mxu0 }
 0x5a9   : > { %v6325_v0 = vadd.f32 %v11340_v61, %v6324_v39  ;;  %v6326_v53 = vpop.f32.mrb[229].mxu0  ;;  %v5931_v24 = vmax.bf16 %v11779_v56, %v5803_v54 }
 0x5aa   : > { %v5424_v29 = vpop.f32.mrb[84].mxu1  ;;  %v6327_v63 = vpop.f32.mrb[230].mxu0  ;;  %v5932_v49 = vmax.bf16 %v11779_v56, %v5804_v10 }
 0x5ab   : > { %6686 = vst.msk [vmem:[%s11020_s28 + $0x190] sm:$0xff] %vm6635_vm0, %v6325_v0  ;;  %v6328_v35 = vadd.f32 %v11340_v61, %v6327_v63  ;;  %v5426_v51 = vpop.f32.mrb[85].mxu1  ;;  %v6329_v47 = vpop.f32.mrb[231].mxu0 }
 0x5ac   : > { %v5428_v15 = vpop.f32.mrb[86].mxu1  ;;  %6538 = vmatprep.mubr.bf16.mxu0 %v5932_v49 }
 0x5ad   : > { %6687 = vst.msk [vmem:[%s11020_s28 + $0x198] sm:$0xff] %vm6635_vm0, %v6328_v35  ;;  %v5639_v9 = vpack.c.bf16 %v5428_v15, %v5424_v29  ;;  %v5430_v12 = vpop.f32.mrb[87].mxu1  ;;  %6539 = vmatmul.mubr.bf16.gmra.mrb[80].mxu0 %v5931_v24 }
 0x5ae   : > { %v5640_v14 = vpack.c.bf16 %v5430_v12, %v5426_v51 }
 0x5af   : > { %v5805_v45 = vadd.bf16 %v10298_v42, %v5639_v9 }
 0x5b0   : > { %v5806_v18 = vadd.bf16 %v10303_v55, %v5640_v14  ;;  %v6332_v17 = vpop.f32.mrb[232].mxu0 }
 0x5b1   : > { %v6333_v27 = vadd.f32 %v11340_v61, %v6332_v17  ;;  %v6334_v41 = vpop.f32.mrb[233].mxu0  ;;  %v5933_v20 = vmax.bf16 %v11779_v56, %v5805_v45 }
 0x5b2   : > { %v5434_v52 = vpop.f32.mrb[88].mxu1  ;;  %v6335_v44 = vpop.f32.mrb[234].mxu0  ;;  %v5934_v3 = vmax.bf16 %v11779_v56, %v5806_v18 }
 0x5b3   : > { %6688 = vst.msk [vmem:[%s11020_s28 + $0x1a0] sm:$0xff] %vm6635_vm0, %v6333_v27  ;;  %v6336_v30 = vadd.f32 %v11340_v61, %v6335_v44  ;;  %v5436_v62 = vpop.f32.mrb[89].mxu1  ;;  %v6337_v11 = vpop.f32.mrb[235].mxu0 }
 0x5b4   : > { %v5438_v1 = vpop.f32.mrb[90].mxu1  ;;  %6546 = vmatprep.mubr.bf16.mxu0 %v5934_v3 }
 0x5b5   : > { %6689 = vst.msk [vmem:[%s11020_s28 + $0x1a8] sm:$0xff] %vm6635_vm0, %v6336_v30  ;;  %v5641_v57 = vpack.c.bf16 %v5438_v1, %v5434_v52  ;;  %v5440_v25 = vpop.f32.mrb[91].mxu1  ;;  %6547 = vmatmul.mubr.bf16.gmra.mrb[84].mxu0 %v5933_v20 }
 0x5b6   : > { %v5642_v8 = vpack.c.bf16 %v5440_v25, %v5436_v62 }
 0x5b7   : > { %v5807_v50 = vadd.bf16 %v10298_v42, %v5641_v57 }
 0x5b8   : > { %v5808_v32 = vadd.bf16 %v10303_v55, %v5642_v8  ;;  %v6340_v36 = vpop.f32.mrb[236].mxu0 }
 0x5b9   : > { %v6341_v13 = vadd.f32 %v11340_v61, %v6340_v36  ;;  %v6342_v21 = vpop.f32.mrb[237].mxu0  ;;  %v5935_v38 = vmax.bf16 %v11779_v56, %v5807_v50 }
 0x5ba   : > { %v5444_v5 = vpop.f32.mrb[92].mxu1  ;;  %v6343_v22 = vpop.f32.mrb[238].mxu0  ;;  %v5936_v28 = vmax.bf16 %v11779_v56, %v5808_v32 }
 0x5bb   : > { %6690 = vst.msk [vmem:[%s11020_s28 + $0x1b0] sm:$0xff] %vm6635_vm0, %v6341_v13  ;;  %v6344_v7 = vadd.f32 %v11340_v61, %v6343_v22  ;;  %v5446_v37 = vpop.f32.mrb[93].mxu1  ;;  %v6345_v48 = vpop.f32.mrb[239].mxu0 }
 0x5bc   : > { %v5448_v23 = vpop.f32.mrb[94].mxu1  ;;  %6554 = vmatprep.mubr.bf16.mxu0 %v5936_v28 }
 0x5bd   : > { %6691 = vst.msk [vmem:[%s11020_s28 + $0x1b8] sm:$0xff] %vm6635_vm0, %v6344_v7  ;;  %v5643_v58 = vpack.c.bf16 %v5448_v23, %v5444_v5  ;;  %v5450_v60 = vpop.f32.mrb[95].mxu1  ;;  %6555 = vmatmul.mubr.bf16.gmra.mrb[88].mxu0 %v5935_v38 }
 0x5be   : > { %v5644_v31 = vpack.c.bf16 %v5450_v60, %v5446_v37 }
 0x5bf   : > { %v5809_v40 = vadd.bf16 %v10298_v42, %v5643_v58 }
 0x5c0   : > { %v5810_v2 = vadd.bf16 %v10303_v55, %v5644_v31  ;;  %v6348_v43 = vpop.f32.mrb[240].mxu0 }
 0x5c1   : > { %v6349_v33 = vadd.f32 %v11340_v61, %v6348_v43  ;;  %v6350_v46 = vpop.f32.mrb[241].mxu0  ;;  %v5937_v4 = vmax.bf16 %v11779_v56, %v5809_v40 }
 0x5c2   : > { %v5454_v19 = vpop.f32.mrb[96].mxu1  ;;  %v6351_v26 = vpop.f32.mrb[242].mxu0  ;;  %v5938_v16 = vmax.bf16 %v11779_v56, %v5810_v2 }
 0x5c3   : > { %6692 = vst.msk [vmem:[%s11020_s28 + $0x1c0] sm:$0xff] %vm6635_vm0, %v6349_v33  ;;  %v6352_v6 = vadd.f32 %v11340_v61, %v6351_v26  ;;  %v5456_v34 = vpop.f32.mrb[97].mxu1  ;;  %v6353_v59 = vpop.f32.mrb[243].mxu0 }
 0x5c4   : > { %v5458_v54 = vpop.f32.mrb[98].mxu1  ;;  %6562 = vmatprep.mubr.bf16.mxu0 %v5938_v16 }
 0x5c5   : > { %6693 = vst.msk [vmem:[%s11020_s28 + $0x1c8] sm:$0xff] %vm6635_vm0, %v6352_v6  ;;  %v5645_v10 = vpack.c.bf16 %v5458_v54, %v5454_v19  ;;  %v5460_v39 = vpop.f32.mrb[99].mxu1  ;;  %6563 = vmatmul.mubr.bf16.gmra.mrb[92].mxu0 %v5937_v4 }
 0x5c6   : > { %v5646_v0 = vpack.c.bf16 %v5460_v39, %v5456_v34 }
 0x5c7   : > { %v5811_v53 = vadd.bf16 %v10298_v42, %v5645_v10 }
 0x5c8   : > { %v5812_v29 = vadd.bf16 %v10303_v55, %v5646_v0  ;;  %v6356_v63 = vpop.f32.mrb[244].mxu0 }
 0x5c9   : > { %v6357_v49 = vadd.f32 %v11340_v61, %v6356_v63  ;;  %v6358_v24 = vpop.f32.mrb[245].mxu0  ;;  %v5939_v15 = vmax.bf16 %v11779_v56, %v5811_v53 }
 0x5ca   : > { %v5464_v35 = vpop.f32.mrb[100].mxu1  ;;  %v6359_v51 = vpop.f32.mrb[246].mxu0  ;;  %v5940_v47 = vmax.bf16 %v11779_v56, %v5812_v29 }
 0x5cb   : > { %6694 = vst.msk [vmem:[%s11020_s28 + $0x1d0] sm:$0xff] %vm6635_vm0, %v6357_v49  ;;  %v6360_v9 = vadd.f32 %v11340_v61, %v6359_v51  ;;  %v5466_v12 = vpop.f32.mrb[101].mxu1  ;;  %v6361_v14 = vpop.f32.mrb[247].mxu0 }
 0x5cc   : > { %v5468_v45 = vpop.f32.mrb[102].mxu1  ;;  %6570 = vmatprep.mubr.bf16.mxu0 %v5940_v47 }
 0x5cd   : > { %6695 = vst.msk [vmem:[%s11020_s28 + $0x1d8] sm:$0xff] %vm6635_vm0, %v6360_v9  ;;  %v5647_v18 = vpack.c.bf16 %v5468_v45, %v5464_v35  ;;  %v5470_v17 = vpop.f32.mrb[103].mxu1  ;;  %6571 = vmatmul.mubr.bf16.gmra.mrb[96].mxu0 %v5939_v15 }
 0x5ce   : > { %v5648_v27 = vpack.c.bf16 %v5470_v17, %v5466_v12 }
 0x5cf   : > { %v5813_v41 = vadd.bf16 %v10298_v42, %v5647_v18 }
 0x5d0   : > { %v5814_v52 = vadd.bf16 %v10303_v55, %v5648_v27  ;;  %v6364_v44 = vpop.f32.mrb[248].mxu0 }
 0x5d1   : > { %v6365_v3 = vadd.f32 %v11340_v61, %v6364_v44  ;;  %v6366_v20 = vpop.f32.mrb[249].mxu0  ;;  %v5941_v1 = vmax.bf16 %v11779_v56, %v5813_v41 }
 0x5d2   : > { %v5474_v30 = vpop.f32.mrb[104].mxu1  ;;  %v6367_v62 = vpop.f32.mrb[250].mxu0  ;;  %v5942_v11 = vmax.bf16 %v11779_v56, %v5814_v52 }
 0x5d3   : > { %6696 = vst.msk [vmem:[%s11020_s28 + $0x1e0] sm:$0xff] %vm6635_vm0, %v6365_v3  ;;  %v6368_v57 = vadd.f32 %v11340_v61, %v6367_v62  ;;  %v5476_v25 = vpop.f32.mrb[105].mxu1  ;;  %v6369_v8 = vpop.f32.mrb[251].mxu0 }
 0x5d4   : > { %v5478_v50 = vpop.f32.mrb[106].mxu1  ;;  %6578 = vmatprep.mubr.bf16.mxu0 %v5942_v11 }
 0x5d5   : > { %6697 = vst.msk [vmem:[%s11020_s28 + $0x1e8] sm:$0xff] %vm6635_vm0, %v6368_v57  ;;  %v5649_v32 = vpack.c.bf16 %v5478_v50, %v5474_v30  ;;  %v5480_v36 = vpop.f32.mrb[107].mxu1  ;;  %6579 = vmatmul.mubr.bf16.gmra.mrb[100].mxu0 %v5941_v1 }
 0x5d6   : > { %v5650_v13 = vpack.c.bf16 %v5480_v36, %v5476_v25 }
 0x5d7   : > { %v5815_v21 = vadd.bf16 %v10298_v42, %v5649_v32 }
 0x5d8   : > { %v5816_v5 = vadd.bf16 %v10303_v55, %v5650_v13  ;;  %v6372_v22 = vpop.f32.mrb[252].mxu0 }
 0x5d9   : > { %v6373_v28 = vadd.f32 %v11340_v61, %v6372_v22  ;;  %v6374_v38 = vpop.f32.mrb[253].mxu0  ;;  %v5943_v23 = vmax.bf16 %v11779_v56, %v5815_v21 }
 0x5da   : > { %v5484_v7 = vpop.f32.mrb[108].mxu1  ;;  %v6375_v37 = vpop.f32.mrb[254].mxu0  ;;  %v5944_v48 = vmax.bf16 %v11779_v56, %v5816_v5 }
 0x5db   : > { %6698 = vst.msk [vmem:[%s11020_s28 + $0x1f0] sm:$0xff] %vm6635_vm0, %v6373_v28  ;;  %v6376_v58 = vadd.f32 %v11340_v61, %v6375_v37  ;;  %v5486_v60 = vpop.f32.mrb[109].mxu1  ;;  %v6377_v31 = vpop.f32.mrb[255].mxu0 }
 0x5dc   : > { %v5488_v40 = vpop.f32.mrb[110].mxu1  ;;  %6586 = vmatprep.mubr.bf16.mxu0 %v5944_v48 }
 0x5dd   : > { %6699 = vst.msk [vmem:[%s11020_s28 + $0x1f8] sm:$0xff] %vm6635_vm0, %v6376_v58  ;;  %v5651_v2 = vpack.c.bf16 %v5488_v40, %v5484_v7  ;;  %v5490_v43 = vpop.f32.mrb[111].mxu1  ;;  %6587 = vmatmul.mubr.bf16.gmra.mrb[104].mxu0 %v5943_v23 }
 0x5de   : > { %v5652_v33 = vpack.c.bf16 %v5490_v43, %v5486_v60 }
 0x5df   : > { %v5817_v46 = vadd.bf16 %v10298_v42, %v5651_v2 }
 0x5e0   : > { %v5818_v19 = vadd.bf16 %v10303_v55, %v5652_v33  ;;  %v6380_v26 = vpop.f32.mrb[0].mxu0 }
 0x5e1   : > { %v6381_v16 = vadd.f32 %v11340_v61, %v6380_v26  ;;  %v6382_v4 = vpop.f32.mrb[1].mxu0  ;;  %v5945_v54 = vmax.bf16 %v11779_v56, %v5817_v46 }
 0x5e2   : > { %v5494_v6 = vpop.f32.mrb[112].mxu1  ;;  %v6383_v34 = vpop.f32.mrb[2].mxu0  ;;  %v5946_v59 = vmax.bf16 %v11779_v56, %v5818_v19 }
 0x5e3   : > { %6700 = vst.msk [vmem:[%s11020_s28 + $0x200] sm:$0xff] %vm6635_vm0, %v6381_v16  ;;  %v6384_v10 = vadd.f32 %v11340_v61, %v6383_v34  ;;  %v5496_v39 = vpop.f32.mrb[113].mxu1  ;;  %v6385_v0 = vpop.f32.mrb[3].mxu0 }
 0x5e4   : > { %v5498_v53 = vpop.f32.mrb[114].mxu1  ;;  %6594 = vmatprep.mubr.bf16.mxu0 %v5946_v59 }
 0x5e5   : > { %6701 = vst.msk [vmem:[%s11020_s28 + $0x208] sm:$0xff] %vm6635_vm0, %v6384_v10  ;;  %v5653_v29 = vpack.c.bf16 %v5498_v53, %v5494_v6  ;;  %v5500_v63 = vpop.f32.mrb[115].mxu1  ;;  %6595 = vmatmul.mubr.bf16.gmra.mrb[108].mxu0 %v5945_v54 }
 0x5e6   : > { %v5654_v49 = vpack.c.bf16 %v5500_v63, %v5496_v39 }
 0x5e7   : > { %v5819_v24 = vadd.bf16 %v10298_v42, %v5653_v29 }
 0x5e8   : > { %v5820_v35 = vadd.bf16 %v10303_v55, %v5654_v49  ;;  %v6388_v51 = vpop.f32.mrb[4].mxu0 }
 0x5e9   : > { %v6389_v47 = vadd.f32 %v11340_v61, %v6388_v51  ;;  %v6390_v15 = vpop.f32.mrb[5].mxu0  ;;  %v5947_v45 = vmax.bf16 %v11779_v56, %v5819_v24 }
 0x5ea   : > { %v5504_v9 = vpop.f32.mrb[116].mxu1  ;;  %v6391_v12 = vpop.f32.mrb[6].mxu0  ;;  %v5948_v14 = vmax.bf16 %v11779_v56, %v5820_v35 }
 0x5eb   : > { %6702 = vst.msk [vmem:[%s11020_s28 + $0x210] sm:$0xff] %vm6635_vm0, %v6389_v47  ;;  %v6392_v18 = vadd.f32 %v11340_v61, %v6391_v12  ;;  %v5506_v17 = vpop.f32.mrb[117].mxu1  ;;  %v6393_v27 = vpop.f32.mrb[7].mxu0 }
 0x5ec   : > { %v5508_v41 = vpop.f32.mrb[118].mxu1  ;;  %6602 = vmatprep.mubr.bf16.mxu0 %v5948_v14 }
 0x5ed   : > { %6703 = vst.msk [vmem:[%s11020_s28 + $0x218] sm:$0xff] %vm6635_vm0, %v6392_v18  ;;  %v5655_v52 = vpack.c.bf16 %v5508_v41, %v5504_v9  ;;  %v5510_v44 = vpop.f32.mrb[119].mxu1  ;;  %6603 = vmatmul.mubr.bf16.gmra.mrb[112].mxu0 %v5947_v45 }
 0x5ee   : > { %v5656_v3 = vpack.c.bf16 %v5510_v44, %v5506_v17 }
 0x5ef   : > { %v5821_v20 = vadd.bf16 %v10298_v42, %v5655_v52 }
 0x5f0   : > { %v5822_v30 = vadd.bf16 %v10303_v55, %v5656_v3  ;;  %v6396_v62 = vpop.f32.mrb[8].mxu0 }
 0x5f1   : > { %v6397_v11 = vadd.f32 %v11340_v61, %v6396_v62  ;;  %v6398_v1 = vpop.f32.mrb[9].mxu0  ;;  %v5949_v50 = vmax.bf16 %v11779_v56, %v5821_v20 }
 0x5f2   : > { %v5514_v57 = vpop.f32.mrb[120].mxu1  ;;  %v6399_v25 = vpop.f32.mrb[10].mxu0  ;;  %v5950_v8 = vmax.bf16 %v11779_v56, %v5822_v30 }
 0x5f3   : > { %6704 = vst.msk [vmem:[%s11020_s28 + $0x220] sm:$0xff] %vm6635_vm0, %v6397_v11  ;;  %v6400_v32 = vadd.f32 %v11340_v61, %v6399_v25  ;;  %v5516_v36 = vpop.f32.mrb[121].mxu1  ;;  %v6401_v13 = vpop.f32.mrb[11].mxu0 }
 0x5f4   : > { %v5518_v21 = vpop.f32.mrb[122].mxu1  ;;  %6610 = vmatprep.mubr.bf16.mxu0 %v5950_v8 }
 0x5f5   : > { %6705 = vst.msk [vmem:[%s11020_s28 + $0x228] sm:$0xff] %vm6635_vm0, %v6400_v32  ;;  %v5657_v5 = vpack.c.bf16 %v5518_v21, %v5514_v57  ;;  %v5520_v22 = vpop.f32.mrb[123].mxu1  ;;  %6611 = vmatmul.mubr.bf16.gmra.mrb[116].mxu0 %v5949_v50 }
 0x5f6   : > { %v5658_v28 = vpack.c.bf16 %v5520_v22, %v5516_v36 }
 0x5f7   : > { %v5823_v38 = vadd.bf16 %v10298_v42, %v5657_v5 }
 0x5f8   : > { %v5824_v7 = vadd.bf16 %v10303_v55, %v5658_v28  ;;  %v6404_v37 = vpop.f32.mrb[12].mxu0 }
 0x5f9   : > { %v6405_v48 = vadd.f32 %v11340_v61, %v6404_v37  ;;  %v6406_v23 = vpop.f32.mrb[13].mxu0  ;;  %v5951_v40 = vmax.bf16 %v11779_v56, %v5823_v38 }
 0x5fa   : > { %v5524_v58 = vpop.f32.mrb[124].mxu1  ;;  %v6407_v60 = vpop.f32.mrb[14].mxu0  ;;  %v5952_v31 = vmax.bf16 %v11779_v56, %v5824_v7 }
 0x5fb   : > { %6706 = vst.msk [vmem:[%s11020_s28 + $0x230] sm:$0xff] %vm6635_vm0, %v6405_v48  ;;  %v6408_v2 = vadd.f32 %v11340_v61, %v6407_v60  ;;  %v5526_v43 = vpop.f32.mrb[125].mxu1  ;;  %v6409_v33 = vpop.f32.mrb[15].mxu0 }
 0x5fc   : > { %v5528_v46 = vpop.f32.mrb[126].mxu1  ;;  %6618 = vmatprep.mubr.bf16.mxu0 %v5952_v31 }
 0x5fd   : > { %6707 = vst.msk [vmem:[%s11020_s28 + $0x238] sm:$0xff] %vm6635_vm0, %v6408_v2  ;;  %v5659_v19 = vpack.c.bf16 %v5528_v46, %v5524_v58  ;;  %v5530_v26 = vpop.f32.mrb[127].mxu1  ;;  %6619 = vmatmul.mubr.bf16.gmra.mrb[120].mxu0 %v5951_v40 }
 0x5fe   : > { %v5660_v16 = vpack.c.bf16 %v5530_v26, %v5526_v43 }
 0x5ff   : > { %v5825_v4 = vadd.bf16 %v10298_v42, %v5659_v19 }
 0x600   : > { %v5826_v6 = vadd.bf16 %v10303_v55, %v5660_v16  ;;  %v6412_v34 = vpop.f32.mrb[16].mxu0 }
 0x601   : > { %v6413_v59 = vadd.f32 %v11340_v61, %v6412_v34  ;;  %v6414_v54 = vpop.f32.mrb[17].mxu0  ;;  %v5953_v0 = vmax.bf16 %v11779_v56, %v5825_v4 }
 0x602   : > { %v6415_v10 = vpop.f32.mrb[18].mxu0  ;;  %v5954_v39 = vmax.bf16 %v11779_v56, %v5826_v6 }
 0x603   : > { %6708 = vst.msk [vmem:[%s11020_s28 + $0x240] sm:$0xff] %vm6635_vm0, %v6413_v59  ;;  %v6416_v53 = vadd.f32 %v11340_v61, %v6415_v10  ;;  %v6417_v29 = vpop.f32.mrb[19].mxu0 }
 0x604   : > { %6626 = vmatprep.mubr.bf16.mxu0 %v5954_v39 }
 0x605   : > { %6709 = vst.msk [vmem:[%s11020_s28 + $0x248] sm:$0xff] %vm6635_vm0, %v6416_v53  ;;  %6627 = vmatmul.mubr.bf16.gmra.mrb[124].mxu0 %v5953_v0 }
 0x608   : > { %v6420_v42 = vpop.f32.mrb[20].mxu0 }
 0x609   : > { %v6421_v55 = vadd.f32 %v11340_v61, %v6420_v42  ;;  %v6422_v63 = vpop.f32.mrb[21].mxu0 }
 0x60a   : > { %v6423_v49 = vpop.f32.mrb[22].mxu0 }
 0x60b   : > { %6710 = vst.msk [vmem:[%s11020_s28 + $0x250] sm:$0xff] %vm6635_vm0, %v6421_v55  ;;  %v6424_v56 = vadd.f32 %v11340_v61, %v6423_v49  ;;  %v6425_v24 = vpop.f32.mrb[23].mxu0 }
 0x60d   : > { %6711 = vst.msk [vmem:[%s11020_s28 + $0x258] sm:$0xff] %vm6635_vm0, %v6424_v56 }
 0x610   : > { %v6428_v35 = vpop.f32.mrb[24].mxu0 }
 0x611   : > { %v6429_v51 = vadd.f32 %v11340_v61, %v6428_v35  ;;  %v6430_v47 = vpop.f32.mrb[25].mxu0 }
 0x612   : > { %v6431_v15 = vpop.f32.mrb[26].mxu0 }
 0x613   : > { %6712 = vst.msk [vmem:[%s11020_s28 + $0x260] sm:$0xff] %vm6635_vm0, %v6429_v51  ;;  %v6432_v9 = vadd.f32 %v11340_v61, %v6431_v15  ;;  %v6433_v12 = vpop.f32.mrb[27].mxu0 }
 0x615   : > { %6713 = vst.msk [vmem:[%s11020_s28 + $0x268] sm:$0xff] %vm6635_vm0, %v6432_v9 }
 0x618   : > { %v6436_v14 = vpop.f32.mrb[28].mxu0 }
 0x619   : > { %v6437_v45 = vadd.f32 %v11340_v61, %v6436_v14  ;;  %v6438_v18 = vpop.f32.mrb[29].mxu0 }
 0x61a   : > { %v6439_v17 = vpop.f32.mrb[30].mxu0 }
 0x61b   : > { %6714 = vst.msk [vmem:[%s11020_s28 + $0x270] sm:$0xff] %vm6635_vm0, %v6437_v45  ;;  %v6440_v27 = vadd.f32 %v11340_v61, %v6439_v17  ;;  %v6441_v41 = vpop.f32.mrb[31].mxu0 }
 0x61d   : > { %6715 = vst.msk [vmem:[%s11020_s28 + $0x278] sm:$0xff] %vm6635_vm0, %v6440_v27 }
 0x620   : > { %v6444_v52 = vpop.f32.mrb[32].mxu0 }
 0x621   : > { %v6445_v44 = vadd.f32 %v11340_v61, %v6444_v52  ;;  %v6446_v3 = vpop.f32.mrb[33].mxu0 }
 0x622   : > { %v6447_v20 = vpop.f32.mrb[34].mxu0 }
 0x623   : > { %6716 = vst.msk [vmem:[%s11020_s28 + $0x280] sm:$0xff] %vm6635_vm0, %v6445_v44  ;;  %v6448_v30 = vadd.f32 %v11340_v61, %v6447_v20  ;;  %v6449_v62 = vpop.f32.mrb[35].mxu0 }
 0x625   : > { %6717 = vst.msk [vmem:[%s11020_s28 + $0x288] sm:$0xff] %vm6635_vm0, %v6448_v30 }
 0x628   : > { %v6452_v11 = vpop.f32.mrb[36].mxu0 }
 0x629   : > { %v6453_v1 = vadd.f32 %v11340_v61, %v6452_v11  ;;  %v6454_v57 = vpop.f32.mrb[37].mxu0 }
 0x62a   : > { %v6455_v25 = vpop.f32.mrb[38].mxu0 }
 0x62b   : > { %6718 = vst.msk [vmem:[%s11020_s28 + $0x290] sm:$0xff] %vm6635_vm0, %v6453_v1  ;;  %v6456_v8 = vadd.f32 %v11340_v61, %v6455_v25  ;;  %v6457_v50 = vpop.f32.mrb[39].mxu0 }
 0x62d   : > { %6719 = vst.msk [vmem:[%s11020_s28 + $0x298] sm:$0xff] %vm6635_vm0, %v6456_v8 }
 0x630   : > { %v6460_v32 = vpop.f32.mrb[40].mxu0 }
 0x631   : > { %v6461_v36 = vadd.f32 %v11340_v61, %v6460_v32  ;;  %v6462_v13 = vpop.f32.mrb[41].mxu0 }
 0x632   : > { %v6463_v21 = vpop.f32.mrb[42].mxu0 }
 0x633   : > { %6720 = vst.msk [vmem:[%s11020_s28 + $0x2a0] sm:$0xff] %vm6635_vm0, %v6461_v36  ;;  %v6464_v5 = vadd.f32 %v11340_v61, %v6463_v21  ;;  %v6465_v22 = vpop.f32.mrb[43].mxu0 }
 0x635   : > { %6721 = vst.msk [vmem:[%s11020_s28 + $0x2a8] sm:$0xff] %vm6635_vm0, %v6464_v5 }
 0x638   : > { %v6468_v28 = vpop.f32.mrb[44].mxu0 }
 0x639   : > { %v6469_v38 = vadd.f32 %v11340_v61, %v6468_v28  ;;  %v6470_v7 = vpop.f32.mrb[45].mxu0 }
 0x63a   : > { %v6471_v37 = vpop.f32.mrb[46].mxu0 }
 0x63b   : > { %6722 = vst.msk [vmem:[%s11020_s28 + $0x2b0] sm:$0xff] %vm6635_vm0, %v6469_v38  ;;  %v6472_v48 = vadd.f32 %v11340_v61, %v6471_v37  ;;  %v6473_v23 = vpop.f32.mrb[47].mxu0 }
 0x63d   : > { %6723 = vst.msk [vmem:[%s11020_s28 + $0x2b8] sm:$0xff] %vm6635_vm0, %v6472_v48 }
 0x640   : > { %v6476_v58 = vpop.f32.mrb[48].mxu0 }
 0x641   : > { %v6477_v60 = vadd.f32 %v11340_v61, %v6476_v58  ;;  %v6478_v31 = vpop.f32.mrb[49].mxu0 }
 0x642   : > { %v6479_v40 = vpop.f32.mrb[50].mxu0 }
 0x643   : > { %6724 = vst.msk [vmem:[%s11020_s28 + $0x2c0] sm:$0xff] %vm6635_vm0, %v6477_v60  ;;  %v6480_v2 = vadd.f32 %v11340_v61, %v6479_v40  ;;  %v6481_v43 = vpop.f32.mrb[51].mxu0 }
 0x645   : > { %6725 = vst.msk [vmem:[%s11020_s28 + $0x2c8] sm:$0xff] %vm6635_vm0, %v6480_v2 }
 0x648   : > { %v6484_v33 = vpop.f32.mrb[52].mxu0 }
 0x649   : > { %v6485_v46 = vadd.f32 %v11340_v61, %v6484_v33  ;;  %v6486_v19 = vpop.f32.mrb[53].mxu0 }
 0x64a   : > { %v6487_v26 = vpop.f32.mrb[54].mxu0 }
 0x64b   : > { %6726 = vst.msk [vmem:[%s11020_s28 + $0x2d0] sm:$0xff] %vm6635_vm0, %v6485_v46  ;;  %v6488_v16 = vadd.f32 %v11340_v61, %v6487_v26  ;;  %v6489_v4 = vpop.f32.mrb[55].mxu0 }
 0x64d   : > { %6727 = vst.msk [vmem:[%s11020_s28 + $0x2d8] sm:$0xff] %vm6635_vm0, %v6488_v16 }
 0x650   : > { %v6492_v6 = vpop.f32.mrb[56].mxu0 }
 0x651   : > { %v6493_v34 = vadd.f32 %v11340_v61, %v6492_v6  ;;  %v6494_v59 = vpop.f32.mrb[57].mxu0 }
 0x652   : > { %v6495_v54 = vpop.f32.mrb[58].mxu0 }
 0x653   : > { %6728 = vst.msk [vmem:[%s11020_s28 + $0x2e0] sm:$0xff] %vm6635_vm0, %v6493_v34  ;;  %v6496_v10 = vadd.f32 %v11340_v61, %v6495_v54  ;;  %v6497_v39 = vpop.f32.mrb[59].mxu0 }
 0x655   : > { %6729 = vst.msk [vmem:[%s11020_s28 + $0x2e8] sm:$0xff] %vm6635_vm0, %v6496_v10 }
 0x658   : > { %v6500_v0 = vpop.f32.mrb[60].mxu0 }
 0x659   : > { %v6501_v53 = vadd.f32 %v11340_v61, %v6500_v0  ;;  %v6502_v29 = vpop.f32.mrb[61].mxu0 }
 0x65a   : > { %v6503_v42 = vpop.f32.mrb[62].mxu0 }
 0x65b   : > { %6730 = vst.msk [vmem:[%s11020_s28 + $0x2f0] sm:$0xff] %vm6635_vm0, %v6501_v53  ;;  %v6504_v55 = vadd.f32 %v11340_v61, %v6503_v42  ;;  %v6505_v63 = vpop.f32.mrb[63].mxu0 }
 0x65d   : > { %6731 = vst.msk [vmem:[%s11020_s28 + $0x2f8] sm:$0xff] %vm6635_vm0, %v6504_v55 }
 0x660   : > { %v6508_v49 = vpop.f32.mrb[64].mxu0 }
 0x661   : > { %v6509_v56 = vadd.f32 %v11340_v61, %v6508_v49  ;;  %v6510_v24 = vpop.f32.mrb[65].mxu0 }
 0x662   : > { %v6511_v35 = vpop.f32.mrb[66].mxu0 }
 0x663   : > { %6732 = vst.msk [vmem:[%s11020_s28 + $0x300] sm:$0xff] %vm6635_vm0, %v6509_v56  ;;  %v6512_v51 = vadd.f32 %v11340_v61, %v6511_v35  ;;  %v6513_v47 = vpop.f32.mrb[67].mxu0 }
 0x665   : > { %6733 = vst.msk [vmem:[%s11020_s28 + $0x308] sm:$0xff] %vm6635_vm0, %v6512_v51 }
 0x668   : > { %v6516_v15 = vpop.f32.mrb[68].mxu0 }
 0x669   : > { %v6517_v9 = vadd.f32 %v11340_v61, %v6516_v15  ;;  %v6518_v12 = vpop.f32.mrb[69].mxu0 }
 0x66a   : > { %v6519_v14 = vpop.f32.mrb[70].mxu0 }
 0x66b   : > { %6734 = vst.msk [vmem:[%s11020_s28 + $0x310] sm:$0xff] %vm6635_vm0, %v6517_v9  ;;  %v6520_v45 = vadd.f32 %v11340_v61, %v6519_v14  ;;  %v6521_v18 = vpop.f32.mrb[71].mxu0 }
 0x66d   : > { %6735 = vst.msk [vmem:[%s11020_s28 + $0x318] sm:$0xff] %vm6635_vm0, %v6520_v45 }
 0x670   : > { %v6524_v17 = vpop.f32.mrb[72].mxu0 }
 0x671   : > { %v6525_v27 = vadd.f32 %v11340_v61, %v6524_v17  ;;  %v6526_v41 = vpop.f32.mrb[73].mxu0 }
 0x672   : > { %v6527_v52 = vpop.f32.mrb[74].mxu0 }
 0x673   : > { %6736 = vst.msk [vmem:[%s11020_s28 + $0x320] sm:$0xff] %vm6635_vm0, %v6525_v27  ;;  %v6528_v44 = vadd.f32 %v11340_v61, %v6527_v52  ;;  %v6529_v3 = vpop.f32.mrb[75].mxu0 }
 0x675   : > { %6737 = vst.msk [vmem:[%s11020_s28 + $0x328] sm:$0xff] %vm6635_vm0, %v6528_v44 }
 0x678   : > { %v6532_v20 = vpop.f32.mrb[76].mxu0 }
 0x679   : > { %v6533_v30 = vadd.f32 %v11340_v61, %v6532_v20  ;;  %v6534_v62 = vpop.f32.mrb[77].mxu0 }
 0x67a   : > { %v6535_v11 = vpop.f32.mrb[78].mxu0 }
 0x67b   : > { %6738 = vst.msk [vmem:[%s11020_s28 + $0x330] sm:$0xff] %vm6635_vm0, %v6533_v30  ;;  %v6536_v1 = vadd.f32 %v11340_v61, %v6535_v11  ;;  %v6537_v57 = vpop.f32.mrb[79].mxu0 }
 0x67d   : > { %6739 = vst.msk [vmem:[%s11020_s28 + $0x338] sm:$0xff] %vm6635_vm0, %v6536_v1 }
 0x680   : > { %v6540_v25 = vpop.f32.mrb[80].mxu0 }
 0x681   : > { %v6541_v8 = vadd.f32 %v11340_v61, %v6540_v25  ;;  %v6542_v50 = vpop.f32.mrb[81].mxu0 }
 0x682   : > { %v6543_v32 = vpop.f32.mrb[82].mxu0 }
 0x683   : > { %6740 = vst.msk [vmem:[%s11020_s28 + $0x340] sm:$0xff] %vm6635_vm0, %v6541_v8  ;;  %v6544_v36 = vadd.f32 %v11340_v61, %v6543_v32  ;;  %v6545_v13 = vpop.f32.mrb[83].mxu0 }
 0x685   : > { %6741 = vst.msk [vmem:[%s11020_s28 + $0x348] sm:$0xff] %vm6635_vm0, %v6544_v36 }
 0x688   : > { %v6548_v21 = vpop.f32.mrb[84].mxu0 }
 0x689   : > { %v6549_v5 = vadd.f32 %v11340_v61, %v6548_v21  ;;  %v6550_v22 = vpop.f32.mrb[85].mxu0 }
 0x68a   : > { %v6551_v28 = vpop.f32.mrb[86].mxu0 }
 0x68b   : > { %6742 = vst.msk [vmem:[%s11020_s28 + $0x350] sm:$0xff] %vm6635_vm0, %v6549_v5  ;;  %v6552_v38 = vadd.f32 %v11340_v61, %v6551_v28  ;;  %v6553_v7 = vpop.f32.mrb[87].mxu0 }
 0x68d   : > { %6743 = vst.msk [vmem:[%s11020_s28 + $0x358] sm:$0xff] %vm6635_vm0, %v6552_v38 }
 0x690   : > { %v6556_v37 = vpop.f32.mrb[88].mxu0 }
 0x691   : > { %v6557_v48 = vadd.f32 %v11340_v61, %v6556_v37  ;;  %v6558_v23 = vpop.f32.mrb[89].mxu0 }
 0x692   : > { %v6559_v58 = vpop.f32.mrb[90].mxu0 }
 0x693   : > { %6744 = vst.msk [vmem:[%s11020_s28 + $0x360] sm:$0xff] %vm6635_vm0, %v6557_v48  ;;  %v6560_v60 = vadd.f32 %v11340_v61, %v6559_v58  ;;  %v6561_v31 = vpop.f32.mrb[91].mxu0 }
 0x695   : > { %6745 = vst.msk [vmem:[%s11020_s28 + $0x368] sm:$0xff] %vm6635_vm0, %v6560_v60 }
 0x698   : > { %v6564_v40 = vpop.f32.mrb[92].mxu0 }
 0x699   : > { %v6565_v2 = vadd.f32 %v11340_v61, %v6564_v40  ;;  %v6566_v43 = vpop.f32.mrb[93].mxu0 }
 0x69a   : > { %v6567_v33 = vpop.f32.mrb[94].mxu0 }
 0x69b   : > { %6746 = vst.msk [vmem:[%s11020_s28 + $0x370] sm:$0xff] %vm6635_vm0, %v6565_v2  ;;  %v6568_v46 = vadd.f32 %v11340_v61, %v6567_v33  ;;  %v6569_v19 = vpop.f32.mrb[95].mxu0 }
 0x69d   : > { %6747 = vst.msk [vmem:[%s11020_s28 + $0x378] sm:$0xff] %vm6635_vm0, %v6568_v46 }
 0x6a0   : > { %v6572_v26 = vpop.f32.mrb[96].mxu0 }
 0x6a1   : > { %v6573_v16 = vadd.f32 %v11340_v61, %v6572_v26  ;;  %v6574_v4 = vpop.f32.mrb[97].mxu0 }
 0x6a2   : > { %v6575_v6 = vpop.f32.mrb[98].mxu0 }
 0x6a3   : > { %6748 = vst.msk [vmem:[%s11020_s28 + $0x380] sm:$0xff] %vm6635_vm0, %v6573_v16  ;;  %v6576_v34 = vadd.f32 %v11340_v61, %v6575_v6  ;;  %v6577_v59 = vpop.f32.mrb[99].mxu0 }
 0x6a5   : > { %6749 = vst.msk [vmem:[%s11020_s28 + $0x388] sm:$0xff] %vm6635_vm0, %v6576_v34 }
 0x6a8   : > { %v6580_v54 = vpop.f32.mrb[100].mxu0 }
 0x6a9   : > { %v6581_v10 = vadd.f32 %v11340_v61, %v6580_v54  ;;  %v6582_v39 = vpop.f32.mrb[101].mxu0 }
 0x6aa   : > { %v6583_v0 = vpop.f32.mrb[102].mxu0 }
 0x6ab   : > { %6750 = vst.msk [vmem:[%s11020_s28 + $0x390] sm:$0xff] %vm6635_vm0, %v6581_v10  ;;  %v6584_v53 = vadd.f32 %v11340_v61, %v6583_v0  ;;  %v6585_v29 = vpop.f32.mrb[103].mxu0 }
 0x6ad   : > { %6751 = vst.msk [vmem:[%s11020_s28 + $0x398] sm:$0xff] %vm6635_vm0, %v6584_v53 }
 0x6b0   : > { %v6588_v42 = vpop.f32.mrb[104].mxu0 }
 0x6b1   : > { %v6589_v55 = vadd.f32 %v11340_v61, %v6588_v42  ;;  %v6590_v63 = vpop.f32.mrb[105].mxu0 }
 0x6b2   : > { %v6591_v49 = vpop.f32.mrb[106].mxu0 }
 0x6b3   : > { %6752 = vst.msk [vmem:[%s11020_s28 + $0x3a0] sm:$0xff] %vm6635_vm0, %v6589_v55  ;;  %v6592_v56 = vadd.f32 %v11340_v61, %v6591_v49  ;;  %v6593_v24 = vpop.f32.mrb[107].mxu0 }
 0x6b5   : > { %6753 = vst.msk [vmem:[%s11020_s28 + $0x3a8] sm:$0xff] %vm6635_vm0, %v6592_v56 }
 0x6b8   : > { %v6596_v35 = vpop.f32.mrb[108].mxu0 }
 0x6b9   : > { %v6597_v51 = vadd.f32 %v11340_v61, %v6596_v35  ;;  %v6598_v47 = vpop.f32.mrb[109].mxu0 }
 0x6ba   : > { %v6599_v15 = vpop.f32.mrb[110].mxu0 }
 0x6bb   : > { %6754 = vst.msk [vmem:[%s11020_s28 + $0x3b0] sm:$0xff] %vm6635_vm0, %v6597_v51  ;;  %v6600_v9 = vadd.f32 %v11340_v61, %v6599_v15  ;;  %v6601_v12 = vpop.f32.mrb[111].mxu0 }
 0x6bd   : > { %6755 = vst.msk [vmem:[%s11020_s28 + $0x3b8] sm:$0xff] %vm6635_vm0, %v6600_v9 }
 0x6c0   : > { %v6604_v14 = vpop.f32.mrb[112].mxu0 }
 0x6c1   : > { %v6605_v45 = vadd.f32 %v11340_v61, %v6604_v14  ;;  %v6606_v18 = vpop.f32.mrb[113].mxu0 }
 0x6c2   : > { %v6607_v17 = vpop.f32.mrb[114].mxu0 }
 0x6c3   : > { %6756 = vst.msk [vmem:[%s11020_s28 + $0x3c0] sm:$0xff] %vm6635_vm0, %v6605_v45  ;;  %v6608_v27 = vadd.f32 %v11340_v61, %v6607_v17  ;;  %v6609_v41 = vpop.f32.mrb[115].mxu0 }
 0x6c5   : > { %6757 = vst.msk [vmem:[%s11020_s28 + $0x3c8] sm:$0xff] %vm6635_vm0, %v6608_v27 }
 0x6c8   : > { %v6612_v52 = vpop.f32.mrb[116].mxu0 }
 0x6c9   : > { %v6613_v44 = vadd.f32 %v11340_v61, %v6612_v52  ;;  %v6614_v3 = vpop.f32.mrb[117].mxu0 }
 0x6ca   : > { %v6615_v20 = vpop.f32.mrb[118].mxu0 }
 0x6cb   : > { %6758 = vst.msk [vmem:[%s11020_s28 + $0x3d0] sm:$0xff] %vm6635_vm0, %v6613_v44  ;;  %v6616_v30 = vadd.f32 %v11340_v61, %v6615_v20  ;;  %v6617_v62 = vpop.f32.mrb[119].mxu0 }
 0x6cd   : > { %6759 = vst.msk [vmem:[%s11020_s28 + $0x3d8] sm:$0xff] %vm6635_vm0, %v6616_v30 }
 0x6d0   : > { %v6620_v11 = vpop.f32.mrb[120].mxu0 }
 0x6d1   : > { %v6621_v1 = vadd.f32 %v11340_v61, %v6620_v11  ;;  %v6622_v57 = vpop.f32.mrb[121].mxu0 }
 0x6d2   : > { %v6623_v25 = vpop.f32.mrb[122].mxu0 }
 0x6d3   : > { %6760 = vst.msk [vmem:[%s11020_s28 + $0x3e0] sm:$0xff] %vm6635_vm0, %v6621_v1  ;;  %v6624_v8 = vadd.f32 %v11340_v61, %v6623_v25  ;;  %v6625_v50 = vpop.f32.mrb[123].mxu0 }
 0x6d5   : > { %6761 = vst.msk [vmem:[%s11020_s28 + $0x3e8] sm:$0xff] %vm6635_vm0, %v6624_v8 }
 0x6d8   : > { %v6628_v32 = vpop.f32.mrb[124].mxu0 }
 0x6d9   : > { %v6629_v36 = vadd.f32 %v11340_v61, %v6628_v32  ;;  %v6630_v13 = vpop.f32.mrb[125].mxu0 }
 0x6da   : > { %v6631_v21 = vpop.f32.mrb[126].mxu0 }
 0x6db   : > { %6762 = vst.msk [vmem:[%s11020_s28 + $0x3f0] sm:$0xff] %vm6635_vm0, %v6629_v36  ;;  %v6632_v5 = vadd.f32 %v11340_v61, %v6631_v21  ;;  %v6633_v22 = vpop.f32.mrb[127].mxu0 }
 0x6dd   : > { %6763 = vst.msk [vmem:[%s11020_s28 + $0x3f8] sm:$0xff] %vm6635_vm0, %v6632_v5 }
 0x6de PF: > { %s21_s17 = sadd.s32 1, %s7309_s17  }
 0x6df   : > { %p18_p4 = scmp.ge.s32.totalorder %s21_s17, 4  }
 0x6e1   :  { %20 = sbr.rel (!%p18_p4) target bundleno = 1 (0x1), region = 94 }

</bundles_post_ra>
